<compile_context>
chip_gen: v7x
topology: tpu7x:2x2x1
jax: 0.10.0
libtpu: 0.0.40
codegen_flags: <defaults>
</compile_context>

<pallas_src>
import functools

import jax
import jax.numpy as jnp
from jax.experimental import pallas as pl
from jax.experimental.pallas import tpu as pltpu


G_ACTS = ("lrelu", "lrelu", "tanh")
S_ACTS = ("lrelu", "lrelu", "none")
D_ACTS = ("lrelu", "lrelu", "none")


# ----------------------------------------------------------------------------
# Fused 3-layer conv-net kernel (optionally with a loss-reduction epilogue)
# ----------------------------------------------------------------------------
def _fused_net3_kernel(*refs, H, W, CPAD, acts, loss_mode, n_valid):
    """One batch element of a 3x(conv3x3 + act) net, fully VMEM-resident.

    refs (loss_mode != "seg_ce"):
      x_ref (1,H,W,CPAD), w1,b1,w2,b2,w3,b3, o_ref, pad_buf
    refs (loss_mode == "seg_ce"):
      x_ref, w1,b1,w2,b2,w3,b3, lab_ref (1,H,W,CPAD), o_ref, pad_buf

    wk: (9*CPAD, CPAD) bf16 im2col weights, bk: (1, CPAD) f32 bias.
    o_ref: (1,H,W,CPAD) image output, or (1,1) f32 loss-sum accumulator.
    pad_buf: (H+2, W+2, CPAD) f32 VMEM halo scratch shared by all 3 layers.
    """
    if loss_mode == "seg_ce":
        (x_ref, w1_ref, b1_ref, w2_ref, b2_ref, w3_ref, b3_ref,
         lab_ref, o_ref, pad_buf) = refs
    else:
        (x_ref, w1_ref, b1_ref, w2_ref, b2_ref, w3_ref, b3_ref,
         o_ref, pad_buf) = refs
        lab_ref = None

    # Zero only the halo BORDER each grid step (the interior is overwritten
    # below).  Scratch persists across steps and may be per-core under
    # megacore, so the borders are re-written every step for correctness.
    zrow = jnp.zeros((1, W + 2, CPAD), dtype=jnp.float32)
    pad_buf[0:1, :, :] = zrow
    pad_buf[H + 1:H + 2, :, :] = zrow
    zcol = jnp.zeros((H + 2, 1, CPAD), dtype=jnp.float32)
    pad_buf[:, 0:1, :] = zcol
    pad_buf[:, W + 1:W + 2, :] = zcol

    # Place this batch element's input in the interior (input may be bf16 when
    # it is an intermediate fake image from a previous fused call).
    pad_buf[1:H + 1, 1:W + 1, :] = x_ref[0].astype(jnp.float32)

    def conv3x3_im2col(w_ref, b_ref, act):
        # im2col: 9 shifted windows concatenated along lanes -> one MXU matmul
        cols = jnp.concatenate(
            [pad_buf[dy:dy + H, dx:dx + W, :].astype(jnp.bfloat16)
             for dy in range(3) for dx in range(3)],
            axis=-1)                                            # (H, W, 9*CPAD)
        acc = jax.lax.dot_general(
            cols, w_ref[...],
            dimension_numbers=(((2,), (0,)), ((), ())),
            preferred_element_type=jnp.float32)                 # (H, W, CPAD)
        acc = acc + b_ref[0, :]
        if act == "lrelu":
            acc = jnp.where(acc > 0, acc, 0.2 * acc)
        elif act == "tanh":
            acc = jnp.tanh(acc)
        return acc

    a = conv3x3_im2col(w1_ref, b1_ref, acts[0])
    pad_buf[1:H + 1, 1:W + 1, :] = a          # hidden act stays in VMEM
    a = conv3x3_im2col(w2_ref, b2_ref, acts[1])
    pad_buf[1:H + 1, 1:W + 1, :] = a
    a = conv3x3_im2col(w3_ref, b3_ref, acts[2])   # (H, W, CPAD) f32

    if loss_mode is None:
        o_ref[0] = a.astype(o_ref.dtype)          # lane-dense (CPAD=128) store
        return

    # ---- loss epilogue: accumulate un-normalized sum over the batch grid ----
    @pl.when(pl.program_id(0) == 0)
    def _():
        o_ref[...] = jnp.zeros_like(o_ref)

    ch = jax.lax.broadcasted_iota(jnp.int32, a.shape, 2)   # channel index
    if loss_mode in ("gan_real", "gan_fake"):
        # non-saturating GAN loss: sum(softplus(sign * pred)) over real channels
        sign = -1.0 if loss_mode == "gan_real" else 1.0
        valid = (ch < n_valid).astype(jnp.float32)
        partial = jnp.sum(jax.nn.softplus(sign * a) * valid)
    else:  # "seg_ce": per-pixel cross entropy vs one-hot label (padded chans masked)
        lg = jnp.where(ch < n_valid, a, -1e30)
        m = jnp.max(lg, axis=-1, keepdims=True)
        lse = m + jnp.log(jnp.sum(jnp.exp(lg - m), axis=-1, keepdims=True))
        logp = lg - lse
        partial = -jnp.sum(lab_ref[0].astype(jnp.float32) * logp)
    o_ref[...] = o_ref[...] + partial.reshape(1, 1)


def fused_net3(x_pad, packed, acts, *, loss_mode=None, label_pad=None,
               n_valid=0, out_dtype=jnp.float32):
    """Run a fused 3-layer conv net over the batch grid.

    x_pad: (B, H, W, CPAD) f32 or bf16, channels zero-padded to CPAD.
    packed: [(w1,b1),(w2,b2),(w3,b3)] with wk (9*CPAD,CPAD) bf16, bk (1,CPAD) f32.
    Returns (B,H,W,CPAD) out_dtype, or a (1,1) f32 un-normalized loss sum.
    """
    B, H, W, CPAD = x_pad.shape
    (w1, b1), (w2, b2), (w3, b3) = packed
    kernel = functools.partial(_fused_net3_kernel, H=H, W=W, CPAD=CPAD,
                               acts=acts, loss_mode=loss_mode, n_valid=n_valid)

    x_spec = pl.BlockSpec((1, H, W, CPAD), lambda b: (b, 0, 0, 0))
    w_spec = pl.BlockSpec((9 * CPAD, CPAD), lambda b: (0, 0))
    b_spec = pl.BlockSpec((1, CPAD), lambda b: (0, 0))
    in_specs = [x_spec, w_spec, b_spec, w_spec, b_spec, w_spec, b_spec]
    operands = [x_pad, w1, b1, w2, b2, w3, b3]
    if loss_mode == "seg_ce":
        in_specs.append(x_spec)
        operands.append(label_pad)

    if loss_mode is None:
        out_shape = jax.ShapeDtypeStruct((B, H, W, CPAD), out_dtype)
        out_spec = pl.BlockSpec((1, H, W, CPAD), lambda b: (b, 0, 0, 0))
        dims = ("parallel",)     # batch shards across v7x's 2 TensorCores
    else:
        out_shape = jax.ShapeDtypeStruct((1, 1), jnp.float32)
        out_spec = pl.BlockSpec((1, 1), lambda b: (0, 0))
        dims = ("arbitrary",)    # (1,1) output is a cross-batch accumulator

    return pl.pallas_call(
        kernel,
        out_shape=out_shape,
        grid=(B,),
        in_specs=in_specs,
        out_specs=out_spec,
        scratch_shapes=[pltpu.VMEM((H + 2, W + 2, CPAD), jnp.float32)],
        compiler_params=pltpu.CompilerParams(dimension_semantics=dims),
    )(*operands)


# ----------------------------------------------------------------------------
# Deterministic parameter construction + MXU-friendly packing
# ----------------------------------------------------------------------------
def _round_up(x, m):
    return ((x + m - 1) // m) * m


def xavier_conv(key, cin, cout, k=3, gain=0.02):
    fan_in = cin * k * k
    fan_out = cout * k * k
    std = gain * (2.0 / (fan_in + fan_out)) ** 0.5
    w = std * jax.random.normal(key, (k, k, cin, cout), jnp.float32)
    b = jnp.zeros((cout,), jnp.float32)
    return w, b


def pack_conv3x3(w, b, cpad):
    """(3,3,cin,cout) f32 -> ((9*cpad, cpad) bf16, (1, cpad) f32), zero padded."""
    _, _, cin, cout = w.shape
    wp = jnp.zeros((3, 3, cpad, cpad), jnp.float32).at[:, :, :cin, :cout].set(w)
    wp = wp.reshape(9 * cpad, cpad).astype(jnp.bfloat16)
    bp = jnp.zeros((1, cpad), jnp.float32).at[0, :cout].set(b)
    return wp, bp


def _pad_channels(x_nhwc, cpad):
    c = x_nhwc.shape[-1]
    return jnp.pad(x_nhwc, ((0, 0), (0, 0), (0, 0), (0, cpad - c)))


# ----------------------------------------------------------------------------
# Model
# ----------------------------------------------------------------------------
class UnpairedModelPallas:
    """JAX/Pallas re-implementation of Unpaired_model.forward (stand-in sub-nets)."""

    def __init__(self, num_classes=4, hidden=16, lambda_segment=1.0, no_EMA=False,
                 key=jax.random.PRNGKey(0)):
        self.num_classes = num_classes
        self.lambda_segment = lambda_segment
        self.no_EMA = no_EMA
        self.cpad = max(128, _round_up(max(num_classes, hidden, 3, 1), 128))
        ks = jax.random.split(key, 9)
        # netG stand-in (OASIS_Generator): label map -> RGB image
        self.G_raw = [xavier_conv(ks[0], num_classes, hidden),
                      xavier_conv(ks[1], hidden, hidden),
                      xavier_conv(ks[2], hidden, 3)]
        # netS stand-in (OASIS_Discriminator as segmenter): image -> class logits
        self.S_raw = [xavier_conv(ks[3], 3, hidden),
                      xavier_conv(ks[4], hidden, hidden),
                      xavier_conv(ks[5], hidden, num_classes)]
        # netDu stand-in (TileStyleGAN2Discriminator): image -> per-pixel logit
        self.Du_raw = [xavier_conv(ks[6], 3, hidden),
                       xavier_conv(ks[7], hidden, hidden),
                       xavier_conv(ks[8], hidden, 1)]
        pack = lambda raw: [pack_conv3x3(w, b, self.cpad) for (w, b) in raw]
        self.Gp = pack(self.G_raw)
        self.Sp = pack(self.S_raw)
        self.Dup = pack(self.Du_raw)
        # netEMA = deepcopy(netG) at init -> identical parameters.
        self.EMAp = None if no_EMA else [(w, b) for (w, b) in self.Gp]

    # --- forward, mirroring the PyTorch mode dispatch ---
    def forward(self, image, label, mode, losses_computer=None):
        # PyTorch inputs are NCHW; kernels use NHWC with channels padded to cpad.
        image_nhwc = jnp.transpose(image, (0, 2, 3, 1)).astype(jnp.float32)
        label_nhwc = jnp.transpose(label, (0, 2, 3, 1)).astype(jnp.float32)
        B, H, W, _ = label_nhwc.shape
        label_pad = _pad_channels(label_nhwc, self.cpad)
        image_pad = _pad_channels(image_nhwc, self.cpad)
        npix = B * H * W
        nc = self.num_classes

        if mode == "losses_G":
            # intermediate fake stays bf16 (only consumed by other kernels)
            fake = fused_net3(label_pad, self.Gp, G_ACTS, out_dtype=jnp.bfloat16)
            seg_sum = fused_net3(fake, self.Sp, S_ACTS, loss_mode="seg_ce",
                                 label_pad=label_pad, n_valid=nc)[0, 0]
            loss_G_seg = self.lambda_segment * seg_sum / npix
            gan_sum = fused_net3(fake, self.Dup, D_ACTS, loss_mode="gan_real",
                                 n_valid=1)[0, 0]
            loss_G_GAN = gan_sum / npix
            loss_G = loss_G_seg + loss_G_GAN
            loss_G_mask = None  # opt.add_mask stand-in disabled
            return loss_G, [loss_G_seg, loss_G_GAN, loss_G_mask]

        if mode == "losses_S":
            fake = jax.lax.stop_gradient(
                fused_net3(label_pad, self.Gp, G_ACTS, out_dtype=jnp.bfloat16))
            s_sum = fused_net3(fake, self.Sp, S_ACTS, loss_mode="seg_ce",
                               label_pad=label_pad, n_valid=nc)[0, 0]
            loss_S_fake = s_sum / npix
            return loss_S_fake, [loss_S_fake]

        if mode == "losses_Du":
            fake = jax.lax.stop_gradient(
                fused_net3(label_pad, self.Gp, G_ACTS, out_dtype=jnp.bfloat16))
            fake_sum = fused_net3(fake, self.Dup, D_ACTS, loss_mode="gan_fake",
                                  n_valid=1)[0, 0]
            real_sum = fused_net3(image_pad, self.Dup, D_ACTS, loss_mode="gan_real",
                                  n_valid=1)[0, 0]
            loss_Du_fake = fake_sum / npix
            loss_Du_real = real_sum / npix
            loss_Du = loss_Du_fake + loss_Du_real
            return loss_Du, [loss_Du_fake, loss_Du_real]

        if mode == "generate":
            params = self.Gp if self.no_EMA else self.EMAp
            fake = fused_net3(label_pad, params, G_ACTS)          # f32 final out
            return jnp.transpose(fake[..., :3], (0, 3, 1, 2))     # back to NCHW

        if mode == "segment_real":
            seg = fused_net3(image_pad, self.Sp, S_ACTS)
            return jnp.transpose(seg[..., :nc], (0, 3, 1, 2))

        if mode == "segment_fake":
            params = self.Gp if self.no_EMA else self.EMAp
            fake = fused_net3(label_pad, params, G_ACTS, out_dtype=jnp.bfloat16)
            seg = fused_net3(fake, self.Sp, S_ACTS)
            return jnp.transpose(seg[..., :nc], (0, 3, 1, 2))

        if mode == "Du_regularize":
            # TODO(synk): R1 penalty needs autodiff of netDu w.r.t. its input
            # through pallas_call (no custom_vjp defined); not implemented.
            raise NotImplementedError("Du_regularize not supported in Pallas port")

        raise ValueError(f"unknown mode {mode}")


# ----------------------------------------------------------------------------
# Pure-JAX reference (same bf16 matmul path) for a numerical spot-check
# ----------------------------------------------------------------------------
def _reference_net(x_nhwc, raw_params, acts):
    h = x_nhwc.astype(jnp.float32)
    for (w, b), act in zip(raw_params, acts):
        h = jax.lax.conv_general_dilated(
            h.astype(jnp.bfloat16), w.astype(jnp.bfloat16),
            window_strides=(1, 1), padding="SAME",
            dimension_numbers=("NHWC", "HWIO", "NHWC"),
            preferred_element_type=jnp.float32) + b
        if act == "lrelu":
            h = jnp.where(h > 0, h, 0.2 * h)
        elif act == "tanh":
            h = jnp.tanh(h)
    return h


# ----------------------------------------------------------------------------
# Demo
# ----------------------------------------------------------------------------
if __name__ == "__main__":
    key = jax.random.PRNGKey(0)
    k_model, k_lbl, k_img = jax.random.split(key, 3)

    B, nc, H, W = 2, 4, 16, 16
    model = UnpairedModelPallas(num_classes=nc, hidden=16, key=k_model)

    cls = jax.random.randint(k_lbl, (B, H, W), 0, nc)
    label = jax.nn.one_hot(cls, nc, axis=1).astype(jnp.float32)   # (B, nc, H, W)
    image = jax.random.normal(k_img, (B, 3, H, W), jnp.float32)   # (B, 3, H, W)

    fake = model.forward(image, label, "generate")
    jax.block_until_ready(fake)
    assert fake.shape == (B, 3, H, W)
    assert bool(jnp.all(jnp.isfinite(fake)))

    # spot-check the fused im2col conv pipeline against a pure-JAX reference
    ref = _reference_net(jnp.transpose(label, (0, 2, 3, 1)), model.G_raw, G_ACTS)
    ref_nchw = jnp.transpose(ref, (0, 3, 1, 2))
    err = float(jnp.max(jnp.abs(fake - ref_nchw)))
    scale = float(jnp.max(jnp.abs(ref_nchw))) + 1e-12
    assert err / scale < 5e-2, f"fused conv mismatch: rel err {err / scale}"

    seg = model.forward(image, label, "segment_real")
    jax.block_until_ready(seg)
    assert seg.shape == (B, nc, H, W)

    seg_f = model.forward(image, label, "segment_fake")
    jax.block_until_ready(seg_f)
    assert seg_f.shape == (B, nc, H, W)

    loss_G, g_parts = model.forward(image, label, "losses_G")
    jax.block_until_ready(loss_G)
    assert loss_G.shape == () and bool(jnp.isfinite(loss_G))

    loss_Du, du_parts = model.forward(image, label, "losses_Du")
    jax.block_until_ready(loss_Du)
    assert loss_Du.shape == () and bool(jnp.isfinite(loss_Du))

    loss_S, s_parts = model.forward(image, label, "losses_S")
    jax.block_until_ready(loss_S)
    assert loss_S.shape == () and bool(jnp.isfinite(loss_S))

    print("KERNEL_OK")
</pallas_src>

<mosaic_0001>
module attributes {stable_mosaic.version = 11 : i64} {
  func.func @_fused_net3_kernel(%arg0: i32, %arg1: memref<1x16x16x128xf32, #tpu.memory_space<vmem>>, %arg2: memref<1152x128xbf16, #tpu.memory_space<vmem>>, %arg3: memref<1x128xf32, #tpu.memory_space<vmem>>, %arg4: memref<1152x128xbf16, #tpu.memory_space<vmem>>, %arg5: memref<1x128xf32, #tpu.memory_space<vmem>>, %arg6: memref<1152x128xbf16, #tpu.memory_space<vmem>>, %arg7: memref<1x128xf32, #tpu.memory_space<vmem>>, %arg8: memref<1x16x16x128xf32, #tpu.memory_space<vmem>>, %arg9: memref<18x18x128xf32, #tpu.memory_space<vmem>>) attributes {dimension_semantics = [#tpu.dimension_semantics<parallel>], iteration_bounds = array<i64: 2>, scalar_prefetch = 0 : i64, scratch_operands = 1 : i64, tpu.core_type = #tpu.core_type<tc>, window_params = [{transform_indices = @transform_0, window_bounds = array<i64: 1, 16, 16, 128>}, {pipeline_mode = #tpu.pipeline_mode<synchronous>, transform_indices = @transform_1, window_bounds = array<i64: 1152, 128>}, {pipeline_mode = #tpu.pipeline_mode<synchronous>, transform_indices = @transform_2, window_bounds = array<i64: 1, 128>}, {pipeline_mode = #tpu.pipeline_mode<synchronous>, transform_indices = @transform_3, window_bounds = array<i64: 1152, 128>}, {pipeline_mode = #tpu.pipeline_mode<synchronous>, transform_indices = @transform_4, window_bounds = array<i64: 1, 128>}, {pipeline_mode = #tpu.pipeline_mode<synchronous>, transform_indices = @transform_5, window_bounds = array<i64: 1152, 128>}, {pipeline_mode = #tpu.pipeline_mode<synchronous>, transform_indices = @transform_6, window_bounds = array<i64: 1, 128>}, {transform_indices = @transform_7, window_bounds = array<i64: 1, 16, 16, 128>}]} {
    %cst = arith.constant 0.000000e+00 : f32
    %0 = vector.broadcast %cst : f32 to vector<1x18x128xf32>
    %c0 = arith.constant 0 : index
    %c0_0 = arith.constant 0 : index
    %c0_1 = arith.constant 0 : index
    %1 = vector.load %arg9[%c0, %c0_0, %c0_1] : memref<18x18x128xf32, #tpu.memory_space<vmem>>, vector<1x18x128xf32>
    tpu.vector_store %arg9[%c0, %c0_0, %c0_1], %0 {strides = array<i32>} : memref<18x18x128xf32, #tpu.memory_space<vmem>>, vector<1x18x128xf32>,
    %c17 = arith.constant 17 : index
    %c0_2 = arith.constant 0 : index
    %c0_3 = arith.constant 0 : index
    %2 = vector.load %arg9[%c17, %c0_2, %c0_3] : memref<18x18x128xf32, #tpu.memory_space<vmem>>, vector<1x18x128xf32>
    tpu.vector_store %arg9[%c17, %c0_2, %c0_3], %0 {strides = array<i32>} : memref<18x18x128xf32, #tpu.memory_space<vmem>>, vector<1x18x128xf32>,
    %cst_4 = arith.constant 0.000000e+00 : f32
    %3 = vector.broadcast %cst_4 : f32 to vector<18x1x128xf32>
    %c0_5 = arith.constant 0 : index
    %c0_6 = arith.constant 0 : index
    %c0_7 = arith.constant 0 : index
    %4 = vector.load %arg9[%c0_5, %c0_6, %c0_7] : memref<18x18x128xf32, #tpu.memory_space<vmem>>, vector<18x1x128xf32>
    tpu.vector_store %arg9[%c0_5, %c0_6, %c0_7], %3 {strides = array<i32>} : memref<18x18x128xf32, #tpu.memory_space<vmem>>, vector<18x1x128xf32>,
    %c0_8 = arith.constant 0 : index
    %c17_9 = arith.constant 17 : index
    %c0_10 = arith.constant 0 : index
    %5 = vector.load %arg9[%c0_8, %c17_9, %c0_10] : memref<18x18x128xf32, #tpu.memory_space<vmem>>, vector<18x1x128xf32>
    tpu.vector_store %arg9[%c0_8, %c17_9, %c0_10], %3 {strides = array<i32>} : memref<18x18x128xf32, #tpu.memory_space<vmem>>, vector<18x1x128xf32>,
    %c0_11 = arith.constant 0 : index
    %c0_12 = arith.constant 0 : index
    %c0_13 = arith.constant 0 : index
    %c0_14 = arith.constant 0 : index
    %6 = vector.load %arg1[%c0_11, %c0_12, %c0_13, %c0_14] : memref<1x16x16x128xf32, #tpu.memory_space<vmem>>, vector<1x16x16x128xf32>
    %7 = vector.shape_cast %6 : vector<1x16x16x128xf32> to vector<16x16x128xf32>
    %c1 = arith.constant 1 : index
    %c1_15 = arith.constant 1 : index
    %c0_16 = arith.constant 0 : index
    %8 = vector.load %arg9[%c1, %c1_15, %c0_16] : memref<18x18x128xf32, #tpu.memory_space<vmem>>, vector<16x16x128xf32>
    tpu.vector_store %arg9[%c1, %c1_15, %c0_16], %7 {strides = array<i32>} : memref<18x18x128xf32, #tpu.memory_space<vmem>>, vector<16x16x128xf32>,
    %c0_17 = arith.constant 0 : index
    %c0_18 = arith.constant 0 : index
    %c0_19 = arith.constant 0 : index
    %9 = vector.load %arg9[%c0_17, %c0_18, %c0_19] : memref<18x18x128xf32, #tpu.memory_space<vmem>>, vector<16x16x128xf32>
    %10 = arith.truncf %9 : vector<16x16x128xf32> to vector<16x16x128xbf16>
    %c0_20 = arith.constant 0 : index
    %c1_21 = arith.constant 1 : index
    %c0_22 = arith.constant 0 : index
    %11 = vector.load %arg9[%c0_20, %c1_21, %c0_22] : memref<18x18x128xf32, #tpu.memory_space<vmem>>, vector<16x16x128xf32>
    %12 = arith.truncf %11 : vector<16x16x128xf32> to vector<16x16x128xbf16>
    %c0_23 = arith.constant 0 : index
    %c2 = arith.constant 2 : index
    %c0_24 = arith.constant 0 : index
    %13 = vector.load %arg9[%c0_23, %c2, %c0_24] : memref<18x18x128xf32, #tpu.memory_space<vmem>>, vector<16x16x128xf32>
    %14 = arith.truncf %13 : vector<16x16x128xf32> to vector<16x16x128xbf16>
    %c1_25 = arith.constant 1 : index
    %c0_26 = arith.constant 0 : index
    %c0_27 = arith.constant 0 : index
    %15 = vector.load %arg9[%c1_25, %c0_26, %c0_27] : memref<18x18x128xf32, #tpu.memory_space<vmem>>, vector<16x16x128xf32>
    %16 = arith.truncf %15 : vector<16x16x128xf32> to vector<16x16x128xbf16>
    %c1_28 = arith.constant 1 : index
    %c1_29 = arith.constant 1 : index
    %c0_30 = arith.constant 0 : index
    %17 = vector.load %arg9[%c1_28, %c1_29, %c0_30] : memref<18x18x128xf32, #tpu.memory_space<vmem>>, vector<16x16x128xf32>
    %18 = arith.truncf %17 : vector<16x16x128xf32> to vector<16x16x128xbf16>
    %c1_31 = arith.constant 1 : index
    %c2_32 = arith.constant 2 : index
    %c0_33 = arith.constant 0 : index
    %19 = vector.load %arg9[%c1_31, %c2_32, %c0_33] : memref<18x18x128xf32, #tpu.memory_space<vmem>>, vector<16x16x128xf32>
    %20 = arith.truncf %19 : vector<16x16x128xf32> to vector<16x16x128xbf16>
    %c2_34 = arith.constant 2 : index
    %c0_35 = arith.constant 0 : index
    %c0_36 = arith.constant 0 : index
    %21 = vector.load %arg9[%c2_34, %c0_35, %c0_36] : memref<18x18x128xf32, #tpu.memory_space<vmem>>, vector<16x16x128xf32>
    %22 = arith.truncf %21 : vector<16x16x128xf32> to vector<16x16x128xbf16>
    %c2_37 = arith.constant 2 : index
    %c1_38 = arith.constant 1 : index
    %c0_39 = arith.constant 0 : index
    %23 = vector.load %arg9[%c2_37, %c1_38, %c0_39] : memref<18x18x128xf32, #tpu.memory_space<vmem>>, vector<16x16x128xf32>
    %24 = arith.truncf %23 : vector<16x16x128xf32> to vector<16x16x128xbf16>
    %c2_40 = arith.constant 2 : index
    %c2_41 = arith.constant 2 : index
    %c0_42 = arith.constant 0 : index
    %25 = vector.load %arg9[%c2_40, %c2_41, %c0_42] : memref<18x18x128xf32, #tpu.memory_space<vmem>>, vector<16x16x128xf32>
    %26 = arith.truncf %25 : vector<16x16x128xf32> to vector<16x16x128xbf16>
    %27 = tpu.concatenate %10, %12, %14, %16, %18, %20, %22, %24, %26 in 2 : vector<16x16x128xbf16>, vector<16x16x128xbf16>, vector<16x16x128xbf16>, vector<16x16x128xbf16>, vector<16x16x128xbf16>, vector<16x16x128xbf16>, vector<16x16x128xbf16>, vector<16x16x128xbf16>, vector<16x16x128xbf16> -> vector<16x16x1152xbf16>
    %c0_43 = arith.constant 0 : index
    %c0_44 = arith.constant 0 : index
    %28 = vector.load %arg2[%c0_43, %c0_44] : memref<1152x128xbf16, #tpu.memory_space<vmem>>, vector<1152x128xbf16>
    %cst_45 = arith.constant dense<0.000000e+00> : vector<16x16x128xf32>
    %29 = tpu.matmul %27, %28, %cst_45 {dimension_numbers = #tpu.dot_dimension_numbers<[2], [0], [0, 1], [1], [0, 0, 0, 1, 1, 1], [], []>} : vector<16x16x1152xbf16>, vector<1152x128xbf16>, vector<16x16x128xf32> -> vector<16x16x128xf32>
    %c0_46 = arith.constant 0 : index
    %c0_47 = arith.constant 0 : index
    %30 = vector.load %arg3[%c0_46, %c0_47] : memref<1x128xf32, #tpu.memory_space<vmem>>, vector<1x128xf32>
    %31 = vector.shape_cast %30 : vector<1x128xf32> to vector<128xf32>
    %32 = vector.shape_cast %31 : vector<128xf32> to vector<1x1x128xf32>
    %33 = vector.broadcast %32 : vector<1x1x128xf32> to vector<16x16x128xf32>
    %34 = arith.addf %29, %33 : vector<16x16x128xf32>
    %cst_48 = arith.constant 0.000000e+00 : f32
    %35 = vector.broadcast %cst_48 : f32 to vector<16x16x128xf32>
    %36 = arith.cmpf ogt, %34, %35 : vector<16x16x128xf32>
    %cst_49 = arith.constant 2.000000e-01 : f32
    %37 = vector.broadcast %cst_49 : f32 to vector<16x16x128xf32>
    %38 = arith.mulf %37, %34 : vector<16x16x128xf32>
    %39 = arith.select %36, %34, %38 : vector<16x16x128xi1>, vector<16x16x128xf32>
    %c1_50 = arith.constant 1 : index
    %c1_51 = arith.constant 1 : index
    %c0_52 = arith.constant 0 : index
    %40 = vector.load %arg9[%c1_50, %c1_51, %c0_52] : memref<18x18x128xf32, #tpu.memory_space<vmem>>, vector<16x16x128xf32>
    tpu.vector_store %arg9[%c1_50, %c1_51, %c0_52], %39 {strides = array<i32>} : memref<18x18x128xf32, #tpu.memory_space<vmem>>, vector<16x16x128xf32>,
    %c0_53 = arith.constant 0 : index
    %c0_54 = arith.constant 0 : index
    %c0_55 = arith.constant 0 : index
    %41 = vector.load %arg9[%c0_53, %c0_54, %c0_55] : memref<18x18x128xf32, #tpu.memory_space<vmem>>, vector<16x16x128xf32>
    %42 = arith.truncf %41 : vector<16x16x128xf32> to vector<16x16x128xbf16>
    %c0_56 = arith.constant 0 : index
    %c1_57 = arith.constant 1 : index
    %c0_58 = arith.constant 0 : index
    %43 = vector.load %arg9[%c0_56, %c1_57, %c0_58] : memref<18x18x128xf32, #tpu.memory_space<vmem>>, vector<16x16x128xf32>
    %44 = arith.truncf %43 : vector<16x16x128xf32> to vector<16x16x128xbf16>
    %c0_59 = arith.constant 0 : index
    %c2_60 = arith.constant 2 : index
    %c0_61 = arith.constant 0 : index
    %45 = vector.load %arg9[%c0_59, %c2_60, %c0_61] : memref<18x18x128xf32, #tpu.memory_space<vmem>>, vector<16x16x128xf32>
    %46 = arith.truncf %45 : vector<16x16x128xf32> to vector<16x16x128xbf16>
    %c1_62 = arith.constant 1 : index
    %c0_63 = arith.constant 0 : index
    %c0_64 = arith.constant 0 : index
    %47 = vector.load %arg9[%c1_62, %c0_63, %c0_64] : memref<18x18x128xf32, #tpu.memory_space<vmem>>, vector<16x16x128xf32>
    %48 = arith.truncf %47 : vector<16x16x128xf32> to vector<16x16x128xbf16>
    %c1_65 = arith.constant 1 : index
    %c1_66 = arith.constant 1 : index
    %c0_67 = arith.constant 0 : index
    %49 = vector.load %arg9[%c1_65, %c1_66, %c0_67] : memref<18x18x128xf32, #tpu.memory_space<vmem>>, vector<16x16x128xf32>
    %50 = arith.truncf %49 : vector<16x16x128xf32> to vector<16x16x128xbf16>
    %c1_68 = arith.constant 1 : index
    %c2_69 = arith.constant 2 : index
    %c0_70 = arith.constant 0 : index
    %51 = vector.load %arg9[%c1_68, %c2_69, %c0_70] : memref<18x18x128xf32, #tpu.memory_space<vmem>>, vector<16x16x128xf32>
    %52 = arith.truncf %51 : vector<16x16x128xf32> to vector<16x16x128xbf16>
    %c2_71 = arith.constant 2 : index
    %c0_72 = arith.constant 0 : index
    %c0_73 = arith.constant 0 : index
    %53 = vector.load %arg9[%c2_71, %c0_72, %c0_73] : memref<18x18x128xf32, #tpu.memory_space<vmem>>, vector<16x16x128xf32>
    %54 = arith.truncf %53 : vector<16x16x128xf32> to vector<16x16x128xbf16>
    %c2_74 = arith.constant 2 : index
    %c1_75 = arith.constant 1 : index
    %c0_76 = arith.constant 0 : index
    %55 = vector.load %arg9[%c2_74, %c1_75, %c0_76] : memref<18x18x128xf32, #tpu.memory_space<vmem>>, vector<16x16x128xf32>
    %56 = arith.truncf %55 : vector<16x16x128xf32> to vector<16x16x128xbf16>
    %c2_77 = arith.constant 2 : index
    %c2_78 = arith.constant 2 : index
    %c0_79 = arith.constant 0 : index
    %57 = vector.load %arg9[%c2_77, %c2_78, %c0_79] : memref<18x18x128xf32, #tpu.memory_space<vmem>>, vector<16x16x128xf32>
    %58 = arith.truncf %57 : vector<16x16x128xf32> to vector<16x16x128xbf16>
    %59 = tpu.concatenate %42, %44, %46, %48, %50, %52, %54, %56, %58 in 2 : vector<16x16x128xbf16>, vector<16x16x128xbf16>, vector<16x16x128xbf16>, vector<16x16x128xbf16>, vector<16x16x128xbf16>, vector<16x16x128xbf16>, vector<16x16x128xbf16>, vector<16x16x128xbf16>, vector<16x16x128xbf16> -> vector<16x16x1152xbf16>
    %c0_80 = arith.constant 0 : index
    %c0_81 = arith.constant 0 : index
    %60 = vector.load %arg4[%c0_80, %c0_81] : memref<1152x128xbf16, #tpu.memory_space<vmem>>, vector<1152x128xbf16>
    %cst_82 = arith.constant dense<0.000000e+00> : vector<16x16x128xf32>
    %61 = tpu.matmul %59, %60, %cst_82 {dimension_numbers = #tpu.dot_dimension_numbers<[2], [0], [0, 1], [1], [0, 0, 0, 1, 1, 1], [], []>} : vector<16x16x1152xbf16>, vector<1152x128xbf16>, vector<16x16x128xf32> -> vector<16x16x128xf32>
    %c0_83 = arith.constant 0 : index
    %c0_84 = arith.constant 0 : index
    %62 = vector.load %arg5[%c0_83, %c0_84] : memref<1x128xf32, #tpu.memory_space<vmem>>, vector<1x128xf32>
    %63 = vector.shape_cast %62 : vector<1x128xf32> to vector<128xf32>
    %64 = vector.shape_cast %63 : vector<128xf32> to vector<1x1x128xf32>
    %65 = vector.broadcast %64 : vector<1x1x128xf32> to vector<16x16x128xf32>
    %66 = arith.addf %61, %65 : vector<16x16x128xf32>
    %cst_85 = arith.constant 0.000000e+00 : f32
    %67 = vector.broadcast %cst_85 : f32 to vector<16x16x128xf32>
    %68 = arith.cmpf ogt, %66, %67 : vector<16x16x128xf32>
    %cst_86 = arith.constant 2.000000e-01 : f32
    %69 = vector.broadcast %cst_86 : f32 to vector<16x16x128xf32>
    %70 = arith.mulf %69, %66 : vector<16x16x128xf32>
    %71 = arith.select %68, %66, %70 : vector<16x16x128xi1>, vector<16x16x128xf32>
    %c1_87 = arith.constant 1 : index
    %c1_88 = arith.constant 1 : index
    %c0_89 = arith.constant 0 : index
    %72 = vector.load %arg9[%c1_87, %c1_88, %c0_89] : memref<18x18x128xf32, #tpu.memory_space<vmem>>, vector<16x16x128xf32>
    tpu.vector_store %arg9[%c1_87, %c1_88, %c0_89], %71 {strides = array<i32>} : memref<18x18x128xf32, #tpu.memory_space<vmem>>, vector<16x16x128xf32>,
    %c0_90 = arith.constant 0 : index
    %c0_91 = arith.constant 0 : index
    %c0_92 = arith.constant 0 : index
    %73 = vector.load %arg9[%c0_90, %c0_91, %c0_92] : memref<18x18x128xf32, #tpu.memory_space<vmem>>, vector<16x16x128xf32>
    %74 = arith.truncf %73 : vector<16x16x128xf32> to vector<16x16x128xbf16>
    %c0_93 = arith.constant 0 : index
    %c1_94 = arith.constant 1 : index
    %c0_95 = arith.constant 0 : index
    %75 = vector.load %arg9[%c0_93, %c1_94, %c0_95] : memref<18x18x128xf32, #tpu.memory_space<vmem>>, vector<16x16x128xf32>
    %76 = arith.truncf %75 : vector<16x16x128xf32> to vector<16x16x128xbf16>
    %c0_96 = arith.constant 0 : index
    %c2_97 = arith.constant 2 : index
    %c0_98 = arith.constant 0 : index
    %77 = vector.load %arg9[%c0_96, %c2_97, %c0_98] : memref<18x18x128xf32, #tpu.memory_space<vmem>>, vector<16x16x128xf32>
    %78 = arith.truncf %77 : vector<16x16x128xf32> to vector<16x16x128xbf16>
    %c1_99 = arith.constant 1 : index
    %c0_100 = arith.constant 0 : index
    %c0_101 = arith.constant 0 : index
    %79 = vector.load %arg9[%c1_99, %c0_100, %c0_101] : memref<18x18x128xf32, #tpu.memory_space<vmem>>, vector<16x16x128xf32>
    %80 = arith.truncf %79 : vector<16x16x128xf32> to vector<16x16x128xbf16>
    %c1_102 = arith.constant 1 : index
    %c1_103 = arith.constant 1 : index
    %c0_104 = arith.constant 0 : index
    %81 = vector.load %arg9[%c1_102, %c1_103, %c0_104] : memref<18x18x128xf32, #tpu.memory_space<vmem>>, vector<16x16x128xf32>
    %82 = arith.truncf %81 : vector<16x16x128xf32> to vector<16x16x128xbf16>
    %c1_105 = arith.constant 1 : index
    %c2_106 = arith.constant 2 : index
    %c0_107 = arith.constant 0 : index
    %83 = vector.load %arg9[%c1_105, %c2_106, %c0_107] : memref<18x18x128xf32, #tpu.memory_space<vmem>>, vector<16x16x128xf32>
    %84 = arith.truncf %83 : vector<16x16x128xf32> to vector<16x16x128xbf16>
    %c2_108 = arith.constant 2 : index
    %c0_109 = arith.constant 0 : index
    %c0_110 = arith.constant 0 : index
    %85 = vector.load %arg9[%c2_108, %c0_109, %c0_110] : memref<18x18x128xf32, #tpu.memory_space<vmem>>, vector<16x16x128xf32>
    %86 = arith.truncf %85 : vector<16x16x128xf32> to vector<16x16x128xbf16>
    %c2_111 = arith.constant 2 : index
    %c1_112 = arith.constant 1 : index
    %c0_113 = arith.constant 0 : index
    %87 = vector.load %arg9[%c2_111, %c1_112, %c0_113] : memref<18x18x128xf32, #tpu.memory_space<vmem>>, vector<16x16x128xf32>
    %88 = arith.truncf %87 : vector<16x16x128xf32> to vector<16x16x128xbf16>
    %c2_114 = arith.constant 2 : index
    %c2_115 = arith.constant 2 : index
    %c0_116 = arith.constant 0 : index
    %89 = vector.load %arg9[%c2_114, %c2_115, %c0_116] : memref<18x18x128xf32, #tpu.memory_space<vmem>>, vector<16x16x128xf32>
    %90 = arith.truncf %89 : vector<16x16x128xf32> to vector<16x16x128xbf16>
    %91 = tpu.concatenate %74, %76, %78, %80, %82, %84, %86, %88, %90 in 2 : vector<16x16x128xbf16>, vector<16x16x128xbf16>, vector<16x16x128xbf16>, vector<16x16x128xbf16>, vector<16x16x128xbf16>, vector<16x16x128xbf16>, vector<16x16x128xbf16>, vector<16x16x128xbf16>, vector<16x16x128xbf16> -> vector<16x16x1152xbf16>
    %c0_117 = arith.constant 0 : index
    %c0_118 = arith.constant 0 : index
    %92 = vector.load %arg6[%c0_117, %c0_118] : memref<1152x128xbf16, #tpu.memory_space<vmem>>, vector<1152x128xbf16>
    %cst_119 = arith.constant dense<0.000000e+00> : vector<16x16x128xf32>
    %93 = tpu.matmul %91, %92, %cst_119 {dimension_numbers = #tpu.dot_dimension_numbers<[2], [0], [0, 1], [1], [0, 0, 0, 1, 1, 1], [], []>} : vector<16x16x1152xbf16>, vector<1152x128xbf16>, vector<16x16x128xf32> -> vector<16x16x128xf32>
    %c0_120 = arith.constant 0 : index
    %c0_121 = arith.constant 0 : index
    %94 = vector.load %arg7[%c0_120, %c0_121] : memref<1x128xf32, #tpu.memory_space<vmem>>, vector<1x128xf32>
    %95 = vector.shape_cast %94 : vector<1x128xf32> to vector<128xf32>
    %96 = vector.shape_cast %95 : vector<128xf32> to vector<1x1x128xf32>
    %97 = vector.broadcast %96 : vector<1x1x128xf32> to vector<16x16x128xf32>
    %98 = arith.addf %93, %97 : vector<16x16x128xf32>
    %99 = math.tanh %98 : vector<16x16x128xf32>
    %c0_122 = arith.constant 0 : index
    %c0_123 = arith.constant 0 : index
    %c0_124 = arith.constant 0 : index
    %c0_125 = arith.constant 0 : index
    %100 = vector.load %arg8[%c0_122, %c0_123, %c0_124, %c0_125] : memref<1x16x16x128xf32, #tpu.memory_space<vmem>>, vector<1x16x16x128xf32>
    %101 = vector.shape_cast %100 : vector<1x16x16x128xf32> to vector<16x16x128xf32>
    %102 = vector.shape_cast %99 : vector<16x16x128xf32> to vector<1x16x16x128xf32>
    tpu.vector_store %arg8[%c0_122, %c0_123, %c0_124, %c0_125], %102 {strides = array<i32>} : memref<1x16x16x128xf32, #tpu.memory_space<vmem>>, vector<1x16x16x128xf32>,
    return
  }
  func.func @transform_0(%arg0: i32) -> (i32, i32, i32, i32) {
    %c0_i32 = arith.constant 0 : i32
    %c0_i32_0 = arith.constant 0 : i32
    %c0_i32_1 = arith.constant 0 : i32
    %c0_i32_2 = arith.constant 0 : i32
    return %arg0, %c0_i32, %c0_i32_0, %c0_i32_1 : i32, i32, i32, i32
  }
  func.func @transform_1(%arg0: i32) -> (i32, i32) {
    %c0_i32 = arith.constant 0 : i32
    %c0_i32_0 = arith.constant 0 : i32
    %c0_i32_1 = arith.constant 0 : i32
    return %c0_i32, %c0_i32_0 : i32, i32
  }
  func.func @transform_2(%arg0: i32) -> (i32, i32) {
    %c0_i32 = arith.constant 0 : i32
    %c0_i32_0 = arith.constant 0 : i32
    %c0_i32_1 = arith.constant 0 : i32
    return %c0_i32, %c0_i32_0 : i32, i32
  }
  func.func @transform_3(%arg0: i32) -> (i32, i32) {
    %c0_i32 = arith.constant 0 : i32
    %c0_i32_0 = arith.constant 0 : i32
    %c0_i32_1 = arith.constant 0 : i32
    return %c0_i32, %c0_i32_0 : i32, i32
  }
  func.func @transform_4(%arg0: i32) -> (i32, i32) {
    %c0_i32 = arith.constant 0 : i32
    %c0_i32_0 = arith.constant 0 : i32
    %c0_i32_1 = arith.constant 0 : i32
    return %c0_i32, %c0_i32_0 : i32, i32
  }
  func.func @transform_5(%arg0: i32) -> (i32, i32) {
    %c0_i32 = arith.constant 0 : i32
    %c0_i32_0 = arith.constant 0 : i32
    %c0_i32_1 = arith.constant 0 : i32
    return %c0_i32, %c0_i32_0 : i32, i32
  }
  func.func @transform_6(%arg0: i32) -> (i32, i32) {
    %c0_i32 = arith.constant 0 : i32
    %c0_i32_0 = arith.constant 0 : i32
    %c0_i32_1 = arith.constant 0 : i32
    return %c0_i32, %c0_i32_0 : i32, i32
  }
  func.func @transform_7(%arg0: i32) -> (i32, i32, i32, i32) {
    %c0_i32 = arith.constant 0 : i32
    %c0_i32_0 = arith.constant 0 : i32
    %c0_i32_1 = arith.constant 0 : i32
    %c0_i32_2 = arith.constant 0 : i32
    return %arg0, %c0_i32, %c0_i32_0, %c0_i32_1 : i32, i32, i32, i32
  }
}

</mosaic_0001>

<bundles_post_ra>
// kernel: tpu_custom_call.1
= control target key start
LH: loop header
LB: loop body
LE: loop exit
PB: predicated region body
PF: predicated region fallthrough
CT: control target
= control target key end

     0   :  { %12 = vsyncpa [#allocation4], 0  ;;  %s10887_s0 = inlined_call_operand.hbm [shape: f32[2,16,16,128], index: 0, kind: input, shape index: {}]   ;;  %s10888_s1 = inlined_call_operand.hbm [shape: bf16[1152,128], index: 1, kind: input, shape index: {}]   ;;  %s10889_s2 = inlined_call_operand.vmem [shape: f32[1,128], index: 2, kind: input, shape index: {}]   ;;  %s10890_s3 = inlined_call_operand.hbm [shape: bf16[1152,128], index: 3, kind: input, shape index: {}]   ;;  %s10891_s4 = inlined_call_operand.vmem [shape: f32[1,128], index: 4, kind: input, shape index: {}]   ;;  %s10892_s5 = inlined_call_operand.hbm [shape: bf16[1152,128], index: 5, kind: input, shape index: {}]   ;;  %s10893_s6 = inlined_call_operand.vmem [shape: f32[1,128], index: 6, kind: input, shape index: {}]   ;;  %s10894_s7 = inlined_call_operand.hbm [shape: f32[2,16,16,128], index: 7, kind: output, shape index: {}]  }
   0x1   :  { %14 = vsyncpa [#allocation4 + $0x1], 0 }
   0x2   :  { %15 = vsyncpa [#allocation7], 0 }
   0x3   :  { %16 = vsyncpa [#allocation10], 0 }
   0x4   :  { %17 = vsyncpa [#allocation5], 0 }
   0x5   :  { %19 = vsyncpa [#allocation5 + $0x1], 0  ;;  %s8773_s24 = smov 0   ;;  %s8775_s25 = smov 0  }
   0x6   :  { %s8777_s26 = smov 0   ;;  %s8779_s27 = smov 0  }
   0x7 LB: > { %s8794_s28 = sadd.s32 4294967295, %s8719_s27   ;;  %s6347_s29 = sadd.s32 4294967294, %s8719_s27   ;;  %s8719_s27 = sphi %s8779_s27, %s10920_s27   ;;  %s8715_s26 = sphi %s8777_s26, %s10919_s26   ;;  %s8711_s25 = sphi %s8775_s25, %s10918_s25   ;;  %s8707_s24 = sphi %s8773_s24, %s10917_s24  }
   0x8   : > { %p45_p0 = scmp.ne.s32.totalorder %s8711_s25, %s8707_s24  ;;  %p10895_p1 = scmp.eq.s32.totalorder %s8794_s28, 0 }
   0x9   : > { %p201_p3 = scmp.eq.s32.totalorder %s6347_s29, 1  ;;  %p6348_p5 = scmp.ge.s32.totalorder %s8719_s27, 1 }
   0xa   : > { %p8803_p4 = por %p10895_p1, %p45_p0  ;;  %p208_p7 = scmp.lt.s32.totalorder %s8719_s27, 3 }
   0xb   : > { %p8808_p6 = por %p201_p3, %p45_p0  ;;  %s8721_s10 = smov [#allocation6]  }
   0xc   : > { %s10899_s30 = scalar_select %p8803_p4, 1, 0 }
   0xd   : > { %s10900_s8 = scalar_select %p8808_p6, 1, 0 }
   0xe   : > { %p8813_p8 = pnand %p6348_p5, %p208_p7  ;;  %s220_s11 = sshll.u32 %s8721_s10, 4  ;;  %s8817_s11 = int_to_ptr.vmem [resolvable:$true] %s220_s11 }
   0xf   : > { %10901 = sst [smem:[#allocation16_spill]] %s10900_s8  ;;  %s8722_s13 = smov [#allocation8]  }
  0x10   : > { %s10902_s9 = scalar_select %p8813_p8, 1, 0 }
  0x11   : > { %p8180_p9 = pneg %p8813_p8  ;;  %s236_s14 = sshll.u32 %s8722_s13, 4  ;;  %s8828_s14 = int_to_ptr.vmem [resolvable:$true] %s236_s14 }
  0x12   : > { %s8723_s15 = smov [#allocation9]   ;;  %s8531_s19 = scalar_lea.hbm %s10888_s1, 9216 }
  0x13   : > { %p8824_p11 = pnand %p8180_p9, %p10895_p1  ;;  %s8830_s16 = sshll.u32 %s8723_s15, 4  ;;  %s253_s16 = int_to_ptr.vmem [resolvable:$true] %s8830_s16 }
  0x14   : > { %p8532_p12 = scmp.ne.s32.totalorder %s10888_s1, %s8531_s19  ;;  %p8538_p5 = scmp.lt.u32.totalorder %s8531_s19, %s10888_s1 }
  0x15   : > { %p8840_p13 = pneg %p8824_p11 }
  0x17   : > { %p8534_p0 = pnand %p8840_p13, %p8532_p12 }
  0x19   : > { %p8535_p3 = pneg %p8534_p0 }
  0x1b   : > { %p8540_p7 = pnand %p8538_p5, %p8535_p3 }
  0x1d   : > { %8543 = shalt.err (!%p8540_p7)
}
  0x1e   : > { %s8544_s10 = scalar_lea.vmem %s8817_s11, 9216  ;;  %p8552_p2 = scmp.lt.s32.totalorder %s8817_s11, %s8817_s11 }
  0x1f   : > { %p8545_p9 = scmp.ne.s32.totalorder %s8817_s11, %s8544_s10  ;;  %p8553_p6 = scmp.lt.s32.totalorder %s8544_s10, %s8544_s10 }
  0x21   : > { %p8547_p10 = pnand %p8545_p9, %p8840_p13  ;;  %p8554_p12 = por %p8553_p6, %p8552_p2 }
  0x23   : > { %p8548_p1 = pneg %p8547_p10 }
  0x25   : > { %p8555_p0 = pnand %p8554_p12, %p8548_p1 }
  0x27   : > { %8558 = shalt.err (!%p8555_p0)
}
  0x28   : > { %s8724_s13 = smov 64   ;;  %s8725_s15 = smov 4  }
  0x29   : > { %8183 = dma.hbm_to_vmem [thread:$0]  (!%p8824_p11), %s10888_s1, 9216, %s8817_s11, [#allocation7], %s8724_s13, %s8724_s13, %s8725_s15  }
  0x2a   : > { %s8559_s21 = scalar_lea.hbm %s10890_s3, 9216 }
  0x2b   : > { %p8560_p1 = scmp.ne.s32.totalorder %s10890_s3, %s8559_s21  ;;  %p8566_p10 = scmp.lt.u32.totalorder %s8559_s21, %s10890_s3 }
  0x2d   : > { %p8562_p2 = pnand %p8560_p1, %p8840_p13 }
  0x2f   : > { %p8563_p6 = pneg %p8562_p2 }
  0x31   : > { %p8568_p3 = pnand %p8566_p10, %p8563_p6 }
  0x33   : > { %8571 = shalt.err (!%p8568_p3)
}
  0x34   : > { %s8572_s11 = scalar_lea.vmem %s8828_s14, 9216  ;;  %p8580_p12 = scmp.lt.s32.totalorder %s8828_s14, %s8828_s14 }
  0x35   : > { %p8573_p5 = scmp.ne.s32.totalorder %s8828_s14, %s8572_s11  ;;  %p8581_p0 = scmp.lt.s32.totalorder %s8572_s11, %s8572_s11 }
  0x37   : > { %p8575_p7 = pnand %p8573_p5, %p8840_p13  ;;  %p8582_p1 = por %p8581_p0, %p8580_p12 }
  0x39   : > { %p8576_p9 = pneg %p8575_p7 }
  0x3b   : > { %p8583_p2 = pnand %p8582_p1, %p8576_p9 }
  0x3d   : > { %8586 = shalt.err (!%p8583_p2)
}
  0x3e   : > { %8186 = dma.hbm_to_vmem [thread:$0]  (!%p8824_p11), %s10890_s3, 9216, %s8828_s14, [#allocation7], %s8724_s13, %s8724_s13, %s8725_s15  }
  0x3f   : > { %s8587_s20 = scalar_lea.hbm %s10892_s5, 9216 }
  0x40   : > { %p8588_p6 = scmp.ne.s32.totalorder %s10892_s5, %s8587_s20  ;;  %p8594_p5 = scmp.lt.u32.totalorder %s8587_s20, %s10892_s5 }
  0x42   : > { %p8590_p10 = pnand %p8588_p6, %p8840_p13 }
  0x44   : > { %p8591_p3 = pneg %p8590_p10 }
  0x46   : > { %p8596_p7 = pnand %p8594_p5, %p8591_p3 }
  0x48   : > { %8599 = shalt.err (!%p8596_p7)
}
  0x49   : > { %s8600_s11 = scalar_lea.vmem %s253_s16, 9216  ;;  %p8608_p1 = scmp.lt.s32.totalorder %s253_s16, %s253_s16 }
  0x4a   : > { %p8601_p9 = scmp.ne.s32.totalorder %s253_s16, %s8600_s11  ;;  %p8609_p2 = scmp.lt.s32.totalorder %s8600_s11, %s8600_s11 }
  0x4c   : > { %p8603_p12 = pnand %p8601_p9, %p8840_p13  ;;  %p8610_p4 = por %p8609_p2, %p8608_p1 }
  0x4e   : > { %p8604_p0 = pneg %p8603_p12 }
  0x50   : > { %p8611_p8 = pnand %p8610_p4, %p8604_p0 }
  0x52   : > { %8614 = shalt.err (!%p8611_p8)
}
  0x53   : > { %8189 = dma.hbm_to_vmem [thread:$0]  (!%p8824_p11), %s10892_s5, 9216, %s253_s16, [#allocation10], %s8724_s13, %s8724_s13, %s8725_s15  }
  0x54   : > { %s8913_s22 = sadd.s32 1, %s8719_s27   ;;  %s32_s17 = sadd.s32 1, %s8715_s26 }
  0x55   : > { %s29_s12 = ssub.s32 %s8719_s27, %s8913_s22  ;;  %p39_p8 = scmp.ne.s32.totalorder %s8715_s26, %s8711_s25 }
  0x56   : > { %p30_p4 = scmp.eq.s32.totalorder %s29_s12, 0  ;;  %p40_p13 = scmp.eq.s32.totalorder %s8719_s27, 0 }
  0x57   : > { %p8201_p6 = scmp.lt.s32.totalorder %s8719_s27, 2  ;;  %p10905_p3 = scmp.eq.s32.totalorder %s8794_s28, 1 }
  0x58   : > { %s8923_s18 = scalar_select %p30_p4, %s8715_s26, %s32_s17  }
  0x59   : > { %p41_p10 = por %p40_p13, %p39_p8  ;;  %p8927_p5 = por %p10905_p3, %p39_p8 }
  0x5a   : > { %s269_s20 = sand.u32 1, %s8715_s26   ;;  %s6586_s21 = sshll.u32 %s8719_s27, 12 }
  0x5b   : > { %s6353_s16 = sshll.u32 %s269_s20, 8  ;;  %s8936_s23 = scalar_lea.hbm %s10887_s0, %s6586_s21 }
  0x5c   : > { %s273_s29 = scalar_lea.vmem [#allocation3], %s6353_s16  ;;  %p8938_p11 = pnand %p8201_p6, %p41_p10 }
  0x5d   : > { %s280_s10 = sshll.u32 %s273_s29, 4  ;;  %s8944_s14 = scalar_lea.sflag [#allocation4], %s269_s20  ;;  %s8942_s10 = int_to_ptr.vmem [resolvable:$true] %s280_s10 }
  0x5e   : > { %s8615_s8 = scalar_lea.hbm %s8936_s23, 4096  ;;  %p8617_p9 = pneg %p8938_p11 }
  0x5f   : > { %p8616_p7 = scmp.ne.s32.totalorder %s8936_s23, %s8615_s8  ;;  %s8620_s21 = scalar_lea.hbm %s10887_s0, 8192 }
  0x60   : > { %p8621_p1 = scmp.lt.u32.totalorder %s8936_s23, %s10887_s0  ;;  %p8622_p2 = scmp.lt.u32.totalorder %s8620_s21, %s8615_s8 }
  0x61   : > { %p8618_p12 = pnand %p8617_p9, %p8616_p7  ;;  %p8624_p8 = scmp.lt.u32.totalorder %s8615_s8, %s8936_s23 }
  0x62   : > { %p8623_p4 = por %p8622_p2, %p8621_p1 }
  0x63   : > { %p8619_p0 = pneg %p8618_p12 }
  0x64   : > { %p8625_p13 = por %p8624_p8, %p8623_p4 }
  0x66   : > { %p8626_p6 = pnand %p8625_p13, %p8619_p0 }
  0x68   : > { %8629 = shalt.err (!%p8626_p6)
}
  0x69   : > { %s8630_s20 = scalar_lea.vmem %s8942_s10, 4096  ;;  %s8726_s15 = smov [#allocation3]  }
  0x6a   : > { %p8631_p10 = scmp.ne.s32.totalorder %s8942_s10, %s8630_s20  ;;  %s8635_s29 = sshll.u32 %s8726_s15, 4  ;;  %s8636_s29 = int_to_ptr.vmem [resolvable:$false] %s8635_s29 }
  0x6b   : > { %s8637_s12 = scalar_lea.vmem %s8636_s29, 8192  ;;  %p8638_p12 = scmp.lt.s32.totalorder %s8942_s10, %s8636_s29 }
  0x6c   : > { %p8633_p3 = pnand %p8631_p10, %p8617_p9  ;;  %p8639_p1 = scmp.lt.s32.totalorder %s8637_s12, %s8630_s20 }
  0x6e   : > { %p8634_p7 = pneg %p8633_p3  ;;  %p8640_p2 = por %p8639_p1, %p8638_p12 }
  0x70   : > { %p8641_p4 = pnand %p8640_p2, %p8634_p7 }
  0x72   : > { %8644 = shalt.err (!%p8641_p4)
}
  0x73   : > { %s8727_s8 = smov 128   ;;  %s8728_s17 = smov 8  }
  0x74   : > { %8193 = dma.hbm_to_vmem [thread:$0]  (!%p8938_p11), %s8936_s23, 4096, %s8942_s10, %s8944_s14, %s8727_s8, %s8727_s8, %s8728_s17  }
  0x75   : > { %p10908_p9 = scmp.ne.s32.totalorder %s10902_s9, 0 }
  0x76   : > { %s8975_s21 = sand.u32 (!%p10908_p9), 1, %s8711_s25   ;;  %p10909_p0 = scmp.ne.s32.totalorder (!%p10908_p9), %s10899_s30, 0 }
  0x77   : > { %292 = sbr.rel (%p10908_p9) target bundleno = 1646 (0x66e), region = 48  ;;  %s6357_s16 = sshll.u32 (!%p10908_p9), %s8975_s21, 8 }
  0x78   : > { %s295_s13 = scalar_lea.sflag (!%p10908_p9), [#allocation4], %s8975_s21  ;;  %s8981_s20 = scalar_lea.vmem (!%p10908_p9), [#allocation3], %s6357_s16 }
  0x7e   : > { %8690 = dma.done.wait (%p10909_p0), %s295_s13, 4096  }
  0x7f   : > { %8692 = vsyncadd (%p10909_p0), %s295_s13, 4294963200  ;;  %p10910_p11 = scmp.eq.s32.totalorder %s8794_s28, 0 }
  0x81   : > { %8694 = dma.done.wait (%p10910_p11), [#allocation7], 18432   ;;  %p10911_p8 = pmov %p10910_p11 }
  0x83   : > { %8696 = vsyncadd (%p10911_p8), [#allocation7], 4294948864  ;;  %p10912_p13 = pmov %p10911_p8 }
  0x84   : > { %p10913_p6 = pmov %p10911_p8 }
  0x85   : > { %8698 = dma.done.wait (%p10912_p13), [#allocation10], 9216  }
  0x86   : > { %8700 = vsyncadd (%p10913_p6), [#allocation10], 4294958080  ;;  %v8729_v0 = vmov 0.0   ;;  %v8248_v1 = vld [vmem:[#allocation6 + $0x40] sm:$0xff]   ;;  %v8250_v3 = vld [vmem:[#allocation6 + $0x48] sm:$0xff]   ;;  %s10778_s15 = scalar_lea.vmem [#allocation11], %s6357_s16 }
  0x87   : > { %342 = vst [vmem:[#allocation2] sm:$0xff] %v8729_v0  ;;  %343 = vst [vmem:[#allocation2 + $0x8] sm:$0xff] %v8729_v0  ;;  %v8249_v2 = vld [vmem:[#allocation6] sm:$0xff]   ;;  %6588 = vmatprep.subr.bf16.mxu0 %v8248_v1  ;;  %8148 = vmatprep.subr.bf16.mxu1 %v8248_v1  ;;  %v8251_v4 = vld [vmem:[#allocation6 + $0x8] sm:$0xff]   ;;  %s6587_s29 = sshll.u32 %s8794_s28, 12  ;;  %s6245_s12 = sshll.u32 %s10778_s15, 4  ;;  %s10840_s12 = int_to_ptr.vmem [resolvable:$true] %s6245_s12 }
  0x88   : > { %344 = vst [vmem:[#allocation2 + $0x10] sm:$0x3] %v8729_v0  ;;  %346 = vst [vmem:[#allocation2 + $0x198] sm:$0xff] %v8729_v0  ;;  %6589 = vmatpush3.bf16.msra.mxu0 %v8249_v2  ;;  %8156 = vmatpush3.bf16.msra.mxu1 %v8249_v2  ;;  %v8252_v5 = vld [vmem:[#allocation6 + $0x50] sm:$0xff]   ;;  %v8254_v7 = vld [vmem:[#allocation6 + $0x58] sm:$0xff]   ;;  %s10838_s16 = scalar_lea.hbm %s10894_s7, %s6587_s29  ;;  %s6232_s28 = scalar_lea.sflag [#allocation5], %s8975_s21 }
  0x89   : > { %347 = vst [vmem:[#allocation2 + $0x1a0] sm:$0xff] %v8729_v0  ;;  %348 = vst [vmem:[#allocation2 + $0x1a8] sm:$0x3] %v8729_v0  ;;  %6590 = vmatprep.subr.bf16.mxu0 %v8250_v3  ;;  %8149 = vmatprep.subr.bf16.mxu1 %v8250_v3  ;;  %v8253_v6 = vld [vmem:[#allocation6 + $0x10] sm:$0xff]   ;;  %v8255_v8 = vld [vmem:[#allocation6 + $0x18] sm:$0xff]   ;;  %s8645_s13 = scalar_lea.vmem %s10840_s12, 4096 }
  0x8a   : > { %350 = vst [vmem:[#allocation2 + $0x18] sm:$0x1] %v8729_v0  ;;  %351 = vst [vmem:[#allocation2 + $0x30] sm:$0x1] %v8729_v0  ;;  %v8256_v9 = vld [vmem:[#allocation6 + $0x60] sm:$0xff]   ;;  %v8258_v11 = vld [vmem:[#allocation6 + $0x68] sm:$0xff]   ;;  %p8646_p10 = scmp.ne.s32.totalorder %s10840_s12, %s8645_s13 }
  0x8b   : > { %352 = vst [vmem:[#allocation2 + $0x48] sm:$0x1] %v8729_v0  ;;  %353 = vst [vmem:[#allocation2 + $0x60] sm:$0x1] %v8729_v0  ;;  %v8257_v10 = vld [vmem:[#allocation6 + $0x20] sm:$0xff]   ;;  %v407_v14 = vld [vmem:[%s8981_s20 + $0xb0] sm:$0xff] }
  0x8c   : > { %354 = vst [vmem:[#allocation2 + $0x78] sm:$0x1] %v8729_v0  ;;  %355 = vst [vmem:[#allocation2 + $0x90] sm:$0x1] %v8729_v0  ;;  %6591 = vmatpush3.bf16.msra.mxu0 %v8251_v4  ;;  %8157 = vmatpush3.bf16.msra.mxu1 %v8251_v4  ;;  %v408_v16 = vld [vmem:[%s8981_s20 + $0xb8] sm:$0xff]  ;;  %v8259_v18 = vld [vmem:[#allocation6 + $0x28] sm:$0xff]   ;;  %p8647_p3 = pnand %p8646_p10, %p8927_p5 }
  0x8d   : > { %356 = vst [vmem:[#allocation2 + $0xa8] sm:$0x1] %v8729_v0  ;;  %357 = vst [vmem:[#allocation2 + $0xc0] sm:$0x1] %v8729_v0  ;;  %6592 = vmatprep.subr.bf16.mxu0 %v8252_v5  ;;  %8150 = vmatprep.subr.bf16.mxu1 %v8252_v5  ;;  %v542_v17 = vpack.c.bf16 %v408_v16, %v407_v14  ;;  %v8260_v19 = vld [vmem:[#allocation6 + $0x70] sm:$0xff]   ;;  %v385_v21 = vld [vmem:[%s8981_s20] sm:$0xff] }
  0x8e   : > { %358 = vst [vmem:[#allocation2 + $0xd8] sm:$0x1] %v8729_v0  ;;  %359 = vst [vmem:[#allocation2 + $0xf0] sm:$0x1] %v8729_v0  ;;  %v498_v12 = vld [vmem:[#allocation2 + $0x1] sm:$0xff]  ;;  %v386_v23 = vld [vmem:[%s8981_s20 + $0x8] sm:$0xff]  ;;  %p8648_p7 = pneg %p8647_p3 }
  0x8f   : > { %360 = vst [vmem:[#allocation2 + $0x108] sm:$0x1] %v8729_v0  ;;  %361 = vst [vmem:[#allocation2 + $0x120] sm:$0x1] %v8729_v0  ;;  %v499_v13 = vld [vmem:[#allocation2 + $0x9] sm:$0xff]  ;;  %1594 = vmatprep.mubr.bf16.mxu1 %v542_v17  ;;  %v8261_v20 = vld [vmem:[#allocation6 + $0x30] sm:$0xff]   ;;  %v9046_v37 = vpack.c.bf16 %v386_v23, %v385_v21 }
  0x90   : > { %362 = vst [vmem:[#allocation2 + $0x138] sm:$0x1] %v8729_v0  ;;  %363 = vst [vmem:[#allocation2 + $0x150] sm:$0x1] %v8729_v0  ;;  %6593 = vmatpush3.bf16.msra.mxu0 %v8253_v6  ;;  %8158 = vmatpush3.bf16.msra.mxu1 %v8253_v6  ;;  %v530_v15 = vpack.c.bf16 %v499_v13, %v498_v12  ;;  %v8262_v22 = vld [vmem:[#allocation6 + $0x78] sm:$0xff]   ;;  %v409_v24 = vld [vmem:[%s8981_s20 + $0xc0] sm:$0xff] }
  0x91   : > { %364 = vst [vmem:[#allocation2 + $0x168] sm:$0x1] %v8729_v0  ;;  %365 = vst [vmem:[#allocation2 + $0x180] sm:$0x1] %v8729_v0  ;;  %6594 = vmatprep.subr.bf16.mxu0 %v8254_v7  ;;  %8151 = vmatprep.subr.bf16.mxu1 %v8254_v7  ;;  %v8263_v25 = vld [vmem:[#allocation6 + $0x38] sm:$0xff]   ;;  %v410_v27 = vld [vmem:[%s8981_s20 + $0xc8] sm:$0xff] }
  0x92   : > { %368 = vst [vmem:[#allocation2 + $0x29] sm:$0x1] %v8729_v0  ;;  %369 = vst [vmem:[#allocation2 + $0x41] sm:$0x1] %v8729_v0  ;;  %1498 = vmatprep.mubr.bf16.mxu0 %v530_v15  ;;  %v8264_v29 = vld [vmem:[#allocation6 + $0xc0] sm:$0xff]   ;;  %v8268_v36 = vld [vmem:[#allocation6 + $0xc8] sm:$0xff]   ;;  %v543_v41 = vpack.c.bf16 %v410_v27, %v409_v24 }
  0x93   : > { %370 = vst [vmem:[#allocation2 + $0x59] sm:$0x1] %v8729_v0  ;;  %371 = vst [vmem:[#allocation2 + $0x71] sm:$0x1] %v8729_v0  ;;  %v8265_v31 = vld [vmem:[#allocation6 + $0x140] sm:$0xff]   ;;  %v8273_v38 = vld [vmem:[#allocation6 + $0x148] sm:$0xff]  }
  0x94   : > { %372 = vst [vmem:[#allocation2 + $0x89] sm:$0x1] %v8729_v0  ;;  %373 = vst [vmem:[#allocation2 + $0xa1] sm:$0x1] %v8729_v0  ;;  %6595 = vmatpush3.bf16.msra.mxu0 %v8255_v8  ;;  %8159 = vmatpush3.bf16.msra.mxu1 %v8255_v8  ;;  %v8266_v34 = vld [vmem:[#allocation6 + $0x80] sm:$0xff]   ;;  %v387_v39 = vld [vmem:[%s8981_s20 + $0x10] sm:$0xff] }
  0x95   : > { %374 = vst [vmem:[#allocation2 + $0xb9] sm:$0x1] %v8729_v0  ;;  %375 = vst [vmem:[#allocation2 + $0xd1] sm:$0x1] %v8729_v0  ;;  %6596 = vmatprep.subr.bf16.mxu0 %v8256_v9  ;;  %8152 = vmatprep.subr.bf16.mxu1 %v8256_v9  ;;  %v8267_v35 = vld [vmem:[#allocation6 + $0x100] sm:$0xff]   ;;  %v8269_v40 = vld [vmem:[#allocation6 + $0x88] sm:$0xff]  }
  0x96   : > { %376 = vst [vmem:[#allocation2 + $0xe9] sm:$0x1] %v8729_v0  ;;  %377 = vst [vmem:[#allocation2 + $0x101] sm:$0x1] %v8729_v0  ;;  %v8275_v45 = vld [vmem:[#allocation6 + $0x108] sm:$0xff]   ;;  %v388_v46 = vld [vmem:[%s8981_s20 + $0x18] sm:$0xff] }
  0x97   : > { %378 = vst [vmem:[#allocation2 + $0x119] sm:$0x1] %v8729_v0  ;;  %379 = vst [vmem:[#allocation2 + $0x131] sm:$0x1] %v8729_v0  ;;  %v411_v47 = vld [vmem:[%s8981_s20 + $0xd0] sm:$0xff]  ;;  %v412_v48 = vld [vmem:[%s8981_s20 + $0xd8] sm:$0xff]  ;;  %v9060_v56 = vpack.c.bf16 %v388_v46, %v387_v39 }
  0x98   : > { %380 = vst [vmem:[#allocation2 + $0x149] sm:$0x1] %v8729_v0  ;;  %381 = vst [vmem:[#allocation2 + $0x161] sm:$0x1] %v8729_v0  ;;  %6597 = vmatpush3.bf16.msra.mxu0 %v8257_v10  ;;  %8160 = vmatpush3.bf16.msra.mxu1 %v8257_v10  ;;  %v8270_v50 = vld [vmem:[#allocation6 + $0xd0] sm:$0xff]   ;;  %v389_v54 = vld [vmem:[%s8981_s20 + $0x20] sm:$0xff]  ;;  %v544_v60 = vpack.c.bf16 %v412_v48, %v411_v47 }
  0x99   : > { %382 = vst [vmem:[#allocation2 + $0x179] sm:$0x1] %v8729_v0  ;;  %383 = vst [vmem:[#allocation2 + $0x191] sm:$0x1] %v8729_v0  ;;  %6598 = vmatprep.subr.bf16.mxu0 %v8258_v11  ;;  %8153 = vmatprep.subr.bf16.mxu1 %v8258_v11  ;;  %v8271_v53 = vld [vmem:[#allocation6 + $0x90] sm:$0xff]   ;;  %v390_v55 = vld [vmem:[%s8981_s20 + $0x28] sm:$0xff] }
  0x9a   : > { %349 = vst [vmem:[#allocation2] sm:$0x1] %v8729_v0  ;;  %367 = vst [vmem:[#allocation2 + $0x11] sm:$0x1] %v8729_v0  ;;  %v413_v57 = vld [vmem:[%s8981_s20 + $0xe0] sm:$0xff]  ;;  %v414_v58 = vld [vmem:[%s8981_s20 + $0xe8] sm:$0xff]  ;;  %v9071_v8 = vpack.c.bf16 %v390_v55, %v389_v54 }
  0x9b   : > { %366 = vst [vmem:[#allocation2 + $0x198] sm:$0x1] %v8729_v0  ;;  %384 = vst [vmem:[#allocation2 + $0x1a9] sm:$0x1] %v8729_v0  ;;  %v8272_v59 = vld [vmem:[#allocation6 + $0xd8] sm:$0xff]   ;;  %v8276_v1 = vld [vmem:[#allocation6 + $0xe0] sm:$0xff]   ;;  %v545_v10 = vpack.c.bf16 %v414_v58, %v413_v57 }
  0x9c   : > { %440 = vst [vmem:[#allocation2 + $0x121] sm:$0xff] %v407_v14  ;;  %441 = vst [vmem:[#allocation2 + $0x129] sm:$0xff] %v408_v16  ;;  %6599 = vmatpush3.bf16.msra.mxu0 %v8259_v18  ;;  %8161 = vmatpush3.bf16.msra.mxu1 %v8259_v18  ;;  %v8274_v61 = vld [vmem:[#allocation6 + $0x98] sm:$0xff]   ;;  %v8281_v2 = vld [vmem:[#allocation6 + $0x150] sm:$0xff]  }
  0x9d   : > { %6600 = vmatprep.subr.bf16.mxu0 %v8260_v19  ;;  %8154 = vmatprep.subr.bf16.mxu1 %v8260_v19  ;;  %418 = vst [vmem:[#allocation2 + $0x19] sm:$0xff] %v385_v21  ;;  %419 = vst [vmem:[#allocation2 + $0x21] sm:$0xff] %v386_v23  ;;  %v8283_v4 = vld [vmem:[#allocation6 + $0x110] sm:$0xff]   ;;  %v8277_v7 = vld [vmem:[#allocation6 + $0xa0] sm:$0xff]  }
  0x9e   : > { %442 = vst [vmem:[#allocation2 + $0x139] sm:$0xff] %v409_v24  ;;  %443 = vst [vmem:[#allocation2 + $0x141] sm:$0xff] %v410_v27  ;;  %v8278_v9 = vld [vmem:[#allocation6 + $0xe8] sm:$0xff]   ;;  %v391_v11 = vld [vmem:[%s8981_s20 + $0x30] sm:$0xff] }
  0x9f   : > { %420 = vst [vmem:[#allocation2 + $0x31] sm:$0xff] %v387_v39  ;;  %421 = vst [vmem:[#allocation2 + $0x39] sm:$0xff] %v388_v46  ;;  %v392_v12 = vld [vmem:[%s8981_s20 + $0x38] sm:$0xff]  ;;  %v8279_v13 = vld [vmem:[#allocation6 + $0xa8] sm:$0xff]  }
  0xa0   : > { %6601 = vmatpush3.bf16.msra.mxu0 %v8261_v20  ;;  %8162 = vmatpush3.bf16.msra.mxu1 %v8261_v20  ;;  %444 = vst [vmem:[#allocation2 + $0x151] sm:$0xff] %v411_v47  ;;  %445 = vst [vmem:[#allocation2 + $0x159] sm:$0xff] %v412_v48  ;;  %v8286_v18 = vld [vmem:[#allocation6 + $0x158] sm:$0xff]   ;;  %v393_v20 = vld [vmem:[%s8981_s20 + $0x40] sm:$0xff] }
  0xa1   : > { %v450_v26 = vld [vmem:[#allocation2] sm:$0xff]  ;;  %6602 = vmatprep.subr.bf16.mxu0 %v8262_v22  ;;  %8155 = vmatprep.subr.bf16.mxu1 %v8262_v22  ;;  %422 = vst [vmem:[#allocation2 + $0x49] sm:$0xff] %v389_v54  ;;  %423 = vst [vmem:[#allocation2 + $0x51] sm:$0xff] %v390_v55  ;;  %v8287_v19 = vld [vmem:[#allocation6 + $0x118] sm:$0xff]  }
  0xa2   : > { %v482_v32 = vpack.c.bf16 %v8729_v0, %v450_v26  ;;  %446 = vst [vmem:[#allocation2 + $0x169] sm:$0xff] %v413_v57  ;;  %447 = vst [vmem:[#allocation2 + $0x171] sm:$0xff] %v414_v58  ;;  %v8280_v21 = vld [vmem:[#allocation6 + $0xf0] sm:$0xff]   ;;  %v394_v22 = vld [vmem:[%s8981_s20 + $0x48] sm:$0xff] }
  0xa3   : > { %v474_v28 = vld [vmem:[#allocation2 + $0x120] sm:$0xff]  ;;  %v475_v30 = vld [vmem:[#allocation2 + $0x128] sm:$0xff]  ;;  %424 = vst [vmem:[#allocation2 + $0x61] sm:$0xff] %v391_v11  ;;  %425 = vst [vmem:[#allocation2 + $0x69] sm:$0xff] %v392_v12  ;;  %v9115_v47 = vpack.c.bf16 %v394_v22, %v393_v20 }
  0xa4   : > { %v9044_v33 = vpack.c.bf16 %v475_v30, %v474_v28  ;;  %6603 = vmatpush3.bf16.msra.mxu0 %v8263_v25  ;;  %8163 = vmatpush3.bf16.msra.mxu1 %v8263_v25  ;;  %v452_v42 = vld [vmem:[#allocation2 + $0x18] sm:$0xff]  ;;  %v453_v43 = vld [vmem:[#allocation2 + $0x20] sm:$0xff]  ;;  %426 = vst [vmem:[#allocation2 + $0x79] sm:$0xff] %v393_v20  ;;  %427 = vst [vmem:[#allocation2 + $0x81] sm:$0xff] %v394_v22  ;;  %v9092_v28 = vpack.c.bf16 %v392_v12, %v391_v11 }
  0xa5   : > { %6700 = vmatprep.subr.bf16.mxu1 %v8264_v29  ;;  %6812 = vmatprep.subr.bf16.mxu0 %v8265_v31  ;;  %v476_v44 = vld [vmem:[#allocation2 + $0x138] sm:$0xff]  ;;  %v477_v49 = vld [vmem:[#allocation2 + $0x140] sm:$0xff]  ;;  %v9054_v51 = vpack.c.bf16 %v453_v43, %v452_v42  ;;  %v9084_v24 = vld [vmem:[%s8981_s20 + $0x58] sm:$0xff] }
  0xa6   : > { %v9056_v52 = vpack.c.bf16 %v477_v49, %v476_v44  ;;  %v454_v62 = vld [vmem:[#allocation2 + $0x30] sm:$0xff]  ;;  %v455_v63 = vld [vmem:[#allocation2 + $0x38] sm:$0xff]  ;;  %v9081_v23 = vld [vmem:[%s8981_s20 + $0x50] sm:$0xff]  ;;  %429 = vst [vmem:[#allocation2 + $0x99] sm:$0xff] %v9084_v24 }
  0xa7   : > { %1499 = vmatmul.mubr.bf16.vlgmr.msra.gmra.mrb[0].mxu0 %v482_v32  ;;  %1595 = vmatmul.mubr.bf16.vlgmr.msra.gmra.mrb[0].mxu1 %v9044_v33  ;;  %v478_v0 = vld [vmem:[#allocation2 + $0x150] sm:$0xff]  ;;  %v479_v3 = vld [vmem:[#allocation2 + $0x158] sm:$0xff]  ;;  %v9067_v5 = vpack.c.bf16 %v455_v63, %v454_v62  ;;  %v8282_v27 = vld [vmem:[#allocation6 + $0xb0] sm:$0xff]   ;;  %428 = vst [vmem:[#allocation2 + $0x91] sm:$0xff] %v9081_v23 }
  0xa8   : > { %6701 = vmatpush3.bf16.msra.mxu1 %v8266_v34  ;;  %6813 = vmatpush3.bf16.msra.mxu0 %v8267_v35  ;;  %v9069_v6 = vpack.c.bf16 %v479_v3, %v478_v0  ;;  %v456_v14 = vld [vmem:[#allocation2 + $0x48] sm:$0xff]  ;;  %v457_v15 = vld [vmem:[#allocation2 + $0x50] sm:$0xff]  ;;  %v8291_v42 = vld [vmem:[#allocation6 + $0x128] sm:$0xff]   ;;  %v9143_v0 = vpack.c.bf16 %v9084_v24, %v9081_v23 }
  0xa9   : > { %6702 = vmatprep.subr.bf16.mxu1 %v8268_v36  ;;  %1506 = vmatprep.mubr.bf16.mxu0 %v9046_v37  ;;  %v480_v16 = vld [vmem:[#allocation2 + $0x168] sm:$0xff]  ;;  %v481_v17 = vld [vmem:[#allocation2 + $0x170] sm:$0xff]  ;;  %v9086_v25 = vpack.c.bf16 %v457_v15, %v456_v14  ;;  %v9107_v43 = vld [vmem:[%s8981_s20 + $0x70] sm:$0xff] }
  0xaa   : > { %1602 = vmatprep.mubr.bf16.mxu1 %v543_v41  ;;  %6814 = vmatprep.subr.bf16.mxu0 %v8273_v38  ;;  %v9088_v26 = vpack.c.bf16 %v481_v17, %v480_v16  ;;  %v8288_v29 = vld [vmem:[#allocation6 + $0x160] sm:$0xff]   ;;  %v8284_v30 = vld [vmem:[#allocation6 + $0xf8] sm:$0xff]   ;;  %v9098_v38 = vld [vmem:[%s8981_s20 + $0x68] sm:$0xff]  ;;  %432 = vst [vmem:[#allocation2 + $0xc1] sm:$0xff] %v9107_v43 }
  0xab   : > { %v8285_v31 = vld [vmem:[#allocation6 + $0xb8] sm:$0xff]   ;;  %v8289_v35 = vld [vmem:[#allocation6 + $0x120] sm:$0xff]   ;;  %v458_v39 = vld [vmem:[#allocation2 + $0x60] sm:$0xff]  ;;  %431 = vst [vmem:[#allocation2 + $0xb1] sm:$0xff] %v9098_v38 }
  0xac   : > { %6703 = vmatpush3.bf16.msra.mxu1 %v8269_v40  ;;  %6815 = vmatpush3.bf16.msra.mxu0 %v8275_v45  ;;  %v546_v32 = vld [vmem:[#allocation2 + $0x2] sm:$0xff]  ;;  %v547_v34 = vld [vmem:[#allocation2 + $0xa] sm:$0xff]  ;;  %v8290_v41 = vld [vmem:[#allocation6 + $0x168] sm:$0xff]  }
  0xad   : > { %6704 = vmatprep.subr.bf16.mxu1 %v8270_v50  ;;  %6816 = vmatprep.subr.bf16.mxu0 %v8281_v2  ;;  %v9095_v36 = vld [vmem:[%s8981_s20 + $0x60] sm:$0xff]  ;;  %v459_v40 = vld [vmem:[#allocation2 + $0x68] sm:$0xff]  ;;  %v578_v45 = vpack.c.bf16 %v547_v34, %v546_v32  ;;  %v9122_v49 = vld [vmem:[%s8981_s20 + $0x88] sm:$0xff] }
  0xae   : > { %430 = vst [vmem:[#allocation2 + $0xa9] sm:$0xff] %v9095_v36  ;;  %v9109_v44 = vpack.c.bf16 %v459_v40, %v458_v39  ;;  %v9112_v46 = vld [vmem:[%s8981_s20 + $0x78] sm:$0xff]  ;;  %v9119_v48 = vld [vmem:[%s8981_s20 + $0x80] sm:$0xff]  ;;  %435 = vst [vmem:[#allocation2 + $0xe1] sm:$0xff] %v9122_v49  ;;  %v9165_v16 = vpack.c.bf16 %v9098_v38, %v9095_v36 }
  0xaf   : > { %1507 = vmatmul.mubr.bf16.gmra.mrb[4].mxu0 %v9054_v51  ;;  %1603 = vmatmul.mubr.bf16.gmra.mrb[4].mxu1 %v9056_v52  ;;  %433 = vst [vmem:[#allocation2 + $0xc9] sm:$0xff] %v9112_v46  ;;  %434 = vst [vmem:[#allocation2 + $0xd9] sm:$0xff] %v9119_v48  ;;  %v460_v50 = vld [vmem:[#allocation2 + $0x78] sm:$0xff]  ;;  %v8292_v54 = vld [vmem:[#allocation6 + $0x170] sm:$0xff]  }
  0xb0   : > { %6705 = vmatpush3.bf16.msra.mxu1 %v8271_v53  ;;  %1514 = vmatprep.mubr.bf16.mxu0 %v9060_v56  ;;  %v549_v53 = vld [vmem:[#allocation2 + $0x22] sm:$0xff]  ;;  %v9149_v2 = vld [vmem:[%s8981_s20 + $0xa8] sm:$0xff]  ;;  %v9157_v12 = vld [vmem:[#allocation6 + $0x200] sm:$0xff]  }
  0xb1   : > { %6706 = vmatprep.subr.bf16.mxu1 %v8272_v59  ;;  %1610 = vmatprep.mubr.bf16.mxu1 %v544_v60  ;;  %v8293_v55 = vld [vmem:[#allocation6 + $0x130] sm:$0xff]   ;;  %v9133_v59 = vld [vmem:[%s8981_s20 + $0x98] sm:$0xff]  ;;  %v550_v3 = vld [vmem:[#allocation2 + $0x32] sm:$0xff]  ;;  %439 = vst [vmem:[#allocation2 + $0x111] sm:$0xff] %v9149_v2 }
  0xb2   : > { %6817 = vmatpush3.bf16.msra.mxu0 %v8283_v4  ;;  %v461_v57 = vld [vmem:[#allocation2 + $0x80] sm:$0xff]  ;;  %437 = vst [vmem:[#allocation2 + $0xf9] sm:$0xff] %v9133_v59  ;;  %v8294_v60 = vld [vmem:[#allocation6 + $0x178] sm:$0xff]   ;;  %v8296_v4 = vld [vmem:[#allocation6 + $0x1c0] sm:$0xff]  }
  0xb3   : > { %6818 = vmatprep.subr.bf16.mxu0 %v8286_v18  ;;  %v9130_v58 = vld [vmem:[%s8981_s20 + $0x90] sm:$0xff]  ;;  %v8295_v63 = vld [vmem:[#allocation6 + $0x138] sm:$0xff]   ;;  %v8299_v15 = vld [vmem:[#allocation6 + $0x1c8] sm:$0xff]  }
  0xb4   : > { %6707 = vmatpush3.bf16.msra.mxu1 %v8274_v61  ;;  %436 = vst [vmem:[#allocation2 + $0xf1] sm:$0xff] %v9130_v58  ;;  %v9137_v61 = vpack.c.bf16 %v461_v57, %v460_v50  ;;  %v551_v11 = vld [vmem:[#allocation2 + $0x3a] sm:$0xff]  ;;  %v552_v18 = vld [vmem:[#allocation2 + $0x4a] sm:$0xff]  ;;  %v554_v32 = vld [vmem:[#allocation2 + $0x62] sm:$0xff] }
  0xb5   : > { %6708 = vmatprep.subr.bf16.mxu1 %v8276_v1  ;;  %v9146_v1 = vld [vmem:[%s8981_s20 + $0xa0] sm:$0xff]  ;;  %v9161_v14 = vpack.c.bf16 %v551_v11, %v550_v3  ;;  %v8300_v17 = vld [vmem:[#allocation6 + $0x188] sm:$0xff]   ;;  %v8302_v22 = vld [vmem:[#allocation6 + $0x1d0] sm:$0xff]  }
  0xb6   : > { %6819 = vmatpush3.bf16.msra.mxu0 %v8287_v19  ;;  %438 = vst [vmem:[#allocation2 + $0x109] sm:$0xff] %v9146_v1  ;;  %v464_v19 = vld [vmem:[#allocation2 + $0xa8] sm:$0xff]  ;;  %v465_v20 = vld [vmem:[#allocation2 + $0xb0] sm:$0xff]  ;;  %v8303_v23 = vld [vmem:[#allocation6 + $0x190] sm:$0xff]  }
  0xb7   : > { %1515 = vmatmul.mubr.bf16.gmra.mrb[8].mxu0 %v9067_v5  ;;  %1611 = vmatmul.mubr.bf16.gmra.mrb[8].mxu1 %v9069_v6  ;;  %v9172_v24 = vpack.c.bf16 %v465_v20, %v464_v19  ;;  %v555_v34 = vld [vmem:[#allocation2 + $0x6a] sm:$0xff]  ;;  %v468_v50 = vld [vmem:[#allocation2 + $0xd8] sm:$0xff] }
  0xb8   : > { %6709 = vmatpush3.bf16.msra.mxu1 %v8277_v7  ;;  %1522 = vmatprep.mubr.bf16.mxu0 %v9071_v8  ;;  %v8297_v7 = vld [vmem:[#allocation6 + $0x180] sm:$0xff]   ;;  %v467_v38 = vld [vmem:[#allocation2 + $0xc8] sm:$0xff] }
  0xb9   : > { %6710 = vmatprep.subr.bf16.mxu1 %v8278_v9  ;;  %1618 = vmatprep.mubr.bf16.mxu1 %v545_v10  ;;  %v462_v9 = vld [vmem:[#allocation2 + $0x90] sm:$0xff]  ;;  %v463_v10 = vld [vmem:[#allocation2 + $0x98] sm:$0xff]  ;;  %v8314_v3 = vld [vmem:[#allocation6 + $0x1f8] sm:$0xff]  }
  0xba   : > { %6820 = vmatprep.subr.bf16.mxu0 %v8288_v29  ;;  %v9178_v29 = vpack.c.bf16 %v9112_v46, %v9107_v43  ;;  %v8307_v36 = vld [vmem:[#allocation6 + $0x1e0] sm:$0xff]   ;;  %v415_v43 = vld [vmem:[%s8981_s20 + $0xf0] sm:$0xff]  ;;  %v8310_v46 = vld [vmem:[#allocation6 + $0x1e8] sm:$0xff]  }
  0xbb   : > { %6821 = vmatpush3.bf16.msra.mxu0 %v8289_v35  ;;  %v8306_v35 = vld [vmem:[#allocation6 + $0x198] sm:$0xff]   ;;  %v8309_v39 = vld [vmem:[#allocation6 + $0x1a0] sm:$0xff]   ;;  %448 = vst [vmem:[#allocation2 + $0x181] sm:$0xff] %v415_v43  ;;  %v471_v11 = vld [vmem:[#allocation2 + $0xf8] sm:$0xff] }
  0xbc   : > { %6711 = vmatpush3.bf16.msra.mxu1 %v8279_v13  ;;  %6822 = vmatprep.subr.bf16.mxu0 %v8290_v41  ;;  %v9159_v13 = vpack.c.bf16 %v463_v10, %v462_v9  ;;  %v9186_v41 = vpack.c.bf16 %v555_v34, %v554_v32  ;;  %v8315_v9 = vld [vmem:[#allocation6 + $0x1b8] sm:$0xff]   ;;  %v470_v10 = vld [vmem:[#allocation2 + $0xf0] sm:$0xff]  ;;  %v564_v32 = vld [vmem:[#allocation2 + $0xda] sm:$0xff] }
  0xbd   : > { %6712 = vmatprep.subr.bf16.mxu1 %v8280_v21  ;;  %v553_v21 = vld [vmem:[#allocation2 + $0x52] sm:$0xff]  ;;  %v565_v34 = vld [vmem:[#allocation2 + $0xe2] sm:$0xff] }
  0xbe   : > { %v561_v19 = vld [vmem:[#allocation2 + $0xb2] sm:$0xff] }
  0xbf   : > { %1523 = vmatmul.mubr.bf16.gmra.mrb[12].mxu0 %v9086_v25  ;;  %1619 = vmatmul.mubr.bf16.gmra.mrb[12].mxu1 %v9088_v26  ;;  %v473_v20 = vld [vmem:[#allocation2 + $0x110] sm:$0xff] }
  0xc0   : > { %6713 = vmatpush3.bf16.msra.mxu1 %v8282_v27  ;;  %1530 = vmatprep.mubr.bf16.mxu0 %v9092_v28  ;;  %v9174_v27 = vpack.c.bf16 %v553_v21, %v552_v18  ;;  %v560_v18 = vld [vmem:[#allocation2 + $0xaa] sm:$0xff] }
  0xc1   : > { %6714 = vmatprep.subr.bf16.mxu1 %v8284_v30  ;;  %1659 = vmatprep.mubr.bf16.mxu1 %v9054_v51  ;;  %v548_v51 = vld [vmem:[#allocation2 + $0x1a] sm:$0xff]  ;;  %v8305_v30 = vld [vmem:[#allocation6 + $0x1d8] sm:$0xff]  }
  0xc2   : > { %6823 = vmatpush3.bf16.msra.mxu0 %v8291_v42  ;;  %v9139_v62 = vpack.c.bf16 %v549_v53, %v548_v51  ;;  %v9190_v42 = vpack.c.bf16 %v9122_v49, %v9119_v48  ;;  %v556_v51 = vld [vmem:[#allocation2 + $0x7a] sm:$0xff]  ;;  %v557_v53 = vld [vmem:[#allocation2 + $0x82] sm:$0xff] }
  0xc3   : > { %6824 = vmatprep.subr.bf16.mxu0 %v8292_v54  ;;  %v8311_v54 = vld [vmem:[#allocation6 + $0x1a8] sm:$0xff]   ;;  %v469_v48 = vld [vmem:[#allocation2 + $0xe0] sm:$0xff] }
  0xc4   : > { %6715 = vmatpush3.bf16.msra.mxu1 %v8285_v31  ;;  %v466_v31 = vld [vmem:[#allocation2 + $0xc0] sm:$0xff]  ;;  %v9198_v57 = vpack.c.bf16 %v469_v48, %v468_v50 }
  0xc5   : > { %6924 = vmatprep.subr.bf16.mxu1 %v8296_v4  ;;  %v9184_v40 = vpack.c.bf16 %v467_v38, %v466_v31  ;;  %v8313_v49 = vld [vmem:[#allocation6 + $0x1b0] sm:$0xff]   ;;  %v558_v4 = vld [vmem:[#allocation2 + $0x92] sm:$0xff] }
  0xc6   : > { %6825 = vmatpush3.bf16.msra.mxu0 %v8293_v55  ;;  %v8312_v55 = vld [vmem:[#allocation6 + $0x1f0] sm:$0xff]   ;;  %v8301_v31 = vld [vmem:[#allocation6 + $0x208] sm:$0xff]  }
  0xc7   : > { %1531 = vmatmul.mubr.bf16.gmra.mrb[16].mxu0 %v9109_v44  ;;  %1660 = vmatmul.mubr.bf16.vlgmr.msra.gmra.mrb[16].mxu1 %v578_v45  ;;  %v416_v45 = vld [vmem:[%s8981_s20 + $0xf8] sm:$0xff]  ;;  %v566_v38 = vld [vmem:[#allocation2 + $0xf2] sm:$0xff]  ;;  %s8730_s20 = smov [#allocation11]  }
  0xc8   : > { %1538 = vmatprep.mubr.bf16.mxu0 %v9115_v47  ;;  %1667 = vmatprep.mubr.bf16.mxu1 %v9067_v5  ;;  %449 = vst [vmem:[#allocation2 + $0x189] sm:$0xff] %v416_v45  ;;  %v573_v48 = vld [vmem:[#allocation2 + $0x142] sm:$0xff]  ;;  %s8649_s30 = sshll.u32 %s8730_s20, 4  ;;  %s8650_s30 = int_to_ptr.vmem [resolvable:$false] %s8649_s30 }
  0xc9   : > { %6826 = vmatprep.subr.bf16.mxu0 %v8294_v60  ;;  %6925 = vmatpush3.bf16.msra.mxu1 %v8297_v7  ;;  %v9200_v60 = vpack.c.bf16 %v557_v53, %v556_v51  ;;  %v559_v7 = vld [vmem:[#allocation2 + $0x9a] sm:$0xff]  ;;  %v8319_v51 = vld [vmem:[#allocation6 + $0x238] sm:$0xff]   ;;  %s8651_s9 = scalar_lea.vmem %s8650_s30, 8192  ;;  %p8652_p12 = scmp.lt.s32.totalorder %s10840_s12, %s8650_s30 }
  0xca   : > { %6827 = vmatpush3.bf16.msra.mxu0 %v8295_v63  ;;  %6926 = vmatprep.subr.bf16.mxu1 %v8299_v15  ;;  %v9204_v63 = vpack.c.bf16 %v9133_v59, %v9130_v58  ;;  %v9210_v15 = vpack.c.bf16 %v471_v11, %v470_v10  ;;  %v9212_v58 = vpack.c.bf16 %v559_v7, %v558_v4  ;;  %v570_v53 = vld [vmem:[#allocation2 + $0x122] sm:$0xff]  ;;  %v577_v11 = vld [vmem:[#allocation2 + $0x172] sm:$0xff]  ;;  %p8653_p1 = scmp.lt.s32.totalorder %s8651_s9, %s8645_s13 }
  0xcb   : > { %8004 = vmatprep.subr.bf16.mxu0 %v9157_v12  ;;  %v9216_v59 = vpack.c.bf16 %v9149_v2, %v9146_v1  ;;  %v562_v1 = vld [vmem:[#allocation2 + $0xc2] sm:$0xff]  ;;  %v563_v2 = vld [vmem:[#allocation2 + $0xca] sm:$0xff] }
  0xcc   : > { %v624_v4 = vld [vmem:[#allocation2 + $0x180] sm:$0xff]  ;;  %p8654_p2 = por %p8653_p1, %p8652_p12 }
  0xcd   : > { %6927 = vmatpush3.bf16.msra.mxu1 %v8300_v17  ;;  %v472_v17 = vld [vmem:[#allocation2 + $0x108] sm:$0xff] }
  0xce   : > { %6928 = vmatprep.subr.bf16.mxu1 %v8302_v22  ;;  %v9222_v21 = vpack.c.bf16 %v473_v20, %v472_v17  ;;  %v9224_v22 = vpack.c.bf16 %v561_v19, %v560_v18  ;;  %v8320_v18 = vld [vmem:[#allocation8 + $0x40] sm:$0xff]   ;;  %p8655_p4 = pnand %p8654_p2, %p8648_p7 }
  0xcf   : > { %1539 = vmatmul.mubr.bf16.gmra.mrb[20].mxu0 %v9137_v61  ;;  %1668 = vmatmul.mubr.bf16.gmra.mrb[20].mxu1 %v9139_v62  ;;  %v625_v7 = vld [vmem:[#allocation2 + $0x188] sm:$0xff] }
  0xd0   : > { %1546 = vmatprep.mubr.bf16.mxu0 %v9143_v0  ;;  %1675 = vmatprep.mubr.bf16.mxu1 %v9086_v25  ;;  %v9271_v10 = vpack.c.bf16 %v625_v7, %v624_v4  ;;  %v720_v20 = vld [vmem:[#allocation2 + $0x182] sm:$0xff] }
  0xd1   : > { %6929 = vmatpush3.bf16.msra.mxu1 %v8303_v23  ;;  %v9226_v23 = vpack.c.bf16 %v416_v45, %v415_v43  ;;  %v568_v43 = vld [vmem:[#allocation2 + $0x10a] sm:$0xff]  ;;  %v569_v45 = vld [vmem:[#allocation2 + $0x112] sm:$0xff] }
  0xd2   : > { %6930 = vmatprep.subr.bf16.mxu1 %v8305_v30  ;;  %v9232_v30 = vpack.c.bf16 %v563_v2, %v562_v1  ;;  %v9251_v50 = vpack.c.bf16 %v569_v45, %v568_v43  ;;  %v721_v1 = vld [vmem:[#allocation2 + $0x18a] sm:$0xff] }
  0xd3   : > { %v9315_v2 = vpack.c.bf16 %v721_v1, %v720_v20  ;;  %v760_v1 = vld [vmem:[#allocation2 + $0x128] sm:$0xff] }
  0xd5   : > { %6931 = vmatpush3.bf16.msra.mxu1 %v8306_v35  ;;  %v8304_v35 = vld [vmem:[#allocation6 + $0x210] sm:$0xff]  }
  0xd6   : > { %6932 = vmatprep.subr.bf16.mxu1 %v8307_v36  ;;  %v9239_v36 = vpack.c.bf16 %v565_v34, %v564_v32  ;;  %v835_v32 = vld [vmem:[#allocation2 + $0x32] sm:$0xff] }
  0xd7   : > { %1547 = vmatmul.mubr.bf16.gmra.mrb[24].mxu0 %v9159_v13  ;;  %1676 = vmatmul.mubr.bf16.gmra.mrb[24].mxu1 %v9161_v14 }
  0xd8   : > { %1554 = vmatprep.mubr.bf16.mxu0 %v9165_v16  ;;  %1683 = vmatprep.mubr.bf16.mxu1 %v9109_v44 }
  0xd9   : > { %6933 = vmatpush3.bf16.msra.mxu1 %v8309_v39  ;;  %v567_v39 = vld [vmem:[#allocation2 + $0xfa] sm:$0xff] }
  0xda   : > { %6934 = vmatprep.subr.bf16.mxu1 %v8310_v46  ;;  %v8318_v46 = vld [vmem:[#allocation6 + $0x230] sm:$0xff]  }
  0xdd   : > { %6935 = vmatpush3.bf16.msra.mxu1 %v8311_v54  ;;  %v571_v54 = vld [vmem:[#allocation2 + $0x12a] sm:$0xff] }
  0xde   : > { %6936 = vmatprep.subr.bf16.mxu1 %v8312_v55  ;;  %v572_v55 = vld [vmem:[#allocation2 + $0x13a] sm:$0xff] }
  0xdf   : > { %1555 = vmatmul.mubr.bf16.gmra.mrb[28].mxu0 %v9172_v24  ;;  %1684 = vmatmul.mubr.bf16.gmra.mrb[28].mxu1 %v9174_v27 }
  0xe0   : > { %1562 = vmatprep.mubr.bf16.mxu0 %v9178_v29  ;;  %1691 = vmatprep.mubr.bf16.mxu1 %v9137_v61 }
  0xe1   : > { %6937 = vmatpush3.bf16.msra.mxu1 %v8313_v49  ;;  %v9263_v49 = vpack.c.bf16 %v573_v48, %v572_v55 }
  0xe2   : > { %6938 = vmatprep.subr.bf16.mxu1 %v8314_v3  ;;  %v575_v3 = vld [vmem:[#allocation2 + $0x15a] sm:$0xff] }
  0xe5   : > { %6939 = vmatpush3.bf16.msra.mxu1 %v8315_v9 }
  0xe6   : > { %7060 = vmatprep.subr.bf16.mxu1 %v8320_v18 }
  0xe7   : > { %1563 = vmatmul.mubr.bf16.gmra.mrb[32].mxu0 %v9184_v40  ;;  %1692 = vmatmul.mubr.bf16.gmra.mrb[32].mxu1 %v9186_v41 }
  0xe8   : > { %1570 = vmatprep.mubr.bf16.mxu0 %v9190_v42  ;;  %1699 = vmatprep.mubr.bf16.mxu1 %v9159_v13 }
  0xef   : > { %1571 = vmatmul.mubr.bf16.gmra.mrb[36].mxu0 %v9198_v57  ;;  %1700 = vmatmul.mubr.bf16.gmra.mrb[36].mxu1 %v9200_v60 }
  0xf0   : > { %1578 = vmatprep.mubr.bf16.mxu0 %v9204_v63  ;;  %1707 = vmatprep.mubr.bf16.mxu1 %v9172_v24 }
  0xf7   : > { %1579 = vmatmul.mubr.bf16.gmra.mrb[40].mxu0 %v9210_v15  ;;  %1708 = vmatmul.mubr.bf16.gmra.mrb[40].mxu1 %v9212_v58 }
  0xf8   : > { %1586 = vmatprep.mubr.bf16.mxu0 %v9216_v59  ;;  %1715 = vmatprep.mubr.bf16.mxu1 %v9184_v40 }
  0xff   : > { %1587 = vmatmul.mubr.bf16.gmra.mrb[44].mxu0 %v9222_v21  ;;  %1716 = vmatmul.mubr.bf16.gmra.mrb[44].mxu1 %v9224_v22 }
 0x100   : > { %1723 = vmatprep.mubr.bf16.mxu1 %v9198_v57  ;;  %1820 = vmatprep.mubr.bf16.mxu0 %v9139_v62  ;;  %v8308_v62 = vld [vmem:[#allocation6 + $0x218] sm:$0xff]  }
 0x107   : > { %1724 = vmatmul.mubr.bf16.gmra.mrb[48].mxu1 %v9232_v30  ;;  %1821 = vmatmul.mubr.bf16.vlgmr.msra.gmra.mrb[48].mxu0 %v9046_v37  ;;  %v8316_v37 = vld [vmem:[#allocation6 + $0x220] sm:$0xff]  }
 0x108   : > { %8005 = vmatpush3.bf16.msra.mxu0 %v9157_v12  ;;  %1731 = vmatprep.mubr.bf16.mxu1 %v9210_v15  ;;  %v9245_v12 = vpack.c.bf16 %v567_v39, %v566_v38 }
 0x109   : > { %1828 = vmatprep.mubr.bf16.mxu0 %v9161_v14  ;;  %8006 = vmatprep.subr.bf16.mxu0 %v8301_v31  ;;  %v8317_v14 = vld [vmem:[#allocation6 + $0x228] sm:$0xff]  }
 0x10c   : > { %8007 = vmatpush3.bf16.msra.mxu0 %v8301_v31  ;;  %v8323_v31 = vld [vmem:[#allocation8 + $0x8] sm:$0xff]  }
 0x10d   : > { %8008 = vmatprep.subr.bf16.mxu0 %v8304_v35 }
 0x10f   : > { %1732 = vmatmul.mubr.bf16.gmra.mrb[52].mxu1 %v9239_v36  ;;  %1829 = vmatmul.mubr.bf16.gmra.mrb[52].mxu0 %v9060_v56 }
 0x110   : > { %1739 = vmatprep.mubr.bf16.mxu1 %v9222_v21  ;;  %1836 = vmatprep.mubr.bf16.mxu0 %v9174_v27 }
 0x111   : > { %8009 = vmatpush3.bf16.msra.mxu0 %v8304_v35 }
 0x112   : > { %8010 = vmatprep.subr.bf16.mxu0 %v8308_v62 }
 0x115   : > { %8011 = vmatpush3.bf16.msra.mxu0 %v8308_v62 }
 0x116   : > { %8012 = vmatprep.subr.bf16.mxu0 %v8316_v37 }
 0x117   : > { %1740 = vmatmul.mubr.bf16.gmra.mrb[56].mxu1 %v9245_v12  ;;  %1837 = vmatmul.mubr.bf16.gmra.mrb[56].mxu0 %v9071_v8 }
 0x118   : > { %1747 = vmatprep.mubr.bf16.mxu1 %v9044_v33  ;;  %1844 = vmatprep.mubr.bf16.mxu0 %v9186_v41  ;;  %v9257_v33 = vpack.c.bf16 %v571_v54, %v570_v53 }
 0x119   : > { %8013 = vmatpush3.bf16.msra.mxu0 %v8316_v37 }
 0x11a   : > { %8014 = vmatprep.subr.bf16.mxu0 %v8317_v14 }
 0x11d   : > { %8015 = vmatpush3.bf16.msra.mxu0 %v8317_v14 }
 0x11e   : > { %8016 = vmatprep.subr.bf16.mxu0 %v8318_v46 }
 0x11f   : > { %1748 = vmatmul.mubr.bf16.gmra.mrb[60].mxu1 %v9251_v50  ;;  %1845 = vmatmul.mubr.bf16.gmra.mrb[60].mxu0 %v9092_v28 }
 0x120   : > { %1755 = vmatprep.mubr.bf16.mxu1 %v9056_v52  ;;  %1852 = vmatprep.mubr.bf16.mxu0 %v9200_v60  ;;  %v574_v52 = vld [vmem:[#allocation2 + $0x152] sm:$0xff] }
 0x121   : > { %8017 = vmatpush3.bf16.msra.mxu0 %v8318_v46  ;;  %v9269_v9 = vpack.c.bf16 %v575_v3, %v574_v52 }
 0x122   : > { %8018 = vmatprep.subr.bf16.mxu0 %v8319_v51 }
 0x125   : > { %8019 = vmatpush3.bf16.msra.mxu0 %v8319_v51 }
 0x127   : > { %1756 = vmatmul.mubr.bf16.gmra.mrb[64].mxu1 %v9257_v33  ;;  %1853 = vmatmul.mubr.bf16.gmra.mrb[64].mxu0 %v9115_v47 }
 0x128   : > { %1763 = vmatprep.mubr.bf16.mxu1 %v9069_v6  ;;  %1860 = vmatprep.mubr.bf16.mxu0 %v9212_v58  ;;  %v576_v6 = vld [vmem:[#allocation2 + $0x16a] sm:$0xff] }
 0x129   : > { %v9277_v17 = vpack.c.bf16 %v577_v11, %v576_v6 }
 0x12f   : > { %1764 = vmatmul.mubr.bf16.gmra.mrb[68].mxu1 %v9263_v49  ;;  %1861 = vmatmul.mubr.bf16.gmra.mrb[68].mxu0 %v9143_v0 }
 0x130   : > { %1771 = vmatprep.mubr.bf16.mxu1 %v9088_v26  ;;  %1868 = vmatprep.mubr.bf16.mxu0 %v9224_v22 }
 0x137   : > { %1772 = vmatmul.mubr.bf16.gmra.mrb[72].mxu1 %v9269_v9  ;;  %1869 = vmatmul.mubr.bf16.gmra.mrb[72].mxu0 %v9165_v16 }
 0x138   : > { %1779 = vmatprep.mubr.bf16.mxu1 %v9271_v10  ;;  %1876 = vmatprep.mubr.bf16.mxu0 %v9232_v30 }
 0x13f   : > { %1780 = vmatmul.mubr.bf16.gmra.mrb[76].mxu1 %v9277_v17  ;;  %1877 = vmatmul.mubr.bf16.gmra.mrb[76].mxu0 %v9178_v29 }
 0x140   : > { %1884 = vmatprep.mubr.bf16.mxu0 %v9239_v36  ;;  %1981 = vmatprep.mubr.bf16.mxu1 %v9060_v56  ;;  %v664_v56 = vld [vmem:[#allocation2 + $0x121] sm:$0xff] }
 0x147   : > { %1885 = vmatmul.mubr.bf16.gmra.mrb[80].mxu0 %v9190_v42  ;;  %1982 = vmatmul.mubr.bf16.vlgmr.msra.gmra.mrb[80].mxu1 %v9067_v5  ;;  %v665_v5 = vld [vmem:[#allocation2 + $0x129] sm:$0xff] }
 0x148   : > { %1892 = vmatprep.mubr.bf16.mxu0 %v9245_v12  ;;  %1989 = vmatprep.mubr.bf16.mxu1 %v9071_v8  ;;  %v9295_v26 = vpack.c.bf16 %v665_v5, %v664_v56  ;;  %v666_v8 = vld [vmem:[#allocation2 + $0x139] sm:$0xff] }
 0x14f   : > { %1893 = vmatmul.mubr.bf16.gmra.mrb[84].mxu0 %v9204_v63  ;;  %1990 = vmatmul.mubr.bf16.gmra.mrb[84].mxu1 %v9086_v25  ;;  %v667_v25 = vld [vmem:[#allocation2 + $0x141] sm:$0xff] }
 0x150   : > { %1900 = vmatprep.mubr.bf16.mxu0 %v9251_v50  ;;  %1997 = vmatprep.mubr.bf16.mxu1 %v9092_v28  ;;  %v9301_v28 = vpack.c.bf16 %v667_v25, %v666_v8 }
 0x157   : > { %1901 = vmatmul.mubr.bf16.gmra.mrb[88].mxu0 %v9216_v59  ;;  %1998 = vmatmul.mubr.bf16.gmra.mrb[88].mxu1 %v9109_v44  ;;  %v668_v44 = vld [vmem:[#allocation2 + $0x151] sm:$0xff] }
 0x158   : > { %1908 = vmatprep.mubr.bf16.mxu0 %v9257_v33  ;;  %2005 = vmatprep.mubr.bf16.mxu1 %v9115_v47  ;;  %v669_v47 = vld [vmem:[#allocation2 + $0x159] sm:$0xff] }
 0x159   : > { %v9307_v19 = vpack.c.bf16 %v669_v47, %v668_v44 }
 0x15f   : > { %1909 = vmatmul.mubr.bf16.gmra.mrb[92].mxu0 %v9295_v26  ;;  %2006 = vmatmul.mubr.bf16.gmra.mrb[92].mxu1 %v9137_v61  ;;  %v8321_v61 = vld [vmem:[#allocation8] sm:$0xff]  }
 0x160   : > { %1916 = vmatprep.mubr.bf16.mxu0 %v9263_v49  ;;  %2013 = vmatprep.mubr.bf16.mxu1 %v9143_v0  ;;  %v670_v0 = vld [vmem:[#allocation2 + $0x169] sm:$0xff] }
 0x161   : > { %7061 = vmatpush3.bf16.msra.mxu1 %v8321_v61 }
 0x167   : > { %1917 = vmatmul.mubr.bf16.gmra.mrb[96].mxu0 %v9301_v28  ;;  %2014 = vmatmul.mubr.bf16.gmra.mrb[96].mxu1 %v9159_v13  ;;  %v671_v13 = vld [vmem:[#allocation2 + $0x171] sm:$0xff] }
 0x168   : > { %1924 = vmatprep.mubr.bf16.mxu0 %v9269_v9  ;;  %2021 = vmatprep.mubr.bf16.mxu1 %v9165_v16  ;;  %v9313_v16 = vpack.c.bf16 %v671_v13, %v670_v0 }
 0x16f   : > { %1925 = vmatmul.mubr.bf16.gmra.mrb[100].mxu0 %v9307_v19  ;;  %2022 = vmatmul.mubr.bf16.gmra.mrb[100].mxu1 %v9172_v24  ;;  %v8322_v24 = vld [vmem:[#allocation8 + $0x48] sm:$0xff]  }
 0x170   : > { %1932 = vmatprep.mubr.bf16.mxu0 %v9277_v17  ;;  %2029 = vmatprep.mubr.bf16.mxu1 %v9178_v29  ;;  %v836_v29 = vld [vmem:[#allocation2 + $0x3a] sm:$0xff] }
 0x171   : > { %7062 = vmatprep.subr.bf16.mxu1 %v8322_v24  ;;  %v867_v14 = vpack.c.bf16 %v836_v29, %v835_v32 }
 0x172   : > { %7063 = vmatpush3.bf16.msra.mxu1 %v8323_v31 }
 0x177   : > { %1933 = vmatmul.mubr.bf16.gmra.mrb[104].mxu0 %v9313_v16  ;;  %2030 = vmatmul.mubr.bf16.gmra.mrb[104].mxu1 %v9184_v40 }
 0x178   : > { %1940 = vmatprep.mubr.bf16.mxu0 %v9315_v2  ;;  %2037 = vmatprep.mubr.bf16.mxu1 %v9190_v42 }
 0x17a   : > { %v6604_v34 = vpop.f32.mrb[0].mxu0  ;;  %v6676_v35 = vpop.f32.mrb[0].mxu1 }
 0x17b   : > { %v6605_v62 = vpop.f32.mrb[1].mxu0  ;;  %v6677_v38 = vpop.f32.mrb[1].mxu1 }
 0x17c   : > { %v9321_v39 = vadd.f32 %v6605_v62, %v6604_v34  ;;  %v6607_v37 = vpop.f32.mrb[2].mxu0  ;;  %v9323_v43 = vadd.f32 %v6677_v38, %v6676_v35  ;;  %v6679_v40 = vpop.f32.mrb[2].mxu1 }
 0x17d   : > { %v6608_v45 = vpop.f32.mrb[3].mxu0  ;;  %v6680_v46 = vpop.f32.mrb[3].mxu1 }
 0x17e   : > { %v9325_v42 = vadd.f32 %v6608_v45, %v6607_v37  ;;  %v9327_v51 = vadd.f32 %v6680_v46, %v6679_v40  ;;  %v762_v40 = vld [vmem:[#allocation2 + $0x140] sm:$0xff]  ;;  %v8326_v45 = vld [vmem:[#allocation8 + $0x58] sm:$0xff]  }
 0x17f   : > { %1941 = vmatmul.mubr.bf16.gmra.mrb[108].mxu0 %v9226_v23  ;;  %2038 = vmatmul.mubr.bf16.gmra.mrb[108].mxu1 %v9198_v57  ;;  %v8324_v57 = vld [vmem:[#allocation8 + $0x50] sm:$0xff]   ;;  %v8327_v46 = vld [vmem:[#allocation8 + $0x18] sm:$0xff]  }
 0x180   : > { %2045 = vmatprep.mubr.bf16.mxu1 %v9204_v63  ;;  %8020 = vmatprep.mubr.bf16.mxu0 %v867_v14  ;;  %v8325_v63 = vld [vmem:[#allocation8 + $0x10] sm:$0xff]  }
 0x181   : > { %7064 = vmatprep.subr.bf16.mxu1 %v8324_v57 }
 0x182   : > { %v6610_v53 = vpop.f32.mrb[4].mxu0  ;;  %v6682_v54 = vpop.f32.mrb[4].mxu1  ;;  %7065 = vmatpush3.bf16.msra.mxu1 %v8325_v63 }
 0x183   : > { %v6611_v55 = vpop.f32.mrb[5].mxu0  ;;  %v6683_v48 = vpop.f32.mrb[5].mxu1  ;;  %7066 = vmatprep.subr.bf16.mxu1 %v8326_v45  ;;  %v8329_v45 = vld [vmem:[#allocation8 + $0x20] sm:$0xff]  }
 0x184   : > { %v9332_v52 = vadd.f32 %v6611_v55, %v6610_v53  ;;  %v6613_v3 = vpop.f32.mrb[6].mxu0  ;;  %v9334_v4 = vadd.f32 %v6683_v48, %v6682_v54  ;;  %v6685_v7 = vpop.f32.mrb[6].mxu1  ;;  %v9370_v53 = vld [vmem:[%s10889_s2] ss:$0 sm:$0xff] }
 0x185   : > { %v6614_v6 = vpop.f32.mrb[7].mxu0  ;;  %v6686_v11 = vpop.f32.mrb[7].mxu1 }
 0x186   : > { %v9336_v56 = vadd.f32 %v6614_v6, %v6613_v3  ;;  %v9338_v5 = vadd.f32 %v6686_v11, %v6685_v7  ;;  %7067 = vmatpush3.bf16.msra.mxu1 %v8327_v46 }
 0x187   : > { %2046 = vmatmul.mubr.bf16.gmra.mrb[112].mxu1 %v9210_v15  ;;  %8021 = vmatmul.mubr.bf16.vlgmr.msra.gmra.mrb[112].mxu0 %v9174_v27 }
 0x188   : > { %2053 = vmatprep.mubr.bf16.mxu1 %v9216_v59  ;;  %8024 = vmatprep.mubr.bf16.mxu0 %v9186_v41  ;;  %v759_v41 = vld [vmem:[#allocation2 + $0x120] sm:$0xff] }
 0x189   : > { %v781_v34 = vpack.c.bf16 %v760_v1, %v759_v41 }
 0x18a   : > { %v6616_v8 = vpop.f32.mrb[8].mxu0  ;;  %v6688_v25 = vpop.f32.mrb[8].mxu1 }
 0x18b   : > { %v6617_v44 = vpop.f32.mrb[9].mxu0  ;;  %v6689_v47 = vpop.f32.mrb[9].mxu1 }
 0x18c   : > { %v9344_v18 = vadd.f32 %v6617_v44, %v6616_v8  ;;  %v6619_v61 = vpop.f32.mrb[10].mxu0  ;;  %v9346_v0 = vadd.f32 %v6689_v47, %v6688_v25  ;;  %v6691_v15 = vpop.f32.mrb[10].mxu1  ;;  %v1504_v8 = vadd.f32 %v9325_v42, %v9370_v53 }
 0x18d   : > { %v6620_v13 = vpop.f32.mrb[11].mxu0  ;;  %v6692_v27 = vpop.f32.mrb[11].mxu1 }
 0x18e   : > { %v9348_v20 = vadd.f32 %v6620_v13, %v6619_v61  ;;  %v9350_v59 = vadd.f32 %v6692_v27, %v6691_v15  ;;  %v764_v15 = vld [vmem:[#allocation2 + $0x158] sm:$0xff] }
 0x18f   : > { %2054 = vmatmul.mubr.bf16.gmra.mrb[116].mxu1 %v9222_v21  ;;  %8025 = vmatmul.mubr.bf16.gmra.mrb[116].mxu0 %v9200_v60 }
 0x190   : > { %2061 = vmatprep.mubr.bf16.mxu1 %v9295_v26  ;;  %8028 = vmatprep.mubr.bf16.mxu0 %v9212_v58  ;;  %v761_v58 = vld [vmem:[#allocation2 + $0x138] sm:$0xff] }
 0x191   : > { %v782_v7 = vpack.c.bf16 %v762_v40, %v761_v58  ;;  %v766_v58 = vld [vmem:[#allocation2 + $0x170] sm:$0xff] }
 0x192   : > { %v6622_v24 = vpop.f32.mrb[12].mxu0  ;;  %v6694_v31 = vpop.f32.mrb[12].mxu1  ;;  %v8328_v40 = vld [vmem:[#allocation8 + $0x60] sm:$0xff]  }
 0x193   : > { %v6623_v32 = vpop.f32.mrb[13].mxu0  ;;  %v6695_v29 = vpop.f32.mrb[13].mxu1  ;;  %7068 = vmatprep.subr.bf16.mxu1 %v8328_v40 }
 0x194   : > { %v9356_v35 = vadd.f32 %v6623_v32, %v6622_v24  ;;  %v6625_v62 = vpop.f32.mrb[14].mxu0  ;;  %v9358_v38 = vadd.f32 %v6695_v29, %v6694_v31  ;;  %v6697_v37 = vpop.f32.mrb[14].mxu1  ;;  %v1509_v24 = vadd.f32 %v9332_v52, %v9370_v53  ;;  %7069 = vmatpush3.bf16.msra.mxu1 %v8329_v45 }
 0x195   : > { %v6626_v21 = vpop.f32.mrb[15].mxu0  ;;  %v6698_v14 = vpop.f32.mrb[15].mxu1 }
 0x196   : > { %v9360_v60 = vadd.f32 %v6626_v21, %v6625_v62  ;;  %v9362_v26 = vadd.f32 %v6698_v14, %v6697_v37  ;;  %v765_v14 = vld [vmem:[#allocation2 + $0x168] sm:$0xff] }
 0x197   : > { %2062 = vmatmul.mubr.bf16.gmra.mrb[120].mxu1 %v781_v34  ;;  %8029 = vmatmul.mubr.bf16.gmra.mrb[120].mxu0 %v9224_v22  ;;  %v1501_v22 = vadd.f32 %v9321_v39, %v9370_v53  ;;  %v763_v39 = vld [vmem:[#allocation2 + $0x150] sm:$0xff] }
 0x198   : > { %2069 = vmatprep.mubr.bf16.mxu1 %v9301_v28  ;;  %8032 = vmatprep.mubr.bf16.mxu0 %v9232_v30  ;;  %v783_v1 = vpack.c.bf16 %v764_v15, %v763_v39 }
 0x19a   : > { %v6628_v54 = vpop.f32.mrb[16].mxu0  ;;  %v6716_v55 = vpop.f32.mrb[16].mxu1 }
 0x19b   : > { %v6629_v48 = vpop.f32.mrb[17].mxu0  ;;  %v6717_v3 = vpop.f32.mrb[17].mxu1 }
 0x19c   : > { %v9374_v28 = vadd.f32 %v6629_v48, %v6628_v54  ;;  %v6718_v30 = vadd.f32 %v6717_v3, %v6716_v55  ;;  %v6631_v6 = vpop.f32.mrb[18].mxu0  ;;  %v6719_v11 = vpop.f32.mrb[18].mxu1  ;;  %v784_v48 = vpack.c.bf16 %v766_v58, %v765_v14  ;;  %v8330_v14 = vld [vmem:[#allocation8 + $0x68] sm:$0xff]  }
 0x19d   : > { %v6632_v57 = vpop.f32.mrb[19].mxu0  ;;  %v6720_v63 = vpop.f32.mrb[19].mxu1  ;;  %v8331_v58 = vld [vmem:[#allocation8 + $0x28] sm:$0xff]   ;;  %7070 = vmatprep.subr.bf16.mxu1 %v8330_v14 }
 0x19e   : > { %v9378_v25 = vadd.f32 %v6718_v30, %v1501_v22  ;;  %v9380_v44 = vadd.f32 %v6632_v57, %v6631_v6  ;;  %v6721_v47 = vadd.f32 %v6720_v63, %v6719_v11  ;;  %v1520_v6 = vadd.f32 %v9348_v20, %v9370_v53  ;;  %7071 = vmatpush3.bf16.msra.mxu1 %v8331_v58 }
 0x19f   : > { %2070 = vmatmul.mubr.bf16.gmra.mrb[124].mxu1 %v782_v7  ;;  %8033 = vmatmul.mubr.bf16.gmra.mrb[124].mxu0 %v9239_v36 }
 0x1a0   : > { %v9383_v61 = vadd.f32 %v6721_v47, %v1504_v8  ;;  %2077 = vmatprep.mubr.bf16.mxu1 %v9307_v19  ;;  %8036 = vmatprep.mubr.bf16.mxu0 %v9245_v12  ;;  %v1512_v12 = vadd.f32 %v9336_v56, %v9370_v53  ;;  %v818_v47 = vld [vmem:[#allocation2 + $0x1a1] sm:$0xff] }
 0x1a2   : > { %v6634_v13 = vpop.f32.mrb[20].mxu0  ;;  %v6722_v27 = vpop.f32.mrb[20].mxu1 }
 0x1a3   : > { %v6635_v41 = vpop.f32.mrb[21].mxu0  ;;  %v6723_v42 = vpop.f32.mrb[21].mxu1 }
 0x1a4   : > { %v9389_v31 = vadd.f32 %v6635_v41, %v6634_v13  ;;  %v6724_v32 = vadd.f32 %v6723_v42, %v6722_v27  ;;  %v6637_v36 = vpop.f32.mrb[22].mxu0  ;;  %v6725_v29 = vpop.f32.mrb[22].mxu1  ;;  %v1525_v27 = vadd.f32 %v9356_v35, %v9370_v53  ;;  %v769_v35 = vld [vmem:[#allocation2 + $0x198] sm:$0xff] }
 0x1a5   : > { %v6638_v34 = vpop.f32.mrb[23].mxu0  ;;  %v6726_v62 = vpop.f32.mrb[23].mxu1 }
 0x1a6   : > { %v9393_v19 = vadd.f32 %v6724_v32, %v1509_v24  ;;  %v9395_v37 = vadd.f32 %v6638_v34, %v6637_v36  ;;  %v6727_v21 = vadd.f32 %v6726_v62, %v6725_v29  ;;  %v865_v62 = vld [vmem:[#allocation2 + $0x19a] sm:$0xff] }
 0x1a7   : > { %2078 = vmatmul.mubr.bf16.gmra.mrb[128].mxu1 %v783_v1  ;;  %8037 = vmatmul.mubr.bf16.gmra.mrb[128].mxu0 %v9251_v50  ;;  %v1517_v50 = vadd.f32 %v9344_v18, %v9370_v53  ;;  %v817_v18 = vld [vmem:[#allocation2 + $0x199] sm:$0xff] }
 0x1a8   : > { %v9398_v52 = vadd.f32 %v6727_v21, %v1512_v12  ;;  %2085 = vmatprep.mubr.bf16.mxu1 %v9313_v16  ;;  %8040 = vmatprep.mubr.bf16.mxu0 %v9257_v33  ;;  %v834_v24 = vpack.c.bf16 %v818_v47, %v817_v18  ;;  %v866_v21 = vld [vmem:[#allocation2 + $0x1a2] sm:$0xff] }
 0x1aa   : > { %v6640_v46 = vpop.f32.mrb[24].mxu0  ;;  %v6728_v56 = vpop.f32.mrb[24].mxu1 }
 0x1ab   : > { %v6641_v54 = vpop.f32.mrb[25].mxu0  ;;  %v6729_v55 = vpop.f32.mrb[25].mxu1 }
 0x1ac   : > { %v9404_v3 = vadd.f32 %v6641_v54, %v6640_v46  ;;  %v6730_v7 = vadd.f32 %v6729_v55, %v6728_v56  ;;  %v6643_v22 = vpop.f32.mrb[26].mxu0  ;;  %v6731_v16 = vpop.f32.mrb[26].mxu1  ;;  %v9432_v56 = vld [vmem:[#allocation2 + $0x8] sm:$0xff]  ;;  %v1533_v54 = vadd.f32 %v9374_v28, %v9370_v53 }
 0x1ad   : > { %v6644_v30 = vpop.f32.mrb[27].mxu0  ;;  %v6732_v33 = vpop.f32.mrb[27].mxu1 }
 0x1ae   : > { %v9408_v11 = vadd.f32 %v6730_v7, %v1517_v50  ;;  %v9410_v57 = vadd.f32 %v6644_v30, %v6643_v22  ;;  %v6733_v63 = vadd.f32 %v6732_v33, %v6731_v16  ;;  %v1536_v16 = vadd.f32 %v9380_v44, %v9370_v53 }
 0x1af   : > { %2086 = vmatmul.mubr.bf16.gmra.mrb[132].mxu1 %v784_v48  ;;  %8041 = vmatmul.mubr.bf16.gmra.mrb[132].mxu0 %v9263_v49  ;;  %v1549_v58 = vadd.f32 %v9404_v3, %v9370_v53 }
 0x1b0   : > { %v9413_v8 = vadd.f32 %v6733_v63, %v1520_v6  ;;  %2093 = vmatprep.mubr.bf16.mxu1 %v9226_v23  ;;  %8044 = vmatprep.mubr.bf16.mxu0 %v9269_v9  ;;  %v1528_v23 = vadd.f32 %v9360_v60, %v9370_v53 }
 0x1b2   : > { %v6646_v39 = vpop.f32.mrb[28].mxu0  ;;  %v6734_v15 = vpop.f32.mrb[28].mxu1 }
 0x1b3   : > { %v6647_v13 = vpop.f32.mrb[29].mxu0  ;;  %v6735_v20 = vpop.f32.mrb[29].mxu1 }
 0x1b4   : > { %v9419_v41 = vadd.f32 %v6647_v13, %v6646_v39  ;;  %v6736_v42 = vadd.f32 %v6735_v20, %v6734_v15  ;;  %v6649_v1 = vpop.f32.mrb[30].mxu0  ;;  %v6737_v49 = vpop.f32.mrb[30].mxu1  ;;  %v1541_v15 = vadd.f32 %v9389_v31, %v9370_v53 }
 0x1b5   : > { %v6650_v32 = vpop.f32.mrb[31].mxu0  ;;  %v6738_v36 = vpop.f32.mrb[31].mxu1 }
 0x1b6   : > { %v9423_v9 = vadd.f32 %v6736_v42, %v1525_v27  ;;  %v9425_v29 = vadd.f32 %v6650_v32, %v6649_v1  ;;  %v6739_v34 = vadd.f32 %v6738_v36, %v6737_v49  ;;  %v1544_v49 = vadd.f32 %v9395_v37, %v9370_v53 }
 0x1b7   : > { %2094 = vmatmul.mubr.bf16.gmra.mrb[136].mxu1 %v9271_v10  ;;  %8045 = vmatmul.mubr.bf16.gmra.mrb[136].mxu0 %v9277_v17  ;;  %v786_v10 = vpack.c.bf16 %v9432_v56, %v769_v35  ;;  %v882_v17 = vpack.c.bf16 %v866_v21, %v865_v62  ;;  %v8333_v35 = vld [vmem:[#allocation8 + $0x30] sm:$0xff]  }
 0x1b8   : > { %v9429_v12 = vadd.f32 %v6739_v34, %v1528_v23  ;;  %2101 = vmatprep.mubr.bf16.mxu1 %v834_v24  ;;  %8048 = vmatprep.mubr.bf16.mxu0 %v9315_v2  ;;  %v8332_v34 = vld [vmem:[#allocation8 + $0x70] sm:$0xff]  }
 0x1b9   : > { %7072 = vmatprep.subr.bf16.mxu1 %v8332_v34 }
 0x1ba   : > { %v6652_v60 = vpop.f32.mrb[32].mxu0  ;;  %v6740_v40 = vpop.f32.mrb[32].mxu1  ;;  %7073 = vmatpush3.bf16.msra.mxu1 %v8333_v35 }
 0x1bb   : > { %v6653_v45 = vpop.f32.mrb[33].mxu0  ;;  %v6741_v46 = vpop.f32.mrb[33].mxu1 }
 0x1bc   : > { %v9437_v55 = vadd.f32 %v6653_v45, %v6652_v60  ;;  %v6742_v2 = vadd.f32 %v6741_v46, %v6740_v40  ;;  %v6655_v48 = vpop.f32.mrb[34].mxu0  ;;  %v6743_v50 = vpop.f32.mrb[34].mxu1  ;;  %v8334_v46 = vld [vmem:[#allocation8 + $0xc0] sm:$0xff]  }
 0x1bd   : > { %v6656_v7 = vpop.f32.mrb[35].mxu0  ;;  %v6744_v22 = vpop.f32.mrb[35].mxu1  ;;  %7172 = vmatprep.subr.bf16.mxu0 %v8334_v46 }
 0x1be   : > { %v9441_v30 = vadd.f32 %v6742_v2, %v1533_v54  ;;  %v9443_v33 = vadd.f32 %v6656_v7, %v6655_v48  ;;  %v6745_v6 = vadd.f32 %v6744_v22, %v6743_v50  ;;  %v8335_v54 = vld [vmem:[#allocation8 + $0x80] sm:$0xff]   ;;  %v1552_v2 = vadd.f32 %v9410_v57, %v9370_v53  ;;  %v8336_v22 = vld [vmem:[#allocation8 + $0xc8] sm:$0xff]  }
 0x1bf   : > { %2102 = vmatmul.mubr.bf16.gmra.mrb[140].mxu1 %v786_v10  ;;  %8049 = vmatmul.mubr.bf16.gmra.mrb[140].mxu0 %v882_v17  ;;  %v1557_v57 = vadd.f32 %v9419_v41, %v9370_v53 }
 0x1c0   : > { %v9445_v63 = vadd.f32 %v6745_v6, %v1536_v16  ;;  %7173 = vmatpush3.bf16.msra.mxu0 %v8335_v54  ;;  %v8337_v16 = vld [vmem:[#allocation8 + $0x88] sm:$0xff]  }
 0x1c1   : > { %7174 = vmatprep.subr.bf16.mxu0 %v8336_v22  ;;  %v1568_v22 = vadd.f32 %v9443_v33, %v9370_v53 }
 0x1c2   : > { %v6658_v28 = vpop.f32.mrb[36].mxu0  ;;  %v6746_v18 = vpop.f32.mrb[36].mxu1 }
 0x1c3   : > { %v6659_v47 = vpop.f32.mrb[37].mxu0  ;;  %v6747_v39 = vpop.f32.mrb[37].mxu1 }
 0x1c4   : > { %v9449_v13 = vadd.f32 %v6659_v47, %v6658_v28  ;;  %v6748_v20 = vadd.f32 %v6747_v39, %v6746_v18  ;;  %v6661_v44 = vpop.f32.mrb[38].mxu0  ;;  %v6749_v27 = vpop.f32.mrb[38].mxu1  ;;  %7175 = vmatpush3.bf16.msra.mxu0 %v8337_v16 }
 0x1c5   : > { %v6662_v42 = vpop.f32.mrb[39].mxu0  ;;  %v6750_v1 = vpop.f32.mrb[39].mxu1 }
 0x1c6   : > { %v9453_v24 = vadd.f32 %v6748_v20, %v1541_v15  ;;  %v9455_v32 = vadd.f32 %v6662_v42, %v6661_v44  ;;  %v6751_v36 = vadd.f32 %v6750_v1, %v6749_v27  ;;  %v8339_v27 = vld [vmem:[#allocation8 + $0xd0] sm:$0xff]  }
 0x1c7   : > { %7176 = vmatprep.subr.bf16.mxu0 %v8339_v27  ;;  %v2399_v27 = vld [vmem:[#allocation2] sm:$0xff] }
 0x1c8   : > { %v9457_v23 = vadd.f32 %v6751_v36, %v1544_v49  ;;  %v8341_v49 = vld [vmem:[#allocation8 + $0x90] sm:$0xff]   ;;  %v1560_v36 = vadd.f32 %v9425_v29, %v9370_v53  ;;  %v1565_v29 = vadd.f32 %v9437_v55, %v9370_v53 }
 0x1c9   : > { %7177 = vmatpush3.bf16.msra.mxu0 %v8341_v49  ;;  %v2447_v55 = vld [vmem:[#allocation2 + $0x1] sm:$0xff]  ;;  %v2431_v49 = vpack.c.bf16 %v9432_v56, %v2399_v27  ;;  %v1576_v56 = vadd.f32 %v9455_v32, %v9370_v53 }
 0x1ca   : > { %v6664_v31 = vpop.f32.mrb[40].mxu0  ;;  %v6752_v62 = vpop.f32.mrb[40].mxu1 }
 0x1cb   : > { %v6665_v21 = vpop.f32.mrb[41].mxu0  ;;  %v6753_v14 = vpop.f32.mrb[41].mxu1 }
 0x1cc   : > { %v9461_v60 = vadd.f32 %v6665_v21, %v6664_v31  ;;  %v6754_v37 = vadd.f32 %v6753_v14, %v6752_v62  ;;  %v6667_v40 = vpop.f32.mrb[42].mxu0  ;;  %v6755_v45 = vpop.f32.mrb[42].mxu1  ;;  %v8338_v62 = vld [vmem:[#allocation8 + $0x78] sm:$0xff]  }
 0x1cd   : > { %v6668_v10 = vpop.f32.mrb[43].mxu0  ;;  %v6756_v17 = vpop.f32.mrb[43].mxu1  ;;  %v8340_v21 = vld [vmem:[#allocation8 + $0x38] sm:$0xff]   ;;  %7074 = vmatprep.subr.bf16.mxu1 %v8338_v62 }
 0x1ce   : > { %v9465_v48 = vadd.f32 %v6754_v37, %v1549_v58  ;;  %v9467_v50 = vadd.f32 %v6668_v10, %v6667_v40  ;;  %v6757_v7 = vadd.f32 %v6756_v17, %v6755_v45  ;;  %v8342_v14 = vld [vmem:[#allocation8 + $0xd8] sm:$0xff]   ;;  %7075 = vmatpush3.bf16.msra.mxu1 %v8340_v21 }
 0x1cf   : > { %v8343_v58 = vld [vmem:[#allocation8 + $0x98] sm:$0xff]   ;;  %7178 = vmatprep.subr.bf16.mxu0 %v8342_v14  ;;  %v1573_v14 = vadd.f32 %v9449_v13, %v9370_v53 }
 0x1d0   : > { %v9469_v3 = vadd.f32 %v6757_v7, %v1552_v2  ;;  %7179 = vmatpush3.bf16.msra.mxu0 %v8343_v58  ;;  %v8344_v7 = vld [vmem:[#allocation8 + $0xe0] sm:$0xff]  }
 0x1d1   : > { %7180 = vmatprep.subr.bf16.mxu0 %v8344_v7 }
 0x1d2   : > { %v6670_v6 = vpop.f32.mrb[44].mxu0  ;;  %v6758_v28 = vpop.f32.mrb[44].mxu1 }
 0x1d3   : > { %v6671_v18 = vpop.f32.mrb[45].mxu0  ;;  %v6759_v47 = vpop.f32.mrb[45].mxu1 }
 0x1d4   : > { %v9473_v39 = vadd.f32 %v6671_v18, %v6670_v6  ;;  %v6760_v15 = vadd.f32 %v6759_v47, %v6758_v28  ;;  %v6673_v20 = vpop.f32.mrb[46].mxu0  ;;  %v6761_v44 = vpop.f32.mrb[46].mxu1  ;;  %v8345_v28 = vld [vmem:[#allocation8 + $0xa0] sm:$0xff]  }
 0x1d5   : > { %v6674_v42 = vpop.f32.mrb[47].mxu0  ;;  %v6762_v1 = vpop.f32.mrb[47].mxu1  ;;  %7181 = vmatpush3.bf16.msra.mxu0 %v8345_v28 }
 0x1d6   : > { %v9477_v34 = vadd.f32 %v6760_v15, %v1557_v57  ;;  %v9479_v35 = vadd.f32 %v6674_v42, %v6673_v20  ;;  %v6763_v31 = vadd.f32 %v6762_v1, %v6761_v44  ;;  %v2448_v20 = vld [vmem:[#allocation2 + $0x9] sm:$0xff]  ;;  %v8346_v1 = vld [vmem:[#allocation8 + $0xe8] sm:$0xff]  }
 0x1d7   : > { %v2479_v44 = vpack.c.bf16 %v2448_v20, %v2447_v55  ;;  %7182 = vmatprep.subr.bf16.mxu0 %v8346_v1  ;;  %v8349_v55 = vld [vmem:[#allocation8 + $0x140] sm:$0xff]  }
 0x1d8   : > { %v9481_v41 = vadd.f32 %v6763_v31, %v1560_v36  ;;  %v8347_v36 = vld [vmem:[#allocation8 + $0xa8] sm:$0xff]   ;;  %v8351_v20 = vld [vmem:[#allocation8 + $0x100] sm:$0xff]   ;;  %7284 = vmatprep.subr.bf16.mxu1 %v8349_v55 }
 0x1d9   : > { %3446 = vmatprep.mubr.bf16.mxu1 %v2479_v44  ;;  %7183 = vmatpush3.bf16.msra.mxu0 %v8347_v36 }
 0x1da   : > { %v6764_v37 = vpop.f32.mrb[48].mxu1  ;;  %v6828_v40 = vpop.f32.mrb[48].mxu0  ;;  %3447 = vmatmul.mubr.bf16.vlgmr.msra.gmra.mrb[144].mxu1 %v2431_v49 }
 0x1db   : > { %v6765_v45 = vpop.f32.mrb[49].mxu1  ;;  %v6829_v46 = vpop.f32.mrb[49].mxu0  ;;  %7285 = vmatpush3.bf16.msra.mxu1 %v8351_v20 }
 0x1dc   : > { %v6766_v10 = vadd.f32 %v6765_v45, %v6764_v37  ;;  %v6830_v17 = vadd.f32 %v6829_v46, %v6828_v40  ;;  %v6767_v54 = vpop.f32.mrb[50].mxu1  ;;  %v6831_v2 = vpop.f32.mrb[50].mxu0  ;;  %v8348_v45 = vld [vmem:[#allocation8 + $0xf0] sm:$0xff]  }
 0x1dd   : > { %v6768_v16 = vpop.f32.mrb[51].mxu1  ;;  %v6832_v6 = vpop.f32.mrb[51].mxu0  ;;  %7184 = vmatprep.subr.bf16.mxu0 %v8348_v45  ;;  %v1589_v45 = vadd.f32 %v9473_v39, %v9370_v53 }
 0x1de   : > { %v9487_v18 = vadd.f32 %v6766_v10, %v1565_v29  ;;  %v9490_v47 = vadd.f32 %v6830_v17, %v9378_v25  ;;  %v6769_v57 = vadd.f32 %v6768_v16, %v6767_v54  ;;  %v6833_v15 = vadd.f32 %v6832_v6, %v6831_v2  ;;  %v8350_v10 = vld [vmem:[#allocation8 + $0xb0] sm:$0xff]   ;;  %v8352_v16 = vld [vmem:[#allocation8 + $0xf8] sm:$0xff]  }
 0x1df   : > { %7185 = vmatpush3.bf16.msra.mxu0 %v8350_v10  ;;  %v8353_v6 = vld [vmem:[#allocation8 + $0xb8] sm:$0xff]   ;;  %v1592_v10 = vadd.f32 %v9479_v35, %v9370_v53  ;;  %v8355_v35 = vld [vmem:[#allocation8 + $0x108] sm:$0xff]  }
 0x1e0   : > { %v9492_v42 = vadd.f32 %v6769_v57, %v1568_v22  ;;  %v9495_v33 = vadd.f32 %v6833_v15, %v9383_v61  ;;  %7186 = vmatprep.subr.bf16.mxu0 %v8352_v16 }
 0x1e2   : > { %v6770_v25 = vpop.f32.mrb[52].mxu1  ;;  %v6834_v31 = vpop.f32.mrb[52].mxu0 }
 0x1e3   : > { %v6771_v62 = vpop.f32.mrb[53].mxu1  ;;  %v6835_v21 = vpop.f32.mrb[53].mxu0  ;;  %7187 = vmatpush3.bf16.msra.mxu0 %v8353_v6 }
 0x1e4   : > { %v6772_v58 = vadd.f32 %v6771_v62, %v6770_v25  ;;  %v6836_v37 = vadd.f32 %v6835_v21, %v6834_v31  ;;  %v6773_v40 = vpop.f32.mrb[54].mxu1  ;;  %v6837_v61 = vpop.f32.mrb[54].mxu0 }
 0x1e5   : > { %v6774_v46 = vpop.f32.mrb[55].mxu1  ;;  %v6838_v29 = vpop.f32.mrb[55].mxu0 }
 0x1e6   : > { %v9502_v17 = vadd.f32 %v6772_v58, %v1573_v14  ;;  %v9505_v54 = vadd.f32 %v6836_v37, %v9393_v19  ;;  %v6775_v2 = vadd.f32 %v6774_v46, %v6773_v40  ;;  %v6839_v7 = vadd.f32 %v6838_v29, %v6837_v61 }
 0x1e7   : > { %v1581_v19 = vadd.f32 %v9461_v60, %v9370_v53 }
 0x1e8   : > { %v9507_v13 = vadd.f32 %v6775_v2, %v1576_v56  ;;  %v9510_v22 = vadd.f32 %v6839_v7, %v9398_v52  ;;  %v1584_v52 = vadd.f32 %v9467_v50, %v9370_v53 }
 0x1ea   : > { %v6776_v32 = vpop.f32.mrb[56].mxu1  ;;  %v6840_v28 = vpop.f32.mrb[56].mxu0 }
 0x1eb   : > { %v6777_v57 = vpop.f32.mrb[57].mxu1  ;;  %v6841_v15 = vpop.f32.mrb[57].mxu0 }
 0x1ec   : > { %v6778_v44 = vadd.f32 %v6777_v57, %v6776_v32  ;;  %v6842_v27 = vadd.f32 %v6841_v15, %v6840_v28  ;;  %v6779_v1 = vpop.f32.mrb[58].mxu1  ;;  %v6843_v49 = vpop.f32.mrb[58].mxu0 }
 0x1ed   : > { %v6780_v36 = vpop.f32.mrb[59].mxu1  ;;  %v6844_v25 = vpop.f32.mrb[59].mxu0 }
 0x1ee   : > { %v9516_v31 = vadd.f32 %v6778_v44, %v1581_v19  ;;  %v9519_v62 = vadd.f32 %v6842_v27, %v9408_v11  ;;  %v6781_v21 = vadd.f32 %v6780_v36, %v6779_v1  ;;  %v6845_v14 = vadd.f32 %v6844_v25, %v6843_v49  ;;  %v8354_v19 = vld [vmem:[#allocation8 + $0x148] sm:$0xff]  }
 0x1ef   : > { %v1597_v44 = vadd.f32 %v9323_v43, %v9370_v53  ;;  %7286 = vmatprep.subr.bf16.mxu1 %v8354_v19 }
 0x1f0   : > { %v9521_v58 = vadd.f32 %v6781_v21, %v1584_v52  ;;  %v9524_v60 = vadd.f32 %v6845_v14, %v9413_v8  ;;  %v1600_v52 = vadd.f32 %v9327_v51, %v9370_v53  ;;  %7287 = vmatpush3.bf16.msra.mxu1 %v8355_v35 }
 0x1f2   : > { %v6782_v37 = vpop.f32.mrb[60].mxu1  ;;  %v6846_v40 = vpop.f32.mrb[60].mxu0 }
 0x1f3   : > { %v6783_v61 = vpop.f32.mrb[61].mxu1  ;;  %v6847_v50 = vpop.f32.mrb[61].mxu0 }
 0x1f4   : > { %v6784_v56 = vadd.f32 %v6783_v61, %v6782_v37  ;;  %v6848_v46 = vadd.f32 %v6847_v50, %v6846_v40  ;;  %v6785_v29 = vpop.f32.mrb[62].mxu1  ;;  %v6849_v11 = vpop.f32.mrb[62].mxu0 }
 0x1f5   : > { %v6786_v2 = vpop.f32.mrb[63].mxu1  ;;  %v6850_v7 = vpop.f32.mrb[63].mxu0 }
 0x1f6   : > { %v9530_v16 = vadd.f32 %v6784_v56, %v1589_v45  ;;  %v9533_v8 = vadd.f32 %v6848_v46, %v9423_v9  ;;  %v6787_v6 = vadd.f32 %v6786_v2, %v6785_v29  ;;  %v6851_v32 = vadd.f32 %v6850_v7, %v6849_v11 }
 0x1f7   : > { %v1605_v56 = vadd.f32 %v9334_v4, %v9370_v53 }
 0x1f8   : > { %v9535_v28 = vadd.f32 %v6787_v6, %v1592_v10  ;;  %v9538_v39 = vadd.f32 %v6851_v32, %v9429_v12  ;;  %v1608_v10 = vadd.f32 %v9338_v5, %v9370_v53  ;;  %v8357_v5 = vld [vmem:[#allocation8 + $0x110] sm:$0xff]  }
 0x1fa   : > { %v6788_v57 = vpop.f32.mrb[64].mxu1  ;;  %v6852_v15 = vpop.f32.mrb[64].mxu0 }
 0x1fb   : > { %v6789_v55 = vpop.f32.mrb[65].mxu1  ;;  %v6853_v20 = vpop.f32.mrb[65].mxu0 }
 0x1fc   : > { %v6790_v27 = vadd.f32 %v6789_v55, %v6788_v57  ;;  %v6854_v1 = vadd.f32 %v6853_v20, %v6852_v15  ;;  %v6791_v9 = vpop.f32.mrb[66].mxu1  ;;  %v6855_v49 = vpop.f32.mrb[66].mxu0 }
 0x1fd   : > { %v6792_v36 = vpop.f32.mrb[67].mxu1  ;;  %v6856_v25 = vpop.f32.mrb[67].mxu0 }
 0x1fe   : > { %v9544_v12 = vadd.f32 %v6790_v27, %v1597_v44  ;;  %v9547_v21 = vadd.f32 %v6854_v1, %v9441_v30  ;;  %v6793_v14 = vadd.f32 %v6792_v36, %v6791_v9  ;;  %v6857_v37 = vadd.f32 %v6856_v25, %v6855_v49  ;;  %v8356_v44 = vld [vmem:[#allocation8 + $0x150] sm:$0xff]  }
 0x1ff   : > { %v1613_v27 = vadd.f32 %v9346_v0, %v9370_v53  ;;  %7288 = vmatprep.subr.bf16.mxu1 %v8356_v44 }
 0x200   : > { %v9549_v40 = vadd.f32 %v6793_v14, %v1600_v52  ;;  %v9552_v43 = vadd.f32 %v6857_v37, %v9445_v63  ;;  %v1616_v52 = vadd.f32 %v9350_v59, %v9370_v53  ;;  %7289 = vmatpush3.bf16.msra.mxu1 %v8357_v5 }
 0x202   : > { %v6794_v61 = vpop.f32.mrb[68].mxu1  ;;  %v6858_v50 = vpop.f32.mrb[68].mxu0 }
 0x203   : > { %v6795_v45 = vpop.f32.mrb[69].mxu1  ;;  %v6859_v51 = vpop.f32.mrb[69].mxu0 }
 0x204   : > { %v6796_v46 = vadd.f32 %v6795_v45, %v6794_v61  ;;  %v6860_v29 = vadd.f32 %v6859_v51, %v6858_v50  ;;  %v6797_v11 = vpop.f32.mrb[70].mxu1  ;;  %v6861_v30 = vpop.f32.mrb[70].mxu0 }
 0x205   : > { %v6798_v2 = vpop.f32.mrb[71].mxu1  ;;  %v6862_v7 = vpop.f32.mrb[71].mxu0 }
 0x206   : > { %v9558_v6 = vadd.f32 %v6796_v46, %v1605_v56  ;;  %v9561_v63 = vadd.f32 %v6860_v29, %v9453_v24  ;;  %v6799_v32 = vadd.f32 %v6798_v2, %v6797_v11  ;;  %v6863_v57 = vadd.f32 %v6862_v7, %v6861_v30 }
 0x207   : > { %v1621_v46 = vadd.f32 %v9358_v38, %v9370_v53 }
 0x208   : > { %v9563_v15 = vadd.f32 %v6799_v32, %v1608_v10  ;;  %v9566_v4 = vadd.f32 %v6863_v57, %v9457_v23  ;;  %v1624_v10 = vadd.f32 %v9362_v26, %v9370_v53 }
 0x20a   : > { %v6800_v55 = vpop.f32.mrb[72].mxu1  ;;  %v6864_v20 = vpop.f32.mrb[72].mxu0 }
 0x20b   : > { %v6801_v19 = vpop.f32.mrb[73].mxu1  ;;  %v6865_v35 = vpop.f32.mrb[73].mxu0 }
 0x20c   : > { %v6802_v1 = vadd.f32 %v6801_v19, %v6800_v55  ;;  %v6866_v9 = vadd.f32 %v6865_v35, %v6864_v20  ;;  %v6803_v24 = vpop.f32.mrb[74].mxu1  ;;  %v6867_v49 = vpop.f32.mrb[74].mxu0 }
 0x20d   : > { %v6804_v36 = vpop.f32.mrb[75].mxu1  ;;  %v6868_v25 = vpop.f32.mrb[75].mxu0 }
 0x20e   : > { %v9572_v23 = vadd.f32 %v6802_v1, %v1613_v27  ;;  %v9575_v14 = vadd.f32 %v6866_v9, %v9465_v48  ;;  %v6805_v37 = vadd.f32 %v6804_v36, %v6803_v24  ;;  %v6869_v61 = vadd.f32 %v6868_v25, %v6867_v49  ;;  %v8359_v25 = vld [vmem:[#allocation8 + $0x118] sm:$0xff]  }
 0x210   : > { %v9577_v50 = vadd.f32 %v6805_v37, %v1616_v52  ;;  %v9580_v0 = vadd.f32 %v6869_v61, %v9469_v3 }
 0x212   : > { %v6806_v45 = vpop.f32.mrb[76].mxu1  ;;  %v6870_v51 = vpop.f32.mrb[76].mxu0 }
 0x213   : > { %v6807_v56 = vpop.f32.mrb[77].mxu1  ;;  %v6871_v59 = vpop.f32.mrb[77].mxu0 }
 0x214   : > { %v6808_v29 = vadd.f32 %v6807_v56, %v6806_v45  ;;  %v6872_v11 = vadd.f32 %v6871_v59, %v6870_v51  ;;  %v6809_v30 = vpop.f32.mrb[78].mxu1  ;;  %v6873_v48 = vpop.f32.mrb[78].mxu0 }
 0x215   : > { %v6810_v2 = vpop.f32.mrb[79].mxu1  ;;  %v6874_v7 = vpop.f32.mrb[79].mxu0 }
 0x216   : > { %v9586_v32 = vadd.f32 %v6808_v29, %v1621_v46  ;;  %v9589_v3 = vadd.f32 %v6872_v11, %v9477_v34  ;;  %v6811_v57 = vadd.f32 %v6810_v2, %v6809_v30  ;;  %v6875_v55 = vadd.f32 %v6874_v7, %v6873_v48  ;;  %v8360_v2 = vld [vmem:[#allocation8 + $0x160] sm:$0xff]  }
 0x217   : > { %v8361_v7 = vld [vmem:[#allocation8 + $0x120] sm:$0xff]  }
 0x218   : > { %v9591_v20 = vadd.f32 %v6811_v57, %v1624_v10  ;;  %v9594_v38 = vadd.f32 %v6875_v55, %v9481_v41  ;;  %v8358_v41 = vld [vmem:[#allocation8 + $0x158] sm:$0xff]  }
 0x219   : > { %7290 = vmatprep.subr.bf16.mxu1 %v8358_v41 }
 0x21a   : > { %v6876_v19 = vpop.f32.mrb[80].mxu0  ;;  %v6940_v35 = vpop.f32.mrb[80].mxu1  ;;  %7291 = vmatpush3.bf16.msra.mxu1 %v8359_v25 }
 0x21b   : > { %v6877_v44 = vpop.f32.mrb[81].mxu0  ;;  %v6941_v5 = vpop.f32.mrb[81].mxu1  ;;  %7292 = vmatprep.subr.bf16.mxu1 %v8360_v2 }
 0x21c   : > { %v6878_v27 = vadd.f32 %v6877_v44, %v6876_v19  ;;  %v6942_v26 = vadd.f32 %v6941_v5, %v6940_v35  ;;  %v6879_v53 = vpop.f32.mrb[82].mxu0  ;;  %v6943_v1 = vpop.f32.mrb[82].mxu1 }
 0x21d   : > { %v6880_v9 = vpop.f32.mrb[83].mxu0  ;;  %v6944_v24 = vpop.f32.mrb[83].mxu1 }
 0x21e   : > { %v9597_v34 = vadd.f32 %v6878_v27, %v9487_v18  ;;  %v6881_v49 = vadd.f32 %v6880_v9, %v6879_v53  ;;  %v6945_v52 = vadd.f32 %v6944_v24, %v6943_v1  ;;  %v9600_v36 = vadd.f32 %v6942_v26, %v9490_v47  ;;  %7293 = vmatpush3.bf16.msra.mxu1 %v8361_v7 }
 0x220   : > { %v9603_v37 = vadd.f32 %v6881_v49, %v9492_v42  ;;  %v9606_v61 = vadd.f32 %v6945_v52, %v9495_v33 }
 0x222   : > { %v6882_v45 = vpop.f32.mrb[84].mxu0  ;;  %v6946_v51 = vpop.f32.mrb[84].mxu1 }
 0x223   : > { %v6883_v56 = vpop.f32.mrb[85].mxu0  ;;  %v6947_v18 = vpop.f32.mrb[85].mxu1 }
 0x224   : > { %v6884_v59 = vadd.f32 %v6883_v56, %v6882_v45  ;;  %v6948_v46 = vadd.f32 %v6947_v18, %v6946_v51  ;;  %v6885_v29 = vpop.f32.mrb[86].mxu0  ;;  %v6949_v11 = vpop.f32.mrb[86].mxu1 }
 0x225   : > { %v6886_v47 = vpop.f32.mrb[87].mxu0  ;;  %v6950_v30 = vpop.f32.mrb[87].mxu1 }
 0x226   : > { %v9609_v48 = vadd.f32 %v6884_v59, %v9502_v17  ;;  %v6887_v42 = vadd.f32 %v6886_v47, %v6885_v29  ;;  %v6951_v10 = vadd.f32 %v6950_v30, %v6949_v11  ;;  %v9612_v33 = vadd.f32 %v6948_v46, %v9505_v54  ;;  %v8363_v30 = vld [vmem:[#allocation8 + $0x128] sm:$0xff]  }
 0x228   : > { %v9615_v57 = vadd.f32 %v6887_v42, %v9507_v13  ;;  %v9618_v55 = vadd.f32 %v6951_v10, %v9510_v22 }
 0x22a   : > { %v6888_v19 = vpop.f32.mrb[88].mxu0  ;;  %v6952_v35 = vpop.f32.mrb[88].mxu1 }
 0x22b   : > { %v6889_v44 = vpop.f32.mrb[89].mxu0  ;;  %v6953_v17 = vpop.f32.mrb[89].mxu1 }
 0x22c   : > { %v6890_v5 = vadd.f32 %v6889_v44, %v6888_v19  ;;  %v6954_v27 = vadd.f32 %v6953_v17, %v6952_v35  ;;  %v6891_v26 = vpop.f32.mrb[90].mxu0  ;;  %v6955_v53 = vpop.f32.mrb[90].mxu1 }
 0x22d   : > { %v6892_v54 = vpop.f32.mrb[91].mxu0  ;;  %v6956_v1 = vpop.f32.mrb[91].mxu1 }
 0x22e   : > { %v9621_v9 = vadd.f32 %v6890_v5, %v9516_v31  ;;  %v6893_v13 = vadd.f32 %v6892_v54, %v6891_v26  ;;  %v6957_v24 = vadd.f32 %v6956_v1, %v6955_v53  ;;  %v9624_v22 = vadd.f32 %v6954_v27, %v9519_v62 }
 0x230   : > { %v9627_v49 = vadd.f32 %v6893_v13, %v9521_v58  ;;  %v9630_v52 = vadd.f32 %v6957_v24, %v9524_v60  ;;  %v8362_v60 = vld [vmem:[#allocation8 + $0x168] sm:$0xff]  }
 0x231   : > { %7294 = vmatprep.subr.bf16.mxu1 %v8362_v60 }
 0x232   : > { %v6894_v41 = vpop.f32.mrb[92].mxu0  ;;  %v6958_v25 = vpop.f32.mrb[92].mxu1  ;;  %7295 = vmatpush3.bf16.msra.mxu1 %v8363_v30 }
 0x233   : > { %v6895_v45 = vpop.f32.mrb[93].mxu0  ;;  %v6959_v51 = vpop.f32.mrb[93].mxu1 }
 0x234   : > { %v6896_v56 = vadd.f32 %v6895_v45, %v6894_v41  ;;  %v6960_v18 = vadd.f32 %v6959_v51, %v6958_v25  ;;  %v6897_v59 = vpop.f32.mrb[94].mxu0  ;;  %v6961_v31 = vpop.f32.mrb[94].mxu1 }
 0x235   : > { %v6898_v46 = vpop.f32.mrb[95].mxu0  ;;  %v6962_v29 = vpop.f32.mrb[95].mxu1 }
 0x236   : > { %v9633_v11 = vadd.f32 %v6896_v56, %v9530_v16  ;;  %v6899_v62 = vadd.f32 %v6898_v46, %v6897_v59  ;;  %v6963_v47 = vadd.f32 %v6962_v29, %v6961_v31  ;;  %v9636_v58 = vadd.f32 %v6960_v18, %v9533_v8  ;;  %v8365_v29 = vld [vmem:[#allocation8 + $0x130] sm:$0xff]  }
 0x238   : > { %v9639_v42 = vadd.f32 %v6899_v62, %v9535_v28  ;;  %v9642_v10 = vadd.f32 %v6963_v47, %v9538_v39 }
 0x23a   : > { %v6900_v2 = vpop.f32.mrb[96].mxu0  ;;  %v6964_v7 = vpop.f32.mrb[96].mxu1 }
 0x23b   : > { %v6901_v19 = vpop.f32.mrb[97].mxu0  ;;  %v6965_v16 = vpop.f32.mrb[97].mxu1 }
 0x23c   : > { %v6902_v35 = vadd.f32 %v6901_v19, %v6900_v2  ;;  %v6966_v44 = vadd.f32 %v6965_v16, %v6964_v7  ;;  %v6903_v17 = vpop.f32.mrb[98].mxu0  ;;  %v6967_v5 = vpop.f32.mrb[98].mxu1 }
 0x23d   : > { %v6904_v8 = vpop.f32.mrb[99].mxu0  ;;  %v6968_v27 = vpop.f32.mrb[99].mxu1 }
 0x23e   : > { %v9645_v26 = vadd.f32 %v6902_v35, %v9544_v12  ;;  %v6905_v28 = vadd.f32 %v6904_v8, %v6903_v17  ;;  %v6969_v53 = vadd.f32 %v6968_v27, %v6967_v5  ;;  %v9648_v39 = vadd.f32 %v6966_v44, %v9547_v21  ;;  %v8366_v17 = vld [vmem:[#allocation8 + $0x1c0] sm:$0xff]  }
 0x23f   : > { %7396 = vmatprep.subr.bf16.mxu0 %v8366_v17 }
 0x240   : > { %v9651_v54 = vadd.f32 %v6905_v28, %v9549_v40  ;;  %v9654_v1 = vadd.f32 %v6969_v53, %v9552_v43  ;;  %v8364_v43 = vld [vmem:[#allocation8 + $0x170] sm:$0xff]  }
 0x241   : > { %7296 = vmatprep.subr.bf16.mxu1 %v8364_v43 }
 0x242   : > { %v6906_v13 = vpop.f32.mrb[100].mxu0  ;;  %v6970_v24 = vpop.f32.mrb[100].mxu1  ;;  %7297 = vmatpush3.bf16.msra.mxu1 %v8365_v29 }
 0x243   : > { %v6907_v41 = vpop.f32.mrb[101].mxu0  ;;  %v6971_v25 = vpop.f32.mrb[101].mxu1 }
 0x244   : > { %v6908_v45 = vadd.f32 %v6907_v41, %v6906_v13  ;;  %v6972_v51 = vadd.f32 %v6971_v25, %v6970_v24  ;;  %v6909_v56 = vpop.f32.mrb[102].mxu0  ;;  %v6973_v12 = vpop.f32.mrb[102].mxu1 }
 0x245   : > { %v6910_v18 = vpop.f32.mrb[103].mxu0  ;;  %v6974_v59 = vpop.f32.mrb[103].mxu1 }
 0x246   : > { %v9657_v31 = vadd.f32 %v6908_v45, %v9558_v6  ;;  %v6911_v21 = vadd.f32 %v6910_v18, %v6909_v56  ;;  %v6975_v46 = vadd.f32 %v6974_v59, %v6973_v12  ;;  %v9660_v40 = vadd.f32 %v6972_v51, %v9561_v63 }
 0x248   : > { %v9663_v62 = vadd.f32 %v6911_v21, %v9563_v15  ;;  %v9666_v47 = vadd.f32 %v6975_v46, %v9566_v4  ;;  %v8372_v21 = vld [vmem:[#allocation8 + $0x138] sm:$0xff]  }
 0x24a   : > { %v6912_v60 = vpop.f32.mrb[104].mxu0  ;;  %v6976_v30 = vpop.f32.mrb[104].mxu1 }
 0x24b   : > { %v6913_v2 = vpop.f32.mrb[105].mxu0  ;;  %v6977_v6 = vpop.f32.mrb[105].mxu1 }
 0x24c   : > { %v6914_v7 = vadd.f32 %v6913_v2, %v6912_v60  ;;  %v6978_v19 = vadd.f32 %v6977_v6, %v6976_v30  ;;  %v6915_v16 = vpop.f32.mrb[106].mxu0  ;;  %v6979_v35 = vpop.f32.mrb[106].mxu1 }
 0x24d   : > { %v6916_v63 = vpop.f32.mrb[107].mxu0  ;;  %v6980_v44 = vpop.f32.mrb[107].mxu1 }
 0x24e   : > { %v9669_v5 = vadd.f32 %v6914_v7, %v9572_v23  ;;  %v6917_v15 = vadd.f32 %v6916_v63, %v6915_v16  ;;  %v6981_v8 = vadd.f32 %v6980_v44, %v6979_v35  ;;  %v9672_v4 = vadd.f32 %v6978_v19, %v9575_v14 }
 0x250   : > { %v9675_v27 = vadd.f32 %v6917_v15, %v9577_v50  ;;  %v9678_v28 = vadd.f32 %v6981_v8, %v9580_v0  ;;  %v8370_v0 = vld [vmem:[#allocation8 + $0x178] sm:$0xff]  }
 0x251   : > { %7298 = vmatprep.subr.bf16.mxu1 %v8370_v0 }
 0x252   : > { %v6918_v53 = vpop.f32.mrb[108].mxu0  ;;  %v6982_v13 = vpop.f32.mrb[108].mxu1  ;;  %7299 = vmatpush3.bf16.msra.mxu1 %v8372_v21 }
 0x253   : > { %v6919_v24 = vpop.f32.mrb[109].mxu0  ;;  %v6983_v41 = vpop.f32.mrb[109].mxu1 }
 0x254   : > { %v6920_v25 = vadd.f32 %v6919_v24, %v6918_v53  ;;  %v6984_v45 = vadd.f32 %v6983_v41, %v6982_v13  ;;  %v6921_v23 = vpop.f32.mrb[110].mxu0  ;;  %v6985_v51 = vpop.f32.mrb[110].mxu1 }
 0x255   : > { %v6922_v56 = vpop.f32.mrb[111].mxu0  ;;  %v6986_v12 = vpop.f32.mrb[111].mxu1 }
 0x256   : > { %v9681_v14 = vadd.f32 %v6920_v25, %v9586_v32  ;;  %v6923_v18 = vadd.f32 %v6922_v56, %v6921_v23  ;;  %v6987_v59 = vadd.f32 %v6986_v12, %v6985_v51  ;;  %v9684_v50 = vadd.f32 %v6984_v45, %v9589_v3 }
 0x258   : > { %v9687_v46 = vadd.f32 %v6923_v18, %v9591_v20  ;;  %v9690_v43 = vadd.f32 %v6987_v59, %v9594_v38 }
 0x25a   : > { %v6988_v29 = vpop.f32.mrb[112].mxu1  ;;  %v8022_v60 = vpop.f32.mrb[112].mxu0 }
 0x25b   : > { %v2153_v32 = vadd.f32 %v8022_v60, %v9612_v33  ;;  %v6989_v30 = vpop.f32.mrb[113].mxu1  ;;  %v2144_v2 = vpop.f32.mrb[113].mxu0 }
 0x25c   : > { %v6990_v6 = vadd.f32 %v6989_v30, %v6988_v29  ;;  %v2145_v3 = vadd.f32 %v2144_v2, %v9600_v36  ;;  %v6991_v7 = vpop.f32.mrb[114].mxu1  ;;  %v8023_v19 = vpop.f32.mrb[114].mxu0  ;;  %v9714_v30 = vld [vmem:[#allocation8 + $0x200] sm:$0xff]  }
 0x25d   : > { %vm2273_vm0 = vcmp.gt.f32.partialorder %v2153_v32, 0.0  ;;  %v2305_v16 = vmul.f32 0.2, %v2153_v32  ;;  %v2156_v20 = vadd.f32 %v8023_v19, %v9618_v55  ;;  %v6992_v35 = vpop.f32.mrb[115].mxu1  ;;  %v2147_v38 = vpop.f32.mrb[115].mxu0  ;;  %8052 = vmatprep.subr.bf16.mxu1 %v9714_v30 }
 0x25e   : > { %vm2271_vm1 = vcmp.gt.f32.partialorder %v2145_v3, 0.0  ;;  %v2303_v63 = vmul.f32 0.2, %v2145_v3  ;;  %v6993_v44 = vadd.f32 %v6992_v35, %v6991_v7  ;;  %v2148_v17 = vadd.f32 %v2147_v38, %v9606_v61 }
 0x25f   : > { %v9696_v15 = vsel %vm2273_vm0, %v2153_v32, %v2305_v16  ;;  %vm2274_vm2 = vcmp.gt.f32.partialorder %v2156_v20, 0.0  ;;  %v2306_v33 = vmul.f32 0.2, %v2156_v20  ;;  %v9699_v8 = vadd.f32 %v6990_v6, %v9597_v34  ;;  %v2495_v6 = vld [vmem:[#allocation2 + $0x2] sm:$0xff] }
 0x260   : > { %2369 = vst [vmem:[#allocation2 + $0x31] sm:$0xff] %v9696_v15  ;;  %v2335_v36 = vsel %vm2271_vm1, %v2145_v3, %v2303_v63  ;;  %vm2272_vm3 = vcmp.gt.f32.partialorder %v2148_v17, 0.0  ;;  %v2304_v53 = vmul.f32 0.2, %v2148_v17  ;;  %v9703_v55 = vadd.f32 %v6993_v44, %v9603_v37  ;;  %v2496_v3 = vld [vmem:[#allocation2 + $0xa] sm:$0xff] }
 0x261   : > { %2367 = vst [vmem:[#allocation2 + $0x19] sm:$0xff] %v2335_v36  ;;  %v9705_v13 = vsel %vm2274_vm2, %v2156_v20, %v2306_v33  ;;  %v2527_v44 = vpack.c.bf16 %v2496_v3, %v2495_v6 }
 0x262   : > { %2370 = vst [vmem:[#allocation2 + $0x39] sm:$0xff] %v9705_v13  ;;  %v2336_v61 = vsel %vm2272_vm3, %v2148_v17, %v2304_v53  ;;  %v6994_v24 = vpop.f32.mrb[116].mxu1  ;;  %v8026_v41 = vpop.f32.mrb[116].mxu0  ;;  %v2481_v34 = vpack.c.bf16 %v9705_v13, %v9696_v15  ;;  %v8371_v15 = vld [vmem:[#allocation8 + $0x1d0] sm:$0xff]  }
 0x263   : > { %2368 = vst [vmem:[#allocation2 + $0x21] sm:$0xff] %v2336_v61  ;;  %v2169_v25 = vadd.f32 %v8026_v41, %v9636_v58  ;;  %v6995_v45 = vpop.f32.mrb[117].mxu1  ;;  %v2160_v23 = vpop.f32.mrb[117].mxu0  ;;  %v2480_v51 = vpack.c.bf16 %v2336_v61, %v2335_v36  ;;  %v8367_v41 = vld [vmem:[#allocation8 + $0x180] sm:$0xff]  }
 0x264   : > { %v6996_v56 = vadd.f32 %v6995_v45, %v6994_v24  ;;  %v2161_v37 = vadd.f32 %v2160_v23, %v9624_v22  ;;  %v6997_v12 = vpop.f32.mrb[118].mxu1  ;;  %v8027_v18 = vpop.f32.mrb[118].mxu0 }
 0x265   : > { %vm2277_vm4 = vcmp.gt.f32.partialorder %v2169_v25, 0.0  ;;  %v2309_v59 = vmul.f32 0.2, %v2169_v25  ;;  %v2172_v0 = vadd.f32 %v8027_v18, %v9642_v10  ;;  %v6998_v21 = vpop.f32.mrb[119].mxu1  ;;  %v2163_v29 = vpop.f32.mrb[119].mxu0  ;;  %3454 = vmatprep.mubr.bf16.mxu1 %v2480_v51 }
 0x266   : > { %vm2275_vm5 = vcmp.gt.f32.partialorder %v2161_v37, 0.0  ;;  %v2307_v60 = vmul.f32 0.2, %v2161_v37  ;;  %v6999_v32 = vadd.f32 %v6998_v21, %v6997_v12  ;;  %v2164_v58 = vadd.f32 %v2163_v29, %v9630_v52 }
 0x267   : > { %v9716_v2 = vsel %vm2277_vm4, %v2169_v25, %v2309_v59  ;;  %vm2278_vm6 = vcmp.gt.f32.partialorder %v2172_v0, 0.0  ;;  %v2310_v22 = vmul.f32 0.2, %v2172_v0  ;;  %v9719_v7 = vadd.f32 %v6996_v56, %v9609_v48  ;;  %v2545_v56 = vld [vmem:[#allocation2 + $0x30] sm:$0xff] }
 0x268   : > { %2373 = vst [vmem:[#allocation2 + $0x61] sm:$0xff] %v9716_v2  ;;  %v9722_v10 = vsel %vm2275_vm5, %v2161_v37, %v2307_v60  ;;  %vm2276_vm7 = vcmp.gt.f32.partialorder %v2164_v58, 0.0  ;;  %v2308_v19 = vmul.f32 0.2, %v2164_v58  ;;  %v9725_v16 = vadd.f32 %v6999_v32, %v9615_v57  ;;  %v2543_v38 = vld [vmem:[#allocation2 + $0x18] sm:$0xff] }
 0x269   : > { %2371 = vst [vmem:[#allocation2 + $0x49] sm:$0xff] %v9722_v10  ;;  %v9729_v52 = vsel %vm2278_vm6, %v2172_v0, %v2310_v22  ;;  %v2546_v17 = vld [vmem:[#allocation2 + $0x38] sm:$0xff] }
 0x26a   : > { %2374 = vst [vmem:[#allocation2 + $0x69] sm:$0xff] %v9729_v52  ;;  %v9732_v20 = vsel %vm2276_vm7, %v2164_v58, %v2308_v19  ;;  %v7000_v48 = vpop.f32.mrb[120].mxu1  ;;  %v8030_v35 = vpop.f32.mrb[120].mxu0  ;;  %v2544_v63 = vld [vmem:[#allocation2 + $0x20] sm:$0xff]  ;;  %v2483_v57 = vpack.c.bf16 %v9729_v52, %v9716_v2  ;;  %v8368_v37 = vld [vmem:[#allocation8 + $0x1c8] sm:$0xff]   ;;  %v2576_v0 = vpack.c.bf16 %v2546_v17, %v2545_v56 }
 0x26b   : > { %2372 = vst [vmem:[#allocation2 + $0x51] sm:$0xff] %v9732_v20  ;;  %v2185_v33 = vadd.f32 %v8030_v35, %v9660_v40  ;;  %v7001_v36 = vpop.f32.mrb[121].mxu1  ;;  %v2176_v53 = vpop.f32.mrb[121].mxu0  ;;  %v2575_v61 = vpack.c.bf16 %v2544_v63, %v2543_v38  ;;  %v2482_v24 = vpack.c.bf16 %v9732_v20, %v9722_v10  ;;  %v8369_v58 = vld [vmem:[#allocation8 + $0x188] sm:$0xff]   ;;  %v8376_v20 = vld [vmem:[#allocation8 + $0x1e0] sm:$0xff]   ;;  %v8380_v52 = vld [vmem:[#allocation8 + $0x1f0] sm:$0xff]  }
 0x26c   : > { %v7002_v25 = vadd.f32 %v7001_v36, %v7000_v48  ;;  %v2177_v45 = vadd.f32 %v2176_v53, %v9648_v39  ;;  %v7003_v23 = vpop.f32.mrb[122].mxu1  ;;  %v8031_v51 = vpop.f32.mrb[122].mxu0 }
 0x26d   : > { %vm2281_vm8 = vcmp.gt.f32.partialorder %v2185_v33, 0.0  ;;  %v2313_v12 = vmul.f32 0.2, %v2185_v33  ;;  %v2188_v18 = vadd.f32 %v8031_v51, %v9666_v47  ;;  %v7004_v59 = vpop.f32.mrb[123].mxu1  ;;  %v2179_v40 = vpop.f32.mrb[123].mxu0  ;;  %3607 = vmatprep.mubr.bf16.mxu0 %v2575_v61  ;;  %3455 = vmatmul.mubr.bf16.gmra.mrb[148].mxu1 %v2575_v61 }
 0x26e   : > { %vm2279_vm9 = vcmp.gt.f32.partialorder %v2177_v45, 0.0  ;;  %v2311_v21 = vmul.f32 0.2, %v2177_v45  ;;  %v7005_v29 = vadd.f32 %v7004_v59, %v7003_v23  ;;  %v2180_v60 = vadd.f32 %v2179_v40, %v9654_v1  ;;  %3608 = vmatmul.mubr.bf16.vlgmr.msra.gmra.mrb[144].mxu0 %v2527_v44  ;;  %3462 = vmatprep.mubr.bf16.mxu1 %v2481_v34  ;;  %v2497_v34 = vld [vmem:[#allocation2 + $0x1a] sm:$0xff]  ;;  %v8374_v23 = vld [vmem:[#allocation8 + $0x1d8] sm:$0xff]  }
 0x26f   : > { %v9746_v39 = vsel %vm2281_vm8, %v2185_v33, %v2313_v12  ;;  %vm2282_vm10 = vcmp.gt.f32.partialorder %v2188_v18, 0.0  ;;  %v2314_v32 = vmul.f32 0.2, %v2188_v18  ;;  %3615 = vmatprep.mubr.bf16.mxu0 %v2576_v0  ;;  %v9749_v47 = vadd.f32 %v7002_v25, %v9621_v9  ;;  %7397 = vmatpush3.bf16.msra.mxu0 %v8367_v41  ;;  %v2498_v9 = vld [vmem:[#allocation2 + $0x22] sm:$0xff] }
 0x270   : > { %2377 = vst [vmem:[#allocation2 + $0x91] sm:$0xff] %v9746_v39  ;;  %v9752_v22 = vsel %vm2279_vm9, %v2177_v45, %v2311_v21  ;;  %vm2280_vm11 = vcmp.gt.f32.partialorder %v2180_v60, 0.0  ;;  %v2312_v1 = vmul.f32 0.2, %v2180_v60  ;;  %v9755_v6 = vadd.f32 %v7005_v29, %v9627_v49  ;;  %7398 = vmatprep.subr.bf16.mxu0 %v8368_v37  ;;  %v8373_v33 = vld [vmem:[#allocation8 + $0x190] sm:$0xff]   ;;  %v2547_v45 = vld [vmem:[#allocation2 + $0x48] sm:$0xff] }
 0x271   : > { %2375 = vst [vmem:[#allocation2 + $0x79] sm:$0xff] %v9752_v22  ;;  %v9758_v13 = vsel %vm2282_vm10, %v2188_v18, %v2314_v32  ;;  %v9770_v25 = vpack.c.bf16 %v2498_v9, %v2497_v34  ;;  %v8375_v21 = vld [vmem:[#allocation8 + $0x198] sm:$0xff]  }
 0x272   : > { %2378 = vst [vmem:[#allocation2 + $0x99] sm:$0xff] %v9758_v13  ;;  %v9761_v3 = vsel %vm2280_vm11, %v2180_v60, %v2312_v1  ;;  %v7006_v19 = vpop.f32.mrb[124].mxu1  ;;  %v8034_v48 = vpop.f32.mrb[124].mxu0  ;;  %v2548_v35 = vld [vmem:[#allocation2 + $0x50] sm:$0xff]  ;;  %v2485_v38 = vpack.c.bf16 %v9758_v13, %v9746_v39 }
 0x273   : > { %2376 = vst [vmem:[#allocation2 + $0x81] sm:$0xff] %v9761_v3  ;;  %v2201_v49 = vadd.f32 %v8034_v48, %v9684_v50  ;;  %v7007_v63 = vpop.f32.mrb[125].mxu1  ;;  %v2192_v44 = vpop.f32.mrb[125].mxu0  ;;  %v2484_v17 = vpack.c.bf16 %v9761_v3, %v9752_v22  ;;  %7399 = vmatpush3.bf16.msra.mxu0 %v8369_v58  ;;  %v9773_v12 = vpack.c.bf16 %v2548_v35, %v2547_v45  ;;  %v2499_v60 = vld [vmem:[#allocation2 + $0x32] sm:$0xff]  ;;  %v2503_v3 = vld [vmem:[#allocation2 + $0x62] sm:$0xff] }
 0x274   : > { %v7008_v36 = vadd.f32 %v7007_v63, %v7006_v19  ;;  %v2193_v53 = vadd.f32 %v2192_v44, %v9672_v4  ;;  %v7009_v61 = vpop.f32.mrb[126].mxu1  ;;  %v8035_v41 = vpop.f32.mrb[126].mxu0  ;;  %7400 = vmatprep.subr.bf16.mxu0 %v8371_v15  ;;  %v2550_v15 = vld [vmem:[#allocation2 + $0x68] sm:$0xff]  ;;  %v8377_v35 = vld [vmem:[#allocation8 + $0x1a0] sm:$0xff]  }
 0x275   : > { %vm2285_vm12 = vcmp.gt.f32.partialorder %v2201_v49, 0.0  ;;  %v2317_v51 = vmul.f32 0.2, %v2201_v49  ;;  %v2204_v50 = vadd.f32 %v8035_v41, %v9690_v43  ;;  %v7010_v56 = vpop.f32.mrb[127].mxu1  ;;  %v2195_v37 = vpop.f32.mrb[127].mxu0  ;;  %3463 = vmatmul.mubr.bf16.gmra.mrb[152].mxu1 %v2576_v0 }
 0x276   : > { %vm2283_vm13 = vcmp.gt.f32.partialorder %v2193_v53, 0.0  ;;  %v2315_v18 = vmul.f32 0.2, %v2193_v53  ;;  %v7011_v59 = vadd.f32 %v7010_v56, %v7009_v61  ;;  %v2196_v4 = vadd.f32 %v2195_v37, %v9678_v28  ;;  %3616 = vmatmul.mubr.bf16.gmra.mrb[148].mxu0 %v9770_v25  ;;  %3470 = vmatprep.mubr.bf16.mxu1 %v2482_v24  ;;  %v8378_v61 = vld [vmem:[#allocation8 + $0x1e8] sm:$0xff]  }
 0x277   : > { %v9780_v40 = vsel %vm2285_vm12, %v2201_v49, %v2317_v51  ;;  %vm2286_vm14 = vcmp.gt.f32.partialorder %v2204_v50, 0.0  ;;  %v2318_v43 = vmul.f32 0.2, %v2204_v50  ;;  %3623 = vmatprep.mubr.bf16.mxu0 %v9773_v12  ;;  %v9784_v0 = vadd.f32 %v7008_v36, %v9633_v11  ;;  %7401 = vmatpush3.bf16.msra.mxu0 %v8373_v33  ;;  %v2500_v11 = vld [vmem:[#allocation2 + $0x3a] sm:$0xff] }
 0x278   : > { %2381 = vst [vmem:[#allocation2 + $0xc1] sm:$0xff] %v9780_v40  ;;  %v9787_v28 = vsel %vm2283_vm13, %v2193_v53, %v2315_v18  ;;  %vm2284_vm15 = vcmp.gt.f32.partialorder %v2196_v4, 0.0  ;;  %v2316_v29 = vmul.f32 0.2, %v2196_v4  ;;  %v9790_v10 = vadd.f32 %v7011_v59, %v9639_v42  ;;  %7402 = vmatprep.subr.bf16.mxu0 %v8374_v23  ;;  %v2549_v53 = vld [vmem:[#allocation2 + $0x60] sm:$0xff]  ;;  %v8379_v59 = vld [vmem:[#allocation8 + $0x1a8] sm:$0xff]  }
 0x279   : > { %2379 = vst [vmem:[#allocation2 + $0xa9] sm:$0xff] %v9787_v28  ;;  %v9793_v24 = vsel %vm2286_vm14, %v2204_v50, %v2318_v43  ;;  %v9805_v36 = vpack.c.bf16 %v2500_v11, %v2499_v60  ;;  %v9809_v51 = vpack.c.bf16 %v2550_v15, %v2549_v53  ;;  %v2501_v43 = vld [vmem:[#allocation2 + $0x4a] sm:$0xff] }
 0x27a   : > { %2382 = vst [vmem:[#allocation2 + $0xc9] sm:$0xff] %v9793_v24  ;;  %v9796_v32 = vsel %vm2284_vm15, %v2196_v4, %v2316_v29  ;;  %v7012_v58 = vpop.f32.mrb[128].mxu1  ;;  %v8038_v1 = vpop.f32.mrb[128].mxu0  ;;  %v2487_v34 = vpack.c.bf16 %v9793_v24, %v9780_v40  ;;  %v2552_v60 = vld [vmem:[#allocation2 + $0x80] sm:$0xff] }
 0x27b   : > { %2380 = vst [vmem:[#allocation2 + $0xb1] sm:$0xff] %v9796_v32  ;;  %v2217_v42 = vadd.f32 %v8038_v1, %v9719_v7  ;;  %v7013_v9 = vpop.f32.mrb[129].mxu1  ;;  %v2208_v19 = vpop.f32.mrb[129].mxu0  ;;  %v2486_v48 = vpack.c.bf16 %v9796_v32, %v9787_v28  ;;  %7403 = vmatpush3.bf16.msra.mxu0 %v8375_v21  ;;  %v2505_v13 = vld [vmem:[#allocation2 + $0x7a] sm:$0xff] }
 0x27c   : > { %v7014_v49 = vadd.f32 %v7013_v9, %v7012_v58  ;;  %v2209_v63 = vadd.f32 %v2208_v19, %v9699_v8  ;;  %v7015_v44 = vpop.f32.mrb[130].mxu1  ;;  %v8039_v33 = vpop.f32.mrb[130].mxu0  ;;  %7404 = vmatprep.subr.bf16.mxu0 %v8376_v20 }
 0x27d   : > { %vm2289_vm0 = vcmp.gt.f32.partialorder %v2217_v42, 0.0  ;;  %v2321_v41 = vmul.f32 0.2, %v2217_v42  ;;  %v2220_v7 = vadd.f32 %v8039_v33, %v9725_v16  ;;  %v7016_v45 = vpop.f32.mrb[131].mxu1  ;;  %v2211_v23 = vpop.f32.mrb[131].mxu0  ;;  %3471 = vmatmul.mubr.bf16.gmra.mrb[156].mxu1 %v9773_v12  ;;  %v8383_v33 = vld [vmem:[#allocation8 + $0x1f8] sm:$0xff]  }
 0x27e   : > { %vm2287_vm1 = vcmp.gt.f32.partialorder %v2209_v63, 0.0  ;;  %v2319_v50 = vmul.f32 0.2, %v2209_v63  ;;  %v7017_v8 = vadd.f32 %v7016_v45, %v7015_v44  ;;  %v2212_v56 = vadd.f32 %v2211_v23, %v9703_v55  ;;  %3624 = vmatmul.mubr.bf16.gmra.mrb[152].mxu0 %v9805_v36  ;;  %3478 = vmatprep.mubr.bf16.mxu1 %v2483_v57  ;;  %v2551_v44 = vld [vmem:[#allocation2 + $0x78] sm:$0xff] }
 0x27f   : > { %v9816_v37 = vsel %vm2289_vm0, %v2217_v42, %v2321_v41  ;;  %vm2290_vm2 = vcmp.gt.f32.partialorder %v2220_v7, 0.0  ;;  %v2322_v16 = vmul.f32 0.2, %v2220_v7  ;;  %3631 = vmatprep.mubr.bf16.mxu0 %v9809_v51  ;;  %v9820_v18 = vadd.f32 %v7014_v49, %v9645_v26  ;;  %7405 = vmatpush3.bf16.msra.mxu0 %v8377_v35  ;;  %v2502_v26 = vld [vmem:[#allocation2 + $0x52] sm:$0xff]  ;;  %v8382_v42 = vld [vmem:[#allocation8 + $0x1b0] sm:$0xff]  }
 0x280   : > { %2385 = vst [vmem:[#allocation2 + $0xf1] sm:$0xff] %v9816_v37  ;;  %v9823_v55 = vsel %vm2287_vm1, %v2209_v63, %v2319_v50  ;;  %vm2288_vm3 = vcmp.gt.f32.partialorder %v2212_v56, 0.0  ;;  %v2320_v4 = vmul.f32 0.2, %v2212_v56  ;;  %v9826_v2 = vadd.f32 %v7017_v8, %v9651_v54  ;;  %7406 = vmatprep.subr.bf16.mxu0 %v8378_v61 }
 0x281   : > { %2383 = vst [vmem:[#allocation2 + $0xd9] sm:$0xff] %v9823_v55  ;;  %v9829_v57 = vsel %vm2290_vm2, %v2220_v7, %v2322_v16  ;;  %v9841_v63 = vpack.c.bf16 %v2502_v26, %v2501_v43  ;;  %v9845_v7 = vpack.c.bf16 %v2552_v60, %v2551_v44  ;;  %v2554_v43 = vld [vmem:[#allocation2 + $0x98] sm:$0xff]  ;;  %v2511_v40 = vld [vmem:[#allocation2 + $0xc2] sm:$0xff]  ;;  %v2512_v24 = vld [vmem:[#allocation2 + $0xca] sm:$0xff] }
 0x282   : > { %2386 = vst [vmem:[#allocation2 + $0xf9] sm:$0xff] %v9829_v57  ;;  %v9832_v21 = vsel %vm2288_vm3, %v2212_v56, %v2320_v4  ;;  %v7018_v29 = vpop.f32.mrb[132].mxu1  ;;  %v8042_v20 = vpop.f32.mrb[132].mxu0  ;;  %v2489_v11 = vpack.c.bf16 %v9829_v57, %v9816_v37  ;;  %v8384_v56 = vld [vmem:[#allocation8 + $0x1b8] sm:$0xff]  }
 0x283   : > { %2384 = vst [vmem:[#allocation2 + $0xe1] sm:$0xff] %v9832_v21  ;;  %v2233_v54 = vadd.f32 %v8042_v20, %v9784_v0  ;;  %v7019_v58 = vpop.f32.mrb[133].mxu1  ;;  %v2224_v1 = vpop.f32.mrb[133].mxu0  ;;  %v2488_v15 = vpack.c.bf16 %v9832_v21, %v9823_v55  ;;  %7407 = vmatpush3.bf16.msra.mxu0 %v8379_v59 }
 0x284   : > { %v7020_v9 = vadd.f32 %v7019_v58, %v7018_v29  ;;  %v2225_v19 = vadd.f32 %v2224_v1, %v9749_v47  ;;  %v7021_v35 = vpop.f32.mrb[134].mxu1  ;;  %v8043_v49 = vpop.f32.mrb[134].mxu0  ;;  %7408 = vmatprep.subr.bf16.mxu0 %v8380_v52 }
 0x285   : > { %vm2293_vm4 = vcmp.gt.f32.partialorder %v2233_v54, 0.0  ;;  %v2325_v53 = vmul.f32 0.2, %v2233_v54  ;;  %v2236_v0 = vadd.f32 %v8043_v49, %v9790_v10  ;;  %v7022_v61 = vpop.f32.mrb[135].mxu1  ;;  %v2227_v41 = vpop.f32.mrb[135].mxu0  ;;  %3479 = vmatmul.mubr.bf16.gmra.mrb[160].mxu1 %v9809_v51 }
 0x286   : > { %vm2291_vm5 = vcmp.gt.f32.partialorder %v2225_v19, 0.0  ;;  %v2323_v45 = vmul.f32 0.2, %v2225_v19  ;;  %v7023_v47 = vadd.f32 %v7022_v61, %v7021_v35  ;;  %v2228_v23 = vadd.f32 %v2227_v41, %v9755_v6  ;;  %3632 = vmatmul.mubr.bf16.gmra.mrb[156].mxu0 %v9841_v63  ;;  %3486 = vmatprep.mubr.bf16.mxu1 %v2484_v17  ;;  %v2504_v17 = vld [vmem:[#allocation2 + $0x6a] sm:$0xff] }
 0x287   : > { %v9852_v50 = vsel %vm2293_vm4, %v2233_v54, %v2325_v53  ;;  %vm2294_vm6 = vcmp.gt.f32.partialorder %v2236_v0, 0.0  ;;  %v2326_v10 = vmul.f32 0.2, %v2236_v0  ;;  %3639 = vmatprep.mubr.bf16.mxu0 %v9845_v7  ;;  %v2088_v8 = vadd.f32 %v7020_v9, %v9657_v31  ;;  %7409 = vmatpush3.bf16.msra.mxu0 %v8382_v42 }
 0x288   : > { %2389 = vst [vmem:[#allocation2 + $0x121] sm:$0xff] %v9852_v50  ;;  %v9857_v16 = vsel %vm2291_vm5, %v2225_v19, %v2323_v45  ;;  %vm2292_vm7 = vcmp.gt.f32.partialorder %v2228_v23, 0.0  ;;  %v2324_v6 = vmul.f32 0.2, %v2228_v23  ;;  %v2091_v59 = vadd.f32 %v7023_v47, %v9663_v62  ;;  %7410 = vmatprep.subr.bf16.mxu0 %v8383_v33  ;;  %v2553_v19 = vld [vmem:[#allocation2 + $0x90] sm:$0xff] }
 0x289   : > { %2387 = vst [vmem:[#allocation2 + $0x109] sm:$0xff] %v9857_v16  ;;  %v9861_v22 = vsel %vm2294_vm6, %v2236_v0, %v2326_v10  ;;  %v9872_v9 = vpack.c.bf16 %v2504_v17, %v2503_v3  ;;  %v9875_v53 = vpack.c.bf16 %v2554_v43, %v2553_v19 }
 0x28a   : > { %2390 = vst [vmem:[#allocation2 + $0x129] sm:$0xff] %v9861_v22  ;;  %v9864_v31 = vsel %vm2292_vm7, %v2228_v23, %v2324_v6  ;;  %v7024_v4 = vpop.f32.mrb[136].mxu1  ;;  %v8046_v52 = vpop.f32.mrb[136].mxu0  ;;  %v2491_v26 = vpack.c.bf16 %v9861_v22, %v9852_v50  ;;  %v2556_v6 = vld [vmem:[#allocation2 + $0xb0] sm:$0xff]  ;;  %v2513_v55 = vld [vmem:[#allocation2 + $0xda] sm:$0xff]  ;;  %v2514_v21 = vld [vmem:[#allocation2 + $0xe2] sm:$0xff] }
 0x28b   : > { %2388 = vst [vmem:[#allocation2 + $0x111] sm:$0xff] %v9864_v31  ;;  %v2249_v62 = vadd.f32 %v8046_v52, %v2088_v8  ;;  %v7025_v29 = vpop.f32.mrb[137].mxu1  ;;  %v2240_v20 = vpop.f32.mrb[137].mxu0  ;;  %v2490_v60 = vpack.c.bf16 %v9864_v31, %v9857_v16  ;;  %7411 = vmatpush3.bf16.msra.mxu0 %v8384_v56 }
 0x28c   : > { %v7026_v54 = vadd.f32 %v7025_v29, %v7024_v4  ;;  %v2241_v58 = vadd.f32 %v2240_v20, %v9820_v18  ;;  %v7027_v1 = vpop.f32.mrb[138].mxu1  ;;  %v8047_v42 = vpop.f32.mrb[138].mxu0  ;;  %v2555_v20 = vld [vmem:[#allocation2 + $0xa8] sm:$0xff] }
 0x28d   : > { %vm2297_vm8 = vcmp.gt.f32.partialorder %v2249_v62, 0.0  ;;  %v2329_v35 = vmul.f32 0.2, %v2249_v62  ;;  %v2252_v49 = vadd.f32 %v8047_v42, %v2091_v59  ;;  %v7028_v44 = vpop.f32.mrb[139].mxu1  ;;  %v2243_v33 = vpop.f32.mrb[139].mxu0  ;;  %3487 = vmatmul.mubr.bf16.gmra.mrb[164].mxu1 %v9845_v7 }
 0x28e   : > { %vm2295_vm9 = vcmp.gt.f32.partialorder %v2241_v58, 0.0  ;;  %v2327_v0 = vmul.f32 0.2, %v2241_v58  ;;  %v7029_v61 = vadd.f32 %v7028_v44, %v7027_v1  ;;  %v2244_v41 = vadd.f32 %v2243_v33, %v9826_v2  ;;  %3640 = vmatmul.mubr.bf16.gmra.mrb[160].mxu0 %v9872_v9  ;;  %3494 = vmatprep.mubr.bf16.mxu1 %v2485_v38  ;;  %v2506_v38 = vld [vmem:[#allocation2 + $0x82] sm:$0xff] }
 0x28f   : > { %v9882_v18 = vsel %vm2297_vm8, %v2249_v62, %v2329_v35  ;;  %vm2298_vm10 = vcmp.gt.f32.partialorder %v2252_v49, 0.0  ;;  %v2330_v45 = vmul.f32 0.2, %v2252_v49  ;;  %3647 = vmatprep.mubr.bf16.mxu0 %v9875_v53  ;;  %v2096_v47 = vadd.f32 %v7026_v54, %v9669_v5 }
 0x290   : > { %2393 = vst [vmem:[#allocation2 + $0x151] sm:$0xff] %v9882_v18  ;;  %v9887_v23 = vsel %vm2295_vm9, %v2241_v58, %v2327_v0  ;;  %vm2296_vm11 = vcmp.gt.f32.partialorder %v2244_v41, 0.0  ;;  %v2328_v2 = vmul.f32 0.2, %v2244_v41  ;;  %v2099_v10 = vadd.f32 %v7029_v61, %v9675_v27  ;;  %v2507_v61 = vld [vmem:[#allocation2 + $0x92] sm:$0xff] }
 0x291   : > { %2391 = vst [vmem:[#allocation2 + $0x139] sm:$0xff] %v9887_v23  ;;  %v9891_v39 = vsel %vm2298_vm10, %v2252_v49, %v2330_v45  ;;  %v9901_v29 = vpack.c.bf16 %v2506_v38, %v2505_v13  ;;  %v9904_v1 = vpack.c.bf16 %v2556_v6, %v2555_v20  ;;  %v2510_v6 = vld [vmem:[#allocation2 + $0xb2] sm:$0xff]  ;;  %v2519_v50 = vld [vmem:[#allocation2 + $0x122] sm:$0xff]  ;;  %v2520_v22 = vld [vmem:[#allocation2 + $0x12a] sm:$0xff] }
 0x292   : > { %2394 = vst [vmem:[#allocation2 + $0x159] sm:$0xff] %v9891_v39  ;;  %v9894_v8 = vsel %vm2296_vm11, %v2244_v41, %v2328_v2  ;;  %v7030_v56 = vpop.f32.mrb[140].mxu1  ;;  %v8050_v5 = vpop.f32.mrb[140].mxu0  ;;  %v2493_v59 = vpack.c.bf16 %v9891_v39, %v9882_v18  ;;  %v2508_v41 = vld [vmem:[#allocation2 + $0x9a] sm:$0xff]  ;;  %v2558_v2 = vld [vmem:[#allocation2 + $0xc8] sm:$0xff] }
 0x293   : > { %2392 = vst [vmem:[#allocation2 + $0x141] sm:$0xff] %v9894_v8  ;;  %v7031_v3 = vpop.f32.mrb[141].mxu1  ;;  %v2256_v27 = vpop.f32.mrb[141].mxu0  ;;  %v2492_v17 = vpack.c.bf16 %v9894_v8, %v9887_v23  ;;  %v9918_v32 = vpack.c.bf16 %v2508_v41, %v2507_v61  ;;  %v2517_v31 = vld [vmem:[#allocation2 + $0x10a] sm:$0xff] }
 0x294   : > { %v7032_v4 = vadd.f32 %v7031_v3, %v7030_v56  ;;  %v2257_v52 = vadd.f32 %v2256_v27, %v2096_v47  ;;  %v7033_v43 = vpop.f32.mrb[142].mxu1  ;;  %v8051_v62 = vpop.f32.mrb[142].mxu0  ;;  %v2560_v3 = vld [vmem:[#allocation2 + $0xe0] sm:$0xff] }
 0x295   : > { %v7034_v54 = vpop.f32.mrb[143].mxu1  ;;  %v2259_v58 = vpop.f32.mrb[143].mxu0  ;;  %3495 = vmatmul.mubr.bf16.gmra.mrb[168].mxu1 %v9875_v53 }
 0x296   : > { %v2104_v42 = vadd.f32 %v7032_v4, %v9681_v14  ;;  %vm2299_vm12 = vcmp.gt.f32.partialorder %v2257_v52, 0.0  ;;  %v2331_v19 = vmul.f32 0.2, %v2257_v52  ;;  %v7035_v35 = vadd.f32 %v7034_v54, %v7033_v43  ;;  %3648 = vmatmul.mubr.bf16.gmra.mrb[164].mxu0 %v9901_v29  ;;  %3502 = vmatprep.mubr.bf16.mxu1 %v2486_v48  ;;  %v2559_v4 = vld [vmem:[#allocation2 + $0xd8] sm:$0xff] }
 0x297   : > { %v2260_v49 = vadd.f32 %v2259_v58, %v2099_v10  ;;  %3655 = vmatprep.mubr.bf16.mxu0 %v9904_v1  ;;  %v9941_v43 = vpack.c.bf16 %v2512_v24, %v2511_v40  ;;  %v9951_v54 = vpack.c.bf16 %v2514_v21, %v2513_v55  ;;  %v2563_v58 = vld [vmem:[#allocation2 + $0x108] sm:$0xff] }
 0x298   : > { %v2265_v44 = vadd.f32 %v8050_v5, %v2104_v42  ;;  %v9912_v33 = vsel %vm2299_vm12, %v2257_v52, %v2331_v19  ;;  %v2107_v0 = vadd.f32 %v7035_v35, %v9687_v46  ;;  %v2557_v46 = vld [vmem:[#allocation2 + $0xc0] sm:$0xff]  ;;  %v2509_v5 = vld [vmem:[#allocation2 + $0xaa] sm:$0xff]  ;;  %v9934_v52 = vpack.c.bf16 %v2560_v3, %v2559_v4  ;;  %v2515_v35 = vld [vmem:[#allocation2 + $0xf2] sm:$0xff] }
 0x299   : > { %2395 = vst [vmem:[#allocation2 + $0x169] sm:$0xff] %v9912_v33  ;;  %vm2300_vm13 = vcmp.gt.f32.partialorder %v2260_v49, 0.0  ;;  %v2332_v14 = vmul.f32 0.2, %v2260_v49  ;;  %v9924_v38 = vpack.c.bf16 %v2558_v2, %v2557_v46  ;;  %v9931_v27 = vpack.c.bf16 %v2510_v6, %v2509_v5  ;;  %v2567_v2 = vld [vmem:[#allocation2 + $0x138] sm:$0xff]  ;;  %v2569_v46 = vld [vmem:[#allocation2 + $0x150] sm:$0xff] }
 0x29a   : > { %vm2301_vm14 = vcmp.gt.f32.partialorder %v2265_v44, 0.0  ;;  %v2333_v45 = vmul.f32 0.2, %v2265_v44  ;;  %v2268_v47 = vadd.f32 %v8051_v62, %v2107_v0  ;;  %v2561_v62 = vld [vmem:[#allocation2 + $0xf0] sm:$0xff]  ;;  %v2566_v0 = vld [vmem:[#allocation2 + $0x128] sm:$0xff]  ;;  %v2521_v23 = vld [vmem:[#allocation2 + $0x13a] sm:$0xff] }
 0x29b   : > { %v9916_v28 = vsel %vm2300_vm13, %v2260_v49, %v2332_v14  ;;  %v2516_v49 = vld [vmem:[#allocation2 + $0xfa] sm:$0xff]  ;;  %v2522_v8 = vld [vmem:[#allocation2 + $0x142] sm:$0xff]  ;;  %v2523_v18 = vld [vmem:[#allocation2 + $0x152] sm:$0xff] }
 0x29c   : > { %v2365_v48 = vsel %vm2301_vm14, %v2265_v44, %v2333_v45  ;;  %vm2302_vm15 = vcmp.gt.f32.partialorder %v2268_v47, 0.0  ;;  %v2334_v10 = vmul.f32 0.2, %v2268_v47  ;;  %2396 = vst [vmem:[#allocation2 + $0x171] sm:$0xff] %v9916_v28  ;;  %v2494_v13 = vpack.c.bf16 %v9916_v28, %v9912_v33  ;;  %v2565_v14 = vld [vmem:[#allocation2 + $0x120] sm:$0xff] }
 0x29d   : > { %2397 = vst [vmem:[#allocation2 + $0x181] sm:$0xff] %v2365_v48  ;;  %3503 = vmatmul.mubr.bf16.gmra.mrb[172].mxu1 %v9904_v1  ;;  %v9965_v41 = vpack.c.bf16 %v2516_v49, %v2515_v35  ;;  %v9968_v16 = vpack.c.bf16 %v2566_v0, %v2565_v14  ;;  %v2568_v45 = vld [vmem:[#allocation2 + $0x140] sm:$0xff]  ;;  %v9995_v5 = vpack.c.bf16 %v2522_v8, %v2521_v23  ;;  %v2687_v35 = vld [vmem:[#allocation2 + $0x30] sm:$0xff]  ;;  %v8387_v0 = vld [vmem:[#allocation8 + $0x218] sm:$0xff]  }
 0x29e   : > { %v2366_v56 = vsel %vm2302_vm15, %v2268_v47, %v2334_v10  ;;  %3656 = vmatmul.mubr.bf16.gmra.mrb[168].mxu0 %v9918_v32  ;;  %3510 = vmatprep.mubr.bf16.mxu1 %v2487_v34  ;;  %v2562_v34 = vld [vmem:[#allocation2 + $0xf8] sm:$0xff]  ;;  %v9978_v48 = vpack.c.bf16 %v2568_v45, %v2567_v2  ;;  %v9985_v10 = vpack.c.bf16 %v2520_v22, %v2519_v50  ;;  %v2592_v33 = vld [vmem:[#allocation2 + $0x21] sm:$0xff]  ;;  %v2745_v8 = vld [vmem:[#allocation2 + $0xa9] sm:$0xff] }
 0x29f   : > { %2398 = vst [vmem:[#allocation2 + $0x189] sm:$0xff] %v2366_v56  ;;  %3663 = vmatprep.mubr.bf16.mxu0 %v9924_v38  ;;  %v9944_v20 = vpack.c.bf16 %v2562_v34, %v2561_v62  ;;  %v2524_v39 = vld [vmem:[#allocation2 + $0x15a] sm:$0xff]  ;;  %v8391_v22 = vld [vmem:[#allocation8 + $0x238] sm:$0xff]   ;;  %v2746_v23 = vld [vmem:[#allocation2 + $0xb1] sm:$0xff] }
 0x2a0   : > { %v2571_v6 = vld [vmem:[#allocation2 + $0x168] sm:$0xff]  ;;  %v10005_v4 = vpack.c.bf16 %v2524_v39, %v2523_v18  ;;  %v2591_v34 = vld [vmem:[#allocation2 + $0x19] sm:$0xff] }
 0x2a1   : > { %v2736_v62 = vld [vmem:[#allocation2 + $0x39] sm:$0xff]  ;;  %v2623_v55 = vpack.c.bf16 %v2592_v33, %v2591_v34 }
 0x2a2   : > { %v8390_v2 = vld [vmem:[#allocation8 + $0x230] sm:$0xff]  }
 0x2a3   : > { %v2525_v28 = vld [vmem:[#allocation2 + $0x16a] sm:$0xff]  ;;  %v2741_v50 = vld [vmem:[#allocation2 + $0x79] sm:$0xff] }
 0x2a4   : > { %v2573_v40 = vld [vmem:[#allocation2 + $0x180] sm:$0xff] }
 0x2a5   : > { %3511 = vmatmul.mubr.bf16.gmra.mrb[176].mxu1 %v9924_v38 }
 0x2a6   : > { %3664 = vmatmul.mubr.bf16.gmra.mrb[172].mxu0 %v9931_v27  ;;  %3518 = vmatprep.mubr.bf16.mxu1 %v2488_v15  ;;  %v2564_v15 = vld [vmem:[#allocation2 + $0x110] sm:$0xff] }
 0x2a7   : > { %3671 = vmatprep.mubr.bf16.mxu0 %v9934_v52  ;;  %v9954_v42 = vpack.c.bf16 %v2564_v15, %v2563_v58  ;;  %v2735_v15 = vld [vmem:[#allocation2 + $0x31] sm:$0xff] }
 0x2a8   : > { %v8385_v58 = vld [vmem:[#allocation8 + $0x208] sm:$0xff]  }
 0x2ad   : > { %3519 = vmatmul.mubr.bf16.gmra.mrb[180].mxu1 %v9934_v52  ;;  %v7076_v37 = vpop.f32.mrb[144].mxu1 }
 0x2ae   : > { %3672 = vmatmul.mubr.bf16.gmra.mrb[176].mxu0 %v9941_v43  ;;  %3526 = vmatprep.mubr.bf16.mxu1 %v2489_v11  ;;  %v7077_v57 = vpop.f32.mrb[145].mxu1 }
 0x2af   : > { %3679 = vmatprep.mubr.bf16.mxu0 %v9944_v20  ;;  %v9961_v11 = vadd.f32 %v7077_v57, %v7076_v37  ;;  %v7079_v19 = vpop.f32.mrb[146].mxu1  ;;  %v2767_v37 = vpack.c.bf16 %v2736_v62, %v2735_v15  ;;  %v2688_v57 = vld [vmem:[#allocation2 + $0x38] sm:$0xff] }
 0x2b0   : > { %v7080_v44 = vpop.f32.mrb[147].mxu1  ;;  %v2719_v49 = vpack.c.bf16 %v2688_v57, %v2687_v35  ;;  %v2760_v62 = vld [vmem:[#allocation2 + $0x159] sm:$0xff] }
 0x2b1   : > { %v9963_v61 = vadd.f32 %v7080_v44, %v7079_v19  ;;  %v2738_v19 = vld [vmem:[#allocation2 + $0x51] sm:$0xff]  ;;  %v2737_v44 = vld [vmem:[#allocation2 + $0x49] sm:$0xff] }
 0x2b2   : > { %v2768_v14 = vpack.c.bf16 %v2738_v19, %v2737_v44  ;;  %v8392_v44 = vld [vmem:[#allocation9 + $0x40] sm:$0xff]  }
 0x2b3   : > { %7532 = vmatprep.subr.bf16.mxu0 %v8392_v44 }
 0x2b5   : > { %3527 = vmatmul.mubr.bf16.gmra.mrb[184].mxu1 %v9944_v20 }
 0x2b6   : > { %3680 = vmatmul.mubr.bf16.gmra.mrb[180].mxu0 %v9951_v54  ;;  %3534 = vmatprep.mubr.bf16.mxu1 %v2490_v60  ;;  %v2518_v60 = vld [vmem:[#allocation2 + $0x112] sm:$0xff] }
 0x2b7   : > { %3687 = vmatprep.mubr.bf16.mxu0 %v9954_v42  ;;  %v9975_v47 = vpack.c.bf16 %v2518_v60, %v2517_v31  ;;  %v2739_v31 = vld [vmem:[#allocation2 + $0x61] sm:$0xff]  ;;  %v8389_v60 = vld [vmem:[#allocation8 + $0x228] sm:$0xff]  }
 0x2bd   : > { %3535 = vmatmul.mubr.bf16.gmra.mrb[188].mxu1 %v9954_v42 }
 0x2be   : > { %3688 = vmatmul.mubr.bf16.gmra.mrb[184].mxu0 %v9965_v41  ;;  %3542 = vmatprep.mubr.bf16.mxu1 %v2491_v26  ;;  %v2570_v26 = vld [vmem:[#allocation2 + $0x158] sm:$0xff] }
 0x2bf   : > { %3695 = vmatprep.mubr.bf16.mxu0 %v9968_v16  ;;  %v9988_v56 = vpack.c.bf16 %v2570_v26, %v2569_v46 }
 0x2c5   : > { %3543 = vmatmul.mubr.bf16.gmra.mrb[192].mxu1 %v9968_v16 }
 0x2c6   : > { %3696 = vmatmul.mubr.bf16.gmra.mrb[188].mxu0 %v9975_v47  ;;  %3550 = vmatprep.mubr.bf16.mxu1 %v2492_v17  ;;  %v2572_v17 = vld [vmem:[#allocation2 + $0x170] sm:$0xff] }
 0x2c7   : > { %3703 = vmatprep.mubr.bf16.mxu0 %v9978_v48  ;;  %v9998_v3 = vpack.c.bf16 %v2572_v17, %v2571_v6  ;;  %v2772_v17 = vpack.c.bf16 %v2746_v23, %v2745_v8 }
 0x2cd   : > { %3551 = vmatmul.mubr.bf16.gmra.mrb[196].mxu1 %v9978_v48 }
 0x2ce   : > { %3704 = vmatmul.mubr.bf16.gmra.mrb[192].mxu0 %v9985_v10  ;;  %3558 = vmatprep.mubr.bf16.mxu1 %v2493_v59  ;;  %v2574_v59 = vld [vmem:[#allocation2 + $0x188] sm:$0xff] }
 0x2cf   : > { %3711 = vmatprep.mubr.bf16.mxu0 %v9988_v56  ;;  %v10008_v24 = vpack.c.bf16 %v2574_v59, %v2573_v40 }
 0x2d5   : > { %3559 = vmatmul.mubr.bf16.gmra.mrb[200].mxu1 %v9988_v56 }
 0x2d6   : > { %3712 = vmatmul.mubr.bf16.gmra.mrb[196].mxu0 %v9995_v5  ;;  %3566 = vmatprep.mubr.bf16.mxu1 %v2494_v13  ;;  %v2526_v13 = vld [vmem:[#allocation2 + $0x172] sm:$0xff] }
 0x2d7   : > { %3719 = vmatprep.mubr.bf16.mxu0 %v9998_v3  ;;  %v10013_v21 = vpack.c.bf16 %v2526_v13, %v2525_v28 }
 0x2dd   : > { %3567 = vmatmul.mubr.bf16.gmra.mrb[204].mxu1 %v9998_v3 }
 0x2de   : > { %3720 = vmatmul.mubr.bf16.gmra.mrb[200].mxu0 %v10005_v4  ;;  %3768 = vmatprep.mubr.bf16.mxu1 %v9770_v25  ;;  %v8386_v25 = vld [vmem:[#allocation8 + $0x210] sm:$0xff]  }
 0x2df   : > { %3727 = vmatprep.mubr.bf16.mxu0 %v10008_v24 }
 0x2e5   : > { %3769 = vmatmul.mubr.bf16.vlgmr.msra.gmra.mrb[208].mxu1 %v2623_v55 }
 0x2e6   : > { %3728 = vmatmul.mubr.bf16.gmra.mrb[204].mxu0 %v10013_v21  ;;  %3776 = vmatprep.mubr.bf16.mxu1 %v9805_v36  ;;  %v8388_v36 = vld [vmem:[#allocation8 + $0x220] sm:$0xff]  }
 0x2e7   : > { %3929 = vmatprep.mubr.bf16.mxu0 %v2767_v37  ;;  %8053 = vmatpush3.bf16.msra.mxu1 %v9714_v30  ;;  %v2740_v30 = vld [vmem:[#allocation2 + $0x69] sm:$0xff] }
 0x2e8   : > { %8054 = vmatprep.subr.bf16.mxu1 %v8385_v58  ;;  %v2769_v45 = vpack.c.bf16 %v2740_v30, %v2739_v31 }
 0x2eb   : > { %8055 = vmatpush3.bf16.msra.mxu1 %v8385_v58 }
 0x2ec   : > { %8056 = vmatprep.subr.bf16.mxu1 %v8386_v25 }
 0x2ed   : > { %3777 = vmatmul.mubr.bf16.gmra.mrb[212].mxu1 %v2767_v37 }
 0x2ee   : > { %3930 = vmatmul.mubr.bf16.vlgmr.msra.gmra.mrb[208].mxu0 %v2719_v49  ;;  %3784 = vmatprep.mubr.bf16.mxu1 %v9841_v63  ;;  %v2742_v63 = vld [vmem:[#allocation2 + $0x81] sm:$0xff] }
 0x2ef   : > { %3937 = vmatprep.mubr.bf16.mxu0 %v2768_v14  ;;  %8057 = vmatpush3.bf16.msra.mxu1 %v8386_v25  ;;  %v2770_v26 = vpack.c.bf16 %v2742_v63, %v2741_v50  ;;  %v2759_v25 = vld [vmem:[#allocation2 + $0x151] sm:$0xff] }
 0x2f0   : > { %8058 = vmatprep.subr.bf16.mxu1 %v8387_v0  ;;  %v2779_v35 = vpack.c.bf16 %v2760_v62, %v2759_v25 }
 0x2f3   : > { %8059 = vmatpush3.bf16.msra.mxu1 %v8387_v0 }
 0x2f4   : > { %8060 = vmatprep.subr.bf16.mxu1 %v8388_v36 }
 0x2f5   : > { %3785 = vmatmul.mubr.bf16.gmra.mrb[216].mxu1 %v2768_v14 }
 0x2f6   : > { %3938 = vmatmul.mubr.bf16.gmra.mrb[212].mxu0 %v9773_v12  ;;  %3792 = vmatprep.mubr.bf16.mxu1 %v9872_v9  ;;  %v2744_v12 = vld [vmem:[#allocation2 + $0x99] sm:$0xff]  ;;  %v2743_v9 = vld [vmem:[#allocation2 + $0x91] sm:$0xff] }
 0x2f7   : > { %3945 = vmatprep.mubr.bf16.mxu0 %v2769_v45  ;;  %8061 = vmatpush3.bf16.msra.mxu1 %v8388_v36  ;;  %v2771_v46 = vpack.c.bf16 %v2744_v12, %v2743_v9 }
 0x2f8   : > { %8062 = vmatprep.subr.bf16.mxu1 %v8389_v60 }
 0x2fb   : > { %8063 = vmatpush3.bf16.msra.mxu1 %v8389_v60 }
 0x2fc   : > { %8064 = vmatprep.subr.bf16.mxu1 %v8390_v2 }
 0x2fd   : > { %3793 = vmatmul.mubr.bf16.gmra.mrb[220].mxu1 %v2769_v45  ;;  %v2762_v45 = vld [vmem:[#allocation2 + $0x171] sm:$0xff] }
 0x2fe   : > { %3946 = vmatmul.mubr.bf16.gmra.mrb[216].mxu0 %v9809_v51  ;;  %3800 = vmatprep.mubr.bf16.mxu1 %v9901_v29  ;;  %v2748_v51 = vld [vmem:[#allocation2 + $0xc9] sm:$0xff]  ;;  %v2747_v29 = vld [vmem:[#allocation2 + $0xc1] sm:$0xff] }
 0x2ff   : > { %3953 = vmatprep.mubr.bf16.mxu0 %v2770_v26  ;;  %8065 = vmatpush3.bf16.msra.mxu1 %v8390_v2  ;;  %v2773_v6 = vpack.c.bf16 %v2748_v51, %v2747_v29 }
 0x300   : > { %8066 = vmatprep.subr.bf16.mxu1 %v8391_v22 }
 0x303   : > { %8067 = vmatpush3.bf16.msra.mxu1 %v8391_v22 }
 0x305   : > { %3801 = vmatmul.mubr.bf16.gmra.mrb[224].mxu1 %v2770_v26  ;;  %v2761_v26 = vld [vmem:[#allocation2 + $0x169] sm:$0xff] }
 0x306   : > { %3954 = vmatmul.mubr.bf16.gmra.mrb[220].mxu0 %v9845_v7  ;;  %3808 = vmatprep.mubr.bf16.mxu1 %v9918_v32  ;;  %v2750_v7 = vld [vmem:[#allocation2 + $0xe1] sm:$0xff]  ;;  %v2749_v32 = vld [vmem:[#allocation2 + $0xd9] sm:$0xff] }
 0x307   : > { %3961 = vmatprep.mubr.bf16.mxu0 %v2771_v46  ;;  %v2774_v18 = vpack.c.bf16 %v2750_v7, %v2749_v32  ;;  %v2670_v7 = vld [vmem:[#allocation2 + $0x18a] sm:$0xff] }
 0x30d   : > { %3809 = vmatmul.mubr.bf16.gmra.mrb[228].mxu1 %v2771_v46  ;;  %v2780_v46 = vpack.c.bf16 %v2762_v45, %v2761_v26 }
 0x30e   : > { %3962 = vmatmul.mubr.bf16.gmra.mrb[224].mxu0 %v9875_v53  ;;  %3816 = vmatprep.mubr.bf16.mxu1 %v9931_v27  ;;  %v2752_v53 = vld [vmem:[#allocation2 + $0xf9] sm:$0xff]  ;;  %v2751_v27 = vld [vmem:[#allocation2 + $0xf1] sm:$0xff] }
 0x30f   : > { %3969 = vmatprep.mubr.bf16.mxu0 %v2772_v17  ;;  %v2775_v39 = vpack.c.bf16 %v2752_v53, %v2751_v27  ;;  %v2764_v27 = vld [vmem:[#allocation2 + $0x189] sm:$0xff] }
 0x315   : > { %3817 = vmatmul.mubr.bf16.gmra.mrb[232].mxu1 %v2772_v17 }
 0x316   : > { %3970 = vmatmul.mubr.bf16.gmra.mrb[228].mxu0 %v9904_v1  ;;  %3824 = vmatprep.mubr.bf16.mxu1 %v9941_v43  ;;  %v2754_v1 = vld [vmem:[#allocation2 + $0x111] sm:$0xff]  ;;  %v2753_v43 = vld [vmem:[#allocation2 + $0x109] sm:$0xff] }
 0x317   : > { %3977 = vmatprep.mubr.bf16.mxu0 %v2773_v6  ;;  %v2776_v59 = vpack.c.bf16 %v2754_v1, %v2753_v43 }
 0x31d   : > { %3825 = vmatmul.mubr.bf16.gmra.mrb[236].mxu1 %v2773_v6  ;;  %v2669_v6 = vld [vmem:[#allocation2 + $0x182] sm:$0xff] }
 0x31e   : > { %3978 = vmatmul.mubr.bf16.gmra.mrb[232].mxu0 %v9924_v38  ;;  %3832 = vmatprep.mubr.bf16.mxu1 %v9951_v54  ;;  %v2756_v38 = vld [vmem:[#allocation2 + $0x129] sm:$0xff]  ;;  %v2755_v54 = vld [vmem:[#allocation2 + $0x121] sm:$0xff] }
 0x31f   : > { %3985 = vmatprep.mubr.bf16.mxu0 %v2774_v18  ;;  %v2777_v40 = vpack.c.bf16 %v2756_v38, %v2755_v54  ;;  %v2763_v54 = vld [vmem:[#allocation2 + $0x181] sm:$0xff] }
 0x325   : > { %3833 = vmatmul.mubr.bf16.gmra.mrb[240].mxu1 %v2774_v18 }
 0x326   : > { %3986 = vmatmul.mubr.bf16.gmra.mrb[236].mxu0 %v9934_v52  ;;  %3840 = vmatprep.mubr.bf16.mxu1 %v9965_v41  ;;  %v2758_v52 = vld [vmem:[#allocation2 + $0x141] sm:$0xff]  ;;  %v2757_v41 = vld [vmem:[#allocation2 + $0x139] sm:$0xff] }
 0x327   : > { %3993 = vmatprep.mubr.bf16.mxu0 %v2775_v39  ;;  %v2778_v33 = vpack.c.bf16 %v2758_v52, %v2757_v41  ;;  %v2781_v41 = vpack.c.bf16 %v2764_v27, %v2763_v54  ;;  %v2789_v54 = vld [vmem:[#allocation2 + $0x7a] sm:$0xff] }
 0x32d   : > { %3841 = vmatmul.mubr.bf16.gmra.mrb[244].mxu1 %v2775_v39 }
 0x32e   : > { %3994 = vmatmul.mubr.bf16.gmra.mrb[240].mxu0 %v9944_v20  ;;  %3848 = vmatprep.mubr.bf16.mxu1 %v9975_v47  ;;  %v10042_v20 = vld [vmem:[%s10891_s4] ss:$0 sm:$0xff] }
 0x32f   : > { %4001 = vmatprep.mubr.bf16.mxu0 %v2776_v59  ;;  %v3449_v55 = vadd.f32 %v9961_v11, %v10042_v20  ;;  %v3452_v57 = vadd.f32 %v9963_v61, %v10042_v20  ;;  %v8393_v11 = vld [vmem:[#allocation9] sm:$0xff]  }
 0x330   : > { %7533 = vmatpush3.bf16.msra.mxu0 %v8393_v11 }
 0x335   : > { %3849 = vmatmul.mubr.bf16.gmra.mrb[248].mxu1 %v2776_v59 }
 0x336   : > { %4002 = vmatmul.mubr.bf16.gmra.mrb[244].mxu0 %v9954_v42  ;;  %3856 = vmatprep.mubr.bf16.mxu1 %v9985_v10 }
 0x337   : > { %4009 = vmatprep.mubr.bf16.mxu0 %v2777_v40 }
 0x33d   : > { %3857 = vmatmul.mubr.bf16.gmra.mrb[252].mxu1 %v2777_v40 }
 0x33e   : > { %4010 = vmatmul.mubr.bf16.gmra.mrb[248].mxu0 %v9968_v16  ;;  %3864 = vmatprep.mubr.bf16.mxu1 %v9995_v5 }
 0x33f   : > { %4017 = vmatprep.mubr.bf16.mxu0 %v2778_v33 }
 0x340   : > { %v7082_v47 = vpop.f32.mrb[148].mxu1 }
 0x341   : > { %v7188_v28 = vpop.f32.mrb[144].mxu0  ;;  %v7083_v42 = vpop.f32.mrb[149].mxu1 }
 0x342   : > { %v7084_v13 = vadd.f32 %v7083_v42, %v7082_v47  ;;  %v7189_v10 = vpop.f32.mrb[145].mxu0  ;;  %v7085_v34 = vpop.f32.mrb[150].mxu1  ;;  %v8394_v47 = vld [vmem:[#allocation9 + $0x48] sm:$0xff]  }
 0x343   : > { %v7190_v15 = vadd.f32 %v7189_v10, %v7188_v28  ;;  %v7191_v16 = vpop.f32.mrb[146].mxu0  ;;  %v7086_v58 = vpop.f32.mrb[151].mxu1  ;;  %v8395_v28 = vld [vmem:[#allocation9 + $0x8] sm:$0xff]   ;;  %7534 = vmatprep.subr.bf16.mxu0 %v8394_v47 }
 0x344   : > { %v7087_v5 = vadd.f32 %v7086_v58, %v7085_v34  ;;  %v7192_v37 = vpop.f32.mrb[147].mxu0  ;;  %v3457_v2 = vadd.f32 %v7084_v13, %v10042_v20  ;;  %v2765_v10 = vld [vmem:[#allocation2 + $0x199] sm:$0xff]  ;;  %v2766_v34 = vld [vmem:[#allocation2 + $0x1a1] sm:$0xff]  ;;  %7535 = vmatpush3.bf16.msra.mxu0 %v8395_v28 }
 0x345   : > { %v7193_v19 = vadd.f32 %v7192_v37, %v7191_v16  ;;  %3865 = vmatmul.mubr.bf16.gmra.mrb[0].mxu1 %v2778_v33  ;;  %v10048_v49 = vadd.f32 %v7190_v15, %v3449_v55  ;;  %v2783_v15 = vld [vmem:[#allocation2 + $0x32] sm:$0xff]  ;;  %v2784_v16 = vld [vmem:[#allocation2 + $0x3a] sm:$0xff] }
 0x346   : > { %4018 = vmatmul.mubr.bf16.gmra.mrb[252].mxu0 %v9978_v48  ;;  %3872 = vmatprep.mubr.bf16.mxu1 %v10005_v4  ;;  %v3460_v12 = vadd.f32 %v7087_v5, %v10042_v20  ;;  %v2791_v47 = vld [vmem:[#allocation2 + $0x92] sm:$0xff]  ;;  %v2792_v28 = vld [vmem:[#allocation2 + $0x9a] sm:$0xff] }
 0x347   : > { %4025 = vmatprep.mubr.bf16.mxu0 %v2779_v35  ;;  %v10052_v0 = vadd.f32 %v7193_v19, %v3452_v57 }
 0x348   : > { %v7088_v14 = vpop.f32.mrb[152].mxu1 }
 0x349   : > { %v7194_v36 = vpop.f32.mrb[148].mxu0  ;;  %v7089_v30 = vpop.f32.mrb[153].mxu1 }
 0x34a   : > { %v7090_v61 = vadd.f32 %v7089_v30, %v7088_v14  ;;  %v7195_v31 = vpop.f32.mrb[149].mxu0  ;;  %v7091_v60 = vpop.f32.mrb[154].mxu1  ;;  %v2815_v14 = vpack.c.bf16 %v2784_v16, %v2783_v15 }
 0x34b   : > { %v7196_v63 = vadd.f32 %v7195_v31, %v7194_v36  ;;  %v7197_v48 = vpop.f32.mrb[150].mxu0  ;;  %v7092_v50 = vpop.f32.mrb[155].mxu1  ;;  %v2717_v31 = vld [vmem:[#allocation2 + $0x198] sm:$0xff] }
 0x34c   : > { %v7093_v4 = vadd.f32 %v7092_v50, %v7091_v60  ;;  %v7198_v22 = vpop.f32.mrb[151].mxu0  ;;  %v3465_v39 = vadd.f32 %v7090_v61, %v10042_v20 }
 0x34d   : > { %v7199_v9 = vadd.f32 %v7198_v22, %v7197_v48  ;;  %3873 = vmatmul.mubr.bf16.gmra.mrb[4].mxu1 %v2779_v35  ;;  %v10056_v23 = vadd.f32 %v7196_v63, %v3457_v2  ;;  %v2782_v35 = vpack.c.bf16 %v2766_v34, %v2765_v10  ;;  %v2785_v2 = vld [vmem:[#allocation2 + $0x4a] sm:$0xff]  ;;  %v2786_v63 = vld [vmem:[#allocation2 + $0x52] sm:$0xff] }
 0x34e   : > { %4026 = vmatmul.mubr.bf16.gmra.mrb[0].mxu0 %v9988_v56  ;;  %3880 = vmatprep.mubr.bf16.mxu1 %v10013_v21  ;;  %v10063_v21 = vpack.c.bf16 %v2670_v7, %v2669_v6  ;;  %v3468_v40 = vadd.f32 %v7093_v4, %v10042_v20  ;;  %v2787_v4 = vld [vmem:[#allocation2 + $0x62] sm:$0xff]  ;;  %v2788_v22 = vld [vmem:[#allocation2 + $0x6a] sm:$0xff]  ;;  %v2816_v7 = vpack.c.bf16 %v2786_v63, %v2785_v2 }
 0x34f   : > { %4033 = vmatprep.mubr.bf16.mxu0 %v2780_v46  ;;  %v10060_v8 = vadd.f32 %v7199_v9, %v3460_v12 }
 0x350   : > { %v7094_v17 = vpop.f32.mrb[156].mxu1 }
 0x351   : > { %v7200_v51 = vpop.f32.mrb[152].mxu0  ;;  %v7095_v29 = vpop.f32.mrb[157].mxu1 }
 0x352   : > { %v7096_v32 = vadd.f32 %v7095_v29, %v7094_v17  ;;  %v7201_v18 = vpop.f32.mrb[153].mxu0  ;;  %v7097_v53 = vpop.f32.mrb[158].mxu1 }
 0x353   : > { %v7202_v1 = vadd.f32 %v7201_v18, %v7200_v51  ;;  %v7203_v43 = vpop.f32.mrb[154].mxu0  ;;  %v7098_v59 = vpop.f32.mrb[159].mxu1 }
 0x354   : > { %v7099_v56 = vadd.f32 %v7098_v59, %v7097_v53  ;;  %v7204_v38 = vpop.f32.mrb[155].mxu0  ;;  %v2817_v53 = vpack.c.bf16 %v2788_v22, %v2787_v4  ;;  %v8397_v59 = vld [vmem:[#allocation9 + $0x10] sm:$0xff]  }
 0x355   : > { %v7205_v52 = vadd.f32 %v7204_v38, %v7203_v43  ;;  %3881 = vmatmul.mubr.bf16.gmra.mrb[8].mxu1 %v2780_v46  ;;  %v10066_v33 = vadd.f32 %v7202_v1, %v3465_v39  ;;  %v10079_v46 = vld [vmem:[#allocation2 + $0x8] sm:$0xff]  ;;  %v8396_v43 = vld [vmem:[#allocation9 + $0x50] sm:$0xff]  }
 0x356   : > { %4034 = vmatmul.mubr.bf16.gmra.mrb[4].mxu0 %v9998_v3  ;;  %3888 = vmatprep.mubr.bf16.mxu1 %v10063_v21  ;;  %v3473_v3 = vadd.f32 %v7096_v32, %v10042_v20  ;;  %v3476_v36 = vadd.f32 %v7099_v56, %v10042_v20  ;;  %v2734_v17 = vpack.c.bf16 %v10079_v46, %v2717_v31  ;;  %v2795_v31 = vld [vmem:[#allocation2 + $0xc2] sm:$0xff] }
 0x357   : > { %4041 = vmatprep.mubr.bf16.mxu0 %v2781_v41  ;;  %v10070_v42 = vadd.f32 %v7205_v52, %v3468_v40  ;;  %v2790_v40 = vld [vmem:[#allocation2 + $0x82] sm:$0xff]  ;;  %7536 = vmatprep.subr.bf16.mxu0 %v8396_v43 }
 0x358   : > { %v7100_v13 = vpop.f32.mrb[160].mxu1  ;;  %7537 = vmatpush3.bf16.msra.mxu0 %v8397_v59 }
 0x359   : > { %v7206_v62 = vpop.f32.mrb[156].mxu0  ;;  %v7101_v55 = vpop.f32.mrb[161].mxu1 }
 0x35a   : > { %v7102_v58 = vadd.f32 %v7101_v55, %v7100_v13  ;;  %v7207_v5 = vpop.f32.mrb[157].mxu0  ;;  %v7103_v37 = vpop.f32.mrb[162].mxu1 }
 0x35b   : > { %v7208_v25 = vadd.f32 %v7207_v5, %v7206_v62  ;;  %v7209_v57 = vpop.f32.mrb[158].mxu0  ;;  %v7104_v19 = vpop.f32.mrb[163].mxu1 }
 0x35c   : > { %v7105_v44 = vadd.f32 %v7104_v19, %v7103_v37  ;;  %v7210_v11 = vpop.f32.mrb[159].mxu0 }
 0x35d   : > { %v7211_v30 = vadd.f32 %v7210_v11, %v7209_v57  ;;  %3889 = vmatmul.mubr.bf16.gmra.mrb[12].mxu1 %v2781_v41  ;;  %v10074_v61 = vadd.f32 %v7208_v25, %v3473_v3  ;;  %v2819_v3 = vpack.c.bf16 %v2792_v28, %v2791_v47  ;;  %v2793_v11 = vld [vmem:[#allocation2 + $0xaa] sm:$0xff] }
 0x35e   : > { %4042 = vmatmul.mubr.bf16.gmra.mrb[8].mxu0 %v10008_v24  ;;  %8068 = vmatprep.mubr.bf16.mxu1 %v2815_v14  ;;  %v3481_v24 = vadd.f32 %v7102_v58, %v10042_v20  ;;  %v3484_v27 = vadd.f32 %v7105_v44, %v10042_v20  ;;  %v2818_v58 = vpack.c.bf16 %v2790_v40, %v2789_v54  ;;  %v2794_v14 = vld [vmem:[#allocation2 + $0xb2] sm:$0xff]  ;;  %v2800_v54 = vld [vmem:[#allocation2 + $0xfa] sm:$0xff] }
 0x35f   : > { %4049 = vmatprep.mubr.bf16.mxu0 %v2782_v35  ;;  %v10077_v60 = vadd.f32 %v7211_v30, %v3476_v36 }
 0x360   : > { %v7106_v45 = vpop.f32.mrb[164].mxu1 }
 0x361   : > { %v7212_v48 = vpop.f32.mrb[160].mxu0  ;;  %v7107_v50 = vpop.f32.mrb[165].mxu1 }
 0x362   : > { %v7108_v26 = vadd.f32 %v7107_v50, %v7106_v45  ;;  %v7213_v12 = vpop.f32.mrb[161].mxu0  ;;  %v7109_v9 = vpop.f32.mrb[166].mxu1  ;;  %v2796_v45 = vld [vmem:[#allocation2 + $0xca] sm:$0xff] }
 0x363   : > { %v7214_v51 = vadd.f32 %v7213_v12, %v7212_v48  ;;  %v7215_v29 = vpop.f32.mrb[162].mxu0  ;;  %v7110_v6 = vpop.f32.mrb[167].mxu1  ;;  %v2820_v12 = vpack.c.bf16 %v2794_v14, %v2793_v11  ;;  %v2803_v14 = vld [vmem:[#allocation2 + $0x122] sm:$0xff] }
 0x364   : > { %v7111_v32 = vadd.f32 %v7110_v6, %v7109_v9  ;;  %v7216_v18 = vpop.f32.mrb[163].mxu0  ;;  %v3489_v62 = vadd.f32 %v7108_v26, %v10042_v20 }
 0x365   : > { %v7217_v39 = vadd.f32 %v7216_v18, %v7215_v29  ;;  %8069 = vmatmul.mubr.bf16.vlgmr.msra.gmra.mrb[16].mxu1 %v2816_v7  ;;  %v10084_v1 = vadd.f32 %v7214_v51, %v3481_v24  ;;  %v2821_v24 = vpack.c.bf16 %v2796_v45, %v2795_v31  ;;  %v8398_v7 = vld [vmem:[#allocation9 + $0x58] sm:$0xff]  }
 0x366   : > { %4050 = vmatmul.mubr.bf16.gmra.mrb[12].mxu0 %v2734_v17  ;;  %8072 = vmatprep.mubr.bf16.mxu1 %v2817_v53  ;;  %v3492_v25 = vadd.f32 %v7111_v32, %v10042_v20  ;;  %v8399_v32 = vld [vmem:[#allocation9 + $0x18] sm:$0xff]  }
 0x367   : > { %v10086_v56 = vadd.f32 %v7217_v39, %v3484_v27  ;;  %v2797_v27 = vld [vmem:[#allocation2 + $0xda] sm:$0xff]  ;;  %v2798_v39 = vld [vmem:[#allocation2 + $0xe2] sm:$0xff]  ;;  %7538 = vmatprep.subr.bf16.mxu0 %v8398_v7 }
 0x368   : > { %v7112_v38 = vpop.f32.mrb[168].mxu1  ;;  %7539 = vmatpush3.bf16.msra.mxu0 %v8399_v32 }
 0x369   : > { %v7218_v52 = vpop.f32.mrb[164].mxu0  ;;  %v7113_v41 = vpop.f32.mrb[169].mxu1 }
 0x36a   : > { %v7114_v13 = vadd.f32 %v7113_v41, %v7112_v38  ;;  %v7219_v10 = vpop.f32.mrb[165].mxu0  ;;  %v7115_v34 = vpop.f32.mrb[170].mxu1  ;;  %v2799_v38 = vld [vmem:[#allocation2 + $0xf2] sm:$0xff] }
 0x36b   : > { %v7220_v55 = vadd.f32 %v7219_v10, %v7218_v52  ;;  %v7221_v15 = vpop.f32.mrb[166].mxu0  ;;  %v7116_v16 = vpop.f32.mrb[171].mxu1 }
 0x36c   : > { %v7117_v5 = vadd.f32 %v7116_v16, %v7115_v34  ;;  %v7222_v37 = vpop.f32.mrb[167].mxu0  ;;  %v3497_v50 = vadd.f32 %v7114_v13, %v10042_v20  ;;  %v2822_v34 = vpack.c.bf16 %v2798_v39, %v2797_v27  ;;  %v2806_v27 = vld [vmem:[#allocation2 + $0x142] sm:$0xff] }
 0x36d   : > { %v7223_v57 = vadd.f32 %v7222_v37, %v7221_v15  ;;  %8073 = vmatmul.mubr.bf16.gmra.mrb[20].mxu1 %v2818_v58  ;;  %v10090_v19 = vadd.f32 %v7220_v55, %v3489_v62  ;;  %v2823_v15 = vpack.c.bf16 %v2800_v54, %v2799_v38  ;;  %v2808_v38 = vld [vmem:[#allocation2 + $0x15a] sm:$0xff] }
 0x36e   : > { %8076 = vmatprep.mubr.bf16.mxu1 %v2819_v3  ;;  %v3500_v51 = vadd.f32 %v7117_v5, %v10042_v20 }
 0x36f   : > { %v10092_v35 = vadd.f32 %v7223_v57, %v3492_v25  ;;  %v2801_v25 = vld [vmem:[#allocation2 + $0x10a] sm:$0xff]  ;;  %v2802_v57 = vld [vmem:[#allocation2 + $0x112] sm:$0xff] }
 0x370   : > { %v7118_v44 = vpop.f32.mrb[172].mxu1 }
 0x371   : > { %v7224_v36 = vpop.f32.mrb[168].mxu0  ;;  %v7119_v30 = vpop.f32.mrb[173].mxu1 }
 0x372   : > { %v7120_v2 = vadd.f32 %v7119_v30, %v7118_v44  ;;  %v7225_v63 = vpop.f32.mrb[169].mxu0  ;;  %v7121_v48 = vpop.f32.mrb[174].mxu1 }
 0x373   : > { %v7226_v4 = vadd.f32 %v7225_v63, %v7224_v36  ;;  %v7227_v22 = vpop.f32.mrb[170].mxu0  ;;  %v7122_v26 = vpop.f32.mrb[175].mxu1  ;;  %v2804_v36 = vld [vmem:[#allocation2 + $0x12a] sm:$0xff] }
 0x374   : > { %v7123_v9 = vadd.f32 %v7122_v26, %v7121_v48  ;;  %v7228_v17 = vpop.f32.mrb[171].mxu0  ;;  %v3505_v47 = vadd.f32 %v7120_v2, %v10042_v20 }
 0x375   : > { %v7229_v29 = vadd.f32 %v7228_v17, %v7227_v22  ;;  %8077 = vmatmul.mubr.bf16.gmra.mrb[24].mxu1 %v2820_v12  ;;  %v10096_v6 = vadd.f32 %v7226_v4, %v3497_v50  ;;  %v2824_v4 = vpack.c.bf16 %v2802_v57, %v2801_v25  ;;  %v2825_v12 = vpack.c.bf16 %v2804_v36, %v2803_v14  ;;  %v2809_v57 = vld [vmem:[#allocation2 + $0x16a] sm:$0xff] }
 0x376   : > { %8080 = vmatprep.mubr.bf16.mxu1 %v2821_v24  ;;  %v3508_v16 = vadd.f32 %v7123_v9, %v10042_v20 }
 0x377   : > { %v10098_v18 = vadd.f32 %v7229_v29, %v3500_v51  ;;  %v8400_v51 = vld [vmem:[#allocation9 + $0x60] sm:$0xff]  }
 0x378   : > { %v7124_v53 = vpop.f32.mrb[176].mxu1  ;;  %v8401_v29 = vld [vmem:[#allocation9 + $0x20] sm:$0xff]   ;;  %7540 = vmatprep.subr.bf16.mxu0 %v8400_v51  ;;  %v2814_v51 = vld [vmem:[#allocation2 + $0x1a2] sm:$0xff] }
 0x379   : > { %v7230_v43 = vpop.f32.mrb[172].mxu0  ;;  %v7125_v59 = vpop.f32.mrb[177].mxu1  ;;  %7541 = vmatpush3.bf16.msra.mxu0 %v8401_v29  ;;  %v8402_v29 = vld [vmem:[#allocation9 + $0x68] sm:$0xff]  }
 0x37a   : > { %v7126_v40 = vadd.f32 %v7125_v59, %v7124_v53  ;;  %v7231_v52 = vpop.f32.mrb[173].mxu0  ;;  %v7127_v41 = vpop.f32.mrb[178].mxu1  ;;  %v2805_v53 = vld [vmem:[#allocation2 + $0x13a] sm:$0xff]  ;;  %v2807_v59 = vld [vmem:[#allocation2 + $0x152] sm:$0xff]  ;;  %7542 = vmatprep.subr.bf16.mxu0 %v8402_v29 }
 0x37b   : > { %v7232_v28 = vadd.f32 %v7231_v52, %v7230_v43  ;;  %v7233_v13 = vpop.f32.mrb[174].mxu0  ;;  %v7128_v10 = vpop.f32.mrb[179].mxu1 }
 0x37c   : > { %v7129_v62 = vadd.f32 %v7128_v10, %v7127_v41  ;;  %v7234_v55 = vpop.f32.mrb[175].mxu0  ;;  %v3513_v2 = vadd.f32 %v7126_v40, %v10042_v20  ;;  %v2826_v10 = vpack.c.bf16 %v2806_v27, %v2805_v53 }
 0x37d   : > { %v7235_v58 = vadd.f32 %v7234_v55, %v7233_v13  ;;  %8081 = vmatmul.mubr.bf16.gmra.mrb[28].mxu1 %v2822_v34  ;;  %v10102_v5 = vadd.f32 %v7232_v28, %v3505_v47  ;;  %v2827_v55 = vpack.c.bf16 %v2808_v38, %v2807_v59 }
 0x37e   : > { %8084 = vmatprep.mubr.bf16.mxu1 %v2823_v15  ;;  %v3516_v9 = vadd.f32 %v7129_v62, %v10042_v20 }
 0x37f   : > { %v10104_v37 = vadd.f32 %v7235_v58, %v3508_v16 }
 0x380   : > { %v7130_v3 = vpop.f32.mrb[180].mxu1 }
 0x381   : > { %v7236_v44 = vpop.f32.mrb[176].mxu0  ;;  %v7131_v11 = vpop.f32.mrb[181].mxu1 }
 0x382   : > { %v7132_v30 = vadd.f32 %v7131_v11, %v7130_v3  ;;  %v7237_v31 = vpop.f32.mrb[177].mxu0  ;;  %v7133_v45 = vpop.f32.mrb[182].mxu1 }
 0x383   : > { %v7238_v63 = vadd.f32 %v7237_v31, %v7236_v44  ;;  %v7239_v48 = vpop.f32.mrb[178].mxu0  ;;  %v7134_v50 = vpop.f32.mrb[183].mxu1  ;;  %v2810_v44 = vld [vmem:[#allocation2 + $0x172] sm:$0xff] }
 0x384   : > { %v7135_v22 = vadd.f32 %v7134_v50, %v7133_v45  ;;  %v7240_v26 = vpop.f32.mrb[179].mxu0  ;;  %v3521_v41 = vadd.f32 %v7132_v30, %v10042_v20  ;;  %v2828_v50 = vpack.c.bf16 %v2810_v44, %v2809_v57 }
 0x385   : > { %v10108_v17 = vadd.f32 %v7238_v63, %v3513_v2  ;;  %v7241_v24 = vadd.f32 %v7240_v26, %v7239_v48  ;;  %8085 = vmatmul.mubr.bf16.gmra.mrb[32].mxu1 %v2824_v4 }
 0x386   : > { %8088 = vmatprep.mubr.bf16.mxu1 %v2825_v12  ;;  %v3524_v15 = vadd.f32 %v7135_v22, %v10042_v20 }
 0x387   : > { %v10110_v7 = vadd.f32 %v7241_v24, %v3516_v9  ;;  %v2813_v24 = vld [vmem:[#allocation2 + $0x19a] sm:$0xff] }
 0x388   : > { %v7136_v32 = vpop.f32.mrb[184].mxu1  ;;  %v2830_v59 = vpack.c.bf16 %v2814_v51, %v2813_v24 }
 0x389   : > { %v7242_v39 = vpop.f32.mrb[180].mxu0  ;;  %v7137_v43 = vpop.f32.mrb[185].mxu1 }
 0x38a   : > { %v7138_v54 = vadd.f32 %v7137_v43, %v7136_v32  ;;  %v7243_v40 = vpop.f32.mrb[181].mxu0  ;;  %v7139_v52 = vpop.f32.mrb[186].mxu1  ;;  %v8403_v32 = vld [vmem:[#allocation9 + $0x28] sm:$0xff]  }
 0x38b   : > { %v7244_v47 = vadd.f32 %v7243_v40, %v7242_v39  ;;  %v7245_v28 = vpop.f32.mrb[182].mxu0  ;;  %v7140_v13 = vpop.f32.mrb[187].mxu1  ;;  %7543 = vmatpush3.bf16.msra.mxu0 %v8403_v32 }
 0x38c   : > { %v7141_v34 = vadd.f32 %v7140_v13, %v7139_v52  ;;  %v7246_v62 = vpop.f32.mrb[183].mxu0  ;;  %v3529_v45 = vadd.f32 %v7138_v54, %v10042_v20 }
 0x38d   : > { %v10114_v16 = vadd.f32 %v7244_v47, %v3521_v41  ;;  %v7247_v58 = vadd.f32 %v7246_v62, %v7245_v28  ;;  %8089 = vmatmul.mubr.bf16.gmra.mrb[36].mxu1 %v2826_v10 }
 0x38e   : > { %8092 = vmatprep.mubr.bf16.mxu1 %v2827_v55  ;;  %v3532_v26 = vadd.f32 %v7141_v34, %v10042_v20 }
 0x38f   : > { %v10116_v3 = vadd.f32 %v7247_v58, %v3524_v15 }
 0x390   : > { %v7142_v25 = vpop.f32.mrb[188].mxu1 }
 0x391   : > { %v7248_v11 = vpop.f32.mrb[184].mxu0  ;;  %v7143_v14 = vpop.f32.mrb[189].mxu1 }
 0x392   : > { %v7144_v36 = vadd.f32 %v7143_v14, %v7142_v25  ;;  %v7249_v30 = vpop.f32.mrb[185].mxu0  ;;  %v7145_v31 = vpop.f32.mrb[190].mxu1 }
 0x393   : > { %v7250_v2 = vadd.f32 %v7249_v30, %v7248_v11  ;;  %v7251_v63 = vpop.f32.mrb[186].mxu0  ;;  %v7146_v48 = vpop.f32.mrb[191].mxu1 }
 0x394   : > { %v7147_v4 = vadd.f32 %v7146_v48, %v7145_v31  ;;  %v7252_v22 = vpop.f32.mrb[187].mxu0  ;;  %v3537_v52 = vadd.f32 %v7144_v36, %v10042_v20 }
 0x395   : > { %v10120_v12 = vadd.f32 %v7250_v2, %v3529_v45  ;;  %v7253_v9 = vadd.f32 %v7252_v22, %v7251_v63  ;;  %8093 = vmatmul.mubr.bf16.gmra.mrb[40].mxu1 %v2828_v50  ;;  %v8405_v22 = vld [vmem:[#allocation9 + $0x30] sm:$0xff]  }
 0x396   : > { %8096 = vmatprep.mubr.bf16.mxu1 %v10063_v21  ;;  %v3540_v10 = vadd.f32 %v7147_v4, %v10042_v20  ;;  %v8404_v4 = vld [vmem:[#allocation9 + $0x70] sm:$0xff]  }
 0x397   : > { %v10123_v53 = vadd.f32 %v7253_v9, %v3532_v26  ;;  %7544 = vmatprep.subr.bf16.mxu0 %v8404_v4 }
 0x398   : > { %v7148_v27 = vpop.f32.mrb[192].mxu1  ;;  %7545 = vmatpush3.bf16.msra.mxu0 %v8405_v22  ;;  %v8410_v22 = vld [vmem:[#allocation9 + $0x78] sm:$0xff]  }
 0x399   : > { %v7254_v39 = vpop.f32.mrb[188].mxu0  ;;  %v7149_v43 = vpop.f32.mrb[193].mxu1  ;;  %7546 = vmatprep.subr.bf16.mxu0 %v8410_v22 }
 0x39a   : > { %v7150_v38 = vadd.f32 %v7149_v43, %v7148_v27  ;;  %v7255_v54 = vpop.f32.mrb[189].mxu0  ;;  %v7151_v40 = vpop.f32.mrb[194].mxu1 }
 0x39b   : > { %v7256_v41 = vadd.f32 %v7255_v54, %v7254_v39  ;;  %v7257_v47 = vpop.f32.mrb[190].mxu0  ;;  %v7152_v28 = vpop.f32.mrb[195].mxu1 }
 0x39c   : > { %v7153_v21 = vadd.f32 %v7152_v28, %v7151_v40  ;;  %v7258_v13 = vpop.f32.mrb[191].mxu0  ;;  %v3545_v14 = vadd.f32 %v7150_v38, %v10042_v20  ;;  %v8406_v28 = vld [vmem:[#allocation9 + $0xc0] sm:$0xff]  }
 0x39d   : > { %v10127_v34 = vadd.f32 %v7256_v41, %v3537_v52  ;;  %v7259_v62 = vadd.f32 %v7258_v13, %v7257_v47  ;;  %8097 = vmatmul.mubr.bf16.gmra.mrb[44].mxu1 %v2830_v59  ;;  %7644 = vmatprep.subr.bf16.mxu1 %v8406_v28 }
 0x39e   : > { %v3548_v63 = vadd.f32 %v7153_v21, %v10042_v20  ;;  %v8407_v21 = vld [vmem:[#allocation9 + $0x80] sm:$0xff]  }
 0x39f   : > { %v10129_v55 = vadd.f32 %v7259_v62, %v3540_v10  ;;  %7645 = vmatpush3.bf16.msra.mxu1 %v8407_v21 }
 0x3a0   : > { %v7154_v15 = vpop.f32.mrb[196].mxu1 }
 0x3a1   : > { %v7260_v58 = vpop.f32.mrb[192].mxu0  ;;  %v7155_v25 = vpop.f32.mrb[197].mxu1 }
 0x3a2   : > { %v7156_v57 = vadd.f32 %v7155_v25, %v7154_v15  ;;  %v7261_v44 = vpop.f32.mrb[193].mxu0  ;;  %v7157_v11 = vpop.f32.mrb[198].mxu1 }
 0x3a3   : > { %v7262_v36 = vadd.f32 %v7261_v44, %v7260_v58  ;;  %v7263_v30 = vpop.f32.mrb[194].mxu0  ;;  %v7158_v31 = vpop.f32.mrb[199].mxu1  ;;  %v8408_v58 = vld [vmem:[#allocation9 + $0xc8] sm:$0xff]  }
 0x3a4   : > { %v7159_v45 = vadd.f32 %v7158_v31, %v7157_v11  ;;  %v7264_v2 = vpop.f32.mrb[195].mxu0  ;;  %v3553_v39 = vadd.f32 %v7156_v57, %v10042_v20  ;;  %7646 = vmatprep.subr.bf16.mxu1 %v8408_v58 }
 0x3a5   : > { %v10133_v48 = vadd.f32 %v7262_v36, %v3545_v14  ;;  %v7265_v50 = vadd.f32 %v7264_v2, %v7263_v30  ;;  %v8409_v2 = vld [vmem:[#allocation9 + $0x88] sm:$0xff]  }
 0x3a6   : > { %v3556_v52 = vadd.f32 %v7159_v45, %v10042_v20  ;;  %7647 = vmatpush3.bf16.msra.mxu1 %v8409_v2 }
 0x3a7   : > { %v10135_v26 = vadd.f32 %v7265_v50, %v3548_v63 }
 0x3a8   : > { %v7160_v9 = vpop.f32.mrb[200].mxu1 }
 0x3a9   : > { %v7266_v24 = vpop.f32.mrb[196].mxu0  ;;  %v7161_v51 = vpop.f32.mrb[201].mxu1 }
 0x3aa   : > { %v7162_v29 = vadd.f32 %v7161_v51, %v7160_v9  ;;  %v7267_v32 = vpop.f32.mrb[197].mxu0  ;;  %v7163_v27 = vpop.f32.mrb[202].mxu1  ;;  %v8411_v9 = vld [vmem:[#allocation9 + $0xd0] sm:$0xff]  }
 0x3ab   : > { %v7268_v43 = vadd.f32 %v7267_v32, %v7266_v24  ;;  %v7269_v59 = vpop.f32.mrb[198].mxu0  ;;  %v7164_v38 = vpop.f32.mrb[203].mxu1  ;;  %v8412_v24 = vld [vmem:[#allocation9 + $0x38] sm:$0xff]   ;;  %v8413_v32 = vld [vmem:[#allocation9 + $0x90] sm:$0xff]   ;;  %7648 = vmatprep.subr.bf16.mxu1 %v8411_v9 }
 0x3ac   : > { %v7165_v54 = vadd.f32 %v7164_v38, %v7163_v27  ;;  %v7270_v40 = vpop.f32.mrb[199].mxu0  ;;  %v3561_v11 = vadd.f32 %v7162_v29, %v10042_v20  ;;  %7547 = vmatpush3.bf16.msra.mxu0 %v8412_v24  ;;  %7649 = vmatpush3.bf16.msra.mxu1 %v8413_v32  ;;  %v4395_v9 = vld [vmem:[#allocation2 + $0x1] sm:$0xff]  ;;  %v4396_v24 = vld [vmem:[#allocation2 + $0x9] sm:$0xff] }
 0x3ad   : > { %v10139_v41 = vadd.f32 %v7268_v43, %v3553_v39  ;;  %v7271_v47 = vadd.f32 %v7270_v40, %v7269_v59 }
 0x3ae   : > { %v3564_v63 = vadd.f32 %v7165_v54, %v10042_v20 }
 0x3af   : > { %v10141_v13 = vadd.f32 %v7271_v47, %v3556_v52 }
 0x3b0   : > { %v7166_v10 = vpop.f32.mrb[204].mxu1 }
 0x3b1   : > { %v7272_v62 = vpop.f32.mrb[200].mxu0  ;;  %v7167_v15 = vpop.f32.mrb[205].mxu1 }
 0x3b2   : > { %v7168_v25 = vadd.f32 %v7167_v15, %v7166_v10  ;;  %v7273_v57 = vpop.f32.mrb[201].mxu0  ;;  %v7169_v44 = vpop.f32.mrb[206].mxu1 }
 0x3b3   : > { %v7274_v14 = vadd.f32 %v7273_v57, %v7272_v62  ;;  %v7275_v36 = vpop.f32.mrb[202].mxu0  ;;  %v7170_v30 = vpop.f32.mrb[207].mxu1  ;;  %v8414_v57 = vld [vmem:[#allocation9 + $0xd8] sm:$0xff]  }
 0x3b4   : > { %v7171_v31 = vadd.f32 %v7170_v30, %v7169_v44  ;;  %v7276_v45 = vpop.f32.mrb[203].mxu0  ;;  %v3569_v54 = vadd.f32 %v7168_v25, %v10042_v20  ;;  %7650 = vmatprep.subr.bf16.mxu1 %v8414_v57  ;;  %v8422_v57 = vld [vmem:[#allocation9 + $0xb0] sm:$0xff]  }
 0x3b5   : > { %v10145_v50 = vadd.f32 %v7274_v14, %v3561_v11  ;;  %v7277_v4 = vadd.f32 %v7276_v45, %v7275_v36  ;;  %v8415_v11 = vld [vmem:[#allocation9 + $0x98] sm:$0xff]   ;;  %v8416_v45 = vld [vmem:[#allocation9 + $0xe0] sm:$0xff]  }
 0x3b6   : > { %v3572_v62 = vadd.f32 %v7171_v31, %v10042_v20  ;;  %7651 = vmatpush3.bf16.msra.mxu1 %v8415_v11 }
 0x3b7   : > { %v10147_v51 = vadd.f32 %v7277_v4, %v3564_v63  ;;  %7652 = vmatprep.subr.bf16.mxu1 %v8416_v45 }
 0x3b8   : > { %v7300_v29 = vpop.f32.mrb[208].mxu1 }
 0x3b9   : > { %v7278_v27 = vpop.f32.mrb[204].mxu0  ;;  %v7301_v39 = vpop.f32.mrb[209].mxu1 }
 0x3ba   : > { %v7279_v43 = vpop.f32.mrb[205].mxu0  ;;  %v7302_v59 = vadd.f32 %v7301_v39, %v7300_v29  ;;  %v7303_v38 = vpop.f32.mrb[210].mxu1  ;;  %v4347_v39 = vld [vmem:[#allocation2] sm:$0xff] }
 0x3bb   : > { %v7280_v40 = vadd.f32 %v7279_v43, %v7278_v27  ;;  %v7281_v52 = vpop.f32.mrb[206].mxu0  ;;  %v7304_v47 = vpop.f32.mrb[211].mxu1  ;;  %v4427_v27 = vpack.c.bf16 %v4396_v24, %v4395_v9 }
 0x3bc   : > { %v3771_v28 = vadd.f32 %v7302_v59, %v10048_v49  ;;  %v7282_v21 = vpop.f32.mrb[207].mxu0  ;;  %v7305_v10 = vadd.f32 %v7304_v47, %v7303_v38  ;;  %v8417_v49 = vld [vmem:[#allocation9 + $0xa0] sm:$0xff]   ;;  %v8418_v38 = vld [vmem:[#allocation9 + $0xe8] sm:$0xff]  }
 0x3bd   : > { %v10152_v15 = vadd.f32 %v7280_v40, %v3569_v54  ;;  %v7283_v58 = vadd.f32 %v7282_v21, %v7281_v52  ;;  %7653 = vmatpush3.bf16.msra.mxu1 %v8417_v49  ;;  %v4379_v54 = vpack.c.bf16 %v10079_v46, %v4347_v39  ;;  %5394 = vmatprep.mubr.bf16.mxu0 %v4427_v27  ;;  %v8419_v52 = vld [vmem:[#allocation9 + $0xa8] sm:$0xff]  }
 0x3be   : > { %v3774_v44 = vadd.f32 %v7305_v10, %v10052_v0  ;;  %7654 = vmatprep.subr.bf16.mxu1 %v8418_v38 }
 0x3bf   : > { %v10155_v14 = vadd.f32 %v7283_v58, %v3572_v62  ;;  %5395 = vmatmul.mubr.bf16.vlgmr.msra.gmra.mrb[16].mxu0 %v4379_v54  ;;  %v8420_v62 = vld [vmem:[#allocation9 + $0xf0] sm:$0xff]   ;;  %v8421_v58 = vld [vmem:[#allocation9 + $0x140] sm:$0xff]  }
 0x3c0   : > { %v7306_v25 = vpop.f32.mrb[212].mxu1  ;;  %7756 = vmatprep.subr.bf16.mxu0 %v8421_v58 }
 0x3c1   : > { %v7412_v36 = vpop.f32.mrb[208].mxu0  ;;  %v7307_v30 = vpop.f32.mrb[213].mxu1  ;;  %7655 = vmatpush3.bf16.msra.mxu1 %v8419_v52 }
 0x3c2   : > { %v7308_v2 = vadd.f32 %v7307_v30, %v7306_v25  ;;  %v7413_v63 = vpop.f32.mrb[209].mxu0  ;;  %v7309_v4 = vpop.f32.mrb[214].mxu1  ;;  %7656 = vmatprep.subr.bf16.mxu1 %v8420_v62 }
 0x3c3   : > { %v7414_v20 = vadd.f32 %v7413_v63, %v7412_v36  ;;  %v7415_v31 = vpop.f32.mrb[210].mxu0  ;;  %v7310_v22 = vpop.f32.mrb[215].mxu1  ;;  %v8423_v36 = vld [vmem:[#allocation9 + $0x100] sm:$0xff]  }
 0x3c4   : > { %v3779_v0 = vadd.f32 %v7308_v2, %v10056_v23  ;;  %v7311_v32 = vadd.f32 %v7310_v22, %v7309_v4  ;;  %v7416_v29 = vpop.f32.mrb[211].mxu0  ;;  %7757 = vmatpush3.bf16.msra.mxu0 %v8423_v36  ;;  %v8424_v4 = vld [vmem:[#allocation9 + $0xf8] sm:$0xff]  }
 0x3c5   : > { %v7417_v43 = vadd.f32 %v7416_v29, %v7415_v31  ;;  %v10158_v59 = vadd.f32 %v7414_v20, %v3771_v28  ;;  %7657 = vmatpush3.bf16.msra.mxu1 %v8422_v57  ;;  %v8425_v31 = vld [vmem:[#allocation9 + $0xb8] sm:$0xff]   ;;  %v8426_v57 = vld [vmem:[#allocation9 + $0x148] sm:$0xff]  }
 0x3c6   : > { %v3782_v40 = vadd.f32 %v7311_v32, %v10060_v8  ;;  %7658 = vmatprep.subr.bf16.mxu1 %v8424_v4  ;;  %7758 = vmatprep.subr.bf16.mxu0 %v8426_v57 }
 0x3c7   : > { %v10162_v47 = vadd.f32 %v7417_v43, %v3774_v44 }
 0x3c8   : > { %v7312_v23 = vpop.f32.mrb[216].mxu1 }
 0x3c9   : > { %v7418_v21 = vpop.f32.mrb[212].mxu0  ;;  %v7313_v10 = vpop.f32.mrb[217].mxu1  ;;  %7659 = vmatpush3.bf16.msra.mxu1 %v8425_v31 }
 0x3ca   : > { %v7314_v28 = vadd.f32 %v7313_v10, %v7312_v23  ;;  %v7419_v11 = vpop.f32.mrb[213].mxu0  ;;  %v7315_v25 = vpop.f32.mrb[218].mxu1 }
 0x3cb   : > { %v7420_v46 = vadd.f32 %v7419_v11, %v7418_v21  ;;  %v7421_v30 = vpop.f32.mrb[214].mxu0  ;;  %v7316_v8 = vpop.f32.mrb[219].mxu1 }
 0x3cc   : > { %v3787_v44 = vadd.f32 %v7314_v28, %v10066_v33  ;;  %v7317_v45 = vadd.f32 %v7316_v8, %v7315_v25  ;;  %v7422_v49 = vpop.f32.mrb[215].mxu0  ;;  %v8427_v28 = vld [vmem:[#allocation9 + $0x108] sm:$0xff]  }
 0x3cd   : > { %v7423_v2 = vadd.f32 %v7422_v49, %v7421_v30  ;;  %v10165_v63 = vadd.f32 %v7420_v46, %v3779_v0  ;;  %7759 = vmatpush3.bf16.msra.mxu0 %v8427_v28 }
 0x3ce   : > { %v3790_v20 = vadd.f32 %v7317_v45, %v10070_v42 }
 0x3cf   : > { %v10168_v22 = vadd.f32 %v7423_v2, %v3782_v40 }
 0x3d0   : > { %v7318_v9 = vpop.f32.mrb[220].mxu1 }
 0x3d1   : > { %v7424_v24 = vpop.f32.mrb[216].mxu0  ;;  %v7319_v32 = vpop.f32.mrb[221].mxu1 }
 0x3d2   : > { %v7320_v29 = vadd.f32 %v7319_v32, %v7318_v9  ;;  %v7425_v33 = vpop.f32.mrb[217].mxu0  ;;  %v7321_v27 = vpop.f32.mrb[222].mxu1 }
 0x3d3   : > { %v7426_v39 = vadd.f32 %v7425_v33, %v7424_v24  ;;  %v7427_v43 = vpop.f32.mrb[218].mxu0  ;;  %v7322_v38 = vpop.f32.mrb[223].mxu1 }
 0x3d4   : > { %v3795_v0 = vadd.f32 %v7320_v29, %v10074_v61  ;;  %v7323_v54 = vadd.f32 %v7322_v38, %v7321_v27  ;;  %v7428_v52 = vpop.f32.mrb[219].mxu0 }
 0x3d5   : > { %v7429_v23 = vadd.f32 %v7428_v52, %v7427_v43  ;;  %v10171_v42 = vadd.f32 %v7426_v39, %v3787_v44 }
 0x3d6   : > { %v3798_v40 = vadd.f32 %v7323_v54, %v10077_v60 }
 0x3d7   : > { %v10174_v21 = vadd.f32 %v7429_v23, %v3790_v20 }
 0x3d8   : > { %v7324_v10 = vpop.f32.mrb[224].mxu1 }
 0x3d9   : > { %v7430_v62 = vpop.f32.mrb[220].mxu0  ;;  %v7325_v58 = vpop.f32.mrb[225].mxu1 }
 0x3da   : > { %v7326_v11 = vadd.f32 %v7325_v58, %v7324_v10  ;;  %v7431_v25 = vpop.f32.mrb[221].mxu0  ;;  %v7327_v36 = vpop.f32.mrb[226].mxu1  ;;  %v8429_v58 = vld [vmem:[#allocation9 + $0x110] sm:$0xff]  }
 0x3db   : > { %v7432_v46 = vadd.f32 %v7431_v25, %v7430_v62  ;;  %v7433_v30 = vpop.f32.mrb[222].mxu0  ;;  %v7328_v61 = vpop.f32.mrb[227].mxu1  ;;  %v8428_v62 = vld [vmem:[#allocation9 + $0x150] sm:$0xff]  }
 0x3dc   : > { %v3803_v8 = vadd.f32 %v7326_v11, %v10084_v1  ;;  %v7329_v44 = vadd.f32 %v7328_v61, %v7327_v36  ;;  %v7434_v45 = vpop.f32.mrb[223].mxu0  ;;  %7760 = vmatprep.subr.bf16.mxu0 %v8428_v62 }
 0x3dd   : > { %v7435_v60 = vadd.f32 %v7434_v45, %v7433_v30  ;;  %v10177_v49 = vadd.f32 %v7432_v46, %v3795_v0  ;;  %7761 = vmatpush3.bf16.msra.mxu0 %v8429_v58 }
 0x3de   : > { %v3806_v2 = vadd.f32 %v7329_v44, %v10086_v56 }
 0x3df   : > { %v10180_v4 = vadd.f32 %v7435_v60, %v3798_v40 }
 0x3e0   : > { %v7330_v20 = vpop.f32.mrb[228].mxu1 }
 0x3e1   : > { %v7436_v31 = vpop.f32.mrb[224].mxu0  ;;  %v7331_v9 = vpop.f32.mrb[229].mxu1 }
 0x3e2   : > { %v7332_v24 = vadd.f32 %v7331_v9, %v7330_v20  ;;  %v7437_v32 = vpop.f32.mrb[225].mxu0  ;;  %v7333_v29 = vpop.f32.mrb[230].mxu1 }
 0x3e3   : > { %v7438_v33 = vadd.f32 %v7437_v32, %v7436_v31  ;;  %v7439_v27 = vpop.f32.mrb[226].mxu0  ;;  %v7334_v39 = vpop.f32.mrb[231].mxu1 }
 0x3e4   : > { %v3811_v1 = vadd.f32 %v7332_v24, %v10090_v19  ;;  %v7335_v43 = vadd.f32 %v7334_v39, %v7333_v29  ;;  %v7440_v38 = vpop.f32.mrb[227].mxu0 }
 0x3e5   : > { %v7441_v54 = vadd.f32 %v7440_v38, %v7439_v27  ;;  %v10183_v0 = vadd.f32 %v7438_v33, %v3803_v8 }
 0x3e6   : > { %v3814_v56 = vadd.f32 %v7335_v43, %v10092_v35 }
 0x3e7   : > { %v10186_v52 = vadd.f32 %v7441_v54, %v3806_v2 }
 0x3e8   : > { %v7336_v23 = vpop.f32.mrb[232].mxu1 }
 0x3e9   : > { %v7442_v40 = vpop.f32.mrb[228].mxu0  ;;  %v7337_v10 = vpop.f32.mrb[233].mxu1 }
 0x3ea   : > { %v7338_v57 = vadd.f32 %v7337_v10, %v7336_v23  ;;  %v7443_v28 = vpop.f32.mrb[229].mxu0  ;;  %v7339_v11 = vpop.f32.mrb[234].mxu1  ;;  %v8431_v10 = vld [vmem:[#allocation9 + $0x118] sm:$0xff]  }
 0x3eb   : > { %v7444_v25 = vadd.f32 %v7443_v28, %v7442_v40  ;;  %v7445_v36 = vpop.f32.mrb[230].mxu0  ;;  %v7340_v19 = vpop.f32.mrb[235].mxu1  ;;  %v8430_v40 = vld [vmem:[#allocation9 + $0x158] sm:$0xff]  }
 0x3ec   : > { %v3819_v46 = vadd.f32 %v7338_v57, %v10096_v6  ;;  %v7341_v30 = vadd.f32 %v7340_v19, %v7339_v11  ;;  %v7446_v61 = vpop.f32.mrb[231].mxu0  ;;  %7762 = vmatprep.subr.bf16.mxu0 %v8430_v40 }
 0x3ed   : > { %v7447_v35 = vadd.f32 %v7446_v61, %v7445_v36  ;;  %v10189_v8 = vadd.f32 %v7444_v25, %v3811_v1  ;;  %7763 = vmatpush3.bf16.msra.mxu0 %v8431_v10 }
 0x3ee   : > { %v3822_v44 = vadd.f32 %v7341_v30, %v10098_v18  ;;  %v8432_v30 = vld [vmem:[#allocation9 + $0x1c0] sm:$0xff]  }
 0x3ef   : > { %v10192_v45 = vadd.f32 %v7447_v35, %v3814_v56  ;;  %7868 = vmatprep.subr.bf16.mxu1 %v8432_v30 }
 0x3f0   : > { %v7342_v60 = vpop.f32.mrb[236].mxu1 }
 0x3f1   : > { %v7448_v2 = vpop.f32.mrb[232].mxu0  ;;  %v7343_v20 = vpop.f32.mrb[237].mxu1 }
 0x3f2   : > { %v7344_v31 = vadd.f32 %v7343_v20, %v7342_v60  ;;  %v7449_v9 = vpop.f32.mrb[233].mxu0  ;;  %v7345_v24 = vpop.f32.mrb[238].mxu1 }
 0x3f3   : > { %v7450_v32 = vadd.f32 %v7449_v9, %v7448_v2  ;;  %v7451_v29 = vpop.f32.mrb[234].mxu0  ;;  %v7346_v33 = vpop.f32.mrb[239].mxu1 }
 0x3f4   : > { %v3827_v6 = vadd.f32 %v7344_v31, %v10102_v5  ;;  %v7347_v27 = vadd.f32 %v7346_v33, %v7345_v24  ;;  %v7452_v39 = vpop.f32.mrb[235].mxu0 }
 0x3f5   : > { %v7453_v43 = vadd.f32 %v7452_v39, %v7451_v29  ;;  %v10195_v1 = vadd.f32 %v7450_v32, %v3819_v46 }
 0x3f6   : > { %v3830_v18 = vadd.f32 %v7347_v27, %v10104_v37  ;;  %v8434_v27 = vld [vmem:[#allocation9 + $0x160] sm:$0xff]  }
 0x3f7   : > { %v10198_v38 = vadd.f32 %v7453_v43, %v3822_v44  ;;  %7764 = vmatprep.subr.bf16.mxu0 %v8434_v27 }
 0x3f8   : > { %v7348_v54 = vpop.f32.mrb[240].mxu1 }
 0x3f9   : > { %v7454_v56 = vpop.f32.mrb[236].mxu0  ;;  %v7349_v23 = vpop.f32.mrb[241].mxu1 }
 0x3fa   : > { %v7350_v62 = vadd.f32 %v7349_v23, %v7348_v54  ;;  %v7455_v58 = vpop.f32.mrb[237].mxu0  ;;  %v7351_v57 = vpop.f32.mrb[242].mxu1 }
 0x3fb   : > { %v7456_v28 = vadd.f32 %v7455_v58, %v7454_v56  ;;  %v7457_v11 = vpop.f32.mrb[238].mxu0  ;;  %v7352_v5 = vpop.f32.mrb[243].mxu1 }
 0x3fc   : > { %v3835_v25 = vadd.f32 %v7350_v62, %v10108_v17  ;;  %v7353_v36 = vadd.f32 %v7352_v5, %v7351_v57  ;;  %v7458_v19 = vpop.f32.mrb[239].mxu0 }
 0x3fd   : > { %v7459_v37 = vadd.f32 %v7458_v19, %v7457_v11  ;;  %v10201_v46 = vadd.f32 %v7456_v28, %v3827_v6 }
 0x3fe   : > { %v3838_v61 = vadd.f32 %v7353_v36, %v10110_v7  ;;  %v8435_v7 = vld [vmem:[#allocation9 + $0x120] sm:$0xff]  }
 0x3ff   : > { %v10204_v35 = vadd.f32 %v7459_v37, %v3830_v18  ;;  %7765 = vmatpush3.bf16.msra.mxu0 %v8435_v7 }
 0x400   : > { %v7354_v44 = vpop.f32.mrb[244].mxu1 }
 0x401   : > { %v7460_v60 = vpop.f32.mrb[240].mxu0  ;;  %v7355_v2 = vpop.f32.mrb[245].mxu1 }
 0x402   : > { %v7356_v20 = vadd.f32 %v7355_v2, %v7354_v44  ;;  %v7461_v31 = vpop.f32.mrb[241].mxu0  ;;  %v7357_v9 = vpop.f32.mrb[246].mxu1 }
 0x403   : > { %v7462_v24 = vadd.f32 %v7461_v31, %v7460_v60  ;;  %v7463_v17 = vpop.f32.mrb[242].mxu0  ;;  %v7358_v32 = vpop.f32.mrb[247].mxu1 }
 0x404   : > { %v3843_v29 = vadd.f32 %v7356_v20, %v10114_v16  ;;  %v7359_v33 = vadd.f32 %v7358_v32, %v7357_v9  ;;  %v7464_v6 = vpop.f32.mrb[243].mxu0 }
 0x405   : > { %v7465_v39 = vadd.f32 %v7464_v6, %v7463_v17  ;;  %v10207_v43 = vadd.f32 %v7462_v24, %v3835_v25 }
 0x406   : > { %v3846_v18 = vadd.f32 %v7359_v33, %v10116_v3  ;;  %v8438_v33 = vld [vmem:[#allocation9 + $0x168] sm:$0xff]  }
 0x407   : > { %v10210_v54 = vadd.f32 %v7465_v39, %v3838_v61  ;;  %7766 = vmatprep.subr.bf16.mxu0 %v8438_v33 }
 0x408   : > { %v7360_v56 = vpop.f32.mrb[248].mxu1 }
 0x409   : > { %v7466_v23 = vpop.f32.mrb[244].mxu0  ;;  %v7361_v40 = vpop.f32.mrb[249].mxu1 }
 0x40a   : > { %v7362_v10 = vadd.f32 %v7361_v40, %v7360_v56  ;;  %v7467_v62 = vpop.f32.mrb[245].mxu0  ;;  %v7363_v58 = vpop.f32.mrb[250].mxu1 }
 0x40b   : > { %v7468_v16 = vadd.f32 %v7467_v62, %v7466_v23  ;;  %v7469_v57 = vpop.f32.mrb[246].mxu0  ;;  %v7364_v28 = vpop.f32.mrb[251].mxu1 }
 0x40c   : > { %v3851_v11 = vadd.f32 %v7362_v10, %v10120_v12  ;;  %v7365_v5 = vadd.f32 %v7364_v28, %v7363_v58  ;;  %v7470_v25 = vpop.f32.mrb[247].mxu0 }
 0x40d   : > { %v7471_v36 = vadd.f32 %v7470_v25, %v7469_v57  ;;  %v10213_v19 = vadd.f32 %v7468_v16, %v3843_v29 }
 0x40e   : > { %v3854_v3 = vadd.f32 %v7365_v5, %v10123_v53  ;;  %v8439_v53 = vld [vmem:[#allocation9 + $0x128] sm:$0xff]  }
 0x40f   : > { %v10216_v37 = vadd.f32 %v7471_v36, %v3846_v18  ;;  %7767 = vmatpush3.bf16.msra.mxu0 %v8439_v53 }
 0x410   : > { %v7366_v30 = vpop.f32.mrb[252].mxu1 }
 0x411   : > { %v7472_v61 = vpop.f32.mrb[248].mxu0  ;;  %v7367_v44 = vpop.f32.mrb[253].mxu1 }
 0x412   : > { %v7368_v60 = vadd.f32 %v7367_v44, %v7366_v30  ;;  %v7473_v2 = vpop.f32.mrb[249].mxu0  ;;  %v7369_v20 = vpop.f32.mrb[254].mxu1 }
 0x413   : > { %v7474_v31 = vadd.f32 %v7473_v2, %v7472_v61  ;;  %v7475_v9 = vpop.f32.mrb[250].mxu0  ;;  %v7370_v24 = vpop.f32.mrb[255].mxu1 }
 0x414   : > { %v3859_v12 = vadd.f32 %v7368_v60, %v10127_v34  ;;  %v7371_v17 = vadd.f32 %v7370_v24, %v7369_v20  ;;  %v7476_v32 = vpop.f32.mrb[251].mxu0 }
 0x415   : > { %v7477_v29 = vadd.f32 %v7476_v32, %v7475_v9  ;;  %v10219_v6 = vadd.f32 %v7474_v31, %v3851_v11 }
 0x416   : > { %v3862_v27 = vadd.f32 %v7371_v17, %v10129_v55  ;;  %v8442_v17 = vld [vmem:[#allocation9 + $0x170] sm:$0xff]  }
 0x417   : > { %v10222_v39 = vadd.f32 %v7477_v29, %v3854_v3  ;;  %7768 = vmatprep.subr.bf16.mxu0 %v8442_v17 }
 0x418   : > { %v7372_v7 = vpop.f32.mrb[0].mxu1 }
 0x419   : > { %v7478_v18 = vpop.f32.mrb[252].mxu0  ;;  %v7373_v56 = vpop.f32.mrb[1].mxu1 }
 0x41a   : > { %v7374_v23 = vadd.f32 %v7373_v56, %v7372_v7  ;;  %v7479_v40 = vpop.f32.mrb[253].mxu0  ;;  %v7375_v10 = vpop.f32.mrb[2].mxu1 }
 0x41b   : > { %v7480_v34 = vadd.f32 %v7479_v40, %v7478_v18  ;;  %v7481_v62 = vpop.f32.mrb[254].mxu0  ;;  %v7376_v58 = vpop.f32.mrb[3].mxu1 }
 0x41c   : > { %v3867_v16 = vadd.f32 %v7374_v23, %v10133_v48  ;;  %v7377_v57 = vadd.f32 %v7376_v58, %v7375_v10  ;;  %v7482_v28 = vpop.f32.mrb[255].mxu0 }
 0x41d   : > { %v7483_v11 = vadd.f32 %v7482_v28, %v7481_v62  ;;  %v10225_v5 = vadd.f32 %v7480_v34, %v3859_v12 }
 0x41e   : > { %v3870_v55 = vadd.f32 %v7377_v57, %v10135_v26  ;;  %v8443_v26 = vld [vmem:[#allocation9 + $0x130] sm:$0xff]  }
 0x41f   : > { %v10228_v25 = vadd.f32 %v7483_v11, %v3862_v27  ;;  %7769 = vmatpush3.bf16.msra.mxu0 %v8443_v26 }
 0x420   : > { %v7378_v36 = vpop.f32.mrb[4].mxu1 }
 0x421   : > { %v7484_v3 = vpop.f32.mrb[0].mxu0  ;;  %v7379_v30 = vpop.f32.mrb[5].mxu1 }
 0x422   : > { %v7380_v61 = vadd.f32 %v7379_v30, %v7378_v36  ;;  %v7485_v44 = vpop.f32.mrb[1].mxu0  ;;  %v7381_v60 = vpop.f32.mrb[6].mxu1 }
 0x423   : > { %v7486_v2 = vadd.f32 %v7485_v44, %v7484_v3  ;;  %v7487_v20 = vpop.f32.mrb[2].mxu0  ;;  %v7382_v31 = vpop.f32.mrb[7].mxu1 }
 0x424   : > { %v3875_v48 = vadd.f32 %v7380_v61, %v10139_v41  ;;  %v7383_v9 = vadd.f32 %v7382_v31, %v7381_v60  ;;  %v7488_v24 = vpop.f32.mrb[3].mxu0 }
 0x425   : > { %v7489_v12 = vadd.f32 %v7488_v24, %v7487_v20  ;;  %v10231_v32 = vadd.f32 %v7486_v2, %v3867_v16 }
 0x426   : > { %v3878_v33 = vadd.f32 %v7383_v9, %v10141_v13  ;;  %v8446_v9 = vld [vmem:[#allocation9 + $0x178] sm:$0xff]  }
 0x427   : > { %v10234_v29 = vadd.f32 %v7489_v12, %v3870_v55  ;;  %7770 = vmatprep.subr.bf16.mxu0 %v8446_v9 }
 0x428   : > { %v7384_v53 = vpop.f32.mrb[8].mxu1 }
 0x429   : > { %v7490_v27 = vpop.f32.mrb[4].mxu0  ;;  %v7385_v7 = vpop.f32.mrb[9].mxu1 }
 0x42a   : > { %v7386_v18 = vadd.f32 %v7385_v7, %v7384_v53  ;;  %v7491_v56 = vpop.f32.mrb[5].mxu0  ;;  %v7387_v23 = vpop.f32.mrb[10].mxu1 }
 0x42b   : > { %v7492_v41 = vadd.f32 %v7491_v56, %v7490_v27  ;;  %v7493_v40 = vpop.f32.mrb[6].mxu0  ;;  %v7388_v10 = vpop.f32.mrb[11].mxu1 }
 0x42c   : > { %v3883_v34 = vadd.f32 %v7386_v18, %v10145_v50  ;;  %v7389_v62 = vadd.f32 %v7388_v10, %v7387_v23  ;;  %v7494_v58 = vpop.f32.mrb[7].mxu0 }
 0x42d   : > { %v7495_v16 = vadd.f32 %v7494_v58, %v7493_v40  ;;  %v10237_v57 = vadd.f32 %v7492_v41, %v3875_v48 }
 0x42e   : > { %v3886_v13 = vadd.f32 %v7389_v62, %v10147_v51  ;;  %v8447_v51 = vld [vmem:[#allocation9 + $0x138] sm:$0xff]  }
 0x42f   : > { %v10240_v28 = vadd.f32 %v7495_v16, %v3878_v33  ;;  %7771 = vmatpush3.bf16.msra.mxu0 %v8447_v51  ;;  %v10264_v51 = vld [vmem:[#allocation9 + $0x200] sm:$0xff]  }
 0x430   : > { %v7390_v11 = vpop.f32.mrb[12].mxu1  ;;  %8100 = vmatprep.subr.bf16.mxu0 %v10264_v51 }
 0x431   : > { %v7496_v55 = vpop.f32.mrb[8].mxu0  ;;  %v7391_v36 = vpop.f32.mrb[13].mxu1 }
 0x432   : > { %v7392_v3 = vadd.f32 %v7391_v36, %v7390_v11  ;;  %v7497_v30 = vpop.f32.mrb[9].mxu0  ;;  %v7393_v61 = vpop.f32.mrb[14].mxu1 }
 0x433   : > { %v7498_v44 = vadd.f32 %v7497_v30, %v7496_v55  ;;  %v7499_v60 = vpop.f32.mrb[10].mxu0  ;;  %v7394_v2 = vpop.f32.mrb[15].mxu1 }
 0x434   : > { %v3891_v50 = vadd.f32 %v7392_v3, %v10152_v15  ;;  %v7395_v20 = vadd.f32 %v7394_v2, %v7393_v61  ;;  %v7500_v31 = vpop.f32.mrb[11].mxu0 }
 0x435   : > { %v7501_v48 = vadd.f32 %v7500_v31, %v7499_v60  ;;  %v10243_v24 = vadd.f32 %v7498_v44, %v3883_v34 }
 0x436   : > { %v3894_v17 = vadd.f32 %v7395_v20, %v10155_v14 }
 0x437   : > { %v10246_v12 = vadd.f32 %v7501_v48, %v3886_v13 }
 0x438   : > { %v8070_v26 = vpop.f32.mrb[16].mxu1 }
 0x439   : > { %v7502_v33 = vpop.f32.mrb[12].mxu0  ;;  %v4101_v53 = vadd.f32 %v8070_v26, %v10165_v63  ;;  %v4092_v27 = vpop.f32.mrb[17].mxu1  ;;  %v4443_v26 = vld [vmem:[#allocation2 + $0x2] sm:$0xff] }
 0x43a   : > { %v7503_v7 = vpop.f32.mrb[13].mxu0  ;;  %v4093_v15 = vadd.f32 %v4092_v27, %v10158_v59  ;;  %v8071_v18 = vpop.f32.mrb[18].mxu1 }
 0x43b   : > { %vm4221_vm0 = vcmp.gt.f32.partialorder %v4101_v53, 0.0  ;;  %v4253_v56 = vmul.f32 0.2, %v4101_v53  ;;  %v7504_v23 = vadd.f32 %v7503_v7, %v7502_v33  ;;  %v7505_v41 = vpop.f32.mrb[14].mxu0  ;;  %v4104_v40 = vadd.f32 %v8071_v18, %v10168_v22  ;;  %v4095_v14 = vpop.f32.mrb[19].mxu1  ;;  %v4444_v33 = vld [vmem:[#allocation2 + $0xa] sm:$0xff] }
 0x43c   : > { %vm4219_vm1 = vcmp.gt.f32.partialorder %v4093_v15, 0.0  ;;  %v4251_v10 = vmul.f32 0.2, %v4093_v15  ;;  %v7506_v34 = vpop.f32.mrb[15].mxu0  ;;  %v4096_v62 = vadd.f32 %v4095_v14, %v10162_v47  ;;  %v4475_v18 = vpack.c.bf16 %v4444_v33, %v4443_v26  ;;  %v8441_v33 = vld [vmem:[#allocation9 + $0x190] sm:$0xff]  }
 0x43d   : > { %v10252_v58 = vsel %vm4221_vm0, %v4101_v53, %v4253_v56  ;;  %vm4222_vm2 = vcmp.gt.f32.partialorder %v4104_v40, 0.0  ;;  %v4254_v63 = vmul.f32 0.2, %v4104_v40  ;;  %v7507_v16 = vadd.f32 %v7506_v34, %v7505_v41  ;;  %v8433_v34 = vld [vmem:[#allocation9 + $0x180] sm:$0xff]  }
 0x43e   : > { %4317 = vst [vmem:[#allocation2 + $0x31] sm:$0xff] %v10252_v58  ;;  %v4283_v59 = vsel %vm4219_vm1, %v4093_v15, %v4251_v10  ;;  %vm4220_vm3 = vcmp.gt.f32.partialorder %v4096_v62, 0.0  ;;  %v4252_v13 = vmul.f32 0.2, %v4096_v62  ;;  %v10255_v11 = vadd.f32 %v7504_v23, %v3891_v50 }
 0x43f   : > { %4315 = vst [vmem:[#allocation2 + $0x19] sm:$0xff] %v4283_v59  ;;  %v4286_v22 = vsel %vm4222_vm2, %v4104_v40, %v4254_v63  ;;  %v10257_v55 = vadd.f32 %v7507_v16, %v3894_v17  ;;  %v8436_v16 = vld [vmem:[#allocation9 + $0x1c8] sm:$0xff]  }
 0x440   : > { %4318 = vst [vmem:[#allocation2 + $0x39] sm:$0xff] %v4286_v22  ;;  %v4284_v36 = vsel %vm4220_vm3, %v4096_v62, %v4252_v13  ;;  %v8074_v3 = vpop.f32.mrb[20].mxu1  ;;  %v4429_v47 = vpack.c.bf16 %v4286_v22, %v10252_v58 }
 0x441   : > { %4316 = vst [vmem:[#allocation2 + $0x21] sm:$0xff] %v4284_v36  ;;  %v4117_v30 = vadd.f32 %v8074_v3, %v10177_v49  ;;  %v4108_v61 = vpop.f32.mrb[21].mxu1  ;;  %v4428_v44 = vpack.c.bf16 %v4284_v36, %v4283_v59 }
 0x442   : > { %v4109_v60 = vadd.f32 %v4108_v61, %v10171_v42  ;;  %v8075_v2 = vpop.f32.mrb[22].mxu1  ;;  %v8437_v61 = vld [vmem:[#allocation9 + $0x188] sm:$0xff]  }
 0x443   : > { %vm4225_vm4 = vcmp.gt.f32.partialorder %v4117_v30, 0.0  ;;  %v4257_v50 = vmul.f32 0.2, %v4117_v30  ;;  %v4120_v20 = vadd.f32 %v8075_v2, %v10180_v4  ;;  %v4111_v31 = vpop.f32.mrb[23].mxu1  ;;  %5402 = vmatprep.mubr.bf16.mxu0 %v4428_v44 }
 0x444   : > { %vm4223_vm5 = vcmp.gt.f32.partialorder %v4109_v60, 0.0  ;;  %v4255_v9 = vmul.f32 0.2, %v4109_v60  ;;  %v4112_v48 = vadd.f32 %v4111_v31, %v10174_v21 }
 0x445   : > { %v10266_v17 = vsel %vm4225_vm4, %v4117_v30, %v4257_v50  ;;  %vm4226_vm6 = vcmp.gt.f32.partialorder %v4120_v20, 0.0  ;;  %v4258_v49 = vmul.f32 0.2, %v4120_v20  ;;  %v4493_v63 = vld [vmem:[#allocation2 + $0x30] sm:$0xff] }
 0x446   : > { %4321 = vst [vmem:[#allocation2 + $0x61] sm:$0xff] %v10266_v17  ;;  %v10269_v42 = vsel %vm4223_vm5, %v4109_v60, %v4255_v9  ;;  %vm4224_vm7 = vcmp.gt.f32.partialorder %v4112_v48, 0.0  ;;  %v4256_v4 = vmul.f32 0.2, %v4112_v48  ;;  %v4491_v7 = vld [vmem:[#allocation2 + $0x18] sm:$0xff]  ;;  %v8440_v60 = vld [vmem:[#allocation9 + $0x1d0] sm:$0xff]  }
 0x447   : > { %4319 = vst [vmem:[#allocation2 + $0x49] sm:$0xff] %v10269_v42  ;;  %v10273_v53 = vsel %vm4226_vm6, %v4120_v20, %v4258_v49  ;;  %v4494_v56 = vld [vmem:[#allocation2 + $0x38] sm:$0xff] }
 0x448   : > { %4322 = vst [vmem:[#allocation2 + $0x69] sm:$0xff] %v10273_v53  ;;  %v10276_v21 = vsel %vm4224_vm7, %v4112_v48, %v4256_v4  ;;  %v8078_v27 = vpop.f32.mrb[24].mxu1  ;;  %v4492_v15 = vld [vmem:[#allocation2 + $0x20] sm:$0xff]  ;;  %v4431_v23 = vpack.c.bf16 %v10273_v53, %v10266_v17  ;;  %v4524_v36 = vpack.c.bf16 %v4494_v56, %v4493_v63 }
 0x449   : > { %4320 = vst [vmem:[#allocation2 + $0x51] sm:$0xff] %v10276_v21  ;;  %v4133_v41 = vadd.f32 %v8078_v27, %v10189_v8  ;;  %v4124_v40 = vpop.f32.mrb[25].mxu1  ;;  %v4523_v14 = vpack.c.bf16 %v4492_v15, %v4491_v7  ;;  %v4430_v10 = vpack.c.bf16 %v10276_v21, %v10269_v42  ;;  %v4446_v2 = vld [vmem:[#allocation2 + $0x22] sm:$0xff]  ;;  %v4448_v63 = vld [vmem:[#allocation2 + $0x3a] sm:$0xff] }
 0x44a   : > { %v4125_v62 = vadd.f32 %v4124_v40, %v10183_v0  ;;  %v8079_v58 = vpop.f32.mrb[26].mxu1  ;;  %v8444_v7 = vld [vmem:[#allocation9 + $0x1d8] sm:$0xff]  }
 0x44b   : > { %vm4229_vm8 = vcmp.gt.f32.partialorder %v4133_v41, 0.0  ;;  %v4261_v59 = vmul.f32 0.2, %v4133_v41  ;;  %v4136_v13 = vadd.f32 %v8079_v58, %v10192_v45  ;;  %v4127_v22 = vpop.f32.mrb[27].mxu1  ;;  %5555 = vmatprep.mubr.bf16.mxu1 %v4523_v14  ;;  %5403 = vmatmul.mubr.bf16.gmra.mrb[20].mxu0 %v4523_v14  ;;  %v8448_v58 = vld [vmem:[#allocation9 + $0x1e0] sm:$0xff]  }
 0x44c   : > { %vm4227_vm9 = vcmp.gt.f32.partialorder %v4125_v62, 0.0  ;;  %v4259_v8 = vmul.f32 0.2, %v4125_v62  ;;  %v4128_v3 = vadd.f32 %v4127_v22, %v10186_v52  ;;  %5556 = vmatmul.mubr.bf16.vlgmr.msra.gmra.mrb[48].mxu1 %v4475_v18  ;;  %5410 = vmatprep.mubr.bf16.mxu0 %v4429_v47  ;;  %v4445_v47 = vld [vmem:[#allocation2 + $0x1a] sm:$0xff] }
 0x44d   : > { %v10287_v30 = vsel %vm4229_vm8, %v4133_v41, %v4261_v59  ;;  %vm4230_vm10 = vcmp.gt.f32.partialorder %v4136_v13, 0.0  ;;  %v4262_v0 = vmul.f32 0.2, %v4136_v13  ;;  %5563 = vmatprep.mubr.bf16.mxu1 %v4524_v36  ;;  %7869 = vmatpush3.bf16.msra.mxu1 %v8433_v34  ;;  %v10305_v21 = vpack.c.bf16 %v4446_v2, %v4445_v47  ;;  %v8445_v34 = vld [vmem:[#allocation9 + $0x198] sm:$0xff]   ;;  %v4497_v47 = vld [vmem:[#allocation2 + $0x60] sm:$0xff]  ;;  %v8450_v2 = vld [vmem:[#allocation9 + $0x1e8] sm:$0xff]  }
 0x44e   : > { %4325 = vst [vmem:[#allocation2 + $0x91] sm:$0xff] %v10287_v30  ;;  %v10290_v45 = vsel %vm4227_vm9, %v4125_v62, %v4259_v8  ;;  %vm4228_vm11 = vcmp.gt.f32.partialorder %v4128_v3, 0.0  ;;  %v4260_v44 = vmul.f32 0.2, %v4128_v3  ;;  %7870 = vmatprep.subr.bf16.mxu1 %v8436_v16  ;;  %v4495_v27 = vld [vmem:[#allocation2 + $0x48] sm:$0xff] }
 0x44f   : > { %4323 = vst [vmem:[#allocation2 + $0x79] sm:$0xff] %v10290_v45  ;;  %v10293_v52 = vsel %vm4230_vm10, %v4136_v13, %v4262_v0  ;;  %v4498_v13 = vld [vmem:[#allocation2 + $0x68] sm:$0xff]  ;;  %v8449_v0 = vld [vmem:[#allocation9 + $0x1a0] sm:$0xff]  }
 0x450   : > { %4326 = vst [vmem:[#allocation2 + $0x99] sm:$0xff] %v10293_v52  ;;  %v10296_v50 = vsel %vm4228_vm11, %v4128_v3, %v4260_v44  ;;  %v8082_v20 = vpop.f32.mrb[28].mxu1  ;;  %v4496_v31 = vld [vmem:[#allocation2 + $0x50] sm:$0xff]  ;;  %v4433_v9 = vpack.c.bf16 %v10293_v52, %v10287_v30 }
 0x451   : > { %4324 = vst [vmem:[#allocation2 + $0x81] sm:$0xff] %v10296_v50  ;;  %v4149_v48 = vadd.f32 %v8082_v20, %v10201_v46  ;;  %v4140_v49 = vpop.f32.mrb[29].mxu1  ;;  %v4432_v26 = vpack.c.bf16 %v10296_v50, %v10290_v45  ;;  %7871 = vmatpush3.bf16.msra.mxu1 %v8437_v61  ;;  %v10308_v46 = vpack.c.bf16 %v4496_v31, %v4495_v27  ;;  %v8452_v27 = vld [vmem:[#allocation9 + $0x1f0] sm:$0xff]   ;;  %v4449_v53 = vld [vmem:[#allocation2 + $0x4a] sm:$0xff] }
 0x452   : > { %v4141_v42 = vadd.f32 %v4140_v49, %v10195_v1  ;;  %v8083_v4 = vpop.f32.mrb[30].mxu1  ;;  %7872 = vmatprep.subr.bf16.mxu1 %v8440_v60  ;;  %v4451_v45 = vld [vmem:[#allocation2 + $0x62] sm:$0xff]  ;;  %v4452_v50 = vld [vmem:[#allocation2 + $0x6a] sm:$0xff] }
 0x453   : > { %vm4233_vm12 = vcmp.gt.f32.partialorder %v4149_v48, 0.0  ;;  %v4265_v15 = vmul.f32 0.2, %v4149_v48  ;;  %v4152_v18 = vadd.f32 %v8083_v4, %v10204_v35  ;;  %v4143_v56 = vpop.f32.mrb[31].mxu1  ;;  %5411 = vmatmul.mubr.bf16.gmra.mrb[24].mxu0 %v4524_v36 }
 0x454   : > { %vm4231_vm13 = vcmp.gt.f32.partialorder %v4141_v42, 0.0  ;;  %v4263_v41 = vmul.f32 0.2, %v4141_v42  ;;  %v4144_v40 = vadd.f32 %v4143_v56, %v10198_v38  ;;  %5564 = vmatmul.mubr.bf16.gmra.mrb[52].mxu1 %v10305_v21  ;;  %5418 = vmatprep.mubr.bf16.mxu0 %v4430_v10  ;;  %v4447_v10 = vld [vmem:[#allocation2 + $0x32] sm:$0xff] }
 0x455   : > { %v10312_v1 = vsel %vm4233_vm12, %v4149_v48, %v4265_v15  ;;  %vm4234_vm14 = vcmp.gt.f32.partialorder %v4152_v18, 0.0  ;;  %v4266_v14 = vmul.f32 0.2, %v4152_v18  ;;  %5571 = vmatprep.mubr.bf16.mxu1 %v10308_v46  ;;  %7873 = vmatpush3.bf16.msra.mxu1 %v8441_v33  ;;  %v10331_v60 = vpack.c.bf16 %v4448_v63, %v4447_v10 }
 0x456   : > { %4329 = vst [vmem:[#allocation2 + $0xc1] sm:$0xff] %v10312_v1  ;;  %v10316_v35 = vsel %vm4231_vm13, %v4141_v42, %v4263_v41  ;;  %vm4232_vm15 = vcmp.gt.f32.partialorder %v4144_v40, 0.0  ;;  %v4264_v62 = vmul.f32 0.2, %v4144_v40  ;;  %7874 = vmatprep.subr.bf16.mxu1 %v8444_v7  ;;  %v4499_v63 = vld [vmem:[#allocation2 + $0x78] sm:$0xff] }
 0x457   : > { %4327 = vst [vmem:[#allocation2 + $0xa9] sm:$0xff] %v10316_v35  ;;  %v10319_v38 = vsel %vm4234_vm14, %v4152_v18, %v4266_v14 }
 0x458   : > { %4330 = vst [vmem:[#allocation2 + $0xc9] sm:$0xff] %v10319_v38  ;;  %v10322_v16 = vsel %vm4232_vm15, %v4144_v40, %v4264_v62  ;;  %v8086_v59 = vpop.f32.mrb[32].mxu1  ;;  %v4435_v22 = vpack.c.bf16 %v10319_v38, %v10312_v1  ;;  %v4500_v18 = vld [vmem:[#allocation2 + $0x80] sm:$0xff] }
 0x459   : > { %4328 = vst [vmem:[#allocation2 + $0xb1] sm:$0xff] %v10322_v16  ;;  %v4165_v36 = vadd.f32 %v8086_v59, %v10213_v19  ;;  %v4156_v8 = vpop.f32.mrb[33].mxu1  ;;  %v4434_v3 = vpack.c.bf16 %v10322_v16, %v10316_v35  ;;  %7875 = vmatpush3.bf16.msra.mxu1 %v8445_v34  ;;  %v10335_v19 = vpack.c.bf16 %v4498_v13, %v4497_v47  ;;  %v8454_v34 = vld [vmem:[#allocation9 + $0x1b0] sm:$0xff]   ;;  %v8455_v59 = vld [vmem:[#allocation9 + $0x1f8] sm:$0xff]  }
 0x45a   : > { %v4157_v61 = vadd.f32 %v4156_v8, %v10207_v43  ;;  %v8087_v44 = vpop.f32.mrb[34].mxu1  ;;  %7876 = vmatprep.subr.bf16.mxu1 %v8448_v58 }
 0x45b   : > { %vm4237_vm0 = vcmp.gt.f32.partialorder %v4165_v36, 0.0  ;;  %v4269_v20 = vmul.f32 0.2, %v4165_v36  ;;  %v4168_v31 = vadd.f32 %v8087_v44, %v10216_v37  ;;  %v4159_v48 = vpop.f32.mrb[35].mxu1  ;;  %5419 = vmatmul.mubr.bf16.gmra.mrb[28].mxu0 %v10308_v46  ;;  %v8451_v37 = vld [vmem:[#allocation9 + $0x1a8] sm:$0xff]  }
 0x45c   : > { %vm4235_vm1 = vcmp.gt.f32.partialorder %v4157_v61, 0.0  ;;  %v4267_v49 = vmul.f32 0.2, %v4157_v61  ;;  %v4160_v33 = vadd.f32 %v4159_v48, %v10210_v54  ;;  %5572 = vmatmul.mubr.bf16.gmra.mrb[56].mxu1 %v10331_v60  ;;  %5426 = vmatprep.mubr.bf16.mxu0 %v4431_v23  ;;  %v4450_v23 = vld [vmem:[#allocation2 + $0x52] sm:$0xff] }
 0x45d   : > { %v10342_v43 = vsel %vm4237_vm0, %v4165_v36, %v4269_v20  ;;  %vm4238_vm2 = vcmp.gt.f32.partialorder %v4168_v31, 0.0  ;;  %v4270_v42 = vmul.f32 0.2, %v4168_v31  ;;  %5579 = vmatprep.mubr.bf16.mxu1 %v10335_v19  ;;  %7877 = vmatpush3.bf16.msra.mxu1 %v8449_v0  ;;  %v10361_v10 = vpack.c.bf16 %v4450_v23, %v4449_v53  ;;  %v4501_v53 = vld [vmem:[#allocation2 + $0x90] sm:$0xff] }
 0x45e   : > { %4333 = vst [vmem:[#allocation2 + $0xf1] sm:$0xff] %v10342_v43  ;;  %v10346_v4 = vsel %vm4235_vm1, %v4157_v61, %v4267_v49  ;;  %vm4236_vm3 = vcmp.gt.f32.partialorder %v4160_v33, 0.0  ;;  %v4268_v54 = vmul.f32 0.2, %v4160_v33  ;;  %7878 = vmatprep.subr.bf16.mxu1 %v8450_v2 }
 0x45f   : > { %4331 = vst [vmem:[#allocation2 + $0xd9] sm:$0xff] %v10346_v4  ;;  %v10349_v17 = vsel %vm4238_vm2, %v4168_v31, %v4270_v42  ;;  %v4502_v31 = vld [vmem:[#allocation2 + $0x98] sm:$0xff]  ;;  %v4506_v35 = vld [vmem:[#allocation2 + $0xc8] sm:$0xff] }
 0x460   : > { %4334 = vst [vmem:[#allocation2 + $0xf9] sm:$0xff] %v10349_v17  ;;  %v10352_v7 = vsel %vm4236_vm3, %v4160_v33, %v4268_v54  ;;  %v8090_v15 = vpop.f32.mrb[36].mxu1  ;;  %v4437_v56 = vpack.c.bf16 %v10349_v17, %v10342_v43  ;;  %v4459_v1 = vld [vmem:[#allocation2 + $0xc2] sm:$0xff]  ;;  %v4460_v38 = vld [vmem:[#allocation2 + $0xca] sm:$0xff] }
 0x461   : > { %4332 = vst [vmem:[#allocation2 + $0xe1] sm:$0xff] %v10352_v7  ;;  %v4181_v41 = vadd.f32 %v8090_v15, %v10225_v5  ;;  %v4172_v40 = vpop.f32.mrb[37].mxu1  ;;  %v4436_v14 = vpack.c.bf16 %v10352_v7, %v10346_v4  ;;  %7879 = vmatpush3.bf16.msra.mxu1 %v8451_v37  ;;  %v10365_v5 = vpack.c.bf16 %v4500_v18, %v4499_v63  ;;  %v4454_v63 = vld [vmem:[#allocation2 + $0x82] sm:$0xff] }
 0x462   : > { %v4173_v62 = vadd.f32 %v4172_v40, %v10219_v6  ;;  %v8091_v58 = vpop.f32.mrb[38].mxu1  ;;  %7880 = vmatprep.subr.bf16.mxu1 %v8452_v27  ;;  %v10391_v27 = vpack.c.bf16 %v4452_v50, %v4451_v45 }
 0x463   : > { %vm4241_vm4 = vcmp.gt.f32.partialorder %v4181_v41, 0.0  ;;  %v4273_v13 = vmul.f32 0.2, %v4181_v41  ;;  %v4184_v36 = vadd.f32 %v8091_v58, %v10228_v25  ;;  %v4175_v8 = vpop.f32.mrb[39].mxu1  ;;  %5427 = vmatmul.mubr.bf16.gmra.mrb[32].mxu0 %v10335_v19  ;;  %v8456_v25 = vld [vmem:[#allocation9 + $0x1b8] sm:$0xff]   ;;  %v4453_v58 = vld [vmem:[#allocation2 + $0x7a] sm:$0xff] }
 0x464   : > { %vm4239_vm5 = vcmp.gt.f32.partialorder %v4173_v62, 0.0  ;;  %v4271_v0 = vmul.f32 0.2, %v4173_v62  ;;  %v4176_v61 = vadd.f32 %v4175_v8, %v10222_v39  ;;  %5580 = vmatmul.mubr.bf16.gmra.mrb[60].mxu1 %v10361_v10  ;;  %5434 = vmatprep.mubr.bf16.mxu0 %v4432_v26 }
 0x465   : > { %v10372_v6 = vsel %vm4241_vm4, %v4181_v41, %v4273_v13  ;;  %vm4242_vm6 = vcmp.gt.f32.partialorder %v4184_v36, 0.0  ;;  %v4274_v44 = vmul.f32 0.2, %v4184_v36  ;;  %5587 = vmatprep.mubr.bf16.mxu1 %v10365_v5  ;;  %7881 = vmatpush3.bf16.msra.mxu1 %v8454_v34  ;;  %v10395_v41 = vpack.c.bf16 %v4502_v31, %v4501_v53 }
 0x466   : > { %4337 = vst [vmem:[#allocation2 + $0x121] sm:$0xff] %v10372_v6  ;;  %v10376_v47 = vsel %vm4239_vm5, %v4173_v62, %v4271_v0  ;;  %vm4240_vm7 = vcmp.gt.f32.partialorder %v4176_v61, 0.0  ;;  %v4272_v39 = vmul.f32 0.2, %v4176_v61  ;;  %7882 = vmatprep.subr.bf16.mxu1 %v8455_v59 }
 0x467   : > { %4335 = vst [vmem:[#allocation2 + $0x109] sm:$0xff] %v10376_v47  ;;  %v10379_v2 = vsel %vm4242_vm6, %v4184_v36, %v4274_v44  ;;  %v10421_v44 = vpack.c.bf16 %v4454_v63, %v4453_v58  ;;  %v10461_v63 = vpack.c.bf16 %v4460_v38, %v4459_v1  ;;  %v4463_v43 = vld [vmem:[#allocation2 + $0xf2] sm:$0xff]  ;;  %v4464_v17 = vld [vmem:[#allocation2 + $0xfa] sm:$0xff] }
 0x468   : > { %4338 = vst [vmem:[#allocation2 + $0x129] sm:$0xff] %v10379_v2  ;;  %v10382_v26 = vsel %vm4240_vm7, %v4176_v61, %v4272_v39  ;;  %v8094_v20 = vpop.f32.mrb[40].mxu1  ;;  %v4439_v48 = vpack.c.bf16 %v10379_v2, %v10372_v6  ;;  %v4461_v4 = vld [vmem:[#allocation2 + $0xda] sm:$0xff]  ;;  %v4462_v7 = vld [vmem:[#allocation2 + $0xe2] sm:$0xff] }
 0x469   : > { %4336 = vst [vmem:[#allocation2 + $0x111] sm:$0xff] %v10382_v26  ;;  %v4197_v49 = vadd.f32 %v8094_v20, %v10237_v57  ;;  %v4188_v33 = vpop.f32.mrb[41].mxu1  ;;  %v4438_v42 = vpack.c.bf16 %v10382_v26, %v10376_v47  ;;  %7883 = vmatpush3.bf16.msra.mxu1 %v8456_v25  ;;  %v4503_v25 = vld [vmem:[#allocation2 + $0xa8] sm:$0xff] }
 0x46a   : > { %v4189_v37 = vadd.f32 %v4188_v33, %v10231_v32  ;;  %v8095_v54 = vpop.f32.mrb[42].mxu1 }
 0x46b   : > { %vm4245_vm8 = vcmp.gt.f32.partialorder %v4197_v49, 0.0  ;;  %v4277_v23 = vmul.f32 0.2, %v4197_v49  ;;  %v4200_v15 = vadd.f32 %v8095_v54, %v10240_v28  ;;  %v4191_v18 = vpop.f32.mrb[43].mxu1  ;;  %5435 = vmatmul.mubr.bf16.gmra.mrb[36].mxu0 %v10365_v5  ;;  %v4456_v54 = vld [vmem:[#allocation2 + $0x9a] sm:$0xff] }
 0x46c   : > { %vm4243_vm9 = vcmp.gt.f32.partialorder %v4189_v37, 0.0  ;;  %v4275_v57 = vmul.f32 0.2, %v4189_v37  ;;  %v4192_v40 = vadd.f32 %v4191_v18, %v10234_v29  ;;  %5588 = vmatmul.mubr.bf16.gmra.mrb[64].mxu1 %v10391_v27  ;;  %5442 = vmatprep.mubr.bf16.mxu0 %v4433_v9  ;;  %v4504_v9 = vld [vmem:[#allocation2 + $0xb0] sm:$0xff] }
 0x46d   : > { %v10402_v32 = vsel %vm4245_vm8, %v4197_v49, %v4277_v23  ;;  %vm4246_vm10 = vcmp.gt.f32.partialorder %v4200_v15, 0.0  ;;  %v4278_v34 = vmul.f32 0.2, %v4200_v15  ;;  %5595 = vmatprep.mubr.bf16.mxu1 %v10395_v41  ;;  %v10425_v20 = vpack.c.bf16 %v4504_v9, %v4503_v25  ;;  %v4505_v23 = vld [vmem:[#allocation2 + $0xc0] sm:$0xff]  ;;  %v4457_v18 = vld [vmem:[#allocation2 + $0xaa] sm:$0xff] }
 0x46e   : > { %4341 = vst [vmem:[#allocation2 + $0x151] sm:$0xff] %v10402_v32  ;;  %v10406_v28 = vsel %vm4243_vm9, %v4189_v37, %v4275_v57  ;;  %vm4244_vm11 = vcmp.gt.f32.partialorder %v4192_v40, 0.0  ;;  %v4276_v62 = vmul.f32 0.2, %v4192_v40  ;;  %v4458_v57 = vld [vmem:[#allocation2 + $0xb2] sm:$0xff]  ;;  %v4513_v25 = vld [vmem:[#allocation2 + $0x120] sm:$0xff] }
 0x46f   : > { %4339 = vst [vmem:[#allocation2 + $0x139] sm:$0xff] %v10406_v28  ;;  %v10409_v29 = vsel %vm4246_vm10, %v4200_v15, %v4278_v34  ;;  %v10444_v15 = vpack.c.bf16 %v4506_v35, %v4505_v23  ;;  %v10451_v34 = vpack.c.bf16 %v4458_v57, %v4457_v18  ;;  %v4467_v6 = vld [vmem:[#allocation2 + $0x122] sm:$0xff]  ;;  %v4468_v2 = vld [vmem:[#allocation2 + $0x12a] sm:$0xff] }
 0x470   : > { %4342 = vst [vmem:[#allocation2 + $0x159] sm:$0xff] %v10409_v29  ;;  %v10412_v30 = vsel %vm4244_vm11, %v4192_v40, %v4276_v62  ;;  %v8098_v52 = vpop.f32.mrb[44].mxu1  ;;  %v4441_v59 = vpack.c.bf16 %v10409_v29, %v10402_v32  ;;  %v4508_v40 = vld [vmem:[#allocation2 + $0xe0] sm:$0xff]  ;;  %v4507_v62 = vld [vmem:[#allocation2 + $0xd8] sm:$0xff] }
 0x471   : > { %4340 = vst [vmem:[#allocation2 + $0x141] sm:$0xff] %v10412_v30  ;;  %v4213_v13 = vadd.f32 %v8098_v52, %v10255_v11  ;;  %v4204_v36 = vpop.f32.mrb[45].mxu1  ;;  %v4440_v8 = vpack.c.bf16 %v10412_v30, %v10406_v28  ;;  %v10454_v58 = vpack.c.bf16 %v4508_v40, %v4507_v62  ;;  %v4509_v52 = vld [vmem:[#allocation2 + $0xf0] sm:$0xff] }
 0x472   : > { %v4205_v0 = vadd.f32 %v4204_v36, %v10243_v24  ;;  %v8099_v61 = vpop.f32.mrb[46].mxu1  ;;  %v4511_v36 = vld [vmem:[#allocation2 + $0x108] sm:$0xff] }
 0x473   : > { %vm4249_vm12 = vcmp.gt.f32.partialorder %v4213_v13, 0.0  ;;  %v4281_v39 = vmul.f32 0.2, %v4213_v13  ;;  %v4216_v45 = vadd.f32 %v8099_v61, %v10257_v55  ;;  %v4207_v50 = vpop.f32.mrb[47].mxu1  ;;  %5443 = vmatmul.mubr.bf16.gmra.mrb[40].mxu0 %v10395_v41  ;;  %v10481_v61 = vpack.c.bf16 %v4464_v17, %v4463_v43  ;;  %v4636_v17 = vld [vmem:[#allocation2 + $0x38] sm:$0xff] }
 0x474   : > { %vm4247_vm13 = vcmp.gt.f32.partialorder %v4205_v0, 0.0  ;;  %v4279_v11 = vmul.f32 0.2, %v4205_v0  ;;  %v4208_v31 = vadd.f32 %v4207_v50, %v10246_v12  ;;  %5596 = vmatmul.mubr.bf16.gmra.mrb[68].mxu1 %v10421_v44  ;;  %5450 = vmatprep.mubr.bf16.mxu0 %v4434_v3  ;;  %v4455_v12 = vld [vmem:[#allocation2 + $0x92] sm:$0xff] }
 0x475   : > { %v4313_v24 = vsel %vm4249_vm12, %v4213_v13, %v4281_v39  ;;  %vm4250_vm14 = vcmp.gt.f32.partialorder %v4216_v45, 0.0  ;;  %v4282_v49 = vmul.f32 0.2, %v4216_v45  ;;  %5603 = vmatprep.mubr.bf16.mxu1 %v10425_v20  ;;  %v10441_v3 = vpack.c.bf16 %v4456_v54, %v4455_v12  ;;  %v4517_v35 = vld [vmem:[#allocation2 + $0x150] sm:$0xff] }
 0x476   : > { %4345 = vst [vmem:[#allocation2 + $0x181] sm:$0xff] %v4313_v24  ;;  %v10433_v55 = vsel %vm4247_vm13, %v4205_v0, %v4279_v11  ;;  %vm4248_vm15 = vcmp.gt.f32.partialorder %v4208_v31, 0.0  ;;  %v4280_v33 = vmul.f32 0.2, %v4208_v31  ;;  %v10471_v13 = vpack.c.bf16 %v4462_v7, %v4461_v4  ;;  %v4466_v24 = vld [vmem:[#allocation2 + $0x112] sm:$0xff] }
 0x477   : > { %4343 = vst [vmem:[#allocation2 + $0x169] sm:$0xff] %v10433_v55  ;;  %v4314_v37 = vsel %vm4250_vm14, %v4216_v45, %v4282_v49  ;;  %v10505_v54 = vpack.c.bf16 %v4468_v2, %v4467_v6  ;;  %v4471_v32 = vld [vmem:[#allocation2 + $0x152] sm:$0xff]  ;;  %v4472_v29 = vld [vmem:[#allocation2 + $0x15a] sm:$0xff]  ;;  %v8463_v2 = vld [vmem:[#allocation9 + $0x238] sm:$0xff]  }
 0x478   : > { %4346 = vst [vmem:[#allocation2 + $0x189] sm:$0xff] %v4314_v37  ;;  %v10436_v53 = vsel %vm4248_vm15, %v4208_v31, %v4280_v33  ;;  %v4465_v31 = vld [vmem:[#allocation2 + $0x10a] sm:$0xff]  ;;  %v4516_v49 = vld [vmem:[#allocation2 + $0x140] sm:$0xff]  ;;  %v4515_v37 = vld [vmem:[#allocation2 + $0x138] sm:$0xff]  ;;  %v10525_v62 = vpack.c.bf16 %v4472_v29, %v4471_v32 }
 0x479   : > { %4344 = vst [vmem:[#allocation2 + $0x171] sm:$0xff] %v10436_v53  ;;  %v4442_v16 = vpack.c.bf16 %v10436_v53, %v10433_v55  ;;  %v10495_v33 = vpack.c.bf16 %v4466_v24, %v4465_v31  ;;  %v10498_v12 = vpack.c.bf16 %v4516_v49, %v4515_v37  ;;  %v4469_v28 = vld [vmem:[#allocation2 + $0x13a] sm:$0xff]  ;;  %v4470_v30 = vld [vmem:[#allocation2 + $0x142] sm:$0xff] }
 0x47a   : > { %v10515_v18 = vpack.c.bf16 %v4470_v30, %v4469_v28  ;;  %v4540_v55 = vld [vmem:[#allocation2 + $0x21] sm:$0xff]  ;;  %v8461_v24 = vld [vmem:[#allocation9 + $0x228] sm:$0xff]   ;;  %v4693_v30 = vld [vmem:[#allocation2 + $0xa9] sm:$0xff] }
 0x47b   : > { %5451 = vmatmul.mubr.bf16.gmra.mrb[44].mxu0 %v10425_v20  ;;  %v4687_v31 = vld [vmem:[#allocation2 + $0x61] sm:$0xff]  ;;  %v4689_v6 = vld [vmem:[#allocation2 + $0x79] sm:$0xff]  ;;  %v4694_v28 = vld [vmem:[#allocation2 + $0xb1] sm:$0xff] }
 0x47c   : > { %5604 = vmatmul.mubr.bf16.gmra.mrb[72].mxu1 %v10441_v3  ;;  %5458 = vmatprep.mubr.bf16.mxu0 %v4435_v22  ;;  %v4510_v22 = vld [vmem:[#allocation2 + $0xf8] sm:$0xff]  ;;  %v8462_v37 = vld [vmem:[#allocation9 + $0x230] sm:$0xff]  }
 0x47d   : > { %5611 = vmatprep.mubr.bf16.mxu1 %v10444_v15  ;;  %v10464_v9 = vpack.c.bf16 %v4510_v22, %v4509_v52  ;;  %v4521_v1 = vld [vmem:[#allocation2 + $0x180] sm:$0xff] }
 0x47e   : > { %v4519_v57 = vld [vmem:[#allocation2 + $0x168] sm:$0xff]  ;;  %v4539_v22 = vld [vmem:[#allocation2 + $0x19] sm:$0xff] }
 0x47f   : > { %v4684_v52 = vld [vmem:[#allocation2 + $0x39] sm:$0xff]  ;;  %v4571_v4 = vpack.c.bf16 %v4540_v55, %v4539_v22 }
 0x480   : > { %v4473_v53 = vld [vmem:[#allocation2 + $0x16a] sm:$0xff] }
 0x483   : > { %5459 = vmatmul.mubr.bf16.gmra.mrb[48].mxu0 %v10444_v15 }
 0x484   : > { %5612 = vmatmul.mubr.bf16.gmra.mrb[76].mxu1 %v10451_v34  ;;  %5466 = vmatprep.mubr.bf16.mxu0 %v4436_v14  ;;  %v4512_v14 = vld [vmem:[#allocation2 + $0x110] sm:$0xff] }
 0x485   : > { %5619 = vmatprep.mubr.bf16.mxu1 %v10454_v58  ;;  %v10474_v0 = vpack.c.bf16 %v4512_v14, %v4511_v36  ;;  %v4683_v14 = vld [vmem:[#allocation2 + $0x31] sm:$0xff] }
 0x486   : > { %v8457_v36 = vld [vmem:[#allocation9 + $0x208] sm:$0xff]   ;;  %v4715_v43 = vpack.c.bf16 %v4684_v52, %v4683_v14 }
 0x487   : > { %v4708_v52 = vld [vmem:[#allocation2 + $0x159] sm:$0xff] }
 0x48b   : > { %5467 = vmatmul.mubr.bf16.gmra.mrb[52].mxu0 %v10454_v58 }
 0x48c   : > { %5620 = vmatmul.mubr.bf16.gmra.mrb[80].mxu1 %v10461_v63  ;;  %5474 = vmatprep.mubr.bf16.mxu0 %v4437_v56  ;;  %v4514_v56 = vld [vmem:[#allocation2 + $0x128] sm:$0xff] }
 0x48d   : > { %5627 = vmatprep.mubr.bf16.mxu1 %v10464_v9  ;;  %v10484_v45 = vpack.c.bf16 %v4514_v56, %v4513_v25  ;;  %v4686_v56 = vld [vmem:[#allocation2 + $0x51] sm:$0xff] }
 0x48e   : > { %v4635_v25 = vld [vmem:[#allocation2 + $0x30] sm:$0xff] }
 0x492   : > { %v7548_v39 = vpop.f32.mrb[16].mxu0 }
 0x493   : > { %5475 = vmatmul.mubr.bf16.gmra.mrb[56].mxu0 %v10464_v9  ;;  %v7549_v50 = vpop.f32.mrb[17].mxu0 }
 0x494   : > { %5628 = vmatmul.mubr.bf16.gmra.mrb[84].mxu1 %v10471_v13  ;;  %5482 = vmatprep.mubr.bf16.mxu0 %v4438_v42  ;;  %v10490_v47 = vadd.f32 %v7549_v50, %v7548_v39  ;;  %v7551_v26 = vpop.f32.mrb[18].mxu0  ;;  %v4667_v39 = vpack.c.bf16 %v4636_v17, %v4635_v25  ;;  %v4685_v50 = vld [vmem:[#allocation2 + $0x49] sm:$0xff] }
 0x495   : > { %5635 = vmatprep.mubr.bf16.mxu1 %v10474_v0  ;;  %v7552_v42 = vpop.f32.mrb[19].mxu0 }
 0x496   : > { %v10493_v11 = vadd.f32 %v7552_v42, %v7551_v26  ;;  %v8459_v26 = vld [vmem:[#allocation9 + $0x218] sm:$0xff]   ;;  %v4716_v42 = vpack.c.bf16 %v4686_v56, %v4685_v50 }
 0x49b   : > { %5483 = vmatmul.mubr.bf16.gmra.mrb[60].mxu0 %v10474_v0 }
 0x49c   : > { %5636 = vmatmul.mubr.bf16.gmra.mrb[88].mxu1 %v10481_v61  ;;  %5490 = vmatprep.mubr.bf16.mxu0 %v4439_v48  ;;  %v4518_v48 = vld [vmem:[#allocation2 + $0x158] sm:$0xff] }
 0x49d   : > { %5643 = vmatprep.mubr.bf16.mxu1 %v10484_v45  ;;  %v10508_v23 = vpack.c.bf16 %v4518_v48, %v4517_v35 }
 0x4a3   : > { %5491 = vmatmul.mubr.bf16.gmra.mrb[64].mxu0 %v10484_v45 }
 0x4a4   : > { %5644 = vmatmul.mubr.bf16.gmra.mrb[92].mxu1 %v10495_v33  ;;  %5498 = vmatprep.mubr.bf16.mxu0 %v4440_v8  ;;  %v4520_v8 = vld [vmem:[#allocation2 + $0x170] sm:$0xff] }
 0x4a5   : > { %5651 = vmatprep.mubr.bf16.mxu1 %v10498_v12  ;;  %v10518_v40 = vpack.c.bf16 %v4520_v8, %v4519_v57  ;;  %v4720_v8 = vpack.c.bf16 %v4694_v28, %v4693_v30 }
 0x4ab   : > { %5499 = vmatmul.mubr.bf16.gmra.mrb[68].mxu0 %v10498_v12 }
 0x4ac   : > { %5652 = vmatmul.mubr.bf16.gmra.mrb[96].mxu1 %v10505_v54  ;;  %5506 = vmatprep.mubr.bf16.mxu0 %v4441_v59  ;;  %v4522_v59 = vld [vmem:[#allocation2 + $0x188] sm:$0xff] }
 0x4ad   : > { %5659 = vmatprep.mubr.bf16.mxu1 %v10508_v23  ;;  %v10528_v38 = vpack.c.bf16 %v4522_v59, %v4521_v1 }
 0x4b3   : > { %5507 = vmatmul.mubr.bf16.gmra.mrb[72].mxu0 %v10508_v23 }
 0x4b4   : > { %5660 = vmatmul.mubr.bf16.gmra.mrb[100].mxu1 %v10515_v18  ;;  %5514 = vmatprep.mubr.bf16.mxu0 %v4442_v16  ;;  %v4474_v16 = vld [vmem:[#allocation2 + $0x172] sm:$0xff] }
 0x4b5   : > { %5667 = vmatprep.mubr.bf16.mxu1 %v10518_v40  ;;  %v10533_v7 = vpack.c.bf16 %v4474_v16, %v4473_v53 }
 0x4bb   : > { %5515 = vmatmul.mubr.bf16.gmra.mrb[76].mxu0 %v10518_v40 }
 0x4bc   : > { %5668 = vmatmul.mubr.bf16.gmra.mrb[104].mxu1 %v10525_v62  ;;  %5716 = vmatprep.mubr.bf16.mxu0 %v10305_v21  ;;  %v8458_v21 = vld [vmem:[#allocation9 + $0x210] sm:$0xff]  }
 0x4bd   : > { %5675 = vmatprep.mubr.bf16.mxu1 %v10528_v38 }
 0x4c3   : > { %5717 = vmatmul.mubr.bf16.vlgmr.msra.gmra.mrb[80].mxu0 %v4571_v4 }
 0x4c4   : > { %5676 = vmatmul.mubr.bf16.gmra.mrb[108].mxu1 %v10533_v7  ;;  %5724 = vmatprep.mubr.bf16.mxu0 %v10331_v60  ;;  %v8460_v60 = vld [vmem:[#allocation9 + $0x220] sm:$0xff]  }
 0x4c5   : > { %5877 = vmatprep.mubr.bf16.mxu1 %v4715_v43  ;;  %8101 = vmatpush3.bf16.msra.mxu0 %v10264_v51  ;;  %v4688_v51 = vld [vmem:[#allocation2 + $0x69] sm:$0xff] }
 0x4c6   : > { %8102 = vmatprep.subr.bf16.mxu0 %v8457_v36  ;;  %v4717_v49 = vpack.c.bf16 %v4688_v51, %v4687_v31 }
 0x4c9   : > { %8103 = vmatpush3.bf16.msra.mxu0 %v8457_v36 }
 0x4ca   : > { %8104 = vmatprep.subr.bf16.mxu0 %v8458_v21 }
 0x4cb   : > { %5725 = vmatmul.mubr.bf16.gmra.mrb[84].mxu0 %v4715_v43 }
 0x4cc   : > { %5878 = vmatmul.mubr.bf16.vlgmr.msra.gmra.mrb[112].mxu1 %v4667_v39  ;;  %5732 = vmatprep.mubr.bf16.mxu0 %v10361_v10  ;;  %v4690_v10 = vld [vmem:[#allocation2 + $0x81] sm:$0xff] }
 0x4cd   : > { %5885 = vmatprep.mubr.bf16.mxu1 %v4716_v42  ;;  %8105 = vmatpush3.bf16.msra.mxu0 %v8458_v21  ;;  %v4718_v48 = vpack.c.bf16 %v4690_v10, %v4689_v6  ;;  %v4707_v21 = vld [vmem:[#allocation2 + $0x151] sm:$0xff] }
 0x4ce   : > { %8106 = vmatprep.subr.bf16.mxu0 %v8459_v26  ;;  %v4727_v39 = vpack.c.bf16 %v4708_v52, %v4707_v21 }
 0x4d1   : > { %8107 = vmatpush3.bf16.msra.mxu0 %v8459_v26 }
 0x4d2   : > { %8108 = vmatprep.subr.bf16.mxu0 %v8460_v60 }
 0x4d3   : > { %5733 = vmatmul.mubr.bf16.gmra.mrb[88].mxu0 %v4716_v42 }
 0x4d4   : > { %5886 = vmatmul.mubr.bf16.gmra.mrb[116].mxu1 %v10308_v46  ;;  %5740 = vmatprep.mubr.bf16.mxu0 %v10391_v27  ;;  %v4692_v46 = vld [vmem:[#allocation2 + $0x99] sm:$0xff]  ;;  %v4691_v27 = vld [vmem:[#allocation2 + $0x91] sm:$0xff] }
 0x4d5   : > { %5893 = vmatprep.mubr.bf16.mxu1 %v4717_v49  ;;  %8109 = vmatpush3.bf16.msra.mxu0 %v8460_v60  ;;  %v4719_v35 = vpack.c.bf16 %v4692_v46, %v4691_v27 }
 0x4d6   : > { %8110 = vmatprep.subr.bf16.mxu0 %v8461_v24 }
 0x4d9   : > { %8111 = vmatpush3.bf16.msra.mxu0 %v8461_v24  ;;  %v4710_v24 = vld [vmem:[#allocation2 + $0x171] sm:$0xff] }
 0x4da   : > { %8112 = vmatprep.subr.bf16.mxu0 %v8462_v37 }
 0x4db   : > { %5741 = vmatmul.mubr.bf16.gmra.mrb[92].mxu0 %v4717_v49 }
 0x4dc   : > { %5894 = vmatmul.mubr.bf16.gmra.mrb[120].mxu1 %v10335_v19  ;;  %5748 = vmatprep.mubr.bf16.mxu0 %v10421_v44  ;;  %v4696_v19 = vld [vmem:[#allocation2 + $0xc9] sm:$0xff]  ;;  %v4695_v44 = vld [vmem:[#allocation2 + $0xc1] sm:$0xff] }
 0x4dd   : > { %5901 = vmatprep.mubr.bf16.mxu1 %v4718_v48  ;;  %8113 = vmatpush3.bf16.msra.mxu0 %v8462_v37  ;;  %v4721_v57 = vpack.c.bf16 %v4696_v19, %v4695_v44  ;;  %v4617_v19 = vld [vmem:[#allocation2 + $0x182] sm:$0xff]  ;;  %v4618_v44 = vld [vmem:[#allocation2 + $0x18a] sm:$0xff] }
 0x4de   : > { %8114 = vmatprep.subr.bf16.mxu0 %v8463_v2 }
 0x4e1   : > { %8115 = vmatpush3.bf16.msra.mxu0 %v8463_v2 }
 0x4e3   : > { %5749 = vmatmul.mubr.bf16.gmra.mrb[96].mxu0 %v4718_v48 }
 0x4e4   : > { %5902 = vmatmul.mubr.bf16.gmra.mrb[124].mxu1 %v10365_v5  ;;  %5756 = vmatprep.mubr.bf16.mxu0 %v10441_v3  ;;  %v4698_v5 = vld [vmem:[#allocation2 + $0xe1] sm:$0xff]  ;;  %v4697_v3 = vld [vmem:[#allocation2 + $0xd9] sm:$0xff] }
 0x4e5   : > { %5909 = vmatprep.mubr.bf16.mxu1 %v4719_v35  ;;  %v4722_v32 = vpack.c.bf16 %v4698_v5, %v4697_v3 }
 0x4eb   : > { %5757 = vmatmul.mubr.bf16.gmra.mrb[100].mxu0 %v4719_v35 }
 0x4ec   : > { %5910 = vmatmul.mubr.bf16.gmra.mrb[128].mxu1 %v10395_v41  ;;  %5764 = vmatprep.mubr.bf16.mxu0 %v10451_v34  ;;  %v4700_v41 = vld [vmem:[#allocation2 + $0xf9] sm:$0xff]  ;;  %v4699_v34 = vld [vmem:[#allocation2 + $0xf1] sm:$0xff] }
 0x4ed   : > { %5917 = vmatprep.mubr.bf16.mxu1 %v4720_v8  ;;  %v4723_v29 = vpack.c.bf16 %v4700_v41, %v4699_v34 }
 0x4f3   : > { %5765 = vmatmul.mubr.bf16.gmra.mrb[104].mxu0 %v4720_v8 }
 0x4f4   : > { %5918 = vmatmul.mubr.bf16.gmra.mrb[132].mxu1 %v10425_v20  ;;  %5772 = vmatprep.mubr.bf16.mxu0 %v10461_v63  ;;  %v4702_v20 = vld [vmem:[#allocation2 + $0x111] sm:$0xff]  ;;  %v4701_v63 = vld [vmem:[#allocation2 + $0x109] sm:$0xff] }
 0x4f5   : > { %5925 = vmatprep.mubr.bf16.mxu1 %v4721_v57  ;;  %v4724_v59 = vpack.c.bf16 %v4702_v20, %v4701_v63 }
 0x4fb   : > { %5773 = vmatmul.mubr.bf16.gmra.mrb[108].mxu0 %v4721_v57 }
 0x4fc   : > { %5926 = vmatmul.mubr.bf16.gmra.mrb[136].mxu1 %v10444_v15  ;;  %5780 = vmatprep.mubr.bf16.mxu0 %v10471_v13  ;;  %v4704_v15 = vld [vmem:[#allocation2 + $0x129] sm:$0xff]  ;;  %v4703_v13 = vld [vmem:[#allocation2 + $0x121] sm:$0xff] }
 0x4fd   : > { %5933 = vmatprep.mubr.bf16.mxu1 %v4722_v32  ;;  %v4725_v1 = vpack.c.bf16 %v4704_v15, %v4703_v13 }
 0x503   : > { %5781 = vmatmul.mubr.bf16.gmra.mrb[112].mxu0 %v4722_v32  ;;  %v4712_v32 = vld [vmem:[#allocation2 + $0x189] sm:$0xff] }
 0x504   : > { %5934 = vmatmul.mubr.bf16.gmra.mrb[140].mxu1 %v10454_v58  ;;  %5788 = vmatprep.mubr.bf16.mxu0 %v10481_v61  ;;  %v4706_v58 = vld [vmem:[#allocation2 + $0x141] sm:$0xff]  ;;  %v4705_v61 = vld [vmem:[#allocation2 + $0x139] sm:$0xff] }
 0x505   : > { %5941 = vmatprep.mubr.bf16.mxu1 %v4723_v29  ;;  %v4726_v55 = vpack.c.bf16 %v4706_v58, %v4705_v61 }
 0x50b   : > { %5789 = vmatmul.mubr.bf16.gmra.mrb[116].mxu0 %v4723_v29 }
 0x50c   : > { %5942 = vmatmul.mubr.bf16.gmra.mrb[144].mxu1 %v10464_v9  ;;  %5796 = vmatprep.mubr.bf16.mxu0 %v10495_v33  ;;  %v10562_v9 = vld [vmem:[%s10893_s6] ss:$0 sm:$0xff] }
 0x50d   : > { %5949 = vmatprep.mubr.bf16.mxu1 %v4724_v59  ;;  %v5397_v4 = vadd.f32 %v10490_v47, %v10562_v9  ;;  %v5400_v17 = vadd.f32 %v10493_v11, %v10562_v9 }
 0x513   : > { %5797 = vmatmul.mubr.bf16.gmra.mrb[120].mxu0 %v4724_v59  ;;  %v4711_v59 = vld [vmem:[#allocation2 + $0x181] sm:$0xff] }
 0x514   : > { %5950 = vmatmul.mubr.bf16.gmra.mrb[148].mxu1 %v10474_v0  ;;  %5804 = vmatprep.mubr.bf16.mxu0 %v10505_v54  ;;  %v4729_v58 = vpack.c.bf16 %v4712_v32, %v4711_v59  ;;  %v4739_v59 = vld [vmem:[#allocation2 + $0x92] sm:$0xff] }
 0x515   : > { %5957 = vmatprep.mubr.bf16.mxu1 %v4725_v1 }
 0x51b   : > { %5805 = vmatmul.mubr.bf16.gmra.mrb[124].mxu0 %v4725_v1 }
 0x51c   : > { %5958 = vmatmul.mubr.bf16.gmra.mrb[152].mxu1 %v10484_v45  ;;  %5812 = vmatprep.mubr.bf16.mxu0 %v10515_v18 }
 0x51d   : > { %5965 = vmatprep.mubr.bf16.mxu1 %v4726_v55 }
 0x51e   : > { %v7554_v33 = vpop.f32.mrb[20].mxu0 }
 0x51f   : > { %v7660_v53 = vpop.f32.mrb[48].mxu1  ;;  %v7555_v0 = vpop.f32.mrb[21].mxu0 }
 0x520   : > { %v7556_v16 = vadd.f32 %v7555_v0, %v7554_v33  ;;  %v7661_v54 = vpop.f32.mrb[49].mxu1  ;;  %v7557_v22 = vpop.f32.mrb[22].mxu0  ;;  %v4713_v33 = vld [vmem:[#allocation2 + $0x199] sm:$0xff] }
 0x521   : > { %v7662_v14 = vadd.f32 %v7661_v54, %v7660_v53  ;;  %v7663_v45 = vpop.f32.mrb[50].mxu1  ;;  %v7558_v36 = vpop.f32.mrb[23].mxu0  ;;  %v4714_v53 = vld [vmem:[#allocation2 + $0x1a1] sm:$0xff]  ;;  %v4731_v54 = vld [vmem:[#allocation2 + $0x32] sm:$0xff] }
 0x522   : > { %v7559_v18 = vadd.f32 %v7558_v36, %v7557_v22  ;;  %v7664_v43 = vpop.f32.mrb[51].mxu1  ;;  %v5405_v11 = vadd.f32 %v7556_v16, %v10562_v9  ;;  %v4732_v22 = vld [vmem:[#allocation2 + $0x3a] sm:$0xff] }
 0x523   : > { %v10568_v56 = vadd.f32 %v7662_v14, %v5397_v4  ;;  %v7665_v25 = vadd.f32 %v7664_v43, %v7663_v45  ;;  %5813 = vmatmul.mubr.bf16.gmra.mrb[128].mxu0 %v4726_v55  ;;  %v4730_v43 = vpack.c.bf16 %v4714_v53, %v4713_v33 }
 0x524   : > { %5966 = vmatmul.mubr.bf16.gmra.mrb[156].mxu1 %v10498_v12  ;;  %5820 = vmatprep.mubr.bf16.mxu0 %v10525_v62  ;;  %v4709_v12 = vld [vmem:[#allocation2 + $0x169] sm:$0xff]  ;;  %v5408_v62 = vadd.f32 %v7559_v18, %v10562_v9 }
 0x525   : > { %v10572_v50 = vadd.f32 %v7665_v25, %v5400_v17  ;;  %5973 = vmatprep.mubr.bf16.mxu1 %v4727_v39  ;;  %v4728_v27 = vpack.c.bf16 %v4710_v24, %v4709_v12  ;;  %v4763_v25 = vpack.c.bf16 %v4732_v22, %v4731_v54  ;;  %v4734_v24 = vld [vmem:[#allocation2 + $0x52] sm:$0xff] }
 0x526   : > { %v7560_v47 = vpop.f32.mrb[24].mxu0 }
 0x527   : > { %v7666_v26 = vpop.f32.mrb[52].mxu1  ;;  %v7561_v42 = vpop.f32.mrb[25].mxu0 }
 0x528   : > { %v7562_v60 = vadd.f32 %v7561_v42, %v7560_v47  ;;  %v7667_v51 = vpop.f32.mrb[53].mxu1  ;;  %v7563_v31 = vpop.f32.mrb[26].mxu0 }
 0x529   : > { %v7668_v49 = vadd.f32 %v7667_v51, %v7666_v26  ;;  %v7669_v37 = vpop.f32.mrb[54].mxu1  ;;  %v7564_v10 = vpop.f32.mrb[27].mxu0 }
 0x52a   : > { %v7565_v6 = vadd.f32 %v7564_v10, %v7563_v31  ;;  %v7670_v2 = vpop.f32.mrb[55].mxu1  ;;  %v5413_v41 = vadd.f32 %v7562_v60, %v10562_v9  ;;  %v4665_v60 = vld [vmem:[#allocation2 + $0x198] sm:$0xff]  ;;  %v4733_v31 = vld [vmem:[#allocation2 + $0x4a] sm:$0xff] }
 0x52b   : > { %v10576_v48 = vadd.f32 %v7668_v49, %v5405_v11  ;;  %v7671_v46 = vadd.f32 %v7670_v2, %v7669_v37  ;;  %5821 = vmatmul.mubr.bf16.gmra.mrb[132].mxu0 %v4727_v39  ;;  %v4735_v37 = vld [vmem:[#allocation2 + $0x62] sm:$0xff]  ;;  %v4736_v10 = vld [vmem:[#allocation2 + $0x6a] sm:$0xff] }
 0x52c   : > { %5974 = vmatmul.mubr.bf16.gmra.mrb[160].mxu1 %v10508_v23  ;;  %5828 = vmatprep.mubr.bf16.mxu0 %v10533_v7  ;;  %v10583_v7 = vpack.c.bf16 %v4618_v44, %v4617_v19  ;;  %v5416_v15 = vadd.f32 %v7565_v6, %v10562_v9 }
 0x52d   : > { %v10580_v35 = vadd.f32 %v7671_v46, %v5408_v62  ;;  %5981 = vmatprep.mubr.bf16.mxu1 %v4728_v27  ;;  %v8530_v62 = vld [vmem:[#allocation2 + $0x8] sm:$0xff] }
 0x52e   : > { %v7566_v28 = vpop.f32.mrb[28].mxu0  ;;  %v4682_v46 = vpack.c.bf16 %v8530_v62, %v4665_v60 }
 0x52f   : > { %v7672_v30 = vpop.f32.mrb[56].mxu1  ;;  %v7567_v8 = vpop.f32.mrb[29].mxu0 }
 0x530   : > { %v7568_v57 = vadd.f32 %v7567_v8, %v7566_v28  ;;  %v7673_v5 = vpop.f32.mrb[57].mxu1  ;;  %v7569_v3 = vpop.f32.mrb[30].mxu0  ;;  %v4764_v8 = vpack.c.bf16 %v4734_v24, %v4733_v31 }
 0x531   : > { %v7674_v34 = vadd.f32 %v7673_v5, %v7672_v30  ;;  %v7675_v29 = vpop.f32.mrb[58].mxu1  ;;  %v7570_v20 = vpop.f32.mrb[31].mxu0 }
 0x532   : > { %v7571_v23 = vadd.f32 %v7570_v20, %v7569_v3  ;;  %v7676_v63 = vpop.f32.mrb[59].mxu1  ;;  %v5421_v45 = vadd.f32 %v7568_v57, %v10562_v9  ;;  %v4765_v57 = vpack.c.bf16 %v4736_v10, %v4735_v37  ;;  %v4738_v20 = vld [vmem:[#allocation2 + $0x82] sm:$0xff] }
 0x533   : > { %v10586_v13 = vadd.f32 %v7674_v34, %v5413_v41  ;;  %v7677_v1 = vadd.f32 %v7676_v63, %v7675_v29  ;;  %5829 = vmatmul.mubr.bf16.gmra.mrb[136].mxu0 %v4728_v27  ;;  %v4737_v29 = vld [vmem:[#allocation2 + $0x7a] sm:$0xff] }
 0x534   : > { %5982 = vmatmul.mubr.bf16.gmra.mrb[164].mxu1 %v10518_v40  ;;  %5836 = vmatprep.mubr.bf16.mxu0 %v10583_v7  ;;  %v5424_v39 = vadd.f32 %v7571_v23, %v10562_v9  ;;  %v4766_v54 = vpack.c.bf16 %v4738_v20, %v4737_v29 }
 0x535   : > { %v10590_v61 = vadd.f32 %v7677_v1, %v5416_v15  ;;  %5989 = vmatprep.mubr.bf16.mxu1 %v4729_v58  ;;  %v4740_v15 = vld [vmem:[#allocation2 + $0x9a] sm:$0xff] }
 0x536   : > { %v7572_v55 = vpop.f32.mrb[32].mxu0 }
 0x537   : > { %v7678_v0 = vpop.f32.mrb[60].mxu1  ;;  %v7573_v16 = vpop.f32.mrb[33].mxu0 }
 0x538   : > { %v7574_v52 = vadd.f32 %v7573_v16, %v7572_v55  ;;  %v7679_v4 = vpop.f32.mrb[61].mxu1  ;;  %v7575_v14 = vpop.f32.mrb[34].mxu0 }
 0x539   : > { %v7680_v36 = vadd.f32 %v7679_v4, %v7678_v0  ;;  %v7681_v18 = vpop.f32.mrb[62].mxu1  ;;  %v7576_v40 = vpop.f32.mrb[35].mxu0  ;;  %v4767_v4 = vpack.c.bf16 %v4740_v15, %v4739_v59 }
 0x53a   : > { %v7577_v21 = vadd.f32 %v7576_v40, %v7575_v14  ;;  %v7682_v17 = vpop.f32.mrb[63].mxu1  ;;  %v5429_v27 = vadd.f32 %v7574_v52, %v10562_v9 }
 0x53b   : > { %v10594_v47 = vadd.f32 %v7680_v36, %v5421_v45  ;;  %v7683_v26 = vadd.f32 %v7682_v17, %v7681_v18  ;;  %5837 = vmatmul.mubr.bf16.gmra.mrb[140].mxu0 %v4729_v58 }
 0x53c   : > { %5990 = vmatmul.mubr.bf16.gmra.mrb[168].mxu1 %v10528_v38  ;;  %8116 = vmatprep.mubr.bf16.mxu0 %v4763_v25  ;;  %v5432_v5 = vadd.f32 %v7577_v21, %v10562_v9  ;;  %v4742_v21 = vld [vmem:[#allocation2 + $0xb2] sm:$0xff] }
 0x53d   : > { %v10597_v42 = vadd.f32 %v7683_v26, %v5424_v39  ;;  %5997 = vmatprep.mubr.bf16.mxu1 %v4730_v43  ;;  %v4741_v43 = vld [vmem:[#allocation2 + $0xaa] sm:$0xff]  ;;  %v4743_v39 = vld [vmem:[#allocation2 + $0xc2] sm:$0xff] }
 0x53e   : > { %v7578_v51 = vpop.f32.mrb[36].mxu0  ;;  %v4744_v26 = vld [vmem:[#allocation2 + $0xca] sm:$0xff]  ;;  %v4768_v10 = vpack.c.bf16 %v4742_v21, %v4741_v43 }
 0x53f   : > { %v7684_v11 = vpop.f32.mrb[64].mxu1  ;;  %v7579_v49 = vpop.f32.mrb[37].mxu0 }
 0x540   : > { %v7580_v6 = vadd.f32 %v7579_v49, %v7578_v51  ;;  %v7685_v2 = vpop.f32.mrb[65].mxu1  ;;  %v7581_v12 = vpop.f32.mrb[38].mxu0 }
 0x541   : > { %v7686_v38 = vadd.f32 %v7685_v2, %v7684_v11  ;;  %v7687_v28 = vpop.f32.mrb[66].mxu1  ;;  %v7582_v30 = vpop.f32.mrb[39].mxu0 }
 0x542   : > { %v7583_v19 = vadd.f32 %v7582_v30, %v7581_v12  ;;  %v7688_v44 = vpop.f32.mrb[67].mxu1  ;;  %v5437_v33 = vadd.f32 %v7580_v6, %v10562_v9  ;;  %v4769_v12 = vpack.c.bf16 %v4744_v26, %v4743_v39  ;;  %v4745_v30 = vld [vmem:[#allocation2 + $0xda] sm:$0xff] }
 0x543   : > { %v10601_v3 = vadd.f32 %v7686_v38, %v5429_v27  ;;  %v7689_v32 = vadd.f32 %v7688_v44, %v7687_v28  ;;  %8117 = vmatmul.mubr.bf16.vlgmr.msra.gmra.mrb[144].mxu0 %v4764_v8  ;;  %v4746_v8 = vld [vmem:[#allocation2 + $0xe2] sm:$0xff] }
 0x544   : > { %5998 = vmatmul.mubr.bf16.gmra.mrb[172].mxu1 %v4682_v46  ;;  %8120 = vmatprep.mubr.bf16.mxu0 %v4765_v57  ;;  %v5440_v14 = vadd.f32 %v7583_v19, %v10562_v9  ;;  %v4747_v57 = vld [vmem:[#allocation2 + $0xf2] sm:$0xff]  ;;  %v4770_v15 = vpack.c.bf16 %v4746_v8, %v4745_v30  ;;  %v4756_v8 = vld [vmem:[#allocation2 + $0x15a] sm:$0xff] }
 0x545   : > { %v10603_v41 = vadd.f32 %v7689_v32, %v5432_v5  ;;  %v4748_v5 = vld [vmem:[#allocation2 + $0xfa] sm:$0xff]  ;;  %v4755_v30 = vld [vmem:[#allocation2 + $0x152] sm:$0xff] }
 0x546   : > { %v7584_v34 = vpop.f32.mrb[40].mxu0 }
 0x547   : > { %v7690_v23 = vpop.f32.mrb[68].mxu1  ;;  %v7585_v63 = vpop.f32.mrb[41].mxu0 }
 0x548   : > { %v7586_v1 = vadd.f32 %v7585_v63, %v7584_v34  ;;  %v7691_v58 = vpop.f32.mrb[69].mxu1  ;;  %v7587_v55 = vpop.f32.mrb[42].mxu0 }
 0x549   : > { %v7692_v53 = vadd.f32 %v7691_v58, %v7690_v23  ;;  %v7693_v0 = vpop.f32.mrb[70].mxu1  ;;  %v7588_v16 = vpop.f32.mrb[43].mxu0 }
 0x54a   : > { %v7589_v22 = vadd.f32 %v7588_v16, %v7587_v55  ;;  %v7694_v52 = vpop.f32.mrb[71].mxu1  ;;  %v5445_v24 = vadd.f32 %v7586_v1, %v10562_v9  ;;  %v4771_v55 = vpack.c.bf16 %v4748_v5, %v4747_v57 }
 0x54b   : > { %v10607_v45 = vadd.f32 %v7692_v53, %v5437_v33  ;;  %v7695_v36 = vadd.f32 %v7694_v52, %v7693_v0  ;;  %8121 = vmatmul.mubr.bf16.gmra.mrb[148].mxu0 %v4766_v54  ;;  %v4750_v52 = vld [vmem:[#allocation2 + $0x112] sm:$0xff] }
 0x54c   : > { %8124 = vmatprep.mubr.bf16.mxu0 %v4767_v4  ;;  %v5448_v62 = vadd.f32 %v7589_v22, %v10562_v9  ;;  %v4749_v22 = vld [vmem:[#allocation2 + $0x10a] sm:$0xff] }
 0x54d   : > { %v10609_v18 = vadd.f32 %v7695_v36, %v5440_v14  ;;  %v4751_v36 = vld [vmem:[#allocation2 + $0x122] sm:$0xff] }
 0x54e   : > { %v7590_v40 = vpop.f32.mrb[44].mxu0 }
 0x54f   : > { %v7696_v17 = vpop.f32.mrb[72].mxu1  ;;  %v7591_v25 = vpop.f32.mrb[45].mxu0 }
 0x550   : > { %v7592_v60 = vadd.f32 %v7591_v25, %v7590_v40  ;;  %v7697_v51 = vpop.f32.mrb[73].mxu1  ;;  %v7593_v31 = vpop.f32.mrb[46].mxu0  ;;  %v4752_v40 = vld [vmem:[#allocation2 + $0x12a] sm:$0xff] }
 0x551   : > { %v7698_v11 = vadd.f32 %v7697_v51, %v7696_v17  ;;  %v7699_v49 = vpop.f32.mrb[74].mxu1  ;;  %v7594_v37 = vpop.f32.mrb[47].mxu0  ;;  %v4772_v51 = vpack.c.bf16 %v4750_v52, %v4749_v22 }
 0x552   : > { %v7595_v6 = vadd.f32 %v7594_v37, %v7593_v31  ;;  %v7700_v2 = vpop.f32.mrb[75].mxu1  ;;  %v5453_v20 = vadd.f32 %v7592_v60, %v10562_v9 }
 0x553   : > { %v10613_v46 = vadd.f32 %v7698_v11, %v5445_v24  ;;  %v7701_v27 = vadd.f32 %v7700_v2, %v7699_v49  ;;  %8125 = vmatmul.mubr.bf16.gmra.mrb[152].mxu0 %v4768_v10  ;;  %v4773_v11 = vpack.c.bf16 %v4752_v40, %v4751_v36 }
 0x554   : > { %8128 = vmatprep.mubr.bf16.mxu0 %v4769_v12  ;;  %v5456_v33 = vadd.f32 %v7595_v6, %v10562_v9  ;;  %v4753_v12 = vld [vmem:[#allocation2 + $0x13a] sm:$0xff] }
 0x555   : > { %v10615_v38 = vadd.f32 %v7701_v27, %v5448_v62  ;;  %v4754_v62 = vld [vmem:[#allocation2 + $0x142] sm:$0xff] }
 0x556   : > { %v7596_v28 = vpop.f32.mrb[48].mxu0 }
 0x557   : > { %v7702_v19 = vpop.f32.mrb[76].mxu1  ;;  %v7597_v44 = vpop.f32.mrb[49].mxu0 }
 0x558   : > { %v7598_v32 = vadd.f32 %v7597_v44, %v7596_v28  ;;  %v7703_v34 = vpop.f32.mrb[77].mxu1  ;;  %v7599_v29 = vpop.f32.mrb[50].mxu0 }
 0x559   : > { %v7704_v23 = vadd.f32 %v7703_v34, %v7702_v19  ;;  %v7705_v63 = vpop.f32.mrb[78].mxu1  ;;  %v7600_v59 = vpop.f32.mrb[51].mxu0 }
 0x55a   : > { %v7601_v1 = vadd.f32 %v7600_v59, %v7599_v29  ;;  %v7706_v58 = vpop.f32.mrb[79].mxu1  ;;  %v5461_v25 = vadd.f32 %v7598_v32, %v10562_v9  ;;  %v4775_v59 = vpack.c.bf16 %v4756_v8, %v4755_v30 }
 0x55b   : > { %v10619_v53 = vadd.f32 %v7704_v23, %v5453_v20  ;;  %v7707_v0 = vadd.f32 %v7706_v58, %v7705_v63  ;;  %8129 = vmatmul.mubr.bf16.gmra.mrb[156].mxu0 %v4770_v15  ;;  %v4774_v20 = vpack.c.bf16 %v4754_v62, %v4753_v12 }
 0x55c   : > { %8132 = vmatprep.mubr.bf16.mxu0 %v4771_v55  ;;  %v5464_v49 = vadd.f32 %v7601_v1, %v10562_v9 }
 0x55d   : > { %v10621_v16 = vadd.f32 %v7707_v0, %v5456_v33  ;;  %v4757_v0 = vld [vmem:[#allocation2 + $0x16a] sm:$0xff] }
 0x55e   : > { %v7602_v54 = vpop.f32.mrb[52].mxu0 }
 0x55f   : > { %v7708_v4 = vpop.f32.mrb[80].mxu1  ;;  %v7603_v14 = vpop.f32.mrb[53].mxu0 }
 0x560   : > { %v7604_v43 = vadd.f32 %v7603_v14, %v7602_v54  ;;  %v7709_v21 = vpop.f32.mrb[81].mxu1  ;;  %v7605_v17 = vpop.f32.mrb[54].mxu0  ;;  %v4758_v54 = vld [vmem:[#allocation2 + $0x172] sm:$0xff] }
 0x561   : > { %v7710_v39 = vadd.f32 %v7709_v21, %v7708_v4  ;;  %v7711_v26 = vpop.f32.mrb[82].mxu1  ;;  %v7606_v60 = vpop.f32.mrb[55].mxu0 }
 0x562   : > { %v7607_v31 = vadd.f32 %v7606_v60, %v7605_v17  ;;  %v7712_v24 = vpop.f32.mrb[83].mxu1  ;;  %v5469_v5 = vadd.f32 %v7604_v43, %v10562_v9 }
 0x563   : > { %v10625_v37 = vadd.f32 %v7710_v39, %v5461_v25  ;;  %v7713_v10 = vadd.f32 %v7712_v24, %v7711_v26  ;;  %8133 = vmatmul.mubr.bf16.gmra.mrb[160].mxu0 %v4772_v51  ;;  %v4776_v25 = vpack.c.bf16 %v4758_v54, %v4757_v0  ;;  %v4761_v24 = vld [vmem:[#allocation2 + $0x19a] sm:$0xff] }
 0x564   : > { %8136 = vmatprep.mubr.bf16.mxu0 %v4773_v11  ;;  %v5472_v15 = vadd.f32 %v7607_v31, %v10562_v9  ;;  %v4762_v11 = vld [vmem:[#allocation2 + $0x1a2] sm:$0xff] }
 0x565   : > { %v10627_v6 = vadd.f32 %v7713_v10, %v5464_v49  ;;  %v4778_v62 = vpack.c.bf16 %v4762_v11, %v4761_v24 }
 0x566   : > { %v7608_v2 = vpop.f32.mrb[56].mxu0 }
 0x567   : > { %v7714_v27 = vpop.f32.mrb[84].mxu1  ;;  %v7609_v28 = vpop.f32.mrb[57].mxu0 }
 0x568   : > { %v7610_v19 = vadd.f32 %v7609_v28, %v7608_v2  ;;  %v7715_v44 = vpop.f32.mrb[85].mxu1  ;;  %v7611_v57 = vpop.f32.mrb[58].mxu0 }
 0x569   : > { %v7716_v32 = vadd.f32 %v7715_v44, %v7714_v27  ;;  %v7717_v34 = vpop.f32.mrb[86].mxu1  ;;  %v7612_v29 = vpop.f32.mrb[59].mxu0 }
 0x56a   : > { %v7613_v23 = vadd.f32 %v7612_v29, %v7611_v57  ;;  %v7718_v63 = vpop.f32.mrb[87].mxu1  ;;  %v5477_v40 = vadd.f32 %v7610_v19, %v10562_v9 }
 0x56b   : > { %v10631_v1 = vadd.f32 %v7716_v32, %v5469_v5  ;;  %v7719_v58 = vadd.f32 %v7718_v63, %v7717_v34  ;;  %8137 = vmatmul.mubr.bf16.gmra.mrb[164].mxu0 %v4774_v20 }
 0x56c   : > { %8140 = vmatprep.mubr.bf16.mxu0 %v4775_v59  ;;  %v5480_v60 = vadd.f32 %v7613_v23, %v10562_v9 }
 0x56d   : > { %v10633_v55 = vadd.f32 %v7719_v58, %v5472_v15 }
 0x56e   : > { %v7614_v33 = vpop.f32.mrb[60].mxu0 }
 0x56f   : > { %v7720_v22 = vpop.f32.mrb[88].mxu1  ;;  %v7615_v52 = vpop.f32.mrb[61].mxu0 }
 0x570   : > { %v7616_v4 = vadd.f32 %v7615_v52, %v7614_v33  ;;  %v7721_v14 = vpop.f32.mrb[89].mxu1  ;;  %v7617_v36 = vpop.f32.mrb[62].mxu0 }
 0x571   : > { %v7722_v43 = vadd.f32 %v7721_v14, %v7720_v22  ;;  %v7723_v21 = vpop.f32.mrb[90].mxu1  ;;  %v7618_v17 = vpop.f32.mrb[63].mxu0 }
 0x572   : > { %v7619_v39 = vadd.f32 %v7618_v17, %v7617_v36  ;;  %v7724_v26 = vpop.f32.mrb[91].mxu1  ;;  %v5485_v8 = vadd.f32 %v7616_v4, %v10562_v9 }
 0x573   : > { %v10637_v51 = vadd.f32 %v7722_v43, %v5477_v40  ;;  %v7725_v31 = vadd.f32 %v7724_v26, %v7723_v21  ;;  %8141 = vmatmul.mubr.bf16.gmra.mrb[168].mxu0 %v4776_v25 }
 0x574   : > { %8144 = vmatprep.mubr.bf16.mxu0 %v10583_v7  ;;  %v5488_v7 = vadd.f32 %v7619_v39, %v10562_v9 }
 0x575   : > { %v10640_v49 = vadd.f32 %v7725_v31, %v5480_v60 }
 0x576   : > { %v7620_v10 = vpop.f32.mrb[64].mxu0 }
 0x577   : > { %v7726_v2 = vpop.f32.mrb[92].mxu1  ;;  %v7621_v12 = vpop.f32.mrb[65].mxu0 }
 0x578   : > { %v7622_v27 = vadd.f32 %v7621_v12, %v7620_v10  ;;  %v7727_v28 = vpop.f32.mrb[93].mxu1  ;;  %v7623_v30 = vpop.f32.mrb[66].mxu0 }
 0x579   : > { %v7728_v19 = vadd.f32 %v7727_v28, %v7726_v2  ;;  %v7729_v44 = vpop.f32.mrb[94].mxu1  ;;  %v7624_v57 = vpop.f32.mrb[67].mxu0 }
 0x57a   : > { %v7625_v5 = vadd.f32 %v7624_v57, %v7623_v30  ;;  %v7730_v32 = vpop.f32.mrb[95].mxu1  ;;  %v5493_v0 = vadd.f32 %v7622_v27, %v10562_v9 }
 0x57b   : > { %v10644_v34 = vadd.f32 %v7728_v19, %v5485_v8  ;;  %v7731_v29 = vadd.f32 %v7730_v32, %v7729_v44  ;;  %8145 = vmatmul.mubr.bf16.gmra.mrb[172].mxu0 %v4778_v62 }
 0x57c   : > { %v5496_v36 = vadd.f32 %v7625_v5, %v10562_v9 }
 0x57d   : > { %v10646_v20 = vadd.f32 %v7731_v29, %v5488_v7 }
 0x57e   : > { %v7626_v23 = vpop.f32.mrb[68].mxu0 }
 0x57f   : > { %v7732_v63 = vpop.f32.mrb[96].mxu1  ;;  %v7627_v59 = vpop.f32.mrb[69].mxu0 }
 0x580   : > { %v7628_v15 = vadd.f32 %v7627_v59, %v7626_v23  ;;  %v7733_v58 = vpop.f32.mrb[97].mxu1  ;;  %v7629_v33 = vpop.f32.mrb[70].mxu0 }
 0x581   : > { %v7734_v54 = vadd.f32 %v7733_v58, %v7732_v63  ;;  %v7735_v22 = vpop.f32.mrb[98].mxu1  ;;  %v7630_v52 = vpop.f32.mrb[71].mxu0 }
 0x582   : > { %v7631_v4 = vadd.f32 %v7630_v52, %v7629_v33  ;;  %v7736_v14 = vpop.f32.mrb[99].mxu1  ;;  %v5501_v24 = vadd.f32 %v7628_v15, %v10562_v9 }
 0x583   : > { %v10650_v40 = vadd.f32 %v7734_v54, %v5493_v0  ;;  %v7737_v43 = vadd.f32 %v7736_v14, %v7735_v22 }
 0x584   : > { %v5504_v27 = vadd.f32 %v7631_v4, %v10562_v9 }
 0x585   : > { %v10652_v21 = vadd.f32 %v7737_v43, %v5496_v36 }
 0x586   : > { %v7632_v17 = vpop.f32.mrb[72].mxu0 }
 0x587   : > { %v7738_v25 = vpop.f32.mrb[100].mxu1  ;;  %v7633_v39 = vpop.f32.mrb[73].mxu0 }
 0x588   : > { %v7634_v26 = vadd.f32 %v7633_v39, %v7632_v17  ;;  %v7739_v60 = vpop.f32.mrb[101].mxu1  ;;  %v7635_v31 = vpop.f32.mrb[74].mxu0 }
 0x589   : > { %v7740_v11 = vadd.f32 %v7739_v60, %v7738_v25  ;;  %v7741_v10 = vpop.f32.mrb[102].mxu1  ;;  %v7636_v2 = vpop.f32.mrb[75].mxu0 }
 0x58a   : > { %v7637_v12 = vadd.f32 %v7636_v2, %v7635_v31  ;;  %v7742_v62 = vpop.f32.mrb[103].mxu1  ;;  %v5509_v29 = vadd.f32 %v7634_v26, %v10562_v9 }
 0x58b   : > { %v10656_v28 = vadd.f32 %v7740_v11, %v5501_v24  ;;  %v7743_v30 = vadd.f32 %v7742_v62, %v7741_v10 }
 0x58c   : > { %v5512_v33 = vadd.f32 %v7637_v12, %v10562_v9 }
 0x58d   : > { %v10658_v8 = vadd.f32 %v7743_v30, %v5504_v27 }
 0x58e   : > { %v7638_v19 = vpop.f32.mrb[76].mxu0 }
 0x58f   : > { %v7744_v44 = vpop.f32.mrb[104].mxu1  ;;  %v7639_v57 = vpop.f32.mrb[77].mxu0 }
 0x590   : > { %v7640_v5 = vadd.f32 %v7639_v57, %v7638_v19  ;;  %v7745_v32 = vpop.f32.mrb[105].mxu1  ;;  %v7641_v7 = vpop.f32.mrb[78].mxu0 }
 0x591   : > { %v7746_v23 = vadd.f32 %v7745_v32, %v7744_v44  ;;  %v7747_v63 = vpop.f32.mrb[106].mxu1  ;;  %v7642_v59 = vpop.f32.mrb[79].mxu0 }
 0x592   : > { %v7643_v15 = vadd.f32 %v7642_v59, %v7641_v7  ;;  %v7748_v58 = vpop.f32.mrb[107].mxu1  ;;  %v5517_v25 = vadd.f32 %v7640_v5, %v10562_v9 }
 0x593   : > { %v10662_v0 = vadd.f32 %v7746_v23, %v5509_v29  ;;  %v7749_v54 = vadd.f32 %v7748_v58, %v7747_v63 }
 0x594   : > { %v5520_v10 = vadd.f32 %v7643_v15, %v10562_v9 }
 0x595   : > { %v10664_v22 = vadd.f32 %v7749_v54, %v5512_v33 }
 0x596   : > { %v7772_v52 = vpop.f32.mrb[80].mxu0 }
 0x597   : > { %v7750_v4 = vpop.f32.mrb[108].mxu1  ;;  %v7773_v14 = vpop.f32.mrb[81].mxu0 }
 0x598   : > { %v7751_v36 = vpop.f32.mrb[109].mxu1  ;;  %v7774_v43 = vadd.f32 %v7773_v14, %v7772_v52  ;;  %v7775_v17 = vpop.f32.mrb[82].mxu0 }
 0x599   : > { %v7752_v39 = vadd.f32 %v7751_v36, %v7750_v4  ;;  %v7753_v26 = vpop.f32.mrb[110].mxu1  ;;  %v7776_v60 = vpop.f32.mrb[83].mxu0 }
 0x59a   : > { %v5719_v31 = vadd.f32 %v7774_v43, %v10568_v56  ;;  %v7754_v24 = vpop.f32.mrb[111].mxu1  ;;  %v7777_v11 = vadd.f32 %v7776_v60, %v7775_v17 }
 0x59b   : > { %v10669_v2 = vadd.f32 %v7752_v39, %v5517_v25  ;;  %v7755_v12 = vadd.f32 %v7754_v24, %v7753_v26 }
 0x59c   : > { %v5722_v62 = vadd.f32 %v7777_v11, %v10572_v50 }
 0x59d   : > { %v10672_v27 = vadd.f32 %v7755_v12, %v5520_v10 }
 0x59e   : > { %v7778_v30 = vpop.f32.mrb[84].mxu0 }
 0x59f   : > { %v7884_v19 = vpop.f32.mrb[112].mxu1  ;;  %v7779_v44 = vpop.f32.mrb[85].mxu0 }
 0x5a0   : > { %v7780_v57 = vadd.f32 %v7779_v44, %v7778_v30  ;;  %v7885_v5 = vpop.f32.mrb[113].mxu1  ;;  %v7781_v32 = vpop.f32.mrb[86].mxu0 }
 0x5a1   : > { %v7886_v7 = vadd.f32 %v7885_v5, %v7884_v19  ;;  %v7887_v29 = vpop.f32.mrb[114].mxu1  ;;  %v7782_v56 = vpop.f32.mrb[87].mxu0 }
 0x5a2   : > { %v5727_v23 = vadd.f32 %v7780_v57, %v10576_v48  ;;  %v7783_v63 = vadd.f32 %v7782_v56, %v7781_v32  ;;  %v7888_v9 = vpop.f32.mrb[115].mxu1 }
 0x5a3   : > { %v7889_v59 = vadd.f32 %v7888_v9, %v7887_v29  ;;  %v10675_v15 = vadd.f32 %v7886_v7, %v5719_v31 }
 0x5a4   : > { %v5730_v50 = vadd.f32 %v7783_v63, %v10580_v35 }
 0x5a5   : > { %v10678_v58 = vadd.f32 %v7889_v59, %v5722_v62 }
 0x5a6   : > { %v7784_v33 = vpop.f32.mrb[88].mxu0 }
 0x5a7   : > { %v7890_v54 = vpop.f32.mrb[116].mxu1  ;;  %v7785_v52 = vpop.f32.mrb[89].mxu0 }
 0x5a8   : > { %v7786_v4 = vadd.f32 %v7785_v52, %v7784_v33  ;;  %v7891_v14 = vpop.f32.mrb[117].mxu1  ;;  %v7787_v36 = vpop.f32.mrb[90].mxu0 }
 0x5a9   : > { %v7892_v43 = vadd.f32 %v7891_v14, %v7890_v54  ;;  %v7893_v17 = vpop.f32.mrb[118].mxu1  ;;  %v7788_v25 = vpop.f32.mrb[91].mxu0 }
 0x5aa   : > { %v5735_v48 = vadd.f32 %v7786_v4, %v10586_v13  ;;  %v7789_v39 = vadd.f32 %v7788_v25, %v7787_v36  ;;  %v7894_v26 = vpop.f32.mrb[119].mxu1 }
 0x5ab   : > { %v7895_v60 = vadd.f32 %v7894_v26, %v7893_v17  ;;  %v10681_v31 = vadd.f32 %v7892_v43, %v5727_v23 }
 0x5ac   : > { %v5738_v35 = vadd.f32 %v7789_v39, %v10590_v61 }
 0x5ad   : > { %v10684_v24 = vadd.f32 %v7895_v60, %v5730_v50 }
 0x5ae   : > { %v7790_v11 = vpop.f32.mrb[92].mxu0 }
 0x5af   : > { %v7896_v10 = vpop.f32.mrb[120].mxu1  ;;  %v7791_v12 = vpop.f32.mrb[93].mxu0 }
 0x5b0   : > { %v7792_v62 = vadd.f32 %v7791_v12, %v7790_v11  ;;  %v7897_v30 = vpop.f32.mrb[121].mxu1  ;;  %v7793_v19 = vpop.f32.mrb[94].mxu0 }
 0x5b1   : > { %v7898_v44 = vadd.f32 %v7897_v30, %v7896_v10  ;;  %v7899_v57 = vpop.f32.mrb[122].mxu1  ;;  %v7794_v5 = vpop.f32.mrb[95].mxu0 }
 0x5b2   : > { %v5743_v13 = vadd.f32 %v7792_v62, %v10594_v47  ;;  %v7795_v32 = vadd.f32 %v7794_v5, %v7793_v19  ;;  %v7900_v7 = vpop.f32.mrb[123].mxu1 }
 0x5b3   : > { %v7901_v29 = vadd.f32 %v7900_v7, %v7899_v57  ;;  %v10687_v56 = vadd.f32 %v7898_v44, %v5735_v48 }
 0x5b4   : > { %v5746_v61 = vadd.f32 %v7795_v32, %v10597_v42 }
 0x5b5   : > { %v10690_v23 = vadd.f32 %v7901_v29, %v5738_v35 }
 0x5b6   : > { %v7796_v63 = vpop.f32.mrb[96].mxu0 }
 0x5b7   : > { %v7902_v9 = vpop.f32.mrb[124].mxu1  ;;  %v7797_v59 = vpop.f32.mrb[97].mxu0 }
 0x5b8   : > { %v7798_v50 = vadd.f32 %v7797_v59, %v7796_v63  ;;  %v7903_v33 = vpop.f32.mrb[125].mxu1  ;;  %v7799_v54 = vpop.f32.mrb[98].mxu0 }
 0x5b9   : > { %v7904_v52 = vadd.f32 %v7903_v33, %v7902_v9  ;;  %v7905_v4 = vpop.f32.mrb[126].mxu1  ;;  %v7800_v14 = vpop.f32.mrb[99].mxu0 }
 0x5ba   : > { %v5751_v47 = vadd.f32 %v7798_v50, %v10601_v3  ;;  %v7801_v36 = vadd.f32 %v7800_v14, %v7799_v54  ;;  %v7906_v43 = vpop.f32.mrb[127].mxu1 }
 0x5bb   : > { %v7907_v17 = vadd.f32 %v7906_v43, %v7905_v4  ;;  %v10693_v25 = vadd.f32 %v7904_v52, %v5743_v13 }
 0x5bc   : > { %v5754_v42 = vadd.f32 %v7801_v36, %v10603_v41 }
 0x5bd   : > { %v10696_v48 = vadd.f32 %v7907_v17, %v5746_v61 }
 0x5be   : > { %v7802_v39 = vpop.f32.mrb[100].mxu0 }
 0x5bf   : > { %v7908_v26 = vpop.f32.mrb[128].mxu1  ;;  %v7803_v60 = vpop.f32.mrb[101].mxu0 }
 0x5c0   : > { %v7804_v35 = vadd.f32 %v7803_v60, %v7802_v39  ;;  %v7909_v11 = vpop.f32.mrb[129].mxu1  ;;  %v7805_v10 = vpop.f32.mrb[102].mxu0 }
 0x5c1   : > { %v7910_v12 = vadd.f32 %v7909_v11, %v7908_v26  ;;  %v7911_v62 = vpop.f32.mrb[130].mxu1  ;;  %v7806_v30 = vpop.f32.mrb[103].mxu0 }
 0x5c2   : > { %v5759_v3 = vadd.f32 %v7804_v35, %v10607_v45  ;;  %v7807_v19 = vadd.f32 %v7806_v30, %v7805_v10  ;;  %v7912_v44 = vpop.f32.mrb[131].mxu1 }
 0x5c3   : > { %v7913_v57 = vadd.f32 %v7912_v44, %v7911_v62  ;;  %v10699_v5 = vadd.f32 %v7910_v12, %v5751_v47 }
 0x5c4   : > { %v5762_v41 = vadd.f32 %v7807_v19, %v10609_v18 }
 0x5c5   : > { %v10702_v13 = vadd.f32 %v7913_v57, %v5754_v42 }
 0x5c6   : > { %v7808_v32 = vpop.f32.mrb[104].mxu0 }
 0x5c7   : > { %v7914_v7 = vpop.f32.mrb[132].mxu1  ;;  %v7809_v29 = vpop.f32.mrb[105].mxu0 }
 0x5c8   : > { %v7810_v61 = vadd.f32 %v7809_v29, %v7808_v32  ;;  %v7915_v63 = vpop.f32.mrb[133].mxu1  ;;  %v7811_v9 = vpop.f32.mrb[106].mxu0 }
 0x5c9   : > { %v7916_v59 = vadd.f32 %v7915_v63, %v7914_v7  ;;  %v7917_v50 = vpop.f32.mrb[134].mxu1  ;;  %v7812_v33 = vpop.f32.mrb[107].mxu0 }
 0x5ca   : > { %v5767_v45 = vadd.f32 %v7810_v61, %v10613_v46  ;;  %v7813_v54 = vadd.f32 %v7812_v33, %v7811_v9  ;;  %v7918_v52 = vpop.f32.mrb[135].mxu1 }
 0x5cb   : > { %v7919_v4 = vadd.f32 %v7918_v52, %v7917_v50  ;;  %v10705_v14 = vadd.f32 %v7916_v59, %v5759_v3 }
 0x5cc   : > { %v5770_v18 = vadd.f32 %v7813_v54, %v10615_v38 }
 0x5cd   : > { %v10708_v47 = vadd.f32 %v7919_v4, %v5762_v41 }
 0x5ce   : > { %v7814_v36 = vpop.f32.mrb[108].mxu0 }
 0x5cf   : > { %v7920_v43 = vpop.f32.mrb[136].mxu1  ;;  %v7815_v17 = vpop.f32.mrb[109].mxu0 }
 0x5d0   : > { %v7816_v42 = vadd.f32 %v7815_v17, %v7814_v36  ;;  %v7921_v39 = vpop.f32.mrb[137].mxu1  ;;  %v7817_v26 = vpop.f32.mrb[110].mxu0 }
 0x5d1   : > { %v7922_v60 = vadd.f32 %v7921_v39, %v7920_v43  ;;  %v7923_v35 = vpop.f32.mrb[138].mxu1  ;;  %v7818_v11 = vpop.f32.mrb[111].mxu0 }
 0x5d2   : > { %v5775_v46 = vadd.f32 %v7816_v42, %v10619_v53  ;;  %v7819_v10 = vadd.f32 %v7818_v11, %v7817_v26  ;;  %v7924_v12 = vpop.f32.mrb[139].mxu1 }
 0x5d3   : > { %v7925_v62 = vadd.f32 %v7924_v12, %v7923_v35  ;;  %v10711_v30 = vadd.f32 %v7922_v60, %v5767_v45 }
 0x5d4   : > { %v5778_v38 = vadd.f32 %v7819_v10, %v10621_v16 }
 0x5d5   : > { %v10714_v3 = vadd.f32 %v7925_v62, %v5770_v18 }
 0x5d6   : > { %v7820_v19 = vpop.f32.mrb[112].mxu0 }
 0x5d7   : > { %v7926_v44 = vpop.f32.mrb[140].mxu1  ;;  %v7821_v57 = vpop.f32.mrb[113].mxu0 }
 0x5d8   : > { %v7822_v41 = vadd.f32 %v7821_v57, %v7820_v19  ;;  %v7927_v32 = vpop.f32.mrb[141].mxu1  ;;  %v7823_v7 = vpop.f32.mrb[114].mxu0 }
 0x5d9   : > { %v7928_v29 = vadd.f32 %v7927_v32, %v7926_v44  ;;  %v7929_v61 = vpop.f32.mrb[142].mxu1  ;;  %v7824_v63 = vpop.f32.mrb[115].mxu0 }
 0x5da   : > { %v5783_v53 = vadd.f32 %v7822_v41, %v10625_v37  ;;  %v7825_v9 = vadd.f32 %v7824_v63, %v7823_v7  ;;  %v7930_v59 = vpop.f32.mrb[143].mxu1 }
 0x5db   : > { %v7931_v50 = vadd.f32 %v7930_v59, %v7929_v61  ;;  %v10717_v33 = vadd.f32 %v7928_v29, %v5775_v46 }
 0x5dc   : > { %v5786_v16 = vadd.f32 %v7825_v9, %v10627_v6 }
 0x5dd   : > { %v10720_v45 = vadd.f32 %v7931_v50, %v5778_v38 }
 0x5de   : > { %v7826_v54 = vpop.f32.mrb[116].mxu0 }
 0x5df   : > { %v7932_v52 = vpop.f32.mrb[144].mxu1  ;;  %v7827_v4 = vpop.f32.mrb[117].mxu0 }
 0x5e0   : > { %v7828_v18 = vadd.f32 %v7827_v4, %v7826_v54  ;;  %v7933_v36 = vpop.f32.mrb[145].mxu1  ;;  %v7829_v43 = vpop.f32.mrb[118].mxu0 }
 0x5e1   : > { %v7934_v17 = vadd.f32 %v7933_v36, %v7932_v52  ;;  %v7935_v42 = vpop.f32.mrb[146].mxu1  ;;  %v7830_v39 = vpop.f32.mrb[119].mxu0 }
 0x5e2   : > { %v5791_v37 = vadd.f32 %v7828_v18, %v10631_v1  ;;  %v7831_v26 = vadd.f32 %v7830_v39, %v7829_v43  ;;  %v7936_v60 = vpop.f32.mrb[147].mxu1 }
 0x5e3   : > { %v7937_v35 = vadd.f32 %v7936_v60, %v7935_v42  ;;  %v10723_v11 = vadd.f32 %v7934_v17, %v5783_v53 }
 0x5e4   : > { %v5794_v6 = vadd.f32 %v7831_v26, %v10633_v55 }
 0x5e5   : > { %v10726_v46 = vadd.f32 %v7937_v35, %v5786_v16 }
 0x5e6   : > { %v7832_v10 = vpop.f32.mrb[120].mxu0 }
 0x5e7   : > { %v7938_v12 = vpop.f32.mrb[148].mxu1  ;;  %v7833_v62 = vpop.f32.mrb[121].mxu0 }
 0x5e8   : > { %v7834_v38 = vadd.f32 %v7833_v62, %v7832_v10  ;;  %v7939_v19 = vpop.f32.mrb[149].mxu1  ;;  %v7835_v44 = vpop.f32.mrb[122].mxu0 }
 0x5e9   : > { %v7940_v57 = vadd.f32 %v7939_v19, %v7938_v12  ;;  %v7941_v41 = vpop.f32.mrb[150].mxu1  ;;  %v7836_v32 = vpop.f32.mrb[123].mxu0 }
 0x5ea   : > { %v5799_v1 = vadd.f32 %v7834_v38, %v10637_v51  ;;  %v7837_v7 = vadd.f32 %v7836_v32, %v7835_v44  ;;  %v7942_v29 = vpop.f32.mrb[151].mxu1 }
 0x5eb   : > { %v7943_v61 = vadd.f32 %v7942_v29, %v7941_v41  ;;  %v10729_v63 = vadd.f32 %v7940_v57, %v5791_v37 }
 0x5ec   : > { %v5802_v55 = vadd.f32 %v7837_v7, %v10640_v49 }
 0x5ed   : > { %v10732_v53 = vadd.f32 %v7943_v61, %v5794_v6 }
 0x5ee   : > { %v7838_v9 = vpop.f32.mrb[124].mxu0 }
 0x5ef   : > { %v7944_v59 = vpop.f32.mrb[152].mxu1  ;;  %v7839_v50 = vpop.f32.mrb[125].mxu0 }
 0x5f0   : > { %v7840_v16 = vadd.f32 %v7839_v50, %v7838_v9  ;;  %v7945_v54 = vpop.f32.mrb[153].mxu1  ;;  %v7841_v52 = vpop.f32.mrb[126].mxu0 }
 0x5f1   : > { %v7946_v4 = vadd.f32 %v7945_v54, %v7944_v59  ;;  %v7947_v18 = vpop.f32.mrb[154].mxu1  ;;  %v7842_v36 = vpop.f32.mrb[127].mxu0 }
 0x5f2   : > { %v5807_v51 = vadd.f32 %v7840_v16, %v10644_v34  ;;  %v7843_v43 = vadd.f32 %v7842_v36, %v7841_v52  ;;  %v7948_v17 = vpop.f32.mrb[155].mxu1 }
 0x5f3   : > { %v7949_v42 = vadd.f32 %v7948_v17, %v7947_v18  ;;  %v10735_v39 = vadd.f32 %v7946_v4, %v5799_v1 }
 0x5f4   : > { %v5810_v49 = vadd.f32 %v7843_v43, %v10646_v20 }
 0x5f5   : > { %v10738_v37 = vadd.f32 %v7949_v42, %v5802_v55 }
 0x5f6   : > { %v7844_v26 = vpop.f32.mrb[128].mxu0 }
 0x5f7   : > { %v7950_v60 = vpop.f32.mrb[156].mxu1  ;;  %v7845_v35 = vpop.f32.mrb[129].mxu0 }
 0x5f8   : > { %v7846_v6 = vadd.f32 %v7845_v35, %v7844_v26  ;;  %v7951_v10 = vpop.f32.mrb[157].mxu1  ;;  %v7847_v12 = vpop.f32.mrb[130].mxu0 }
 0x5f9   : > { %v7952_v62 = vadd.f32 %v7951_v10, %v7950_v60  ;;  %v7953_v38 = vpop.f32.mrb[158].mxu1  ;;  %v7848_v19 = vpop.f32.mrb[131].mxu0 }
 0x5fa   : > { %v5815_v34 = vadd.f32 %v7846_v6, %v10650_v40  ;;  %v7849_v44 = vadd.f32 %v7848_v19, %v7847_v12  ;;  %v7954_v57 = vpop.f32.mrb[159].mxu1 }
 0x5fb   : > { %v7955_v41 = vadd.f32 %v7954_v57, %v7953_v38  ;;  %v10741_v32 = vadd.f32 %v7952_v62, %v5807_v51 }
 0x5fc   : > { %v5818_v20 = vadd.f32 %v7849_v44, %v10652_v21 }
 0x5fd   : > { %v10744_v1 = vadd.f32 %v7955_v41, %v5810_v49 }
 0x5fe   : > { %v7850_v7 = vpop.f32.mrb[132].mxu0 }
 0x5ff   : > { %v7956_v29 = vpop.f32.mrb[160].mxu1  ;;  %v7851_v61 = vpop.f32.mrb[133].mxu0 }
 0x600   : > { %v7852_v55 = vadd.f32 %v7851_v61, %v7850_v7  ;;  %v7957_v9 = vpop.f32.mrb[161].mxu1  ;;  %v7853_v59 = vpop.f32.mrb[134].mxu0 }
 0x601   : > { %v7958_v50 = vadd.f32 %v7957_v9, %v7956_v29  ;;  %v7959_v16 = vpop.f32.mrb[162].mxu1  ;;  %v7854_v54 = vpop.f32.mrb[135].mxu0 }
 0x602   : > { %v5823_v40 = vadd.f32 %v7852_v55, %v10656_v28  ;;  %v7855_v52 = vadd.f32 %v7854_v54, %v7853_v59  ;;  %v7960_v4 = vpop.f32.mrb[163].mxu1 }
 0x603   : > { %v7961_v18 = vadd.f32 %v7960_v4, %v7959_v16  ;;  %v10747_v36 = vadd.f32 %v7958_v50, %v5815_v34 }
 0x604   : > { %v5826_v21 = vadd.f32 %v7855_v52, %v10658_v8 }
 0x605   : > { %v10750_v51 = vadd.f32 %v7961_v18, %v5818_v20 }
 0x606   : > { %v7856_v43 = vpop.f32.mrb[136].mxu0 }
 0x607   : > { %v7962_v17 = vpop.f32.mrb[164].mxu1  ;;  %v7857_v42 = vpop.f32.mrb[137].mxu0 }
 0x608   : > { %v7858_v49 = vadd.f32 %v7857_v42, %v7856_v43  ;;  %v7963_v26 = vpop.f32.mrb[165].mxu1  ;;  %v7859_v60 = vpop.f32.mrb[138].mxu0 }
 0x609   : > { %v7964_v35 = vadd.f32 %v7963_v26, %v7962_v17  ;;  %v7965_v6 = vpop.f32.mrb[166].mxu1  ;;  %v7860_v10 = vpop.f32.mrb[139].mxu0 }
 0x60a   : > { %v5831_v28 = vadd.f32 %v7858_v49, %v10662_v0  ;;  %v7861_v12 = vadd.f32 %v7860_v10, %v7859_v60  ;;  %v7966_v62 = vpop.f32.mrb[167].mxu1 }
 0x60b   : > { %v7967_v38 = vadd.f32 %v7966_v62, %v7965_v6  ;;  %v10753_v19 = vadd.f32 %v7964_v35, %v5823_v40 }
 0x60c   : > { %v5834_v8 = vadd.f32 %v7861_v12, %v10664_v22 }
 0x60d   : > { %v10756_v34 = vadd.f32 %v7967_v38, %v5826_v21 }
 0x60e   : > { %v7862_v44 = vpop.f32.mrb[140].mxu0 }
 0x60f   : > { %v7968_v57 = vpop.f32.mrb[168].mxu1  ;;  %v7863_v41 = vpop.f32.mrb[141].mxu0 }
 0x610   : > { %v7864_v20 = vadd.f32 %v7863_v41, %v7862_v44  ;;  %v7969_v7 = vpop.f32.mrb[169].mxu1  ;;  %v7865_v29 = vpop.f32.mrb[142].mxu0 }
 0x611   : > { %v7970_v61 = vadd.f32 %v7969_v7, %v7968_v57  ;;  %v7971_v55 = vpop.f32.mrb[170].mxu1  ;;  %v7866_v9 = vpop.f32.mrb[143].mxu0 }
 0x612   : > { %v5839_v0 = vadd.f32 %v7864_v20, %v10669_v2  ;;  %v7867_v59 = vadd.f32 %v7866_v9, %v7865_v29  ;;  %v7972_v50 = vpop.f32.mrb[171].mxu1 }
 0x613   : > { %v7973_v16 = vadd.f32 %v7972_v50, %v7971_v55  ;;  %v10759_v54 = vadd.f32 %v7970_v61, %v5831_v28 }
 0x614   : > { %v5842_v22 = vadd.f32 %v7867_v59, %v10672_v27 }
 0x615   : > { %v10762_v40 = vadd.f32 %v7973_v16, %v5834_v8 }
 0x616   : > { %v8118_v52 = vpop.f32.mrb[144].mxu0 }
 0x617   : > { %v7974_v4 = vpop.f32.mrb[172].mxu1  ;;  %v6049_v18 = vadd.f32 %v8118_v52, %v10681_v31  ;;  %v6040_v21 = vpop.f32.mrb[145].mxu0 }
 0x618   : > { %v7975_v43 = vpop.f32.mrb[173].mxu1  ;;  %v6041_v17 = vadd.f32 %v6040_v21, %v10675_v15  ;;  %v8119_v42 = vpop.f32.mrb[146].mxu0 }
 0x619   : > { %8464 = vtanh.f32 %v6049_v18  ;;  %v7976_v2 = vadd.f32 %v7975_v43, %v7974_v4  ;;  %v7977_v49 = vpop.f32.mrb[174].mxu1  ;;  %v6052_v26 = vadd.f32 %v8119_v42, %v10684_v24  ;;  %v6043_v60 = vpop.f32.mrb[147].mxu0 }
 0x61a   : > { %8466 = vtanh.f32 %v6041_v17  ;;  %v7978_v35 = vpop.f32.mrb[175].mxu1  ;;  %v6044_v27 = vadd.f32 %v6043_v60, %v10678_v58 }
 0x61b   : > { %8468 = vtanh.f32 %v6052_v26  ;;  %v7979_v6 = vadd.f32 %v7978_v35, %v7977_v49  ;;  %v10768_v10 = vadd.f32 %v7976_v2, %v5839_v0 }
 0x61c   : > { %8470 = vtanh.f32 %v6044_v27 }
 0x61d   : > { %v10770_v31 = vadd.f32 %v7979_v6, %v5842_v22 }
 0x61e   : > { %v8122_v15 = vpop.f32.mrb[148].mxu0 }
 0x61f   : > { %v6065_v28 = vadd.f32 %v8122_v15, %v10693_v25  ;;  %v6056_v12 = vpop.f32.mrb[149].mxu0 }
 0x620   : > { %v6057_v62 = vadd.f32 %v6056_v12, %v10687_v56  ;;  %v8123_v24 = vpop.f32.mrb[150].mxu0 }
 0x621   : > { %8472 = vtanh.f32 %v6065_v28  ;;  %v6068_v38 = vadd.f32 %v8123_v24, %v10696_v48  ;;  %v6059_v8 = vpop.f32.mrb[151].mxu0 }
 0x622   : > { %8474 = vtanh.f32 %v6057_v62  ;;  %v6060_v58 = vadd.f32 %v6059_v8, %v10690_v23 }
 0x623   : > { %v8465_v44 = vpop.eup %8464  ;;  %8476 = vtanh.f32 %v6068_v38 }
 0x624   : > { %v8467_v57 = vpop.eup %8466  ;;  %6201 = vst [vmem:[%s10778_s15 + $0x10] sm:$0xff] %v8465_v44  ;;  %8478 = vtanh.f32 %v6060_v58 }
 0x625   : > { %v8469_v56 = vpop.eup %8468  ;;  %6199 = vst [vmem:[%s10778_s15] sm:$0xff] %v8467_v57 }
 0x626   : > { %v8471_v25 = vpop.eup %8470  ;;  %6202 = vst [vmem:[%s10778_s15 + $0x18] sm:$0xff] %v8469_v56  ;;  %v8126_v48 = vpop.f32.mrb[152].mxu0 }
 0x627   : > { %6200 = vst [vmem:[%s10778_s15 + $0x8] sm:$0xff] %v8471_v25  ;;  %v6081_v23 = vadd.f32 %v8126_v48, %v10705_v14  ;;  %v6072_v41 = vpop.f32.mrb[153].mxu0 }
 0x628   : > { %v6073_v20 = vadd.f32 %v6072_v41, %v10699_v5  ;;  %v8127_v7 = vpop.f32.mrb[154].mxu0 }
 0x629   : > { %8480 = vtanh.f32 %v6081_v23  ;;  %v6084_v29 = vadd.f32 %v8127_v7, %v10708_v47  ;;  %v6075_v61 = vpop.f32.mrb[155].mxu0 }
 0x62a   : > { %8482 = vtanh.f32 %v6073_v20  ;;  %v6076_v55 = vadd.f32 %v6075_v61, %v10702_v13 }
 0x62b   : > { %v8473_v9 = vpop.eup %8472  ;;  %8484 = vtanh.f32 %v6084_v29 }
 0x62c   : > { %v8475_v0 = vpop.eup %8474  ;;  %6205 = vst [vmem:[%s10778_s15 + $0x30] sm:$0xff] %v8473_v9  ;;  %8486 = vtanh.f32 %v6076_v55 }
 0x62d   : > { %v8477_v59 = vpop.eup %8476  ;;  %6203 = vst [vmem:[%s10778_s15 + $0x20] sm:$0xff] %v8475_v0 }
 0x62e   : > { %v8479_v14 = vpop.eup %8478  ;;  %6206 = vst [vmem:[%s10778_s15 + $0x38] sm:$0xff] %v8477_v59  ;;  %v8130_v5 = vpop.f32.mrb[156].mxu0 }
 0x62f   : > { %6204 = vst [vmem:[%s10778_s15 + $0x28] sm:$0xff] %v8479_v14  ;;  %v6097_v50 = vadd.f32 %v8130_v5, %v10717_v33  ;;  %v6088_v47 = vpop.f32.mrb[157].mxu0 }
 0x630   : > { %v6089_v16 = vadd.f32 %v6088_v47, %v10711_v30  ;;  %v8131_v13 = vpop.f32.mrb[158].mxu0 }
 0x631   : > { %8488 = vtanh.f32 %v6097_v50  ;;  %v6100_v22 = vadd.f32 %v8131_v13, %v10720_v45  ;;  %v6091_v52 = vpop.f32.mrb[159].mxu0 }
 0x632   : > { %8490 = vtanh.f32 %v6089_v16  ;;  %v6092_v4 = vadd.f32 %v6091_v52, %v10714_v3 }
 0x633   : > { %v8481_v18 = vpop.eup %8480  ;;  %8492 = vtanh.f32 %v6100_v22 }
 0x634   : > { %v8483_v21 = vpop.eup %8482  ;;  %6209 = vst [vmem:[%s10778_s15 + $0x50] sm:$0xff] %v8481_v18  ;;  %8494 = vtanh.f32 %v6092_v4 }
 0x635   : > { %v8485_v43 = vpop.eup %8484  ;;  %6207 = vst [vmem:[%s10778_s15 + $0x40] sm:$0xff] %v8483_v21 }
 0x636   : > { %v8487_v33 = vpop.eup %8486  ;;  %6210 = vst [vmem:[%s10778_s15 + $0x58] sm:$0xff] %v8485_v43  ;;  %v8134_v30 = vpop.f32.mrb[160].mxu0 }
 0x637   : > { %6208 = vst [vmem:[%s10778_s15 + $0x48] sm:$0xff] %v8487_v33  ;;  %v6113_v17 = vadd.f32 %v8134_v30, %v10729_v63  ;;  %v6104_v45 = vpop.f32.mrb[161].mxu0 }
 0x638   : > { %v6105_v42 = vadd.f32 %v6104_v45, %v10723_v11  ;;  %v8135_v3 = vpop.f32.mrb[162].mxu0 }
 0x639   : > { %8496 = vtanh.f32 %v6113_v17  ;;  %v6116_v2 = vadd.f32 %v8135_v3, %v10732_v53  ;;  %v6107_v49 = vpop.f32.mrb[163].mxu0 }
 0x63a   : > { %8498 = vtanh.f32 %v6105_v42  ;;  %v6108_v26 = vadd.f32 %v6107_v49, %v10726_v46 }
 0x63b   : > { %v8489_v60 = vpop.eup %8488  ;;  %8500 = vtanh.f32 %v6116_v2 }
 0x63c   : > { %v8491_v35 = vpop.eup %8490  ;;  %6213 = vst [vmem:[%s10778_s15 + $0x70] sm:$0xff] %v8489_v60  ;;  %8502 = vtanh.f32 %v6108_v26 }
 0x63d   : > { %v8493_v27 = vpop.eup %8492  ;;  %6211 = vst [vmem:[%s10778_s15 + $0x60] sm:$0xff] %v8491_v35 }
 0x63e   : > { %v8495_v63 = vpop.eup %8494  ;;  %6214 = vst [vmem:[%s10778_s15 + $0x78] sm:$0xff] %v8493_v27  ;;  %v8138_v11 = vpop.f32.mrb[164].mxu0 }
 0x63f   : > { %6212 = vst [vmem:[%s10778_s15 + $0x68] sm:$0xff] %v8495_v63  ;;  %v6129_v6 = vadd.f32 %v8138_v11, %v10741_v32  ;;  %v6120_v53 = vpop.f32.mrb[165].mxu0 }
 0x640   : > { %v6121_v15 = vadd.f32 %v6120_v53, %v10735_v39  ;;  %v8139_v46 = vpop.f32.mrb[166].mxu0 }
 0x641   : > { %8504 = vtanh.f32 %v6129_v6  ;;  %v6132_v28 = vadd.f32 %v8139_v46, %v10744_v1  ;;  %v6123_v12 = vpop.f32.mrb[167].mxu0 }
 0x642   : > { %8506 = vtanh.f32 %v6121_v15  ;;  %v6124_v62 = vadd.f32 %v6123_v12, %v10738_v37 }
 0x643   : > { %v8497_v24 = vpop.eup %8496  ;;  %8508 = vtanh.f32 %v6132_v28 }
 0x644   : > { %v8499_v38 = vpop.eup %8498  ;;  %6217 = vst [vmem:[%s10778_s15 + $0x90] sm:$0xff] %v8497_v24  ;;  %8510 = vtanh.f32 %v6124_v62 }
 0x645   : > { %v8501_v8 = vpop.eup %8500  ;;  %6215 = vst [vmem:[%s10778_s15 + $0x80] sm:$0xff] %v8499_v38 }
 0x646   : > { %v8503_v32 = vpop.eup %8502  ;;  %6218 = vst [vmem:[%s10778_s15 + $0x98] sm:$0xff] %v8501_v8  ;;  %v8142_v39 = vpop.f32.mrb[168].mxu0 }
 0x647   : > { %6216 = vst [vmem:[%s10778_s15 + $0x88] sm:$0xff] %v8503_v32  ;;  %v6145_v58 = vadd.f32 %v8142_v39, %v10753_v19  ;;  %v6136_v1 = vpop.f32.mrb[169].mxu0 }
 0x648   : > { %v6137_v44 = vadd.f32 %v6136_v1, %v10747_v36  ;;  %v8143_v37 = vpop.f32.mrb[170].mxu0 }
 0x649   : > { %8512 = vtanh.f32 %v6145_v58  ;;  %v6148_v57 = vadd.f32 %v8143_v37, %v10756_v34  ;;  %v6139_v56 = vpop.f32.mrb[171].mxu0 }
 0x64a   : > { %8514 = vtanh.f32 %v6137_v44  ;;  %v6140_v25 = vadd.f32 %v6139_v56, %v10750_v51 }
 0x64b   : > { %v8505_v48 = vpop.eup %8504  ;;  %8516 = vtanh.f32 %v6148_v57 }
 0x64c   : > { %v8507_v23 = vpop.eup %8506  ;;  %6221 = vst [vmem:[%s10778_s15 + $0xb0] sm:$0xff] %v8505_v48  ;;  %8518 = vtanh.f32 %v6140_v25 }
 0x64d   : > { %v8509_v41 = vpop.eup %8508  ;;  %6219 = vst [vmem:[%s10778_s15 + $0xa0] sm:$0xff] %v8507_v23 }
 0x64e   : > { %v8511_v19 = vpop.eup %8510  ;;  %6222 = vst [vmem:[%s10778_s15 + $0xb8] sm:$0xff] %v8509_v41  ;;  %v8146_v36 = vpop.f32.mrb[172].mxu0 }
 0x64f   : > { %6220 = vst [vmem:[%s10778_s15 + $0xa8] sm:$0xff] %v8511_v19  ;;  %v6161_v20 = vadd.f32 %v8146_v36, %v10768_v10  ;;  %v6152_v34 = vpop.f32.mrb[173].mxu0 }
 0x650   : > { %v6153_v7 = vadd.f32 %v6152_v34, %v10759_v54  ;;  %v8147_v51 = vpop.f32.mrb[174].mxu0 }
 0x651   : > { %8520 = vtanh.f32 %v6161_v20  ;;  %v6164_v29 = vadd.f32 %v8147_v51, %v10770_v31  ;;  %v6155_v61 = vpop.f32.mrb[175].mxu0 }
 0x652   : > { %8522 = vtanh.f32 %v6153_v7  ;;  %v6156_v55 = vadd.f32 %v6155_v61, %v10762_v40 }
 0x653   : > { %v8513_v9 = vpop.eup %8512  ;;  %8524 = vtanh.f32 %v6164_v29 }
 0x654   : > { %v8515_v0 = vpop.eup %8514  ;;  %6225 = vst [vmem:[%s10778_s15 + $0xd0] sm:$0xff] %v8513_v9  ;;  %8526 = vtanh.f32 %v6156_v55 }
 0x655   : > { %v8517_v54 = vpop.eup %8516  ;;  %6223 = vst [vmem:[%s10778_s15 + $0xc0] sm:$0xff] %v8515_v0 }
 0x656   : > { %v8519_v10 = vpop.eup %8518  ;;  %6226 = vst [vmem:[%s10778_s15 + $0xd8] sm:$0xff] %v8517_v54 }
 0x657   : > { %6224 = vst [vmem:[%s10778_s15 + $0xc8] sm:$0xff] %v8519_v10 }
 0x65b   : > { %v8521_v31 = vpop.eup %8520 }
 0x65c   : > { %v8523_v59 = vpop.eup %8522  ;;  %6229 = vst [vmem:[%s10778_s15 + $0xf0] sm:$0xff] %v8521_v31 }
 0x65d   : > { %v8525_v40 = vpop.eup %8524  ;;  %6227 = vst [vmem:[%s10778_s15 + $0xe0] sm:$0xff] %v8523_v59 }
 0x65e   : > { %v8527_v14 = vpop.eup %8526  ;;  %6230 = vst [vmem:[%s10778_s15 + $0xf8] sm:$0xff] %v8525_v40 }
 0x65f   : > { %6228 = vst [vmem:[%s10778_s15 + $0xe8] sm:$0xff] %v8527_v14 }
 0x660   : > { %8658 = shalt.err (!%p8655_p4)
}
 0x661   : > { %s8659_s23 = scalar_lea.hbm %s10838_s16, 4096  ;;  %s8663_s14 = scalar_lea.hbm %s10894_s7, 8192 }
 0x662   : > { %p8660_p9 = scmp.ne.s32.totalorder %s10838_s16, %s8659_s23  ;;  %p8664_p8 = scmp.lt.u32.totalorder %s10838_s16, %s10894_s7 }
 0x663   : > { %p8665_p13 = scmp.lt.u32.totalorder %s8663_s14, %s8659_s23  ;;  %p8667_p10 = scmp.lt.u32.totalorder %s8659_s23, %s10838_s16 }
 0x664   : > { %p8661_p0 = pnand %p8660_p9, %p8927_p5 }
 0x665   : > { %p8666_p6 = por %p8665_p13, %p8664_p8 }
 0x666   : > { %p8662_p11 = pneg %p8661_p0 }
 0x667   : > { %p8668_p3 = por %p8667_p10, %p8666_p6 }
 0x669   : > { %p8669_p7 = pnand %p8668_p3, %p8662_p11 }
 0x66b   : > { %8672 = shalt.err (!%p8669_p7)
}
 0x66c   : > { %s8731_s8 = smov 128   ;;  %s8732_s17 = smov 8  }
 0x66d   : > { %8178 = dma.vmem_to_hbm [thread:$0]  (%p8927_p5), %s10840_s12, 4096, %s10838_s16, %s6232_s28, %s8731_s8, %s8731_s8, %s8732_s17  }
 0x66e PF: > { %s10914_s13 = sld [smem:[#allocation16_spill]]  ;;  %s6260_s20 = sand.u32 1, %s8707_s24  }
 0x66f   : > { %p10916_p1 = scmp.ge.s32.totalorder %s8719_s27, 2  ;;  %s6261_s30 = scalar_lea.sflag [#allocation5], %s6260_s20 }
 0x674   : > { %p10915_p12 = scmp.ne.s32.totalorder %s10914_s13, 0 }
 0x676   : > { %p8195_p2 = pnand %p10916_p1, %p10915_p12 }
 0x678   : > { %8702 = dma.done.wait (!%p8195_p2), %s6261_s30, 4096  }
 0x679   : > { %8704 = vsyncadd (!%p8195_p2), %s6261_s30, 4294963200  ;;  %p22_p4 = scmp.ge.s32.totalorder %s8913_s22, 4   ;;  %s10917_s24 = smov %s8711_s25 }
 0x67a   : > { %s10918_s25 = smov %s8715_s26  ;;  %s10919_s26 = smov %s8923_s18 }
 0x67b   : > { %s10920_s27 = smov %s8913_s22  ;;  %24 = sbr.rel (!%p22_p4) target bundleno = 7 (0x7), region = 108 }
 0x682   :  { %6266 = vsyncpa [#allocation4], 1 }
 0x683   :  { %6268 = vsyncpa [#allocation4 + $0x1], 1 }
 0x684   :  { %6269 = vsyncpa [#allocation7], 1 }
 0x685   :  { %6270 = vsyncpa [#allocation10], 1 }
 0x686   :  { %6271 = vsyncpa [#allocation5], 1 }
 0x687   :  { %6273 = vsyncpa [#allocation5 + $0x1], 1 }

</bundles_post_ra>
